<compile_context>
chip_gen: v6e
topology: v6e:2x2x1
jax: 0.10.0
libtpu: 0.0.40
codegen_flags: <defaults>
</compile_context>

<pallas_src>
import functools

import jax
import jax.numpy as jnp
from jax.experimental import pallas as pl
from jax.experimental.pallas import tpu as pltpu


def _round_up(x, m):
    return (x + m - 1) // m * m


def _taps(ksize, pad):
    return [(kh * ksize + kw, kh - pad, kw - pad)
            for kh in range(ksize) for kw in range(ksize)]


def _tap_value(v, dh, dw, width, n, mask_row):
    """v: (C, N) value laid out as flattened (H, W) on lanes.
    Returns t with t[:, n] = v[:, n + dh*W + dw] where the spatial offset is valid,
    and 0 elsewhere (mask_row is the precomputed (1, N) validity mask)."""
    if dh == 0 and dw == 0:
        return v
    d = dh * width + dw
    return jnp.roll(v, -d, axis=-1) * mask_row


# ----------------------------- Pallas kernels -----------------------------

def _convlstm_layer_kernel(x_ref, wx_ref, wh_ref, b_ref, wci_ref, wcf_ref,
                           wco_ref, scale_ref, shift_ref, mask_ref,
                           h_out_ref, sum_ref, sumsq_ref,
                           xacc_ref, colx_ref, colh_ref, h_ref, c_ref,
                           *, ksize, pad, width, activation):
    """One full batch element of a ConvLSTM layer (all T timesteps).

    x_ref    : (T, Cin, N)        previous-layer raw output, N = H*W on lanes
    wx_ref   : (4*Cout, KXpad)    bf16 input-tap weights (zero-padded K columns)
    wh_ref   : (4*Cout, KHpad)    bf16 hidden-tap weights
    b_ref    : (4*Cout, 1)        gate bias
    wci/wcf/wco_ref : (Cout, N)   peephole Hadamard weights
    scale/shift_ref : (Cin, 1)    folded BatchNorm of the previous layer
    mask_ref : (ksize*ksize, N)   per-tap spatial validity masks (0/1 f32)
    h_out_ref: (T, Cout, N)       raw hidden states (pre-BN)
    sum/sumsq_ref : (Cout, N)     BatchNorm batch-statistic accumulators
    scratch  : xacc (T,4*Cout,N) f32, colx (KXpad,N) bf16, colh (KHpad,N) bf16,
               h (Cout,N) f32, c (Cout,N) f32
    """
    T, Cin, N = x_ref.shape
    Cout = h_ref.shape[0]
    taps = _taps(ksize, pad)
    act = jnp.tanh if activation == "tanh" else (lambda v: jnp.maximum(v, 0.0))

    # Per-batch-element init (one grid step == one batch element).
    colx_ref[...] = jnp.zeros_like(colx_ref)   # K-padding rows stay zero forever
    colh_ref[...] = jnp.zeros_like(colh_ref)
    h_ref[...] = jnp.zeros_like(h_ref)         # H_0 = 0
    c_ref[...] = jnp.zeros_like(c_ref)         # C_0 = 0
    sum_ref[...] = jnp.zeros_like(sum_ref)
    sumsq_ref[...] = jnp.zeros_like(sumsq_ref)

    # ---- phase 0: input (X) projection for every timestep, outside the recurrence.
    def x_proj(t, carry):
        xt = x_ref[t] * scale_ref[...] + shift_ref[...]   # fold previous-layer BN
        for k, dh, dw in taps:
            tap = _tap_value(xt, dh, dw, width, N, mask_ref[k:k + 1, :])
            colx_ref[k * Cin:(k + 1) * Cin, :] = tap.astype(jnp.bfloat16)
        xacc_ref[t] = (jnp.dot(wx_ref[...], colx_ref[...],
                               preferred_element_type=jnp.float32)
                       + b_ref[...])
        return carry

    jax.lax.fori_loop(0, T, x_proj, 0)

    # ---- phase 1: ConvLSTM recurrence; only the 9 H-taps are in the serial chain.
    def step(t, carry):
        h = h_ref[...]
        for k, dh, dw in taps:
            tap = _tap_value(h, dh, dw, width, N, mask_ref[k:k + 1, :])
            colh_ref[k * Cout:(k + 1) * Cout, :] = tap.astype(jnp.bfloat16)
        acc = xacc_ref[t] + jnp.dot(wh_ref[...], colh_ref[...],
                                    preferred_element_type=jnp.float32)

        # Gates in torch.chunk order i, f, c, o (f32 elementwise / state math).
        c_prev = c_ref[...]
        i_g = jax.nn.sigmoid(acc[0 * Cout:1 * Cout, :] + wci_ref[...] * c_prev)
        f_g = jax.nn.sigmoid(acc[1 * Cout:2 * Cout, :] + wcf_ref[...] * c_prev)
        c_new = f_g * c_prev + i_g * act(acc[2 * Cout:3 * Cout, :])
        o_g = jax.nn.sigmoid(acc[3 * Cout:4 * Cout, :] + wco_ref[...] * c_new)
        h_new = o_g * act(c_new)

        c_ref[...] = c_new
        h_ref[...] = h_new
        h_out_ref[t] = h_new

        # Fused BatchNorm3d batch statistics, accumulated lane-dense on-chip.
        sum_ref[...] += h_new
        sumsq_ref[...] += h_new * h_new
        return carry

    jax.lax.fori_loop(0, T, step, 0)


def _final_conv_kernel(x_ref, w_ref, b_ref, scale_ref, shift_ref, mask_ref,
                       out_ref, col_ref, *, ksize, pad, width):
    """Final Conv2d + Sigmoid on one batch element's last timestep.
    The last BatchNorm3d is folded in via (scale, shift) before padding."""
    Cin, N = x_ref.shape
    taps = _taps(ksize, pad)

    col_ref[...] = jnp.zeros_like(col_ref)
    y = x_ref[...] * scale_ref[...] + shift_ref[...]
    for k, dh, dw in taps:
        tap = _tap_value(y, dh, dw, width, N, mask_ref[k:k + 1, :])
        col_ref[k * Cin:(k + 1) * Cin, :] = tap.astype(jnp.bfloat16)

    acc = (jnp.dot(w_ref[...], col_ref[...],
                   preferred_element_type=jnp.float32) + b_ref[...])
    out_ref[...] = jax.nn.sigmoid(acc)


# ----------------------------- JAX wrappers -----------------------------

def _convlstm_layer(x, wx, wh, bias, wci, wcf, wco, scale, shift, masks,
                    *, ksize, pad, width, activation):
    """x: (B, T, Cin, N). Returns (hs (B,T,Cout,N), sum (B,Cout,N), sumsq (B,Cout,N))."""
    B, T, Cin, N = x.shape
    Cout = wci.shape[0]
    kx_pad = wx.shape[1]
    kh_pad = wh.shape[1]

    kernel = functools.partial(_convlstm_layer_kernel, ksize=ksize, pad=pad,
                               width=width, activation=activation)
    return pl.pallas_call(
        kernel,
        grid=(B,),
        in_specs=[
            pl.BlockSpec((pl.Squeezed(), T, Cin, N), lambda b: (b, 0, 0, 0)),
            pl.BlockSpec((4 * Cout, kx_pad), lambda b: (0, 0)),     # resident
            pl.BlockSpec((4 * Cout, kh_pad), lambda b: (0, 0)),     # resident
            pl.BlockSpec((4 * Cout, 1), lambda b: (0, 0)),          # resident
            pl.BlockSpec((Cout, N), lambda b: (0, 0)),              # resident
            pl.BlockSpec((Cout, N), lambda b: (0, 0)),              # resident
            pl.BlockSpec((Cout, N), lambda b: (0, 0)),              # resident
            pl.BlockSpec((Cin, 1), lambda b: (0, 0)),               # resident
            pl.BlockSpec((Cin, 1), lambda b: (0, 0)),               # resident
            pl.BlockSpec((ksize * ksize, N), lambda b: (0, 0)),     # resident
        ],
        out_specs=(
            pl.BlockSpec((pl.Squeezed(), T, Cout, N), lambda b: (b, 0, 0, 0)),
            pl.BlockSpec((pl.Squeezed(), Cout, N), lambda b: (b, 0, 0)),
            pl.BlockSpec((pl.Squeezed(), Cout, N), lambda b: (b, 0, 0)),
        ),
        out_shape=(
            jax.ShapeDtypeStruct((B, T, Cout, N), jnp.float32),
            jax.ShapeDtypeStruct((B, Cout, N), jnp.float32),
            jax.ShapeDtypeStruct((B, Cout, N), jnp.float32),
        ),
        scratch_shapes=[
            pltpu.VMEM((T, 4 * Cout, N), jnp.float32),   # X projection for all T
            pltpu.VMEM((kx_pad, N), jnp.bfloat16),       # im2col buffer, X taps
            pltpu.VMEM((kh_pad, N), jnp.bfloat16),       # im2col buffer, H taps
            pltpu.VMEM((Cout, N), jnp.float32),          # hidden state
            pltpu.VMEM((Cout, N), jnp.float32),          # cell state
        ],
        compiler_params=pltpu.CompilerParams(
            dimension_semantics=("parallel",),
            vmem_limit_bytes=32 * 1024 * 1024),
    )(x, wx, wh, bias, wci, wcf, wco, scale, shift, masks)


def _final_conv(x, w, b, scale, shift, masks, *, ksize, pad, width):
    """x: (B, Cin, N) raw last-layer h at t=-1 -> (B, Cnum, N) sigmoid(conv)."""
    B, Cin, N = x.shape
    Cnum = w.shape[0]
    k_pad = w.shape[1]
    return pl.pallas_call(
        functools.partial(_final_conv_kernel, ksize=ksize, pad=pad, width=width),
        grid=(B,),
        in_specs=[
            pl.BlockSpec((pl.Squeezed(), Cin, N), lambda b: (b, 0, 0)),
            pl.BlockSpec((Cnum, k_pad), lambda b: (0, 0)),
            pl.BlockSpec((Cnum, 1), lambda b: (0, 0)),
            pl.BlockSpec((Cin, 1), lambda b: (0, 0)),
            pl.BlockSpec((Cin, 1), lambda b: (0, 0)),
            pl.BlockSpec((ksize * ksize, N), lambda b: (0, 0)),
        ],
        out_specs=pl.BlockSpec((pl.Squeezed(), Cnum, N), lambda b: (b, 0, 0)),
        out_shape=jax.ShapeDtypeStruct((B, Cnum, N), jnp.float32),
        scratch_shapes=[pltpu.VMEM((k_pad, N), jnp.bfloat16)],
        compiler_params=pltpu.CompilerParams(
            dimension_semantics=("parallel",),
            vmem_limit_bytes=32 * 1024 * 1024),
    )(x, w, b, scale, shift, masks)


def _conv_masks(H, W, ksize, pad):
    """(ksize*ksize, H*W) f32: 1 where the tap's source pixel is in-bounds."""
    n = jnp.arange(H * W)
    i_idx = n // W
    j_idx = n % W
    rows = []
    for kh in range(ksize):
        for kw in range(ksize):
            dh, dw = kh - pad, kw - pad
            rows.append((i_idx + dh >= 0) & (i_idx + dh < H)
                        & (j_idx + dw >= 0) & (j_idx + dw < W))
    return jnp.stack(rows).astype(jnp.float32)


def _prep_gate_weights(w, cin, cout, ksize):
    """(k, k, Cin+Cout, 4*Cout) HWIO -> (wx (4*Cout, KXpad), wh (4*Cout, KHpad)) bf16,
    rows/cols ordered (kh, kw)-major then channel, K zero-padded to a 128 multiple."""
    kk = ksize * ksize
    wx = w[:, :, :cin, :].reshape(kk * cin, 4 * cout)
    wh = w[:, :, cin:, :].reshape(kk * cout, 4 * cout)
    kx_pad = _round_up(kk * cin, 128)
    kh_pad = _round_up(kk * cout, 128)
    wx = jnp.pad(wx, ((0, kx_pad - kk * cin), (0, 0))).T
    wh = jnp.pad(wh, ((0, kh_pad - kk * cout), (0, 0))).T
    return wx.astype(jnp.bfloat16), wh.astype(jnp.bfloat16)


def seq2seq_forward(params, x_ncthw, *, padding, activation):
    # Input: PyTorch layout (B, C, T, H, W) -> internal (B, T, C, H*W)
    # (channels on sublanes, flattened spatial on lanes).
    x_ncthw = x_ncthw.astype(jnp.float32)
    B, C0, T, H, W = x_ncthw.shape
    N = H * W
    ksize = params["layers"][0]["w"].shape[0]
    assert 2 * padding == ksize - 1, "ConvLSTM recurrence requires a 'same' conv"
    n_elems = B * T * N

    x = jnp.transpose(x_ncthw, (0, 2, 1, 3, 4)).reshape(B, T, C0, N)
    masks = _conv_masks(H, W, ksize, padding)

    # Folded BatchNorm of the *previous* layer (identity for the first layer).
    scale = jnp.ones((C0, 1), jnp.float32)
    shift = jnp.zeros((C0, 1), jnp.float32)

    for layer in params["layers"]:
        cin = x.shape[2]
        cout = layer["w"].shape[-1] // 4
        wx, wh = _prep_gate_weights(layer["w"], cin, cout, ksize)
        bias = layer["b"].reshape(4 * cout, 1)
        wci = layer["wci"].reshape(N, cout).T
        wcf = layer["wcf"].reshape(N, cout).T
        wco = layer["wco"].reshape(N, cout).T

        hs, s, ss = _convlstm_layer(x, wx, wh, bias, wci, wcf, wco,
                                    scale, shift, masks,
                                    ksize=ksize, pad=padding, width=W,
                                    activation=activation)

        # BatchNorm3d training-mode batch statistics (biased variance, eps=1e-5),
        # folded into an affine (scale, shift) applied by the next consumer kernel.
        mean = jnp.sum(s, axis=(0, 2)) / n_elems
        var = jnp.sum(ss, axis=(0, 2)) / n_elems - mean * mean
        inv = jax.lax.rsqrt(var + 1e-5)
        g = layer["gamma"].reshape(-1)
        be = layer["beta"].reshape(-1)
        scale = (g * inv).reshape(cout, 1)
        shift = (be - mean * g * inv).reshape(cout, 1)
        x = hs

    # Final Conv2d + Sigmoid on the (BN-normalized) last timestep.
    last = x[:, -1]                                       # (B, Cout, N), raw
    kk = ksize * ksize
    cin_f = params["conv_w"].shape[2]
    cnum = params["conv_w"].shape[3]
    kf_pad = _round_up(kk * cin_f, 128)
    wf = jnp.pad(params["conv_w"].reshape(kk * cin_f, cnum),
                 ((0, kf_pad - kk * cin_f), (0, 0))).T.astype(jnp.bfloat16)
    bf = params["conv_b"].reshape(cnum, 1)
    out = _final_conv(last, wf, bf, scale, shift, masks,
                      ksize=ksize, pad=padding, width=W)
    return out.reshape(B, cnum, H, W)                     # NCHW, like torch output


# ----------------------------- parameter init -----------------------------

def init_params(key, num_channels, num_kernels, kernel_size, frame_size,
                num_layers):
    H, W = frame_size
    params = {"layers": []}
    for l in range(num_layers):
        cin = (num_channels if l == 0 else num_kernels) + num_kernels
        key, k1, k2, k3, k4, k5 = jax.random.split(key, 6)
        std = 1.0 / (cin * kernel_size * kernel_size) ** 0.5
        params["layers"].append({
            "w": jax.random.normal(
                k1, (kernel_size, kernel_size, cin, 4 * num_kernels),
                jnp.float32) * std,
            "b": jax.random.normal(k2, (1, 4 * num_kernels), jnp.float32) * 0.01,
            "wci": jax.random.normal(k3, (H, W, num_kernels), jnp.float32) * 0.1,
            "wcf": jax.random.normal(k4, (H, W, num_kernels), jnp.float32) * 0.1,
            "wco": jax.random.normal(k5, (H, W, num_kernels), jnp.float32) * 0.1,
            "gamma": jnp.ones((1, num_kernels), jnp.float32),   # BN defaults
            "beta": jnp.zeros((1, num_kernels), jnp.float32),
        })
    key, k1, k2 = jax.random.split(key, 3)
    std = 1.0 / (num_kernels * kernel_size * kernel_size) ** 0.5
    params["conv_w"] = jax.random.normal(
        k1, (kernel_size, kernel_size, num_kernels, num_channels),
        jnp.float32) * std
    params["conv_b"] = jax.random.normal(k2, (1, num_channels), jnp.float32) * 0.01
    return params
    # TODO(synk): BatchNorm3d running_mean/running_var buffer updates are a
    # training-time side effect and do not affect this forward's output.


# ----------------------------------- main -----------------------------------

if __name__ == "__main__":
    num_channels, num_kernels = 4, 32
    kernel_size, padding = 3, 1
    activation = "tanh"
    frame_size = (16, 16)
    num_layers = 2
    B, T = 2, 8

    key = jax.random.PRNGKey(0)
    kx, kp = jax.random.split(key)
    x = jax.random.normal(kx, (B, num_channels, T, *frame_size), jnp.float32)
    params = init_params(kp, num_channels, num_kernels, kernel_size,
                         frame_size, num_layers)

    fwd = jax.jit(functools.partial(seq2seq_forward, padding=padding,
                                    activation=activation))
    y = fwd(params, x)
    jax.block_until_ready(y)
    assert y.shape == (B, num_channels, *frame_size), y.shape
    assert bool(jnp.all(jnp.isfinite(y)))
    assert bool(jnp.all((y >= 0.0) & (y <= 1.0)))   # sigmoid output range
    print("KERNEL_OK")
</pallas_src>

<mosaic_0001>
module attributes {stable_mosaic.version = 11 : i64} {
  func.func @_convlstm_layer_kernel(%arg0: i32, %arg1: memref<1x8x4x256xf32, #tpu.memory_space<vmem>>, %arg2: memref<128x128xbf16, #tpu.memory_space<vmem>>, %arg3: memref<128x384xbf16, #tpu.memory_space<vmem>>, %arg4: memref<128x1xf32, #tpu.memory_space<vmem>>, %arg5: memref<32x256xf32, #tpu.memory_space<vmem>>, %arg6: memref<32x256xf32, #tpu.memory_space<vmem>>, %arg7: memref<32x256xf32, #tpu.memory_space<vmem>>, %arg8: memref<4x1xf32, #tpu.memory_space<vmem>>, %arg9: memref<4x1xf32, #tpu.memory_space<vmem>>, %arg10: memref<9x256xf32, #tpu.memory_space<vmem>>, %arg11: memref<1x8x32x256xf32, #tpu.memory_space<vmem>>, %arg12: memref<1x32x256xf32, #tpu.memory_space<vmem>>, %arg13: memref<1x32x256xf32, #tpu.memory_space<vmem>>, %arg14: memref<8x128x256xf32, #tpu.memory_space<vmem>>, %arg15: memref<128x256xbf16, #tpu.memory_space<vmem>>, %arg16: memref<384x256xbf16, #tpu.memory_space<vmem>>, %arg17: memref<32x256xf32, #tpu.memory_space<vmem>>, %arg18: memref<32x256xf32, #tpu.memory_space<vmem>>) attributes {dimension_semantics = [#tpu.dimension_semantics<parallel>], iteration_bounds = array<i64: 2>, scalar_prefetch = 0 : i64, scratch_operands = 5 : i64, tpu.core_type = #tpu.core_type<tc>, window_params = [{transform_indices = @transform_0, window_bounds = array<i64: 1, 8, 4, 256>}, {pipeline_mode = #tpu.pipeline_mode<synchronous>, transform_indices = @transform_1, window_bounds = array<i64: 128, 128>}, {pipeline_mode = #tpu.pipeline_mode<synchronous>, transform_indices = @transform_2, window_bounds = array<i64: 128, 384>}, {pipeline_mode = #tpu.pipeline_mode<synchronous>, transform_indices = @transform_3, window_bounds = array<i64: 128, 1>}, {pipeline_mode = #tpu.pipeline_mode<synchronous>, transform_indices = @transform_4, window_bounds = array<i64: 32, 256>}, {pipeline_mode = #tpu.pipeline_mode<synchronous>, transform_indices = @transform_5, window_bounds = array<i64: 32, 256>}, {pipeline_mode = #tpu.pipeline_mode<synchronous>, transform_indices = @transform_6, window_bounds = array<i64: 32, 256>}, {pipeline_mode = #tpu.pipeline_mode<synchronous>, transform_indices = @transform_7, window_bounds = array<i64: 4, 1>}, {pipeline_mode = #tpu.pipeline_mode<synchronous>, transform_indices = @transform_8, window_bounds = array<i64: 4, 1>}, {pipeline_mode = #tpu.pipeline_mode<synchronous>, transform_indices = @transform_9, window_bounds = array<i64: 9, 256>}, {transform_indices = @transform_10, window_bounds = array<i64: 1, 8, 32, 256>}, {transform_indices = @transform_11, window_bounds = array<i64: 1, 32, 256>}, {transform_indices = @transform_12, window_bounds = array<i64: 1, 32, 256>}]} {
    %cst = arith.constant 0.000000e+00 : bf16
    %0 = vector.broadcast %cst : bf16 to vector<128x256xbf16>
    %c0 = arith.constant 0 : index
    %c0_0 = arith.constant 0 : index
    %1 = vector.load %arg15[%c0, %c0_0] : memref<128x256xbf16, #tpu.memory_space<vmem>>, vector<128x256xbf16>
    tpu.vector_store %arg15[%c0, %c0_0], %0 {strides = array<i32>} : memref<128x256xbf16, #tpu.memory_space<vmem>>, vector<128x256xbf16>,
    %cst_1 = arith.constant 0.000000e+00 : bf16
    %2 = vector.broadcast %cst_1 : bf16 to vector<384x256xbf16>
    %c0_2 = arith.constant 0 : index
    %c0_3 = arith.constant 0 : index
    %3 = vector.load %arg16[%c0_2, %c0_3] : memref<384x256xbf16, #tpu.memory_space<vmem>>, vector<384x256xbf16>
    tpu.vector_store %arg16[%c0_2, %c0_3], %2 {strides = array<i32>} : memref<384x256xbf16, #tpu.memory_space<vmem>>, vector<384x256xbf16>,
    %cst_4 = arith.constant 0.000000e+00 : f32
    %4 = vector.broadcast %cst_4 : f32 to vector<32x256xf32>
    %c0_5 = arith.constant 0 : index
    %c0_6 = arith.constant 0 : index
    %5 = vector.load %arg17[%c0_5, %c0_6] : memref<32x256xf32, #tpu.memory_space<vmem>>, vector<32x256xf32>
    tpu.vector_store %arg17[%c0_5, %c0_6], %4 {strides = array<i32>} : memref<32x256xf32, #tpu.memory_space<vmem>>, vector<32x256xf32>,
    %cst_7 = arith.constant 0.000000e+00 : f32
    %6 = vector.broadcast %cst_7 : f32 to vector<32x256xf32>
    %c0_8 = arith.constant 0 : index
    %c0_9 = arith.constant 0 : index
    %7 = vector.load %arg18[%c0_8, %c0_9] : memref<32x256xf32, #tpu.memory_space<vmem>>, vector<32x256xf32>
    tpu.vector_store %arg18[%c0_8, %c0_9], %6 {strides = array<i32>} : memref<32x256xf32, #tpu.memory_space<vmem>>, vector<32x256xf32>,
    %cst_10 = arith.constant 0.000000e+00 : f32
    %8 = vector.broadcast %cst_10 : f32 to vector<32x256xf32>
    %c0_11 = arith.constant 0 : index
    %c0_12 = arith.constant 0 : index
    %c0_13 = arith.constant 0 : index
    %9 = vector.load %arg12[%c0_11, %c0_12, %c0_13] : memref<1x32x256xf32, #tpu.memory_space<vmem>>, vector<1x32x256xf32>
    %10 = vector.shape_cast %9 : vector<1x32x256xf32> to vector<32x256xf32>
    %11 = vector.shape_cast %8 : vector<32x256xf32> to vector<1x32x256xf32>
    tpu.vector_store %arg12[%c0_11, %c0_12, %c0_13], %11 {strides = array<i32>} : memref<1x32x256xf32, #tpu.memory_space<vmem>>, vector<1x32x256xf32>,
    %cst_14 = arith.constant 0.000000e+00 : f32
    %12 = vector.broadcast %cst_14 : f32 to vector<32x256xf32>
    %c0_15 = arith.constant 0 : index
    %c0_16 = arith.constant 0 : index
    %c0_17 = arith.constant 0 : index
    %13 = vector.load %arg13[%c0_15, %c0_16, %c0_17] : memref<1x32x256xf32, #tpu.memory_space<vmem>>, vector<1x32x256xf32>
    %14 = vector.shape_cast %13 : vector<1x32x256xf32> to vector<32x256xf32>
    %15 = vector.shape_cast %12 : vector<32x256xf32> to vector<1x32x256xf32>
    tpu.vector_store %arg13[%c0_15, %c0_16, %c0_17], %15 {strides = array<i32>} : memref<1x32x256xf32, #tpu.memory_space<vmem>>, vector<1x32x256xf32>,
    %c0_i32 = arith.constant 0 : i32
    %c8_i32 = arith.constant 8 : i32
    %16 = arith.addi %c0_i32, %c8_i32 : i32
    %c1_i32 = arith.constant 1 : i32
    scf.for %arg19 = %c0_i32 to %16 step %c1_i32  : i32 {
      %c0_23 = arith.constant 0 : index
      %18 = arith.index_cast %arg19 : i32 to index
      %c0_24 = arith.constant 0 : index
      %c0_25 = arith.constant 0 : index
      %19 = vector.load %arg1[%c0_23, %18, %c0_24, %c0_25] : memref<1x8x4x256xf32, #tpu.memory_space<vmem>>, vector<1x1x4x256xf32>
      %20 = vector.shape_cast %19 : vector<1x1x4x256xf32> to vector<4x256xf32>
      %c0_26 = arith.constant 0 : index
      %c0_27 = arith.constant 0 : index
      %21 = vector.load %arg8[%c0_26, %c0_27] : memref<4x1xf32, #tpu.memory_space<vmem>>, vector<4x1xf32>
      %22 = vector.broadcast %21 : vector<4x1xf32> to vector<4x256xf32>
      %23 = arith.mulf %20, %22 : vector<4x256xf32>
      %c0_28 = arith.constant 0 : index
      %c0_29 = arith.constant 0 : index
      %24 = vector.load %arg9[%c0_28, %c0_29] : memref<4x1xf32, #tpu.memory_space<vmem>>, vector<4x1xf32>
      %25 = vector.broadcast %24 : vector<4x1xf32> to vector<4x256xf32>
      %26 = arith.addf %23, %25 : vector<4x256xf32>
      %c0_30 = arith.constant 0 : index
      %c0_31 = arith.constant 0 : index
      %27 = vector.load %arg10[%c0_30, %c0_31] : memref<9x256xf32, #tpu.memory_space<vmem>>, vector<1x256xf32>
      %28 = vector.extract_strided_slice %26 {offsets = [0, 239], sizes = [4, 17], strides = [1, 1]} : vector<4x256xf32> to vector<4x17xf32>
      %29 = vector.extract_strided_slice %26 {offsets = [0, 0], sizes = [4, 239], strides = [1, 1]} : vector<4x256xf32> to vector<4x239xf32>
      %30 = tpu.concatenate %28, %29 in 1 : vector<4x17xf32>, vector<4x239xf32> -> vector<4x256xf32>
      %31 = vector.broadcast %27 : vector<1x256xf32> to vector<4x256xf32>
      %32 = arith.mulf %30, %31 : vector<4x256xf32>
      %33 = arith.truncf %32 : vector<4x256xf32> to vector<4x256xbf16>
      %c0_32 = arith.constant 0 : index
      %c0_33 = arith.constant 0 : index
      %34 = vector.load %arg15[%c0_32, %c0_33] : memref<128x256xbf16, #tpu.memory_space<vmem>>, vector<4x256xbf16>
      tpu.vector_store %arg15[%c0_32, %c0_33], %33 {strides = array<i32>} : memref<128x256xbf16, #tpu.memory_space<vmem>>, vector<4x256xbf16>,
      %c1 = arith.constant 1 : index
      %c0_34 = arith.constant 0 : index
      %35 = vector.load %arg10[%c1, %c0_34] : memref<9x256xf32, #tpu.memory_space<vmem>>, vector<1x256xf32>
      %36 = vector.extract_strided_slice %26 {offsets = [0, 240], sizes = [4, 16], strides = [1, 1]} : vector<4x256xf32> to vector<4x16xf32>
      %37 = vector.extract_strided_slice %26 {offsets = [0, 0], sizes = [4, 240], strides = [1, 1]} : vector<4x256xf32> to vector<4x240xf32>
      %38 = tpu.concatenate %36, %37 in 1 : vector<4x16xf32>, vector<4x240xf32> -> vector<4x256xf32>
      %39 = vector.broadcast %35 : vector<1x256xf32> to vector<4x256xf32>
      %40 = arith.mulf %38, %39 : vector<4x256xf32>
      %41 = arith.truncf %40 : vector<4x256xf32> to vector<4x256xbf16>
      %c4 = arith.constant 4 : index
      %c0_35 = arith.constant 0 : index
      %42 = vector.load %arg15[%c4, %c0_35] : memref<128x256xbf16, #tpu.memory_space<vmem>>, vector<4x256xbf16>
      tpu.vector_store %arg15[%c4, %c0_35], %41 {strides = array<i32>} : memref<128x256xbf16, #tpu.memory_space<vmem>>, vector<4x256xbf16>,
      %c2 = arith.constant 2 : index
      %c0_36 = arith.constant 0 : index
      %43 = vector.load %arg10[%c2, %c0_36] : memref<9x256xf32, #tpu.memory_space<vmem>>, vector<1x256xf32>
      %44 = vector.extract_strided_slice %26 {offsets = [0, 241], sizes = [4, 15], strides = [1, 1]} : vector<4x256xf32> to vector<4x15xf32>
      %45 = vector.extract_strided_slice %26 {offsets = [0, 0], sizes = [4, 241], strides = [1, 1]} : vector<4x256xf32> to vector<4x241xf32>
      %46 = tpu.concatenate %44, %45 in 1 : vector<4x15xf32>, vector<4x241xf32> -> vector<4x256xf32>
      %47 = vector.broadcast %43 : vector<1x256xf32> to vector<4x256xf32>
      %48 = arith.mulf %46, %47 : vector<4x256xf32>
      %49 = arith.truncf %48 : vector<4x256xf32> to vector<4x256xbf16>
      %c8 = arith.constant 8 : index
      %c0_37 = arith.constant 0 : index
      %50 = vector.load %arg15[%c8, %c0_37] : memref<128x256xbf16, #tpu.memory_space<vmem>>, vector<4x256xbf16>
      tpu.vector_store %arg15[%c8, %c0_37], %49 {strides = array<i32>} : memref<128x256xbf16, #tpu.memory_space<vmem>>, vector<4x256xbf16>,
      %c3 = arith.constant 3 : index
      %c0_38 = arith.constant 0 : index
      %51 = vector.load %arg10[%c3, %c0_38] : memref<9x256xf32, #tpu.memory_space<vmem>>, vector<1x256xf32>
      %52 = vector.extract_strided_slice %26 {offsets = [0, 255], sizes = [4, 1], strides = [1, 1]} : vector<4x256xf32> to vector<4x1xf32>
      %53 = vector.extract_strided_slice %26 {offsets = [0, 0], sizes = [4, 255], strides = [1, 1]} : vector<4x256xf32> to vector<4x255xf32>
      %54 = tpu.concatenate %52, %53 in 1 : vector<4x1xf32>, vector<4x255xf32> -> vector<4x256xf32>
      %55 = vector.broadcast %51 : vector<1x256xf32> to vector<4x256xf32>
      %56 = arith.mulf %54, %55 : vector<4x256xf32>
      %57 = arith.truncf %56 : vector<4x256xf32> to vector<4x256xbf16>
      %c12 = arith.constant 12 : index
      %c0_39 = arith.constant 0 : index
      %58 = vector.load %arg15[%c12, %c0_39] : memref<128x256xbf16, #tpu.memory_space<vmem>>, vector<4x256xbf16>
      tpu.vector_store %arg15[%c12, %c0_39], %57 {strides = array<i32>} : memref<128x256xbf16, #tpu.memory_space<vmem>>, vector<4x256xbf16>,
      %59 = arith.truncf %26 : vector<4x256xf32> to vector<4x256xbf16>
      %c16 = arith.constant 16 : index
      %c0_40 = arith.constant 0 : index
      %60 = vector.load %arg15[%c16, %c0_40] : memref<128x256xbf16, #tpu.memory_space<vmem>>, vector<4x256xbf16>
      tpu.vector_store %arg15[%c16, %c0_40], %59 {strides = array<i32>} : memref<128x256xbf16, #tpu.memory_space<vmem>>, vector<4x256xbf16>,
      %c5 = arith.constant 5 : index
      %c0_41 = arith.constant 0 : index
      %61 = vector.load %arg10[%c5, %c0_41] : memref<9x256xf32, #tpu.memory_space<vmem>>, vector<1x256xf32>
      %62 = vector.extract_strided_slice %26 {offsets = [0, 1], sizes = [4, 255], strides = [1, 1]} : vector<4x256xf32> to vector<4x255xf32>
      %63 = vector.extract_strided_slice %26 {offsets = [0, 0], sizes = [4, 1], strides = [1, 1]} : vector<4x256xf32> to vector<4x1xf32>
      %64 = tpu.concatenate %62, %63 in 1 : vector<4x255xf32>, vector<4x1xf32> -> vector<4x256xf32>
      %65 = vector.broadcast %61 : vector<1x256xf32> to vector<4x256xf32>
      %66 = arith.mulf %64, %65 : vector<4x256xf32>
      %67 = arith.truncf %66 : vector<4x256xf32> to vector<4x256xbf16>
      %c20 = arith.constant 20 : index
      %c0_42 = arith.constant 0 : index
      %68 = vector.load %arg15[%c20, %c0_42] : memref<128x256xbf16, #tpu.memory_space<vmem>>, vector<4x256xbf16>
      tpu.vector_store %arg15[%c20, %c0_42], %67 {strides = array<i32>} : memref<128x256xbf16, #tpu.memory_space<vmem>>, vector<4x256xbf16>,
      %c6 = arith.constant 6 : index
      %c0_43 = arith.constant 0 : index
      %69 = vector.load %arg10[%c6, %c0_43] : memref<9x256xf32, #tpu.memory_space<vmem>>, vector<1x256xf32>
      %70 = vector.extract_strided_slice %26 {offsets = [0, 15], sizes = [4, 241], strides = [1, 1]} : vector<4x256xf32> to vector<4x241xf32>
      %71 = vector.extract_strided_slice %26 {offsets = [0, 0], sizes = [4, 15], strides = [1, 1]} : vector<4x256xf32> to vector<4x15xf32>
      %72 = tpu.concatenate %70, %71 in 1 : vector<4x241xf32>, vector<4x15xf32> -> vector<4x256xf32>
      %73 = vector.broadcast %69 : vector<1x256xf32> to vector<4x256xf32>
      %74 = arith.mulf %72, %73 : vector<4x256xf32>
      %75 = arith.truncf %74 : vector<4x256xf32> to vector<4x256xbf16>
      %c24 = arith.constant 24 : index
      %c0_44 = arith.constant 0 : index
      %76 = vector.load %arg15[%c24, %c0_44] : memref<128x256xbf16, #tpu.memory_space<vmem>>, vector<4x256xbf16>
      tpu.vector_store %arg15[%c24, %c0_44], %75 {strides = array<i32>} : memref<128x256xbf16, #tpu.memory_space<vmem>>, vector<4x256xbf16>,
      %c7 = arith.constant 7 : index
      %c0_45 = arith.constant 0 : index
      %77 = vector.load %arg10[%c7, %c0_45] : memref<9x256xf32, #tpu.memory_space<vmem>>, vector<1x256xf32>
      %78 = vector.extract_strided_slice %26 {offsets = [0, 16], sizes = [4, 240], strides = [1, 1]} : vector<4x256xf32> to vector<4x240xf32>
      %79 = vector.extract_strided_slice %26 {offsets = [0, 0], sizes = [4, 16], strides = [1, 1]} : vector<4x256xf32> to vector<4x16xf32>
      %80 = tpu.concatenate %78, %79 in 1 : vector<4x240xf32>, vector<4x16xf32> -> vector<4x256xf32>
      %81 = vector.broadcast %77 : vector<1x256xf32> to vector<4x256xf32>
      %82 = arith.mulf %80, %81 : vector<4x256xf32>
      %83 = arith.truncf %82 : vector<4x256xf32> to vector<4x256xbf16>
      %c28 = arith.constant 28 : index
      %c0_46 = arith.constant 0 : index
      %84 = vector.load %arg15[%c28, %c0_46] : memref<128x256xbf16, #tpu.memory_space<vmem>>, vector<4x256xbf16>
      tpu.vector_store %arg15[%c28, %c0_46], %83 {strides = array<i32>} : memref<128x256xbf16, #tpu.memory_space<vmem>>, vector<4x256xbf16>,
      %c8_47 = arith.constant 8 : index
      %c0_48 = arith.constant 0 : index
      %85 = vector.load %arg10[%c8_47, %c0_48] : memref<9x256xf32, #tpu.memory_space<vmem>>, vector<1x256xf32>
      %86 = vector.extract_strided_slice %26 {offsets = [0, 17], sizes = [4, 239], strides = [1, 1]} : vector<4x256xf32> to vector<4x239xf32>
      %87 = vector.extract_strided_slice %26 {offsets = [0, 0], sizes = [4, 17], strides = [1, 1]} : vector<4x256xf32> to vector<4x17xf32>
      %88 = tpu.concatenate %86, %87 in 1 : vector<4x239xf32>, vector<4x17xf32> -> vector<4x256xf32>
      %89 = vector.broadcast %85 : vector<1x256xf32> to vector<4x256xf32>
      %90 = arith.mulf %88, %89 : vector<4x256xf32>
      %91 = arith.truncf %90 : vector<4x256xf32> to vector<4x256xbf16>
      %c32 = arith.constant 32 : index
      %c0_49 = arith.constant 0 : index
      %92 = vector.load %arg15[%c32, %c0_49] : memref<128x256xbf16, #tpu.memory_space<vmem>>, vector<4x256xbf16>
      tpu.vector_store %arg15[%c32, %c0_49], %91 {strides = array<i32>} : memref<128x256xbf16, #tpu.memory_space<vmem>>, vector<4x256xbf16>,
      %c0_50 = arith.constant 0 : index
      %c0_51 = arith.constant 0 : index
      %93 = vector.load %arg2[%c0_50, %c0_51] : memref<128x128xbf16, #tpu.memory_space<vmem>>, vector<128x128xbf16>
      %c0_52 = arith.constant 0 : index
      %c0_53 = arith.constant 0 : index
      %94 = vector.load %arg15[%c0_52, %c0_53] : memref<128x256xbf16, #tpu.memory_space<vmem>>, vector<128x256xbf16>
      %cst_54 = arith.constant dense<0.000000e+00> : vector<128x256xf32>
      %95 = tpu.matmul %93, %94, %cst_54 {dimension_numbers = #tpu.dot_dimension_numbers<[1], [0], [0], [1], [0, 0, 1, 1], [], []>} : vector<128x128xbf16>, vector<128x256xbf16>, vector<128x256xf32> -> vector<128x256xf32>
      %c0_55 = arith.constant 0 : index
      %c0_56 = arith.constant 0 : index
      %96 = vector.load %arg4[%c0_55, %c0_56] : memref<128x1xf32, #tpu.memory_space<vmem>>, vector<128x1xf32>
      %97 = vector.broadcast %96 : vector<128x1xf32> to vector<128x256xf32>
      %98 = arith.addf %95, %97 : vector<128x256xf32>
      %99 = arith.index_cast %arg19 : i32 to index
      %c0_57 = arith.constant 0 : index
      %c0_58 = arith.constant 0 : index
      %100 = vector.load %arg14[%99, %c0_57, %c0_58] : memref<8x128x256xf32, #tpu.memory_space<vmem>>, vector<1x128x256xf32>
      %101 = vector.shape_cast %100 : vector<1x128x256xf32> to vector<128x256xf32>
      %102 = vector.shape_cast %98 : vector<128x256xf32> to vector<1x128x256xf32>
      tpu.vector_store %arg14[%99, %c0_57, %c0_58], %102 {strides = array<i32>} : memref<8x128x256xf32, #tpu.memory_space<vmem>>, vector<1x128x256xf32>,
    }
    %c8_i32_18 = arith.constant 8 : i32
    %c0_i32_19 = arith.constant 0 : i32
    %c8_i32_20 = arith.constant 8 : i32
    %17 = arith.addi %c0_i32_19, %c8_i32_20 : i32
    %c1_i32_21 = arith.constant 1 : i32
    scf.for %arg19 = %c0_i32_19 to %17 step %c1_i32_21  : i32 {
      %c0_23 = arith.constant 0 : index
      %c0_24 = arith.constant 0 : index
      %18 = vector.load %arg17[%c0_23, %c0_24] : memref<32x256xf32, #tpu.memory_space<vmem>>, vector<32x256xf32>
      %c0_25 = arith.constant 0 : index
      %c0_26 = arith.constant 0 : index
      %19 = vector.load %arg10[%c0_25, %c0_26] : memref<9x256xf32, #tpu.memory_space<vmem>>, vector<1x256xf32>
      %20 = vector.extract_strided_slice %18 {offsets = [0, 239], sizes = [32, 17], strides = [1, 1]} : vector<32x256xf32> to vector<32x17xf32>
      %21 = vector.extract_strided_slice %18 {offsets = [0, 0], sizes = [32, 239], strides = [1, 1]} : vector<32x256xf32> to vector<32x239xf32>
      %22 = tpu.concatenate %20, %21 in 1 : vector<32x17xf32>, vector<32x239xf32> -> vector<32x256xf32>
      %23 = vector.broadcast %19 : vector<1x256xf32> to vector<32x256xf32>
      %24 = arith.mulf %22, %23 : vector<32x256xf32>
      %25 = arith.truncf %24 : vector<32x256xf32> to vector<32x256xbf16>
      %c0_27 = arith.constant 0 : index
      %c0_28 = arith.constant 0 : index
      %26 = vector.load %arg16[%c0_27, %c0_28] : memref<384x256xbf16, #tpu.memory_space<vmem>>, vector<32x256xbf16>
      tpu.vector_store %arg16[%c0_27, %c0_28], %25 {strides = array<i32>} : memref<384x256xbf16, #tpu.memory_space<vmem>>, vector<32x256xbf16>,
      %c1 = arith.constant 1 : index
      %c0_29 = arith.constant 0 : index
      %27 = vector.load %arg10[%c1, %c0_29] : memref<9x256xf32, #tpu.memory_space<vmem>>, vector<1x256xf32>
      %28 = vector.extract_strided_slice %18 {offsets = [0, 240], sizes = [32, 16], strides = [1, 1]} : vector<32x256xf32> to vector<32x16xf32>
      %29 = vector.extract_strided_slice %18 {offsets = [0, 0], sizes = [32, 240], strides = [1, 1]} : vector<32x256xf32> to vector<32x240xf32>
      %30 = tpu.concatenate %28, %29 in 1 : vector<32x16xf32>, vector<32x240xf32> -> vector<32x256xf32>
      %31 = vector.broadcast %27 : vector<1x256xf32> to vector<32x256xf32>
      %32 = arith.mulf %30, %31 : vector<32x256xf32>
      %33 = arith.truncf %32 : vector<32x256xf32> to vector<32x256xbf16>
      %c32 = arith.constant 32 : index
      %c0_30 = arith.constant 0 : index
      %34 = vector.load %arg16[%c32, %c0_30] : memref<384x256xbf16, #tpu.memory_space<vmem>>, vector<32x256xbf16>
      tpu.vector_store %arg16[%c32, %c0_30], %33 {strides = array<i32>} : memref<384x256xbf16, #tpu.memory_space<vmem>>, vector<32x256xbf16>,
      %c2 = arith.constant 2 : index
      %c0_31 = arith.constant 0 : index
      %35 = vector.load %arg10[%c2, %c0_31] : memref<9x256xf32, #tpu.memory_space<vmem>>, vector<1x256xf32>
      %36 = vector.extract_strided_slice %18 {offsets = [0, 241], sizes = [32, 15], strides = [1, 1]} : vector<32x256xf32> to vector<32x15xf32>
      %37 = vector.extract_strided_slice %18 {offsets = [0, 0], sizes = [32, 241], strides = [1, 1]} : vector<32x256xf32> to vector<32x241xf32>
      %38 = tpu.concatenate %36, %37 in 1 : vector<32x15xf32>, vector<32x241xf32> -> vector<32x256xf32>
      %39 = vector.broadcast %35 : vector<1x256xf32> to vector<32x256xf32>
      %40 = arith.mulf %38, %39 : vector<32x256xf32>
      %41 = arith.truncf %40 : vector<32x256xf32> to vector<32x256xbf16>
      %c64 = arith.constant 64 : index
      %c0_32 = arith.constant 0 : index
      %42 = vector.load %arg16[%c64, %c0_32] : memref<384x256xbf16, #tpu.memory_space<vmem>>, vector<32x256xbf16>
      tpu.vector_store %arg16[%c64, %c0_32], %41 {strides = array<i32>} : memref<384x256xbf16, #tpu.memory_space<vmem>>, vector<32x256xbf16>,
      %c3 = arith.constant 3 : index
      %c0_33 = arith.constant 0 : index
      %43 = vector.load %arg10[%c3, %c0_33] : memref<9x256xf32, #tpu.memory_space<vmem>>, vector<1x256xf32>
      %44 = vector.extract_strided_slice %18 {offsets = [0, 255], sizes = [32, 1], strides = [1, 1]} : vector<32x256xf32> to vector<32x1xf32>
      %45 = vector.extract_strided_slice %18 {offsets = [0, 0], sizes = [32, 255], strides = [1, 1]} : vector<32x256xf32> to vector<32x255xf32>
      %46 = tpu.concatenate %44, %45 in 1 : vector<32x1xf32>, vector<32x255xf32> -> vector<32x256xf32>
      %47 = vector.broadcast %43 : vector<1x256xf32> to vector<32x256xf32>
      %48 = arith.mulf %46, %47 : vector<32x256xf32>
      %49 = arith.truncf %48 : vector<32x256xf32> to vector<32x256xbf16>
      %c96 = arith.constant 96 : index
      %c0_34 = arith.constant 0 : index
      %50 = vector.load %arg16[%c96, %c0_34] : memref<384x256xbf16, #tpu.memory_space<vmem>>, vector<32x256xbf16>
      tpu.vector_store %arg16[%c96, %c0_34], %49 {strides = array<i32>} : memref<384x256xbf16, #tpu.memory_space<vmem>>, vector<32x256xbf16>,
      %51 = arith.truncf %18 : vector<32x256xf32> to vector<32x256xbf16>
      %c128 = arith.constant 128 : index
      %c0_35 = arith.constant 0 : index
      %52 = vector.load %arg16[%c128, %c0_35] : memref<384x256xbf16, #tpu.memory_space<vmem>>, vector<32x256xbf16>
      tpu.vector_store %arg16[%c128, %c0_35], %51 {strides = array<i32>} : memref<384x256xbf16, #tpu.memory_space<vmem>>, vector<32x256xbf16>,
      %c5 = arith.constant 5 : index
      %c0_36 = arith.constant 0 : index
      %53 = vector.load %arg10[%c5, %c0_36] : memref<9x256xf32, #tpu.memory_space<vmem>>, vector<1x256xf32>
      %54 = vector.extract_strided_slice %18 {offsets = [0, 1], sizes = [32, 255], strides = [1, 1]} : vector<32x256xf32> to vector<32x255xf32>
      %55 = vector.extract_strided_slice %18 {offsets = [0, 0], sizes = [32, 1], strides = [1, 1]} : vector<32x256xf32> to vector<32x1xf32>
      %56 = tpu.concatenate %54, %55 in 1 : vector<32x255xf32>, vector<32x1xf32> -> vector<32x256xf32>
      %57 = vector.broadcast %53 : vector<1x256xf32> to vector<32x256xf32>
      %58 = arith.mulf %56, %57 : vector<32x256xf32>
      %59 = arith.truncf %58 : vector<32x256xf32> to vector<32x256xbf16>
      %c160 = arith.constant 160 : index
      %c0_37 = arith.constant 0 : index
      %60 = vector.load %arg16[%c160, %c0_37] : memref<384x256xbf16, #tpu.memory_space<vmem>>, vector<32x256xbf16>
      tpu.vector_store %arg16[%c160, %c0_37], %59 {strides = array<i32>} : memref<384x256xbf16, #tpu.memory_space<vmem>>, vector<32x256xbf16>,
      %c6 = arith.constant 6 : index
      %c0_38 = arith.constant 0 : index
      %61 = vector.load %arg10[%c6, %c0_38] : memref<9x256xf32, #tpu.memory_space<vmem>>, vector<1x256xf32>
      %62 = vector.extract_strided_slice %18 {offsets = [0, 15], sizes = [32, 241], strides = [1, 1]} : vector<32x256xf32> to vector<32x241xf32>
      %63 = vector.extract_strided_slice %18 {offsets = [0, 0], sizes = [32, 15], strides = [1, 1]} : vector<32x256xf32> to vector<32x15xf32>
      %64 = tpu.concatenate %62, %63 in 1 : vector<32x241xf32>, vector<32x15xf32> -> vector<32x256xf32>
      %65 = vector.broadcast %61 : vector<1x256xf32> to vector<32x256xf32>
      %66 = arith.mulf %64, %65 : vector<32x256xf32>
      %67 = arith.truncf %66 : vector<32x256xf32> to vector<32x256xbf16>
      %c192 = arith.constant 192 : index
      %c0_39 = arith.constant 0 : index
      %68 = vector.load %arg16[%c192, %c0_39] : memref<384x256xbf16, #tpu.memory_space<vmem>>, vector<32x256xbf16>
      tpu.vector_store %arg16[%c192, %c0_39], %67 {strides = array<i32>} : memref<384x256xbf16, #tpu.memory_space<vmem>>, vector<32x256xbf16>,
      %c7 = arith.constant 7 : index
      %c0_40 = arith.constant 0 : index
      %69 = vector.load %arg10[%c7, %c0_40] : memref<9x256xf32, #tpu.memory_space<vmem>>, vector<1x256xf32>
      %70 = vector.extract_strided_slice %18 {offsets = [0, 16], sizes = [32, 240], strides = [1, 1]} : vector<32x256xf32> to vector<32x240xf32>
      %71 = vector.extract_strided_slice %18 {offsets = [0, 0], sizes = [32, 16], strides = [1, 1]} : vector<32x256xf32> to vector<32x16xf32>
      %72 = tpu.concatenate %70, %71 in 1 : vector<32x240xf32>, vector<32x16xf32> -> vector<32x256xf32>
      %73 = vector.broadcast %69 : vector<1x256xf32> to vector<32x256xf32>
      %74 = arith.mulf %72, %73 : vector<32x256xf32>
      %75 = arith.truncf %74 : vector<32x256xf32> to vector<32x256xbf16>
      %c224 = arith.constant 224 : index
      %c0_41 = arith.constant 0 : index
      %76 = vector.load %arg16[%c224, %c0_41] : memref<384x256xbf16, #tpu.memory_space<vmem>>, vector<32x256xbf16>
      tpu.vector_store %arg16[%c224, %c0_41], %75 {strides = array<i32>} : memref<384x256xbf16, #tpu.memory_space<vmem>>, vector<32x256xbf16>,
      %c8 = arith.constant 8 : index
      %c0_42 = arith.constant 0 : index
      %77 = vector.load %arg10[%c8, %c0_42] : memref<9x256xf32, #tpu.memory_space<vmem>>, vector<1x256xf32>
      %78 = vector.extract_strided_slice %18 {offsets = [0, 17], sizes = [32, 239], strides = [1, 1]} : vector<32x256xf32> to vector<32x239xf32>
      %79 = vector.extract_strided_slice %18 {offsets = [0, 0], sizes = [32, 17], strides = [1, 1]} : vector<32x256xf32> to vector<32x17xf32>
      %80 = tpu.concatenate %78, %79 in 1 : vector<32x239xf32>, vector<32x17xf32> -> vector<32x256xf32>
      %81 = vector.broadcast %77 : vector<1x256xf32> to vector<32x256xf32>
      %82 = arith.mulf %80, %81 : vector<32x256xf32>
      %83 = arith.truncf %82 : vector<32x256xf32> to vector<32x256xbf16>
      %c256 = arith.constant 256 : index
      %c0_43 = arith.constant 0 : index
      %84 = vector.load %arg16[%c256, %c0_43] : memref<384x256xbf16, #tpu.memory_space<vmem>>, vector<32x256xbf16>
      tpu.vector_store %arg16[%c256, %c0_43], %83 {strides = array<i32>} : memref<384x256xbf16, #tpu.memory_space<vmem>>, vector<32x256xbf16>,
      %85 = arith.index_cast %arg19 : i32 to index
      %c0_44 = arith.constant 0 : index
      %c0_45 = arith.constant 0 : index
      %86 = vector.load %arg14[%85, %c0_44, %c0_45] : memref<8x128x256xf32, #tpu.memory_space<vmem>>, vector<1x128x256xf32>
      %87 = vector.shape_cast %86 : vector<1x128x256xf32> to vector<128x256xf32>
      %c0_46 = arith.constant 0 : index
      %c0_47 = arith.constant 0 : index
      %88 = vector.load %arg3[%c0_46, %c0_47] : memref<128x384xbf16, #tpu.memory_space<vmem>>, vector<128x384xbf16>
      %c0_48 = arith.constant 0 : index
      %c0_49 = arith.constant 0 : index
      %89 = vector.load %arg16[%c0_48, %c0_49] : memref<384x256xbf16, #tpu.memory_space<vmem>>, vector<384x256xbf16>
      %cst_50 = arith.constant dense<0.000000e+00> : vector<128x256xf32>
      %90 = tpu.matmul %88, %89, %cst_50 {dimension_numbers = #tpu.dot_dimension_numbers<[1], [0], [0], [1], [0, 0, 1, 1], [], []>} : vector<128x384xbf16>, vector<384x256xbf16>, vector<128x256xf32> -> vector<128x256xf32>
      %91 = arith.addf %87, %90 : vector<128x256xf32>
      %c0_51 = arith.constant 0 : index
      %c0_52 = arith.constant 0 : index
      %92 = vector.load %arg18[%c0_51, %c0_52] : memref<32x256xf32, #tpu.memory_space<vmem>>, vector<32x256xf32>
      %93 = vector.extract_strided_slice %91 {offsets = [0, 0], sizes = [32, 256], strides = [1, 1]} : vector<128x256xf32> to vector<32x256xf32>
      %c0_53 = arith.constant 0 : index
      %c0_54 = arith.constant 0 : index
      %94 = vector.load %arg5[%c0_53, %c0_54] : memref<32x256xf32, #tpu.memory_space<vmem>>, vector<32x256xf32>
      %95 = arith.mulf %94, %92 : vector<32x256xf32>
      %96 = arith.addf %93, %95 : vector<32x256xf32>
      %97 = arith.negf %96 : vector<32x256xf32>
      %98 = math.exp %97 : vector<32x256xf32>
      %cst_55 = arith.constant 1.000000e+00 : f32
      %99 = vector.broadcast %cst_55 : f32 to vector<32x256xf32>
      %100 = arith.addf %99, %98 : vector<32x256xf32>
      %101 = arith.divf %99, %100 : vector<32x256xf32>
      %102 = vector.extract_strided_slice %91 {offsets = [32, 0], sizes = [32, 256], strides = [1, 1]} : vector<128x256xf32> to vector<32x256xf32>
      %c0_56 = arith.constant 0 : index
      %c0_57 = arith.constant 0 : index
      %103 = vector.load %arg6[%c0_56, %c0_57] : memref<32x256xf32, #tpu.memory_space<vmem>>, vector<32x256xf32>
      %104 = arith.mulf %103, %92 : vector<32x256xf32>
      %105 = arith.addf %102, %104 : vector<32x256xf32>
      %106 = arith.negf %105 : vector<32x256xf32>
      %107 = math.exp %106 : vector<32x256xf32>
      %cst_58 = arith.constant 1.000000e+00 : f32
      %108 = vector.broadcast %cst_58 : f32 to vector<32x256xf32>
      %109 = arith.addf %108, %107 : vector<32x256xf32>
      %110 = arith.divf %108, %109 : vector<32x256xf32>
      %111 = arith.mulf %110, %92 : vector<32x256xf32>
      %112 = vector.extract_strided_slice %91 {offsets = [64, 0], sizes = [32, 256], strides = [1, 1]} : vector<128x256xf32> to vector<32x256xf32>
      %113 = math.tanh %112 : vector<32x256xf32>
      %114 = arith.mulf %101, %113 : vector<32x256xf32>
      %115 = arith.addf %111, %114 : vector<32x256xf32>
      %116 = vector.extract_strided_slice %91 {offsets = [96, 0], sizes = [32, 256], strides = [1, 1]} : vector<128x256xf32> to vector<32x256xf32>
      %c0_59 = arith.constant 0 : index
      %c0_60 = arith.constant 0 : index
      %117 = vector.load %arg7[%c0_59, %c0_60] : memref<32x256xf32, #tpu.memory_space<vmem>>, vector<32x256xf32>
      %118 = arith.mulf %117, %115 : vector<32x256xf32>
      %119 = arith.addf %116, %118 : vector<32x256xf32>
      %120 = arith.negf %119 : vector<32x256xf32>
      %121 = math.exp %120 : vector<32x256xf32>
      %cst_61 = arith.constant 1.000000e+00 : f32
      %122 = vector.broadcast %cst_61 : f32 to vector<32x256xf32>
      %123 = arith.addf %122, %121 : vector<32x256xf32>
      %124 = arith.divf %122, %123 : vector<32x256xf32>
      %125 = math.tanh %115 : vector<32x256xf32>
      %126 = arith.mulf %124, %125 : vector<32x256xf32>
      %c0_62 = arith.constant 0 : index
      %c0_63 = arith.constant 0 : index
      %127 = vector.load %arg18[%c0_62, %c0_63] : memref<32x256xf32, #tpu.memory_space<vmem>>, vector<32x256xf32>
      tpu.vector_store %arg18[%c0_62, %c0_63], %115 {strides = array<i32>} : memref<32x256xf32, #tpu.memory_space<vmem>>, vector<32x256xf32>,
      %c0_64 = arith.constant 0 : index
      %c0_65 = arith.constant 0 : index
      %128 = vector.load %arg17[%c0_64, %c0_65] : memref<32x256xf32, #tpu.memory_space<vmem>>, vector<32x256xf32>
      tpu.vector_store %arg17[%c0_64, %c0_65], %126 {strides = array<i32>} : memref<32x256xf32, #tpu.memory_space<vmem>>, vector<32x256xf32>,
      %c0_66 = arith.constant 0 : index
      %129 = arith.index_cast %arg19 : i32 to index
      %c0_67 = arith.constant 0 : index
      %c0_68 = arith.constant 0 : index
      %130 = vector.load %arg11[%c0_66, %129, %c0_67, %c0_68] : memref<1x8x32x256xf32, #tpu.memory_space<vmem>>, vector<1x1x32x256xf32>
      %131 = vector.shape_cast %130 : vector<1x1x32x256xf32> to vector<32x256xf32>
      %132 = vector.shape_cast %126 : vector<32x256xf32> to vector<1x1x32x256xf32>
      tpu.vector_store %arg11[%c0_66, %129, %c0_67, %c0_68], %132 {strides = array<i32>} : memref<1x8x32x256xf32, #tpu.memory_space<vmem>>, vector<1x1x32x256xf32>,
      %c0_69 = arith.constant 0 : index
      %c0_70 = arith.constant 0 : index
      %c0_71 = arith.constant 0 : index
      %133 = vector.load %arg12[%c0_69, %c0_70, %c0_71] : memref<1x32x256xf32, #tpu.memory_space<vmem>>, vector<1x32x256xf32>
      %134 = vector.shape_cast %133 : vector<1x32x256xf32> to vector<32x256xf32>
      %135 = arith.addf %134, %126 : vector<32x256xf32>
      %c0_72 = arith.constant 0 : index
      %c0_73 = arith.constant 0 : index
      %c0_74 = arith.constant 0 : index
      %136 = vector.load %arg12[%c0_72, %c0_73, %c0_74] : memref<1x32x256xf32, #tpu.memory_space<vmem>>, vector<1x32x256xf32>
      %137 = vector.shape_cast %136 : vector<1x32x256xf32> to vector<32x256xf32>
      %138 = vector.shape_cast %135 : vector<32x256xf32> to vector<1x32x256xf32>
      tpu.vector_store %arg12[%c0_72, %c0_73, %c0_74], %138 {strides = array<i32>} : memref<1x32x256xf32, #tpu.memory_space<vmem>>, vector<1x32x256xf32>,
      %c0_75 = arith.constant 0 : index
      %c0_76 = arith.constant 0 : index
      %c0_77 = arith.constant 0 : index
      %139 = vector.load %arg13[%c0_75, %c0_76, %c0_77] : memref<1x32x256xf32, #tpu.memory_space<vmem>>, vector<1x32x256xf32>
      %140 = vector.shape_cast %139 : vector<1x32x256xf32> to vector<32x256xf32>
      %141 = arith.mulf %126, %126 : vector<32x256xf32>
      %142 = arith.addf %140, %141 : vector<32x256xf32>
      %c0_78 = arith.constant 0 : index
      %c0_79 = arith.constant 0 : index
      %c0_80 = arith.constant 0 : index
      %143 = vector.load %arg13[%c0_78, %c0_79, %c0_80] : memref<1x32x256xf32, #tpu.memory_space<vmem>>, vector<1x32x256xf32>
      %144 = vector.shape_cast %143 : vector<1x32x256xf32> to vector<32x256xf32>
      %145 = vector.shape_cast %142 : vector<32x256xf32> to vector<1x32x256xf32>
      tpu.vector_store %arg13[%c0_78, %c0_79, %c0_80], %145 {strides = array<i32>} : memref<1x32x256xf32, #tpu.memory_space<vmem>>, vector<1x32x256xf32>,
    }
    %c8_i32_22 = arith.constant 8 : i32
    return
  }
  func.func @transform_0(%arg0: i32) -> (i32, i32, i32, i32) {
    %c0_i32 = arith.constant 0 : i32
    %c0_i32_0 = arith.constant 0 : i32
    %c0_i32_1 = arith.constant 0 : i32
    %c0_i32_2 = arith.constant 0 : i32
    return %arg0, %c0_i32, %c0_i32_0, %c0_i32_1 : i32, i32, i32, i32
  }
  func.func @transform_1(%arg0: i32) -> (i32, i32) {
    %c0_i32 = arith.constant 0 : i32
    %c0_i32_0 = arith.constant 0 : i32
    %c0_i32_1 = arith.constant 0 : i32
    return %c0_i32, %c0_i32_0 : i32, i32
  }
  func.func @transform_2(%arg0: i32) -> (i32, i32) {
    %c0_i32 = arith.constant 0 : i32
    %c0_i32_0 = arith.constant 0 : i32
    %c0_i32_1 = arith.constant 0 : i32
    return %c0_i32, %c0_i32_0 : i32, i32
  }
  func.func @transform_3(%arg0: i32) -> (i32, i32) {
    %c0_i32 = arith.constant 0 : i32
    %c0_i32_0 = arith.constant 0 : i32
    %c0_i32_1 = arith.constant 0 : i32
    return %c0_i32, %c0_i32_0 : i32, i32
  }
  func.func @transform_4(%arg0: i32) -> (i32, i32) {
    %c0_i32 = arith.constant 0 : i32
    %c0_i32_0 = arith.constant 0 : i32
    %c0_i32_1 = arith.constant 0 : i32
    return %c0_i32, %c0_i32_0 : i32, i32
  }
  func.func @transform_5(%arg0: i32) -> (i32, i32) {
    %c0_i32 = arith.constant 0 : i32
    %c0_i32_0 = arith.constant 0 : i32
    %c0_i32_1 = arith.constant 0 : i32
    return %c0_i32, %c0_i32_0 : i32, i32
  }
  func.func @transform_6(%arg0: i32) -> (i32, i32) {
    %c0_i32 = arith.constant 0 : i32
    %c0_i32_0 = arith.constant 0 : i32
    %c0_i32_1 = arith.constant 0 : i32
    return %c0_i32, %c0_i32_0 : i32, i32
  }
  func.func @transform_7(%arg0: i32) -> (i32, i32) {
    %c0_i32 = arith.constant 0 : i32
    %c0_i32_0 = arith.constant 0 : i32
    %c0_i32_1 = arith.constant 0 : i32
    return %c0_i32, %c0_i32_0 : i32, i32
  }
  func.func @transform_8(%arg0: i32) -> (i32, i32) {
    %c0_i32 = arith.constant 0 : i32
    %c0_i32_0 = arith.constant 0 : i32
    %c0_i32_1 = arith.constant 0 : i32
    return %c0_i32, %c0_i32_0 : i32, i32
  }
  func.func @transform_9(%arg0: i32) -> (i32, i32) {
    %c0_i32 = arith.constant 0 : i32
    %c0_i32_0 = arith.constant 0 : i32
    %c0_i32_1 = arith.constant 0 : i32
    return %c0_i32, %c0_i32_0 : i32, i32
  }
  func.func @transform_10(%arg0: i32) -> (i32, i32, i32, i32) {
    %c0_i32 = arith.constant 0 : i32
    %c0_i32_0 = arith.constant 0 : i32
    %c0_i32_1 = arith.constant 0 : i32
    %c0_i32_2 = arith.constant 0 : i32
    return %arg0, %c0_i32, %c0_i32_0, %c0_i32_1 : i32, i32, i32, i32
  }
  func.func @transform_11(%arg0: i32) -> (i32, i32, i32) {
    %c0_i32 = arith.constant 0 : i32
    %c0_i32_0 = arith.constant 0 : i32
    %c0_i32_1 = arith.constant 0 : i32
    return %arg0, %c0_i32, %c0_i32_0 : i32, i32, i32
  }
  func.func @transform_12(%arg0: i32) -> (i32, i32, i32) {
    %c0_i32 = arith.constant 0 : i32
    %c0_i32_0 = arith.constant 0 : i32
    %c0_i32_1 = arith.constant 0 : i32
    return %arg0, %c0_i32, %c0_i32_0 : i32, i32, i32
  }
}

module attributes {stable_mosaic.version = 11 : i64} {
  func.func @_convlstm_layer_kernel(%arg0: i32, %arg1: memref<1x8x32x256xf32, #tpu.memory_space<vmem>>, %arg2: memref<128x384xbf16, #tpu.memory_space<vmem>>, %arg3: memref<128x384xbf16, #tpu.memory_space<vmem>>, %arg4: memref<128x1xf32, #tpu.memory_space<vmem>>, %arg5: memref<32x256xf32, #tpu.memory_space<vmem>>, %arg6: memref<32x256xf32, #tpu.memory_space<vmem>>, %arg7: memref<32x256xf32, #tpu.memory_space<vmem>>, %arg8: memref<32x1xf32, #tpu.memory_space<vmem>>, %arg9: memref<32x1xf32, #tpu.memory_space<vmem>>, %arg10: memref<9x256xf32, #tpu.memory_space<vmem>>, %arg11: memref<1x8x32x256xf32, #tpu.memory_space<vmem>>, %arg12: memref<1x32x256xf32, #tpu.memory_space<vmem>>, %arg13: memref<1x32x256xf32, #tpu.memory_space<vmem>>, %arg14: memref<8x128x256xf32, #tpu.memory_space<vmem>>, %arg15: memref<384x256xbf16, #tpu.memory_space<vmem>>, %arg16: memref<384x256xbf16, #tpu.memory_space<vmem>>, %arg17: memref<32x256xf32, #tpu.memory_space<vmem>>, %arg18: memref<32x256xf32, #tpu.memory_space<vmem>>) attributes {dimension_semantics = [#tpu.dimension_semantics<parallel>], iteration_bounds = array<i64: 2>, scalar_prefetch = 0 : i64, scratch_operands = 5 : i64, tpu.core_type = #tpu.core_type<tc>, window_params = [{transform_indices = @transform_0, window_bounds = array<i64: 1, 8, 32, 256>}, {pipeline_mode = #tpu.pipeline_mode<synchronous>, transform_indices = @transform_1, window_bounds = array<i64: 128, 384>}, {pipeline_mode = #tpu.pipeline_mode<synchronous>, transform_indices = @transform_2, window_bounds = array<i64: 128, 384>}, {pipeline_mode = #tpu.pipeline_mode<synchronous>, transform_indices = @transform_3, window_bounds = array<i64: 128, 1>}, {pipeline_mode = #tpu.pipeline_mode<synchronous>, transform_indices = @transform_4, window_bounds = array<i64: 32, 256>}, {pipeline_mode = #tpu.pipeline_mode<synchronous>, transform_indices = @transform_5, window_bounds = array<i64: 32, 256>}, {pipeline_mode = #tpu.pipeline_mode<synchronous>, transform_indices = @transform_6, window_bounds = array<i64: 32, 256>}, {pipeline_mode = #tpu.pipeline_mode<synchronous>, transform_indices = @transform_7, window_bounds = array<i64: 32, 1>}, {pipeline_mode = #tpu.pipeline_mode<synchronous>, transform_indices = @transform_8, window_bounds = array<i64: 32, 1>}, {pipeline_mode = #tpu.pipeline_mode<synchronous>, transform_indices = @transform_9, window_bounds = array<i64: 9, 256>}, {transform_indices = @transform_10, window_bounds = array<i64: 1, 8, 32, 256>}, {transform_indices = @transform_11, window_bounds = array<i64: 1, 32, 256>}, {transform_indices = @transform_12, window_bounds = array<i64: 1, 32, 256>}]} {
    %cst = arith.constant 0.000000e+00 : bf16
    %0 = vector.broadcast %cst : bf16 to vector<384x256xbf16>
    %c0 = arith.constant 0 : index
    %c0_0 = arith.constant 0 : index
    %1 = vector.load %arg15[%c0, %c0_0] : memref<384x256xbf16, #tpu.memory_space<vmem>>, vector<384x256xbf16>
    tpu.vector_store %arg15[%c0, %c0_0], %0 {strides = array<i32>} : memref<384x256xbf16, #tpu.memory_space<vmem>>, vector<384x256xbf16>,
    %cst_1 = arith.constant 0.000000e+00 : bf16
    %2 = vector.broadcast %cst_1 : bf16 to vector<384x256xbf16>
    %c0_2 = arith.constant 0 : index
    %c0_3 = arith.constant 0 : index
    %3 = vector.load %arg16[%c0_2, %c0_3] : memref<384x256xbf16, #tpu.memory_space<vmem>>, vector<384x256xbf16>
    tpu.vector_store %arg16[%c0_2, %c0_3], %2 {strides = array<i32>} : memref<384x256xbf16, #tpu.memory_space<vmem>>, vector<384x256xbf16>,
    %cst_4 = arith.constant 0.000000e+00 : f32
    %4 = vector.broadcast %cst_4 : f32 to vector<32x256xf32>
    %c0_5 = arith.constant 0 : index
    %c0_6 = arith.constant 0 : index
    %5 = vector.load %arg17[%c0_5, %c0_6] : memref<32x256xf32, #tpu.memory_space<vmem>>, vector<32x256xf32>
    tpu.vector_store %arg17[%c0_5, %c0_6], %4 {strides = array<i32>} : memref<32x256xf32, #tpu.memory_space<vmem>>, vector<32x256xf32>,
    %cst_7 = arith.constant 0.000000e+00 : f32
    %6 = vector.broadcast %cst_7 : f32 to vector<32x256xf32>
    %c0_8 = arith.constant 0 : index
    %c0_9 = arith.constant 0 : index
    %7 = vector.load %arg18[%c0_8, %c0_9] : memref<32x256xf32, #tpu.memory_space<vmem>>, vector<32x256xf32>
    tpu.vector_store %arg18[%c0_8, %c0_9], %6 {strides = array<i32>} : memref<32x256xf32, #tpu.memory_space<vmem>>, vector<32x256xf32>,
    %cst_10 = arith.constant 0.000000e+00 : f32
    %8 = vector.broadcast %cst_10 : f32 to vector<32x256xf32>
    %c0_11 = arith.constant 0 : index
    %c0_12 = arith.constant 0 : index
    %c0_13 = arith.constant 0 : index
    %9 = vector.load %arg12[%c0_11, %c0_12, %c0_13] : memref<1x32x256xf32, #tpu.memory_space<vmem>>, vector<1x32x256xf32>
    %10 = vector.shape_cast %9 : vector<1x32x256xf32> to vector<32x256xf32>
    %11 = vector.shape_cast %8 : vector<32x256xf32> to vector<1x32x256xf32>
    tpu.vector_store %arg12[%c0_11, %c0_12, %c0_13], %11 {strides = array<i32>} : memref<1x32x256xf32, #tpu.memory_space<vmem>>, vector<1x32x256xf32>,
    %cst_14 = arith.constant 0.000000e+00 : f32
    %12 = vector.broadcast %cst_14 : f32 to vector<32x256xf32>
    %c0_15 = arith.constant 0 : index
    %c0_16 = arith.constant 0 : index
    %c0_17 = arith.constant 0 : index
    %13 = vector.load %arg13[%c0_15, %c0_16, %c0_17] : memref<1x32x256xf32, #tpu.memory_space<vmem>>, vector<1x32x256xf32>
    %14 = vector.shape_cast %13 : vector<1x32x256xf32> to vector<32x256xf32>
    %15 = vector.shape_cast %12 : vector<32x256xf32> to vector<1x32x256xf32>
    tpu.vector_store %arg13[%c0_15, %c0_16, %c0_17], %15 {strides = array<i32>} : memref<1x32x256xf32, #tpu.memory_space<vmem>>, vector<1x32x256xf32>,
    %c0_i32 = arith.constant 0 : i32
    %c8_i32 = arith.constant 8 : i32
    %16 = arith.addi %c0_i32, %c8_i32 : i32
    %c1_i32 = arith.constant 1 : i32
    scf.for %arg19 = %c0_i32 to %16 step %c1_i32  : i32 {
      %c0_23 = arith.constant 0 : index
      %18 = arith.index_cast %arg19 : i32 to index
      %c0_24 = arith.constant 0 : index
      %c0_25 = arith.constant 0 : index
      %19 = vector.load %arg1[%c0_23, %18, %c0_24, %c0_25] : memref<1x8x32x256xf32, #tpu.memory_space<vmem>>, vector<1x1x32x256xf32>
      %20 = vector.shape_cast %19 : vector<1x1x32x256xf32> to vector<32x256xf32>
      %c0_26 = arith.constant 0 : index
      %c0_27 = arith.constant 0 : index
      %21 = vector.load %arg8[%c0_26, %c0_27] : memref<32x1xf32, #tpu.memory_space<vmem>>, vector<32x1xf32>
      %22 = vector.broadcast %21 : vector<32x1xf32> to vector<32x256xf32>
      %23 = arith.mulf %20, %22 : vector<32x256xf32>
      %c0_28 = arith.constant 0 : index
      %c0_29 = arith.constant 0 : index
      %24 = vector.load %arg9[%c0_28, %c0_29] : memref<32x1xf32, #tpu.memory_space<vmem>>, vector<32x1xf32>
      %25 = vector.broadcast %24 : vector<32x1xf32> to vector<32x256xf32>
      %26 = arith.addf %23, %25 : vector<32x256xf32>
      %c0_30 = arith.constant 0 : index
      %c0_31 = arith.constant 0 : index
      %27 = vector.load %arg10[%c0_30, %c0_31] : memref<9x256xf32, #tpu.memory_space<vmem>>, vector<1x256xf32>
      %28 = vector.extract_strided_slice %26 {offsets = [0, 239], sizes = [32, 17], strides = [1, 1]} : vector<32x256xf32> to vector<32x17xf32>
      %29 = vector.extract_strided_slice %26 {offsets = [0, 0], sizes = [32, 239], strides = [1, 1]} : vector<32x256xf32> to vector<32x239xf32>
      %30 = tpu.concatenate %28, %29 in 1 : vector<32x17xf32>, vector<32x239xf32> -> vector<32x256xf32>
      %31 = vector.broadcast %27 : vector<1x256xf32> to vector<32x256xf32>
      %32 = arith.mulf %30, %31 : vector<32x256xf32>
      %33 = arith.truncf %32 : vector<32x256xf32> to vector<32x256xbf16>
      %c0_32 = arith.constant 0 : index
      %c0_33 = arith.constant 0 : index
      %34 = vector.load %arg15[%c0_32, %c0_33] : memref<384x256xbf16, #tpu.memory_space<vmem>>, vector<32x256xbf16>
      tpu.vector_store %arg15[%c0_32, %c0_33], %33 {strides = array<i32>} : memref<384x256xbf16, #tpu.memory_space<vmem>>, vector<32x256xbf16>,
      %c1 = arith.constant 1 : index
      %c0_34 = arith.constant 0 : index
      %35 = vector.load %arg10[%c1, %c0_34] : memref<9x256xf32, #tpu.memory_space<vmem>>, vector<1x256xf32>
      %36 = vector.extract_strided_slice %26 {offsets = [0, 240], sizes = [32, 16], strides = [1, 1]} : vector<32x256xf32> to vector<32x16xf32>
      %37 = vector.extract_strided_slice %26 {offsets = [0, 0], sizes = [32, 240], strides = [1, 1]} : vector<32x256xf32> to vector<32x240xf32>
      %38 = tpu.concatenate %36, %37 in 1 : vector<32x16xf32>, vector<32x240xf32> -> vector<32x256xf32>
      %39 = vector.broadcast %35 : vector<1x256xf32> to vector<32x256xf32>
      %40 = arith.mulf %38, %39 : vector<32x256xf32>
      %41 = arith.truncf %40 : vector<32x256xf32> to vector<32x256xbf16>
      %c32 = arith.constant 32 : index
      %c0_35 = arith.constant 0 : index
      %42 = vector.load %arg15[%c32, %c0_35] : memref<384x256xbf16, #tpu.memory_space<vmem>>, vector<32x256xbf16>
      tpu.vector_store %arg15[%c32, %c0_35], %41 {strides = array<i32>} : memref<384x256xbf16, #tpu.memory_space<vmem>>, vector<32x256xbf16>,
      %c2 = arith.constant 2 : index
      %c0_36 = arith.constant 0 : index
      %43 = vector.load %arg10[%c2, %c0_36] : memref<9x256xf32, #tpu.memory_space<vmem>>, vector<1x256xf32>
      %44 = vector.extract_strided_slice %26 {offsets = [0, 241], sizes = [32, 15], strides = [1, 1]} : vector<32x256xf32> to vector<32x15xf32>
      %45 = vector.extract_strided_slice %26 {offsets = [0, 0], sizes = [32, 241], strides = [1, 1]} : vector<32x256xf32> to vector<32x241xf32>
      %46 = tpu.concatenate %44, %45 in 1 : vector<32x15xf32>, vector<32x241xf32> -> vector<32x256xf32>
      %47 = vector.broadcast %43 : vector<1x256xf32> to vector<32x256xf32>
      %48 = arith.mulf %46, %47 : vector<32x256xf32>
      %49 = arith.truncf %48 : vector<32x256xf32> to vector<32x256xbf16>
      %c64 = arith.constant 64 : index
      %c0_37 = arith.constant 0 : index
      %50 = vector.load %arg15[%c64, %c0_37] : memref<384x256xbf16, #tpu.memory_space<vmem>>, vector<32x256xbf16>
      tpu.vector_store %arg15[%c64, %c0_37], %49 {strides = array<i32>} : memref<384x256xbf16, #tpu.memory_space<vmem>>, vector<32x256xbf16>,
      %c3 = arith.constant 3 : index
      %c0_38 = arith.constant 0 : index
      %51 = vector.load %arg10[%c3, %c0_38] : memref<9x256xf32, #tpu.memory_space<vmem>>, vector<1x256xf32>
      %52 = vector.extract_strided_slice %26 {offsets = [0, 255], sizes = [32, 1], strides = [1, 1]} : vector<32x256xf32> to vector<32x1xf32>
      %53 = vector.extract_strided_slice %26 {offsets = [0, 0], sizes = [32, 255], strides = [1, 1]} : vector<32x256xf32> to vector<32x255xf32>
      %54 = tpu.concatenate %52, %53 in 1 : vector<32x1xf32>, vector<32x255xf32> -> vector<32x256xf32>
      %55 = vector.broadcast %51 : vector<1x256xf32> to vector<32x256xf32>
      %56 = arith.mulf %54, %55 : vector<32x256xf32>
      %57 = arith.truncf %56 : vector<32x256xf32> to vector<32x256xbf16>
      %c96 = arith.constant 96 : index
      %c0_39 = arith.constant 0 : index
      %58 = vector.load %arg15[%c96, %c0_39] : memref<384x256xbf16, #tpu.memory_space<vmem>>, vector<32x256xbf16>
      tpu.vector_store %arg15[%c96, %c0_39], %57 {strides = array<i32>} : memref<384x256xbf16, #tpu.memory_space<vmem>>, vector<32x256xbf16>,
      %59 = arith.truncf %26 : vector<32x256xf32> to vector<32x256xbf16>
      %c128 = arith.constant 128 : index
      %c0_40 = arith.constant 0 : index
      %60 = vector.load %arg15[%c128, %c0_40] : memref<384x256xbf16, #tpu.memory_space<vmem>>, vector<32x256xbf16>
      tpu.vector_store %arg15[%c128, %c0_40], %59 {strides = array<i32>} : memref<384x256xbf16, #tpu.memory_space<vmem>>, vector<32x256xbf16>,
      %c5 = arith.constant 5 : index
      %c0_41 = arith.constant 0 : index
      %61 = vector.load %arg10[%c5, %c0_41] : memref<9x256xf32, #tpu.memory_space<vmem>>, vector<1x256xf32>
      %62 = vector.extract_strided_slice %26 {offsets = [0, 1], sizes = [32, 255], strides = [1, 1]} : vector<32x256xf32> to vector<32x255xf32>
      %63 = vector.extract_strided_slice %26 {offsets = [0, 0], sizes = [32, 1], strides = [1, 1]} : vector<32x256xf32> to vector<32x1xf32>
      %64 = tpu.concatenate %62, %63 in 1 : vector<32x255xf32>, vector<32x1xf32> -> vector<32x256xf32>
      %65 = vector.broadcast %61 : vector<1x256xf32> to vector<32x256xf32>
      %66 = arith.mulf %64, %65 : vector<32x256xf32>
      %67 = arith.truncf %66 : vector<32x256xf32> to vector<32x256xbf16>
      %c160 = arith.constant 160 : index
      %c0_42 = arith.constant 0 : index
      %68 = vector.load %arg15[%c160, %c0_42] : memref<384x256xbf16, #tpu.memory_space<vmem>>, vector<32x256xbf16>
      tpu.vector_store %arg15[%c160, %c0_42], %67 {strides = array<i32>} : memref<384x256xbf16, #tpu.memory_space<vmem>>, vector<32x256xbf16>,
      %c6 = arith.constant 6 : index
      %c0_43 = arith.constant 0 : index
      %69 = vector.load %arg10[%c6, %c0_43] : memref<9x256xf32, #tpu.memory_space<vmem>>, vector<1x256xf32>
      %70 = vector.extract_strided_slice %26 {offsets = [0, 15], sizes = [32, 241], strides = [1, 1]} : vector<32x256xf32> to vector<32x241xf32>
      %71 = vector.extract_strided_slice %26 {offsets = [0, 0], sizes = [32, 15], strides = [1, 1]} : vector<32x256xf32> to vector<32x15xf32>
      %72 = tpu.concatenate %70, %71 in 1 : vector<32x241xf32>, vector<32x15xf32> -> vector<32x256xf32>
      %73 = vector.broadcast %69 : vector<1x256xf32> to vector<32x256xf32>
      %74 = arith.mulf %72, %73 : vector<32x256xf32>
      %75 = arith.truncf %74 : vector<32x256xf32> to vector<32x256xbf16>
      %c192 = arith.constant 192 : index
      %c0_44 = arith.constant 0 : index
      %76 = vector.load %arg15[%c192, %c0_44] : memref<384x256xbf16, #tpu.memory_space<vmem>>, vector<32x256xbf16>
      tpu.vector_store %arg15[%c192, %c0_44], %75 {strides = array<i32>} : memref<384x256xbf16, #tpu.memory_space<vmem>>, vector<32x256xbf16>,
      %c7 = arith.constant 7 : index
      %c0_45 = arith.constant 0 : index
      %77 = vector.load %arg10[%c7, %c0_45] : memref<9x256xf32, #tpu.memory_space<vmem>>, vector<1x256xf32>
      %78 = vector.extract_strided_slice %26 {offsets = [0, 16], sizes = [32, 240], strides = [1, 1]} : vector<32x256xf32> to vector<32x240xf32>
      %79 = vector.extract_strided_slice %26 {offsets = [0, 0], sizes = [32, 16], strides = [1, 1]} : vector<32x256xf32> to vector<32x16xf32>
      %80 = tpu.concatenate %78, %79 in 1 : vector<32x240xf32>, vector<32x16xf32> -> vector<32x256xf32>
      %81 = vector.broadcast %77 : vector<1x256xf32> to vector<32x256xf32>
      %82 = arith.mulf %80, %81 : vector<32x256xf32>
      %83 = arith.truncf %82 : vector<32x256xf32> to vector<32x256xbf16>
      %c224 = arith.constant 224 : index
      %c0_46 = arith.constant 0 : index
      %84 = vector.load %arg15[%c224, %c0_46] : memref<384x256xbf16, #tpu.memory_space<vmem>>, vector<32x256xbf16>
      tpu.vector_store %arg15[%c224, %c0_46], %83 {strides = array<i32>} : memref<384x256xbf16, #tpu.memory_space<vmem>>, vector<32x256xbf16>,
      %c8 = arith.constant 8 : index
      %c0_47 = arith.constant 0 : index
      %85 = vector.load %arg10[%c8, %c0_47] : memref<9x256xf32, #tpu.memory_space<vmem>>, vector<1x256xf32>
      %86 = vector.extract_strided_slice %26 {offsets = [0, 17], sizes = [32, 239], strides = [1, 1]} : vector<32x256xf32> to vector<32x239xf32>
      %87 = vector.extract_strided_slice %26 {offsets = [0, 0], sizes = [32, 17], strides = [1, 1]} : vector<32x256xf32> to vector<32x17xf32>
      %88 = tpu.concatenate %86, %87 in 1 : vector<32x239xf32>, vector<32x17xf32> -> vector<32x256xf32>
      %89 = vector.broadcast %85 : vector<1x256xf32> to vector<32x256xf32>
      %90 = arith.mulf %88, %89 : vector<32x256xf32>
      %91 = arith.truncf %90 : vector<32x256xf32> to vector<32x256xbf16>
      %c256 = arith.constant 256 : index
      %c0_48 = arith.constant 0 : index
      %92 = vector.load %arg15[%c256, %c0_48] : memref<384x256xbf16, #tpu.memory_space<vmem>>, vector<32x256xbf16>
      tpu.vector_store %arg15[%c256, %c0_48], %91 {strides = array<i32>} : memref<384x256xbf16, #tpu.memory_space<vmem>>, vector<32x256xbf16>,
      %c0_49 = arith.constant 0 : index
      %c0_50 = arith.constant 0 : index
      %93 = vector.load %arg2[%c0_49, %c0_50] : memref<128x384xbf16, #tpu.memory_space<vmem>>, vector<128x384xbf16>
      %c0_51 = arith.constant 0 : index
      %c0_52 = arith.constant 0 : index
      %94 = vector.load %arg15[%c0_51, %c0_52] : memref<384x256xbf16, #tpu.memory_space<vmem>>, vector<384x256xbf16>
      %cst_53 = arith.constant dense<0.000000e+00> : vector<128x256xf32>
      %95 = tpu.matmul %93, %94, %cst_53 {dimension_numbers = #tpu.dot_dimension_numbers<[1], [0], [0], [1], [0, 0, 1, 1], [], []>} : vector<128x384xbf16>, vector<384x256xbf16>, vector<128x256xf32> -> vector<128x256xf32>
      %c0_54 = arith.constant 0 : index
      %c0_55 = arith.constant 0 : index
      %96 = vector.load %arg4[%c0_54, %c0_55] : memref<128x1xf32, #tpu.memory_space<vmem>>, vector<128x1xf32>
      %97 = vector.broadcast %96 : vector<128x1xf32> to vector<128x256xf32>
      %98 = arith.addf %95, %97 : vector<128x256xf32>
      %99 = arith.index_cast %arg19 : i32 to index
      %c0_56 = arith.constant 0 : index
      %c0_57 = arith.constant 0 : index
      %100 = vector.load %arg14[%99, %c0_56, %c0_57] : memref<8x128x256xf32, #tpu.memory_space<vmem>>, vector<1x128x256xf32>
      %101 = vector.shape_cast %100 : vector<1x128x256xf32> to vector<128x256xf32>
      %102 = vector.shape_cast %98 : vector<128x256xf32> to vector<1x128x256xf32>
      tpu.vector_store %arg14[%99, %c0_56, %c0_57], %102 {strides = array<i32>} : memref<8x128x256xf32, #tpu.memory_space<vmem>>, vector<1x128x256xf32>,
    }
    %c8_i32_18 = arith.constant 8 : i32
    %c0_i32_19 = arith.constant 0 : i32
    %c8_i32_20 = arith.constant 8 : i32
    %17 = arith.addi %c0_i32_19, %c8_i32_20 : i32
    %c1_i32_21 = arith.constant 1 : i32
    scf.for %arg19 = %c0_i32_19 to %17 step %c1_i32_21  : i32 {
      %c0_23 = arith.constant 0 : index
      %c0_24 = arith.constant 0 : index
      %18 = vector.load %arg17[%c0_23, %c0_24] : memref<32x256xf32, #tpu.memory_space<vmem>>, vector<32x256xf32>
      %c0_25 = arith.constant 0 : index
      %c0_26 = arith.constant 0 : index
      %19 = vector.load %arg10[%c0_25, %c0_26] : memref<9x256xf32, #tpu.memory_space<vmem>>, vector<1x256xf32>
      %20 = vector.extract_strided_slice %18 {offsets = [0, 239], sizes = [32, 17], strides = [1, 1]} : vector<32x256xf32> to vector<32x17xf32>
      %21 = vector.extract_strided_slice %18 {offsets = [0, 0], sizes = [32, 239], strides = [1, 1]} : vector<32x256xf32> to vector<32x239xf32>
      %22 = tpu.concatenate %20, %21 in 1 : vector<32x17xf32>, vector<32x239xf32> -> vector<32x256xf32>
      %23 = vector.broadcast %19 : vector<1x256xf32> to vector<32x256xf32>
      %24 = arith.mulf %22, %23 : vector<32x256xf32>
      %25 = arith.truncf %24 : vector<32x256xf32> to vector<32x256xbf16>
      %c0_27 = arith.constant 0 : index
      %c0_28 = arith.constant 0 : index
      %26 = vector.load %arg16[%c0_27, %c0_28] : memref<384x256xbf16, #tpu.memory_space<vmem>>, vector<32x256xbf16>
      tpu.vector_store %arg16[%c0_27, %c0_28], %25 {strides = array<i32>} : memref<384x256xbf16, #tpu.memory_space<vmem>>, vector<32x256xbf16>,
      %c1 = arith.constant 1 : index
      %c0_29 = arith.constant 0 : index
      %27 = vector.load %arg10[%c1, %c0_29] : memref<9x256xf32, #tpu.memory_space<vmem>>, vector<1x256xf32>
      %28 = vector.extract_strided_slice %18 {offsets = [0, 240], sizes = [32, 16], strides = [1, 1]} : vector<32x256xf32> to vector<32x16xf32>
      %29 = vector.extract_strided_slice %18 {offsets = [0, 0], sizes = [32, 240], strides = [1, 1]} : vector<32x256xf32> to vector<32x240xf32>
      %30 = tpu.concatenate %28, %29 in 1 : vector<32x16xf32>, vector<32x240xf32> -> vector<32x256xf32>
      %31 = vector.broadcast %27 : vector<1x256xf32> to vector<32x256xf32>
      %32 = arith.mulf %30, %31 : vector<32x256xf32>
      %33 = arith.truncf %32 : vector<32x256xf32> to vector<32x256xbf16>
      %c32 = arith.constant 32 : index
      %c0_30 = arith.constant 0 : index
      %34 = vector.load %arg16[%c32, %c0_30] : memref<384x256xbf16, #tpu.memory_space<vmem>>, vector<32x256xbf16>
      tpu.vector_store %arg16[%c32, %c0_30], %33 {strides = array<i32>} : memref<384x256xbf16, #tpu.memory_space<vmem>>, vector<32x256xbf16>,
      %c2 = arith.constant 2 : index
      %c0_31 = arith.constant 0 : index
      %35 = vector.load %arg10[%c2, %c0_31] : memref<9x256xf32, #tpu.memory_space<vmem>>, vector<1x256xf32>
      %36 = vector.extract_strided_slice %18 {offsets = [0, 241], sizes = [32, 15], strides = [1, 1]} : vector<32x256xf32> to vector<32x15xf32>
      %37 = vector.extract_strided_slice %18 {offsets = [0, 0], sizes = [32, 241], strides = [1, 1]} : vector<32x256xf32> to vector<32x241xf32>
      %38 = tpu.concatenate %36, %37 in 1 : vector<32x15xf32>, vector<32x241xf32> -> vector<32x256xf32>
      %39 = vector.broadcast %35 : vector<1x256xf32> to vector<32x256xf32>
      %40 = arith.mulf %38, %39 : vector<32x256xf32>
      %41 = arith.truncf %40 : vector<32x256xf32> to vector<32x256xbf16>
      %c64 = arith.constant 64 : index
      %c0_32 = arith.constant 0 : index
      %42 = vector.load %arg16[%c64, %c0_32] : memref<384x256xbf16, #tpu.memory_space<vmem>>, vector<32x256xbf16>
      tpu.vector_store %arg16[%c64, %c0_32], %41 {strides = array<i32>} : memref<384x256xbf16, #tpu.memory_space<vmem>>, vector<32x256xbf16>,
      %c3 = arith.constant 3 : index
      %c0_33 = arith.constant 0 : index
      %43 = vector.load %arg10[%c3, %c0_33] : memref<9x256xf32, #tpu.memory_space<vmem>>, vector<1x256xf32>
      %44 = vector.extract_strided_slice %18 {offsets = [0, 255], sizes = [32, 1], strides = [1, 1]} : vector<32x256xf32> to vector<32x1xf32>
      %45 = vector.extract_strided_slice %18 {offsets = [0, 0], sizes = [32, 255], strides = [1, 1]} : vector<32x256xf32> to vector<32x255xf32>
      %46 = tpu.concatenate %44, %45 in 1 : vector<32x1xf32>, vector<32x255xf32> -> vector<32x256xf32>
      %47 = vector.broadcast %43 : vector<1x256xf32> to vector<32x256xf32>
      %48 = arith.mulf %46, %47 : vector<32x256xf32>
      %49 = arith.truncf %48 : vector<32x256xf32> to vector<32x256xbf16>
      %c96 = arith.constant 96 : index
      %c0_34 = arith.constant 0 : index
      %50 = vector.load %arg16[%c96, %c0_34] : memref<384x256xbf16, #tpu.memory_space<vmem>>, vector<32x256xbf16>
      tpu.vector_store %arg16[%c96, %c0_34], %49 {strides = array<i32>} : memref<384x256xbf16, #tpu.memory_space<vmem>>, vector<32x256xbf16>,
      %51 = arith.truncf %18 : vector<32x256xf32> to vector<32x256xbf16>
      %c128 = arith.constant 128 : index
      %c0_35 = arith.constant 0 : index
      %52 = vector.load %arg16[%c128, %c0_35] : memref<384x256xbf16, #tpu.memory_space<vmem>>, vector<32x256xbf16>
      tpu.vector_store %arg16[%c128, %c0_35], %51 {strides = array<i32>} : memref<384x256xbf16, #tpu.memory_space<vmem>>, vector<32x256xbf16>,
      %c5 = arith.constant 5 : index
      %c0_36 = arith.constant 0 : index
      %53 = vector.load %arg10[%c5, %c0_36] : memref<9x256xf32, #tpu.memory_space<vmem>>, vector<1x256xf32>
      %54 = vector.extract_strided_slice %18 {offsets = [0, 1], sizes = [32, 255], strides = [1, 1]} : vector<32x256xf32> to vector<32x255xf32>
      %55 = vector.extract_strided_slice %18 {offsets = [0, 0], sizes = [32, 1], strides = [1, 1]} : vector<32x256xf32> to vector<32x1xf32>
      %56 = tpu.concatenate %54, %55 in 1 : vector<32x255xf32>, vector<32x1xf32> -> vector<32x256xf32>
      %57 = vector.broadcast %53 : vector<1x256xf32> to vector<32x256xf32>
      %58 = arith.mulf %56, %57 : vector<32x256xf32>
      %59 = arith.truncf %58 : vector<32x256xf32> to vector<32x256xbf16>
      %c160 = arith.constant 160 : index
      %c0_37 = arith.constant 0 : index
      %60 = vector.load %arg16[%c160, %c0_37] : memref<384x256xbf16, #tpu.memory_space<vmem>>, vector<32x256xbf16>
      tpu.vector_store %arg16[%c160, %c0_37], %59 {strides = array<i32>} : memref<384x256xbf16, #tpu.memory_space<vmem>>, vector<32x256xbf16>,
      %c6 = arith.constant 6 : index
      %c0_38 = arith.constant 0 : index
      %61 = vector.load %arg10[%c6, %c0_38] : memref<9x256xf32, #tpu.memory_space<vmem>>, vector<1x256xf32>
      %62 = vector.extract_strided_slice %18 {offsets = [0, 15], sizes = [32, 241], strides = [1, 1]} : vector<32x256xf32> to vector<32x241xf32>
      %63 = vector.extract_strided_slice %18 {offsets = [0, 0], sizes = [32, 15], strides = [1, 1]} : vector<32x256xf32> to vector<32x15xf32>
      %64 = tpu.concatenate %62, %63 in 1 : vector<32x241xf32>, vector<32x15xf32> -> vector<32x256xf32>
      %65 = vector.broadcast %61 : vector<1x256xf32> to vector<32x256xf32>
      %66 = arith.mulf %64, %65 : vector<32x256xf32>
      %67 = arith.truncf %66 : vector<32x256xf32> to vector<32x256xbf16>
      %c192 = arith.constant 192 : index
      %c0_39 = arith.constant 0 : index
      %68 = vector.load %arg16[%c192, %c0_39] : memref<384x256xbf16, #tpu.memory_space<vmem>>, vector<32x256xbf16>
      tpu.vector_store %arg16[%c192, %c0_39], %67 {strides = array<i32>} : memref<384x256xbf16, #tpu.memory_space<vmem>>, vector<32x256xbf16>,
      %c7 = arith.constant 7 : index
      %c0_40 = arith.constant 0 : index
      %69 = vector.load %arg10[%c7, %c0_40] : memref<9x256xf32, #tpu.memory_space<vmem>>, vector<1x256xf32>
      %70 = vector.extract_strided_slice %18 {offsets = [0, 16], sizes = [32, 240], strides = [1, 1]} : vector<32x256xf32> to vector<32x240xf32>
      %71 = vector.extract_strided_slice %18 {offsets = [0, 0], sizes = [32, 16], strides = [1, 1]} : vector<32x256xf32> to vector<32x16xf32>
      %72 = tpu.concatenate %70, %71 in 1 : vector<32x240xf32>, vector<32x16xf32> -> vector<32x256xf32>
      %73 = vector.broadcast %69 : vector<1x256xf32> to vector<32x256xf32>
      %74 = arith.mulf %72, %73 : vector<32x256xf32>
      %75 = arith.truncf %74 : vector<32x256xf32> to vector<32x256xbf16>
      %c224 = arith.constant 224 : index
      %c0_41 = arith.constant 0 : index
      %76 = vector.load %arg16[%c224, %c0_41] : memref<384x256xbf16, #tpu.memory_space<vmem>>, vector<32x256xbf16>
      tpu.vector_store %arg16[%c224, %c0_41], %75 {strides = array<i32>} : memref<384x256xbf16, #tpu.memory_space<vmem>>, vector<32x256xbf16>,
      %c8 = arith.constant 8 : index
      %c0_42 = arith.constant 0 : index
      %77 = vector.load %arg10[%c8, %c0_42] : memref<9x256xf32, #tpu.memory_space<vmem>>, vector<1x256xf32>
      %78 = vector.extract_strided_slice %18 {offsets = [0, 17], sizes = [32, 239], strides = [1, 1]} : vector<32x256xf32> to vector<32x239xf32>
      %79 = vector.extract_strided_slice %18 {offsets = [0, 0], sizes = [32, 17], strides = [1, 1]} : vector<32x256xf32> to vector<32x17xf32>
      %80 = tpu.concatenate %78, %79 in 1 : vector<32x239xf32>, vector<32x17xf32> -> vector<32x256xf32>
      %81 = vector.broadcast %77 : vector<1x256xf32> to vector<32x256xf32>
      %82 = arith.mulf %80, %81 : vector<32x256xf32>
      %83 = arith.truncf %82 : vector<32x256xf32> to vector<32x256xbf16>
      %c256 = arith.constant 256 : index
      %c0_43 = arith.constant 0 : index
      %84 = vector.load %arg16[%c256, %c0_43] : memref<384x256xbf16, #tpu.memory_space<vmem>>, vector<32x256xbf16>
      tpu.vector_store %arg16[%c256, %c0_43], %83 {strides = array<i32>} : memref<384x256xbf16, #tpu.memory_space<vmem>>, vector<32x256xbf16>,
      %85 = arith.index_cast %arg19 : i32 to index
      %c0_44 = arith.constant 0 : index
      %c0_45 = arith.constant 0 : index
      %86 = vector.load %arg14[%85, %c0_44, %c0_45] : memref<8x128x256xf32, #tpu.memory_space<vmem>>, vector<1x128x256xf32>
      %87 = vector.shape_cast %86 : vector<1x128x256xf32> to vector<128x256xf32>
      %c0_46 = arith.constant 0 : index
      %c0_47 = arith.constant 0 : index
      %88 = vector.load %arg3[%c0_46, %c0_47] : memref<128x384xbf16, #tpu.memory_space<vmem>>, vector<128x384xbf16>
      %c0_48 = arith.constant 0 : index
      %c0_49 = arith.constant 0 : index
      %89 = vector.load %arg16[%c0_48, %c0_49] : memref<384x256xbf16, #tpu.memory_space<vmem>>, vector<384x256xbf16>
      %cst_50 = arith.constant dense<0.000000e+00> : vector<128x256xf32>
      %90 = tpu.matmul %88, %89, %cst_50 {dimension_numbers = #tpu.dot_dimension_numbers<[1], [0], [0], [1], [0, 0, 1, 1], [], []>} : vector<128x384xbf16>, vector<384x256xbf16>, vector<128x256xf32> -> vector<128x256xf32>
      %91 = arith.addf %87, %90 : vector<128x256xf32>
      %c0_51 = arith.constant 0 : index
      %c0_52 = arith.constant 0 : index
      %92 = vector.load %arg18[%c0_51, %c0_52] : memref<32x256xf32, #tpu.memory_space<vmem>>, vector<32x256xf32>
      %93 = vector.extract_strided_slice %91 {offsets = [0, 0], sizes = [32, 256], strides = [1, 1]} : vector<128x256xf32> to vector<32x256xf32>
      %c0_53 = arith.constant 0 : index
      %c0_54 = arith.constant 0 : index
      %94 = vector.load %arg5[%c0_53, %c0_54] : memref<32x256xf32, #tpu.memory_space<vmem>>, vector<32x256xf32>
      %95 = arith.mulf %94, %92 : vector<32x256xf32>
      %96 = arith.addf %93, %95 : vector<32x256xf32>
      %97 = arith.negf %96 : vector<32x256xf32>
      %98 = math.exp %97 : vector<32x256xf32>
      %cst_55 = arith.constant 1.000000e+00 : f32
      %99 = vector.broadcast %cst_55 : f32 to vector<32x256xf32>
      %100 = arith.addf %99, %98 : vector<32x256xf32>
      %101 = arith.divf %99, %100 : vector<32x256xf32>
      %102 = vector.extract_strided_slice %91 {offsets = [32, 0], sizes = [32, 256], strides = [1, 1]} : vector<128x256xf32> to vector<32x256xf32>
      %c0_56 = arith.constant 0 : index
      %c0_57 = arith.constant 0 : index
      %103 = vector.load %arg6[%c0_56, %c0_57] : memref<32x256xf32, #tpu.memory_space<vmem>>, vector<32x256xf32>
      %104 = arith.mulf %103, %92 : vector<32x256xf32>
      %105 = arith.addf %102, %104 : vector<32x256xf32>
      %106 = arith.negf %105 : vector<32x256xf32>
      %107 = math.exp %106 : vector<32x256xf32>
      %cst_58 = arith.constant 1.000000e+00 : f32
      %108 = vector.broadcast %cst_58 : f32 to vector<32x256xf32>
      %109 = arith.addf %108, %107 : vector<32x256xf32>
      %110 = arith.divf %108, %109 : vector<32x256xf32>
      %111 = arith.mulf %110, %92 : vector<32x256xf32>
      %112 = vector.extract_strided_slice %91 {offsets = [64, 0], sizes = [32, 256], strides = [1, 1]} : vector<128x256xf32> to vector<32x256xf32>
      %113 = math.tanh %112 : vector<32x256xf32>
      %114 = arith.mulf %101, %113 : vector<32x256xf32>
      %115 = arith.addf %111, %114 : vector<32x256xf32>
      %116 = vector.extract_strided_slice %91 {offsets = [96, 0], sizes = [32, 256], strides = [1, 1]} : vector<128x256xf32> to vector<32x256xf32>
      %c0_59 = arith.constant 0 : index
      %c0_60 = arith.constant 0 : index
      %117 = vector.load %arg7[%c0_59, %c0_60] : memref<32x256xf32, #tpu.memory_space<vmem>>, vector<32x256xf32>
      %118 = arith.mulf %117, %115 : vector<32x256xf32>
      %119 = arith.addf %116, %118 : vector<32x256xf32>
      %120 = arith.negf %119 : vector<32x256xf32>
      %121 = math.exp %120 : vector<32x256xf32>
      %cst_61 = arith.constant 1.000000e+00 : f32
      %122 = vector.broadcast %cst_61 : f32 to vector<32x256xf32>
      %123 = arith.addf %122, %121 : vector<32x256xf32>
      %124 = arith.divf %122, %123 : vector<32x256xf32>
      %125 = math.tanh %115 : vector<32x256xf32>
      %126 = arith.mulf %124, %125 : vector<32x256xf32>
      %c0_62 = arith.constant 0 : index
      %c0_63 = arith.constant 0 : index
      %127 = vector.load %arg18[%c0_62, %c0_63] : memref<32x256xf32, #tpu.memory_space<vmem>>, vector<32x256xf32>
      tpu.vector_store %arg18[%c0_62, %c0_63], %115 {strides = array<i32>} : memref<32x256xf32, #tpu.memory_space<vmem>>, vector<32x256xf32>,
      %c0_64 = arith.constant 0 : index
      %c0_65 = arith.constant 0 : index
      %128 = vector.load %arg17[%c0_64, %c0_65] : memref<32x256xf32, #tpu.memory_space<vmem>>, vector<32x256xf32>
      tpu.vector_store %arg17[%c0_64, %c0_65], %126 {strides = array<i32>} : memref<32x256xf32, #tpu.memory_space<vmem>>, vector<32x256xf32>,
      %c0_66 = arith.constant 0 : index
      %129 = arith.index_cast %arg19 : i32 to index
      %c0_67 = arith.constant 0 : index
      %c0_68 = arith.constant 0 : index
      %130 = vector.load %arg11[%c0_66, %129, %c0_67, %c0_68] : memref<1x8x32x256xf32, #tpu.memory_space<vmem>>, vector<1x1x32x256xf32>
      %131 = vector.shape_cast %130 : vector<1x1x32x256xf32> to vector<32x256xf32>
      %132 = vector.shape_cast %126 : vector<32x256xf32> to vector<1x1x32x256xf32>
      tpu.vector_store %arg11[%c0_66, %129, %c0_67, %c0_68], %132 {strides = array<i32>} : memref<1x8x32x256xf32, #tpu.memory_space<vmem>>, vector<1x1x32x256xf32>,
      %c0_69 = arith.constant 0 : index
      %c0_70 = arith.constant 0 : index
      %c0_71 = arith.constant 0 : index
      %133 = vector.load %arg12[%c0_69, %c0_70, %c0_71] : memref<1x32x256xf32, #tpu.memory_space<vmem>>, vector<1x32x256xf32>
      %134 = vector.shape_cast %133 : vector<1x32x256xf32> to vector<32x256xf32>
      %135 = arith.addf %134, %126 : vector<32x256xf32>
      %c0_72 = arith.constant 0 : index
      %c0_73 = arith.constant 0 : index
      %c0_74 = arith.constant 0 : index
      %136 = vector.load %arg12[%c0_72, %c0_73, %c0_74] : memref<1x32x256xf32, #tpu.memory_space<vmem>>, vector<1x32x256xf32>
      %137 = vector.shape_cast %136 : vector<1x32x256xf32> to vector<32x256xf32>
      %138 = vector.shape_cast %135 : vector<32x256xf32> to vector<1x32x256xf32>
      tpu.vector_store %arg12[%c0_72, %c0_73, %c0_74], %138 {strides = array<i32>} : memref<1x32x256xf32, #tpu.memory_space<vmem>>, vector<1x32x256xf32>,
      %c0_75 = arith.constant 0 : index
      %c0_76 = arith.constant 0 : index
      %c0_77 = arith.constant 0 : index
      %139 = vector.load %arg13[%c0_75, %c0_76, %c0_77] : memref<1x32x256xf32, #tpu.memory_space<vmem>>, vector<1x32x256xf32>
      %140 = vector.shape_cast %139 : vector<1x32x256xf32> to vector<32x256xf32>
      %141 = arith.mulf %126, %126 : vector<32x256xf32>
      %142 = arith.addf %140, %141 : vector<32x256xf32>
      %c0_78 = arith.constant 0 : index
      %c0_79 = arith.constant 0 : index
      %c0_80 = arith.constant 0 : index
      %143 = vector.load %arg13[%c0_78, %c0_79, %c0_80] : memref<1x32x256xf32, #tpu.memory_space<vmem>>, vector<1x32x256xf32>
      %144 = vector.shape_cast %143 : vector<1x32x256xf32> to vector<32x256xf32>
      %145 = vector.shape_cast %142 : vector<32x256xf32> to vector<1x32x256xf32>
      tpu.vector_store %arg13[%c0_78, %c0_79, %c0_80], %145 {strides = array<i32>} : memref<1x32x256xf32, #tpu.memory_space<vmem>>, vector<1x32x256xf32>,
    }
    %c8_i32_22 = arith.constant 8 : i32
    return
  }
  func.func @transform_0(%arg0: i32) -> (i32, i32, i32, i32) {
    %c0_i32 = arith.constant 0 : i32
    %c0_i32_0 = arith.constant 0 : i32
    %c0_i32_1 = arith.constant 0 : i32
    %c0_i32_2 = arith.constant 0 : i32
    return %arg0, %c0_i32, %c0_i32_0, %c0_i32_1 : i32, i32, i32, i32
  }
  func.func @transform_1(%arg0: i32) -> (i32, i32) {
    %c0_i32 = arith.constant 0 : i32
    %c0_i32_0 = arith.constant 0 : i32
    %c0_i32_1 = arith.constant 0 : i32
    return %c0_i32, %c0_i32_0 : i32, i32
  }
  func.func @transform_2(%arg0: i32) -> (i32, i32) {
    %c0_i32 = arith.constant 0 : i32
    %c0_i32_0 = arith.constant 0 : i32
    %c0_i32_1 = arith.constant 0 : i32
    return %c0_i32, %c0_i32_0 : i32, i32
  }
  func.func @transform_3(%arg0: i32) -> (i32, i32) {
    %c0_i32 = arith.constant 0 : i32
    %c0_i32_0 = arith.constant 0 : i32
    %c0_i32_1 = arith.constant 0 : i32
    return %c0_i32, %c0_i32_0 : i32, i32
  }
  func.func @transform_4(%arg0: i32) -> (i32, i32) {
    %c0_i32 = arith.constant 0 : i32
    %c0_i32_0 = arith.constant 0 : i32
    %c0_i32_1 = arith.constant 0 : i32
    return %c0_i32, %c0_i32_0 : i32, i32
  }
  func.func @transform_5(%arg0: i32) -> (i32, i32) {
    %c0_i32 = arith.constant 0 : i32
    %c0_i32_0 = arith.constant 0 : i32
    %c0_i32_1 = arith.constant 0 : i32
    return %c0_i32, %c0_i32_0 : i32, i32
  }
  func.func @transform_6(%arg0: i32) -> (i32, i32) {
    %c0_i32 = arith.constant 0 : i32
    %c0_i32_0 = arith.constant 0 : i32
    %c0_i32_1 = arith.constant 0 : i32
    return %c0_i32, %c0_i32_0 : i32, i32
  }
  func.func @transform_7(%arg0: i32) -> (i32, i32) {
    %c0_i32 = arith.constant 0 : i32
    %c0_i32_0 = arith.constant 0 : i32
    %c0_i32_1 = arith.constant 0 : i32
    return %c0_i32, %c0_i32_0 : i32, i32
  }
  func.func @transform_8(%arg0: i32) -> (i32, i32) {
    %c0_i32 = arith.constant 0 : i32
    %c0_i32_0 = arith.constant 0 : i32
    %c0_i32_1 = arith.constant 0 : i32
    return %c0_i32, %c0_i32_0 : i32, i32
  }
  func.func @transform_9(%arg0: i32) -> (i32, i32) {
    %c0_i32 = arith.constant 0 : i32
    %c0_i32_0 = arith.constant 0 : i32
    %c0_i32_1 = arith.constant 0 : i32
    return %c0_i32, %c0_i32_0 : i32, i32
  }
  func.func @transform_10(%arg0: i32) -> (i32, i32, i32, i32) {
    %c0_i32 = arith.constant 0 : i32
    %c0_i32_0 = arith.constant 0 : i32
    %c0_i32_1 = arith.constant 0 : i32
    %c0_i32_2 = arith.constant 0 : i32
    return %arg0, %c0_i32, %c0_i32_0, %c0_i32_1 : i32, i32, i32, i32
  }
  func.func @transform_11(%arg0: i32) -> (i32, i32, i32) {
    %c0_i32 = arith.constant 0 : i32
    %c0_i32_0 = arith.constant 0 : i32
    %c0_i32_1 = arith.constant 0 : i32
    return %arg0, %c0_i32, %c0_i32_0 : i32, i32, i32
  }
  func.func @transform_12(%arg0: i32) -> (i32, i32, i32) {
    %c0_i32 = arith.constant 0 : i32
    %c0_i32_0 = arith.constant 0 : i32
    %c0_i32_1 = arith.constant 0 : i32
    return %arg0, %c0_i32, %c0_i32_0 : i32, i32, i32
  }
}

module attributes {stable_mosaic.version = 11 : i64} {
  func.func @_final_conv_kernel(%arg0: i32, %arg1: memref<1x32x256xf32, #tpu.memory_space<vmem>>, %arg2: memref<4x384xbf16, #tpu.memory_space<vmem>>, %arg3: memref<4x1xf32, #tpu.memory_space<vmem>>, %arg4: memref<32x1xf32, #tpu.memory_space<vmem>>, %arg5: memref<32x1xf32, #tpu.memory_space<vmem>>, %arg6: memref<9x256xf32, #tpu.memory_space<vmem>>, %arg7: memref<1x4x256xf32, #tpu.memory_space<vmem>>, %arg8: memref<384x256xbf16, #tpu.memory_space<vmem>>) attributes {dimension_semantics = [#tpu.dimension_semantics<parallel>], iteration_bounds = array<i64: 2>, scalar_prefetch = 0 : i64, scratch_operands = 1 : i64, tpu.core_type = #tpu.core_type<tc>, window_params = [{transform_indices = @transform_0, window_bounds = array<i64: 1, 32, 256>}, {pipeline_mode = #tpu.pipeline_mode<synchronous>, transform_indices = @transform_1, window_bounds = array<i64: 4, 384>}, {pipeline_mode = #tpu.pipeline_mode<synchronous>, transform_indices = @transform_2, window_bounds = array<i64: 4, 1>}, {pipeline_mode = #tpu.pipeline_mode<synchronous>, transform_indices = @transform_3, window_bounds = array<i64: 32, 1>}, {pipeline_mode = #tpu.pipeline_mode<synchronous>, transform_indices = @transform_4, window_bounds = array<i64: 32, 1>}, {pipeline_mode = #tpu.pipeline_mode<synchronous>, transform_indices = @transform_5, window_bounds = array<i64: 9, 256>}, {transform_indices = @transform_6, window_bounds = array<i64: 1, 4, 256>}]} {
    %cst = arith.constant 0.000000e+00 : bf16
    %0 = vector.broadcast %cst : bf16 to vector<384x256xbf16>
    %c0 = arith.constant 0 : index
    %c0_0 = arith.constant 0 : index
    %1 = vector.load %arg8[%c0, %c0_0] : memref<384x256xbf16, #tpu.memory_space<vmem>>, vector<384x256xbf16>
    tpu.vector_store %arg8[%c0, %c0_0], %0 {strides = array<i32>} : memref<384x256xbf16, #tpu.memory_space<vmem>>, vector<384x256xbf16>,
    %c0_1 = arith.constant 0 : index
    %c0_2 = arith.constant 0 : index
    %c0_3 = arith.constant 0 : index
    %2 = vector.load %arg1[%c0_1, %c0_2, %c0_3] : memref<1x32x256xf32, #tpu.memory_space<vmem>>, vector<1x32x256xf32>
    %3 = vector.shape_cast %2 : vector<1x32x256xf32> to vector<32x256xf32>
    %c0_4 = arith.constant 0 : index
    %c0_5 = arith.constant 0 : index
    %4 = vector.load %arg4[%c0_4, %c0_5] : memref<32x1xf32, #tpu.memory_space<vmem>>, vector<32x1xf32>
    %5 = vector.broadcast %4 : vector<32x1xf32> to vector<32x256xf32>
    %6 = arith.mulf %3, %5 : vector<32x256xf32>
    %c0_6 = arith.constant 0 : index
    %c0_7 = arith.constant 0 : index
    %7 = vector.load %arg5[%c0_6, %c0_7] : memref<32x1xf32, #tpu.memory_space<vmem>>, vector<32x1xf32>
    %8 = vector.broadcast %7 : vector<32x1xf32> to vector<32x256xf32>
    %9 = arith.addf %6, %8 : vector<32x256xf32>
    %c0_8 = arith.constant 0 : index
    %c0_9 = arith.constant 0 : index
    %10 = vector.load %arg6[%c0_8, %c0_9] : memref<9x256xf32, #tpu.memory_space<vmem>>, vector<1x256xf32>
    %11 = vector.extract_strided_slice %9 {offsets = [0, 239], sizes = [32, 17], strides = [1, 1]} : vector<32x256xf32> to vector<32x17xf32>
    %12 = vector.extract_strided_slice %9 {offsets = [0, 0], sizes = [32, 239], strides = [1, 1]} : vector<32x256xf32> to vector<32x239xf32>
    %13 = tpu.concatenate %11, %12 in 1 : vector<32x17xf32>, vector<32x239xf32> -> vector<32x256xf32>
    %14 = vector.broadcast %10 : vector<1x256xf32> to vector<32x256xf32>
    %15 = arith.mulf %13, %14 : vector<32x256xf32>
    %16 = arith.truncf %15 : vector<32x256xf32> to vector<32x256xbf16>
    %c0_10 = arith.constant 0 : index
    %c0_11 = arith.constant 0 : index
    %17 = vector.load %arg8[%c0_10, %c0_11] : memref<384x256xbf16, #tpu.memory_space<vmem>>, vector<32x256xbf16>
    tpu.vector_store %arg8[%c0_10, %c0_11], %16 {strides = array<i32>} : memref<384x256xbf16, #tpu.memory_space<vmem>>, vector<32x256xbf16>,
    %c1 = arith.constant 1 : index
    %c0_12 = arith.constant 0 : index
    %18 = vector.load %arg6[%c1, %c0_12] : memref<9x256xf32, #tpu.memory_space<vmem>>, vector<1x256xf32>
    %19 = vector.extract_strided_slice %9 {offsets = [0, 240], sizes = [32, 16], strides = [1, 1]} : vector<32x256xf32> to vector<32x16xf32>
    %20 = vector.extract_strided_slice %9 {offsets = [0, 0], sizes = [32, 240], strides = [1, 1]} : vector<32x256xf32> to vector<32x240xf32>
    %21 = tpu.concatenate %19, %20 in 1 : vector<32x16xf32>, vector<32x240xf32> -> vector<32x256xf32>
    %22 = vector.broadcast %18 : vector<1x256xf32> to vector<32x256xf32>
    %23 = arith.mulf %21, %22 : vector<32x256xf32>
    %24 = arith.truncf %23 : vector<32x256xf32> to vector<32x256xbf16>
    %c32 = arith.constant 32 : index
    %c0_13 = arith.constant 0 : index
    %25 = vector.load %arg8[%c32, %c0_13] : memref<384x256xbf16, #tpu.memory_space<vmem>>, vector<32x256xbf16>
    tpu.vector_store %arg8[%c32, %c0_13], %24 {strides = array<i32>} : memref<384x256xbf16, #tpu.memory_space<vmem>>, vector<32x256xbf16>,
    %c2 = arith.constant 2 : index
    %c0_14 = arith.constant 0 : index
    %26 = vector.load %arg6[%c2, %c0_14] : memref<9x256xf32, #tpu.memory_space<vmem>>, vector<1x256xf32>
    %27 = vector.extract_strided_slice %9 {offsets = [0, 241], sizes = [32, 15], strides = [1, 1]} : vector<32x256xf32> to vector<32x15xf32>
    %28 = vector.extract_strided_slice %9 {offsets = [0, 0], sizes = [32, 241], strides = [1, 1]} : vector<32x256xf32> to vector<32x241xf32>
    %29 = tpu.concatenate %27, %28 in 1 : vector<32x15xf32>, vector<32x241xf32> -> vector<32x256xf32>
    %30 = vector.broadcast %26 : vector<1x256xf32> to vector<32x256xf32>
    %31 = arith.mulf %29, %30 : vector<32x256xf32>
    %32 = arith.truncf %31 : vector<32x256xf32> to vector<32x256xbf16>
    %c64 = arith.constant 64 : index
    %c0_15 = arith.constant 0 : index
    %33 = vector.load %arg8[%c64, %c0_15] : memref<384x256xbf16, #tpu.memory_space<vmem>>, vector<32x256xbf16>
    tpu.vector_store %arg8[%c64, %c0_15], %32 {strides = array<i32>} : memref<384x256xbf16, #tpu.memory_space<vmem>>, vector<32x256xbf16>,
    %c3 = arith.constant 3 : index
    %c0_16 = arith.constant 0 : index
    %34 = vector.load %arg6[%c3, %c0_16] : memref<9x256xf32, #tpu.memory_space<vmem>>, vector<1x256xf32>
    %35 = vector.extract_strided_slice %9 {offsets = [0, 255], sizes = [32, 1], strides = [1, 1]} : vector<32x256xf32> to vector<32x1xf32>
    %36 = vector.extract_strided_slice %9 {offsets = [0, 0], sizes = [32, 255], strides = [1, 1]} : vector<32x256xf32> to vector<32x255xf32>
    %37 = tpu.concatenate %35, %36 in 1 : vector<32x1xf32>, vector<32x255xf32> -> vector<32x256xf32>
    %38 = vector.broadcast %34 : vector<1x256xf32> to vector<32x256xf32>
    %39 = arith.mulf %37, %38 : vector<32x256xf32>
    %40 = arith.truncf %39 : vector<32x256xf32> to vector<32x256xbf16>
    %c96 = arith.constant 96 : index
    %c0_17 = arith.constant 0 : index
    %41 = vector.load %arg8[%c96, %c0_17] : memref<384x256xbf16, #tpu.memory_space<vmem>>, vector<32x256xbf16>
    tpu.vector_store %arg8[%c96, %c0_17], %40 {strides = array<i32>} : memref<384x256xbf16, #tpu.memory_space<vmem>>, vector<32x256xbf16>,
    %42 = arith.truncf %9 : vector<32x256xf32> to vector<32x256xbf16>
    %c128 = arith.constant 128 : index
    %c0_18 = arith.constant 0 : index
    %43 = vector.load %arg8[%c128, %c0_18] : memref<384x256xbf16, #tpu.memory_space<vmem>>, vector<32x256xbf16>
    tpu.vector_store %arg8[%c128, %c0_18], %42 {strides = array<i32>} : memref<384x256xbf16, #tpu.memory_space<vmem>>, vector<32x256xbf16>,
    %c5 = arith.constant 5 : index
    %c0_19 = arith.constant 0 : index
    %44 = vector.load %arg6[%c5, %c0_19] : memref<9x256xf32, #tpu.memory_space<vmem>>, vector<1x256xf32>
    %45 = vector.extract_strided_slice %9 {offsets = [0, 1], sizes = [32, 255], strides = [1, 1]} : vector<32x256xf32> to vector<32x255xf32>
    %46 = vector.extract_strided_slice %9 {offsets = [0, 0], sizes = [32, 1], strides = [1, 1]} : vector<32x256xf32> to vector<32x1xf32>
    %47 = tpu.concatenate %45, %46 in 1 : vector<32x255xf32>, vector<32x1xf32> -> vector<32x256xf32>
    %48 = vector.broadcast %44 : vector<1x256xf32> to vector<32x256xf32>
    %49 = arith.mulf %47, %48 : vector<32x256xf32>
    %50 = arith.truncf %49 : vector<32x256xf32> to vector<32x256xbf16>
    %c160 = arith.constant 160 : index
    %c0_20 = arith.constant 0 : index
    %51 = vector.load %arg8[%c160, %c0_20] : memref<384x256xbf16, #tpu.memory_space<vmem>>, vector<32x256xbf16>
    tpu.vector_store %arg8[%c160, %c0_20], %50 {strides = array<i32>} : memref<384x256xbf16, #tpu.memory_space<vmem>>, vector<32x256xbf16>,
    %c6 = arith.constant 6 : index
    %c0_21 = arith.constant 0 : index
    %52 = vector.load %arg6[%c6, %c0_21] : memref<9x256xf32, #tpu.memory_space<vmem>>, vector<1x256xf32>
    %53 = vector.extract_strided_slice %9 {offsets = [0, 15], sizes = [32, 241], strides = [1, 1]} : vector<32x256xf32> to vector<32x241xf32>
    %54 = vector.extract_strided_slice %9 {offsets = [0, 0], sizes = [32, 15], strides = [1, 1]} : vector<32x256xf32> to vector<32x15xf32>
    %55 = tpu.concatenate %53, %54 in 1 : vector<32x241xf32>, vector<32x15xf32> -> vector<32x256xf32>
    %56 = vector.broadcast %52 : vector<1x256xf32> to vector<32x256xf32>
    %57 = arith.mulf %55, %56 : vector<32x256xf32>
    %58 = arith.truncf %57 : vector<32x256xf32> to vector<32x256xbf16>
    %c192 = arith.constant 192 : index
    %c0_22 = arith.constant 0 : index
    %59 = vector.load %arg8[%c192, %c0_22] : memref<384x256xbf16, #tpu.memory_space<vmem>>, vector<32x256xbf16>
    tpu.vector_store %arg8[%c192, %c0_22], %58 {strides = array<i32>} : memref<384x256xbf16, #tpu.memory_space<vmem>>, vector<32x256xbf16>,
    %c7 = arith.constant 7 : index
    %c0_23 = arith.constant 0 : index
    %60 = vector.load %arg6[%c7, %c0_23] : memref<9x256xf32, #tpu.memory_space<vmem>>, vector<1x256xf32>
    %61 = vector.extract_strided_slice %9 {offsets = [0, 16], sizes = [32, 240], strides = [1, 1]} : vector<32x256xf32> to vector<32x240xf32>
    %62 = vector.extract_strided_slice %9 {offsets = [0, 0], sizes = [32, 16], strides = [1, 1]} : vector<32x256xf32> to vector<32x16xf32>
    %63 = tpu.concatenate %61, %62 in 1 : vector<32x240xf32>, vector<32x16xf32> -> vector<32x256xf32>
    %64 = vector.broadcast %60 : vector<1x256xf32> to vector<32x256xf32>
    %65 = arith.mulf %63, %64 : vector<32x256xf32>
    %66 = arith.truncf %65 : vector<32x256xf32> to vector<32x256xbf16>
    %c224 = arith.constant 224 : index
    %c0_24 = arith.constant 0 : index
    %67 = vector.load %arg8[%c224, %c0_24] : memref<384x256xbf16, #tpu.memory_space<vmem>>, vector<32x256xbf16>
    tpu.vector_store %arg8[%c224, %c0_24], %66 {strides = array<i32>} : memref<384x256xbf16, #tpu.memory_space<vmem>>, vector<32x256xbf16>,
    %c8 = arith.constant 8 : index
    %c0_25 = arith.constant 0 : index
    %68 = vector.load %arg6[%c8, %c0_25] : memref<9x256xf32, #tpu.memory_space<vmem>>, vector<1x256xf32>
    %69 = vector.extract_strided_slice %9 {offsets = [0, 17], sizes = [32, 239], strides = [1, 1]} : vector<32x256xf32> to vector<32x239xf32>
    %70 = vector.extract_strided_slice %9 {offsets = [0, 0], sizes = [32, 17], strides = [1, 1]} : vector<32x256xf32> to vector<32x17xf32>
    %71 = tpu.concatenate %69, %70 in 1 : vector<32x239xf32>, vector<32x17xf32> -> vector<32x256xf32>
    %72 = vector.broadcast %68 : vector<1x256xf32> to vector<32x256xf32>
    %73 = arith.mulf %71, %72 : vector<32x256xf32>
    %74 = arith.truncf %73 : vector<32x256xf32> to vector<32x256xbf16>
    %c256 = arith.constant 256 : index
    %c0_26 = arith.constant 0 : index
    %75 = vector.load %arg8[%c256, %c0_26] : memref<384x256xbf16, #tpu.memory_space<vmem>>, vector<32x256xbf16>
    tpu.vector_store %arg8[%c256, %c0_26], %74 {strides = array<i32>} : memref<384x256xbf16, #tpu.memory_space<vmem>>, vector<32x256xbf16>,
    %c0_27 = arith.constant 0 : index
    %c0_28 = arith.constant 0 : index
    %76 = vector.load %arg2[%c0_27, %c0_28] : memref<4x384xbf16, #tpu.memory_space<vmem>>, vector<4x384xbf16>
    %c0_29 = arith.constant 0 : index
    %c0_30 = arith.constant 0 : index
    %77 = vector.load %arg8[%c0_29, %c0_30] : memref<384x256xbf16, #tpu.memory_space<vmem>>, vector<384x256xbf16>
    %cst_31 = arith.constant dense<0.000000e+00> : vector<4x256xf32>
    %78 = tpu.matmul %76, %77, %cst_31 {dimension_numbers = #tpu.dot_dimension_numbers<[1], [0], [0], [1], [0, 0, 1, 1], [], []>} : vector<4x384xbf16>, vector<384x256xbf16>, vector<4x256xf32> -> vector<4x256xf32>
    %c0_32 = arith.constant 0 : index
    %c0_33 = arith.constant 0 : index
    %79 = vector.load %arg3[%c0_32, %c0_33] : memref<4x1xf32, #tpu.memory_space<vmem>>, vector<4x1xf32>
    %80 = vector.broadcast %79 : vector<4x1xf32> to vector<4x256xf32>
    %81 = arith.addf %78, %80 : vector<4x256xf32>
    %82 = arith.negf %81 : vector<4x256xf32>
    %83 = math.exp %82 : vector<4x256xf32>
    %cst_34 = arith.constant 1.000000e+00 : f32
    %84 = vector.broadcast %cst_34 : f32 to vector<4x256xf32>
    %85 = arith.addf %84, %83 : vector<4x256xf32>
    %86 = arith.divf %84, %85 : vector<4x256xf32>
    %c0_35 = arith.constant 0 : index
    %c0_36 = arith.constant 0 : index
    %c0_37 = arith.constant 0 : index
    %87 = vector.load %arg7[%c0_35, %c0_36, %c0_37] : memref<1x4x256xf32, #tpu.memory_space<vmem>>, vector<1x4x256xf32>
    %88 = vector.shape_cast %87 : vector<1x4x256xf32> to vector<4x256xf32>
    %89 = vector.shape_cast %86 : vector<4x256xf32> to vector<1x4x256xf32>
    tpu.vector_store %arg7[%c0_35, %c0_36, %c0_37], %89 {strides = array<i32>} : memref<1x4x256xf32, #tpu.memory_space<vmem>>, vector<1x4x256xf32>,
    return
  }
  func.func @transform_0(%arg0: i32) -> (i32, i32, i32) {
    %c0_i32 = arith.constant 0 : i32
    %c0_i32_0 = arith.constant 0 : i32
    %c0_i32_1 = arith.constant 0 : i32
    return %arg0, %c0_i32, %c0_i32_0 : i32, i32, i32
  }
  func.func @transform_1(%arg0: i32) -> (i32, i32) {
    %c0_i32 = arith.constant 0 : i32
    %c0_i32_0 = arith.constant 0 : i32
    %c0_i32_1 = arith.constant 0 : i32
    return %c0_i32, %c0_i32_0 : i32, i32
  }
  func.func @transform_2(%arg0: i32) -> (i32, i32) {
    %c0_i32 = arith.constant 0 : i32
    %c0_i32_0 = arith.constant 0 : i32
    %c0_i32_1 = arith.constant 0 : i32
    return %c0_i32, %c0_i32_0 : i32, i32
  }
  func.func @transform_3(%arg0: i32) -> (i32, i32) {
    %c0_i32 = arith.constant 0 : i32
    %c0_i32_0 = arith.constant 0 : i32
    %c0_i32_1 = arith.constant 0 : i32
    return %c0_i32, %c0_i32_0 : i32, i32
  }
  func.func @transform_4(%arg0: i32) -> (i32, i32) {
    %c0_i32 = arith.constant 0 : i32
    %c0_i32_0 = arith.constant 0 : i32
    %c0_i32_1 = arith.constant 0 : i32
    return %c0_i32, %c0_i32_0 : i32, i32
  }
  func.func @transform_5(%arg0: i32) -> (i32, i32) {
    %c0_i32 = arith.constant 0 : i32
    %c0_i32_0 = arith.constant 0 : i32
    %c0_i32_1 = arith.constant 0 : i32
    return %c0_i32, %c0_i32_0 : i32, i32
  }
  func.func @transform_6(%arg0: i32) -> (i32, i32, i32) {
    %c0_i32 = arith.constant 0 : i32
    %c0_i32_0 = arith.constant 0 : i32
    %c0_i32_1 = arith.constant 0 : i32
    return %arg0, %c0_i32, %c0_i32_0 : i32, i32, i32
  }
}

</mosaic_0001>

<bundles_post_ra>
// kernel: seq2seq_forward.5
= control target key start
LH: loop header
LB: loop body
LE: loop exit
PB: predicated region body
PF: predicated region fallthrough
CT: control target
= control target key end

     0   :  { %s1825_s21 = smov 0   ;;  %s2102_s0 = inlined_call_operand.vmem [shape: f32[2,32,256], index: 0, kind: input, shape index: {}]   ;;  %s2103_s1 = inlined_call_operand.vmem [shape: bf16[4,384], index: 1, kind: input, shape index: {}]   ;;  %s2104_s2 = inlined_call_operand.vmem [shape: f32[4,1], index: 2, kind: input, shape index: {}]   ;;  %s2105_s3 = inlined_call_operand.vmem [shape: f32[32,1], index: 3, kind: input, shape index: {}]   ;;  %s2106_s4 = inlined_call_operand.vmem [shape: f32[32,1], index: 4, kind: input, shape index: {}]   ;;  %s2107_s5 = inlined_call_operand.vmem [shape: f32[9,256], index: 5, kind: input, shape index: {}]   ;;  %s2108_s6 = inlined_call_operand.vmem [shape: f32[2,4,256], index: 6, kind: output, shape index: {}]  }
   0x1 LB: > { %s1565_s22 = sadd.s32 4294967295, %s1778_s21   ;;  %p1569_p0 = scmp.ge.s32.totalorder %s1778_s21, 1  ;;  %s1778_s21 = sphi %s1825_s21, %s16_s21  }
   0x2   : > { %p212_p1 = scmp.lt.s32.totalorder %s1778_s21, 3 }
   0x4   : > { %p213_p2 = pnand %p1569_p0, %p212_p1 }
   0x5   : > { %p242_p3 = scmp.lt.s32.totalorder (!%p213_p2), %s1565_s22, 1  ;;  %s1781_s19 = smov (!%p213_p2), 1  }
   0x6   : > { %216 = sbr.rel (%p213_p2) target bundleno = 625 (0x271), region = 44  ;;  %s1782_s20 = smov (!%p213_p2), 15  }
   0x7   : > { %s1783_s23 = smov (!%p213_p2), 16   ;;  %s1784_s24 = smov (!%p213_p2), 17  }
   0x8   : > { %s1785_s25 = smov (!%p213_p2), 112   ;;  %s1786_s26 = smov (!%p213_p2), 113  }
   0x9   : > { %s1787_s27 = smov (!%p213_p2), 127   ;;  %s1789_s30 = smov (!%p213_p2), 111  }
   0xb   : > { %v343_v0 = vld [vmem:[%s2106_s4 + $0x10] sm:$0xff]  ;;  %v1780_v2 = vmov 0   ;;  %v344_v5 = vld [vmem:[%s2106_s4 + $0x18] sm:$0xff]  ;;  %v310_v7 = vld [vmem:[%s2105_s3 + $0x8] sm:$0xff]  ;;  %s2110_s22 = smov (!%p242_p3, %s1565_s22), 1  ;;  %v420_v43 = vlaneseq  ;;  %vm660_vm0 = vcmask 7168  }
   0xc   : > { %v311_v1 = vld [vmem:[%s2105_s3 + $0x10] sm:$0xff]  ;;  %1762 = vset.pattern.permute.xlu1 %v1780_v2  ;;  %v1653_v3 = vcombine.low %v1780_v2, %v1780_v2  ;;  %v1654_v4 = vcombine.high %v1780_v2, %v1780_v2  ;;  %1761 = vset.pattern.permute.xlu0 %v1780_v2  ;;  %v312_v6 = vld [vmem:[%s2105_s3 + $0x18] sm:$0xff]  ;;  %v309_v8 = vld [vmem:[%s2105_s3] sm:$0xff]  ;;  %s1669_s15 = sshll.u32 %s2110_s22, 6  ;;  %v1788_v44 = vmov 1983009808  }
   0xd   : > { %357 = vperm.xlu1 %1762, %v343_v0   ;;  %325 = vperm.xlu0 %1761, %v311_v1   ;;  %v342_v9 = vld [vmem:[%s2106_s4 + $0x8] sm:$0xff]  ;;  %v341_v10 = vld [vmem:[%s2106_s4] sm:$0xff]  ;;  %s1867_s18 = scalar_lea.vmem %s2102_s0, %s1669_s15  ;;  %v1154_v45 = vunpack.c.l.s4 %v1788_v44  ;;  %v421_v46 = vshrl.u32 %v420_v43, 7  ;;  %vm574_vm1 = vcmask 121856   ;;  %vm488_vm2 = vcmask 130048  }
   0xe   : > { %1452 = vmatprep.subr.bf16.mxu1 %v1654_v4  ;;  %1484 = vmatprep.mubr.bf16.mxu1 %v1780_v2  ;;  %v306_v11 = vld [vmem:[%s1867_s18 + $0x28] sm:$0xff]  ;;  %v305_v14 = vld [vmem:[%s1867_s18 + $0x20] sm:$0xff]  ;;  %v308_v16 = vld [vmem:[%s1867_s18 + $0x38] sm:$0xff]  ;;  %vm402_vm3 = vcmask 138240   ;;  %vm942_vm4 = vcmask 916480   ;;  %vm856_vm5 = vcmask 924672  }
   0xf   : > { %1453 = vmatpush1.bf16.msra.mxu1 %v1653_v3  ;;  %v307_v21 = vld [vmem:[%s1867_s18 + $0x30] sm:$0xff]  ;;  %v302_v28 = vld [vmem:[%s1867_s18 + $0x8] sm:$0xff]  ;;  %v304_v29 = vld [vmem:[%s1867_s18 + $0x18] sm:$0xff]  ;;  %v1155_v47 = vunpack.c.0.s8 %v1154_v45  ;;  %v1960_v53 = vsub.s32 0, %v421_v46  ;;  %v1962_v54 = vsub.s32 1, %v421_v46  ;;  %vm770_vm6 = vcmask 1039360  }
  0x10   : > { %1454 = vmatprep.subr.bf16.mxu1 %v1654_v4  ;;  %v301_v32 = vld [vmem:[%s1867_s18] sm:$0xff]  ;;  %v303_v37 = vld [vmem:[%s1867_s18 + $0x10] sm:$0xff]  ;;  %vm1028_vm7 = vcmask 908288  }
  0x11   : > { %362 = vperm.xlu1 %1762, %v344_v5   ;;  %330 = vperm.xlu0 %1761, %v312_v6   ;;  %v1158_v48 = vsub.s32 %v1155_v47, %v421_v46  ;;  %v1096_v49 = vld [vmem:[%s2103_s1] sm:$0x3f] }
  0x12   : > { %v1588_v55 = vld [vmem:[%s2107_s5 + $0x3] ss:$8 sm:$0x3]  ;;  %v1152_v56 = vcombine.high %v1096_v49, %v1096_v49 }
  0x13   : > { %1455 = vmatpush1.bf16.msra.mxu1 %v1653_v3  ;;  %v1952_v50 = vrot.slane %v1096_v49, %v1158_v48  ;;  %v681_v59 = vrot.slane %v1588_v55, %v1960_v53  ;;  %v685_v60 = vrot.slane %v1588_v55, %v1962_v54 }
  0x14   : > { %1456 = vmatprep.subr.bf16.mxu1 %v1654_v4  ;;  %v1975_v63 = vrot.slane %v1152_v56, %v1158_v48 }
  0x15   : > { %320 = vperm.xlu1 %1762, %v310_v7   ;;  %315 = vperm.xlu0 %1761, %v309_v8   ;;  %v1167_v52 = vcombine.high %v1952_v50, %v1952_v50 }
  0x17   : > { %1457 = vmatpush1.bf16.msra.mxu1 %v1653_v3  ;;  %1443 = vmatprep.mubr.bf16.mxu0 %v1167_v52 }
  0x18   : > { %1458 = vmatprep.subr.bf16.mxu1 %v1654_v4 }
  0x19   : > { %352 = vperm.xlu1 %1762, %v342_v9   ;;  %347 = vperm.xlu0 %1761, %v341_v10  }
  0x1b   : > { %1459 = vmatpush1.bf16.msra.mxu1 %v1653_v3 }
  0x1c   : > { %1460 = vmatprep.subr.bf16.mxu1 %v1654_v4 }
  0x1f   : > { %1461 = vmatpush1.bf16.msra.mxu1 %v1653_v3 }
  0x20   : > { %1462 = vmatprep.subr.bf16.mxu1 %v1654_v4 }
  0x23   : > { %1463 = vmatpush1.bf16.msra.mxu1 %v1653_v3 }
  0x88   : > { %v358_v12 = vpop.permute.xlu1 %357  ;;  %v326_v13 = vpop.permute.xlu0 %325 }
  0x89   : > { %v338_v15 = vmul.f32 %v326_v13, %v306_v11  ;;  %v337_v18 = vmul.f32 %v326_v13, %v305_v14  ;;  %v1145_v11 = vld [vmem:[%s2104_s2] sm:$0xf] }
  0x8b   : > { %v1872_v17 = vadd.f32 %v358_v12, %v338_v15  ;;  %v1878_v25 = vadd.f32 %v358_v12, %v337_v18 }
  0x8c   : > { %v363_v19 = vpop.permute.xlu1 %362  ;;  %v331_v20 = vpop.permute.xlu0 %330 }
  0x8d   : > { %v340_v22 = vmul.f32 %v331_v20, %v308_v16  ;;  %644 = vrot.lane.b32.xlu0 %v1872_v17, %s1781_s19  ;;  %v339_v23 = vmul.f32 %v331_v20, %v307_v21 }
  0x8f   : > { %v1876_v24 = vadd.f32 %v363_v19, %v340_v22  ;;  %v1884_v30 = vadd.f32 %v363_v19, %v339_v23 }
  0x90   : > { %v321_v26 = vpop.permute.xlu1 %320  ;;  %v316_v27 = vpop.permute.xlu0 %315 }
  0x91   : > { %646 = vrot.lane.b32.xlu1 %v1876_v24, %s1781_s19  ;;  %656 = vrot.lane.b32.xlu0 %v1878_v25, %s1781_s19  ;;  %v334_v31 = vmul.f32 %v316_v27, %v302_v28  ;;  %v336_v35 = vmul.f32 %v321_v26, %v304_v29  ;;  %v333_v38 = vmul.f32 %v316_v27, %v301_v32 }
  0x92   : > { %v335_v40 = vmul.f32 %v321_v26, %v303_v37  ;;  %v1583_v26 = vld [vmem:[%s2107_s5 + $0x2] ss:$8 sm:$0x3] }
  0x93   : > { %v599_v32 = vrot.slane %v1583_v26, %v1962_v54 }
  0x94   : > { %v353_v33 = vpop.permute.xlu1 %352  ;;  %v348_v34 = vpop.permute.xlu0 %347 }
  0x95   : > { %v1887_v36 = vadd.f32 %v348_v34, %v334_v31  ;;  %658 = vrot.lane.b32.xlu1 %v1884_v30, %s1781_s19  ;;  %v1891_v39 = vadd.f32 %v353_v33, %v336_v35  ;;  %v1894_v41 = vadd.f32 %v348_v34, %v333_v38  ;;  %v1897_v42 = vadd.f32 %v353_v33, %v335_v40 }
  0x96   : > { %v595_v31 = vrot.slane %v1583_v26, %v1960_v53 }
  0x97   : > { %640 = vrot.lane.b32.xlu0 %v1887_v36, %s1781_s19 }
  0x99   : > { %642 = vrot.lane.b32.xlu1 %v1891_v39, %s1781_s19 }
  0x9b   : > { %652 = vrot.lane.b32.xlu0 %v1894_v41, %s1781_s19 }
  0x9d   : > { %654 = vrot.lane.b32.xlu1 %v1897_v42, %s1781_s19 }
  0x9f   : > { %558 = vrot.lane.b32.xlu0 %v1872_v17, %s1782_s20 }
  0xa1   : > { %560 = vrot.lane.b32.xlu1 %v1876_v24, %s1782_s20 }
  0xa3   : > { %570 = vrot.lane.b32.xlu0 %v1878_v25, %s1782_s20 }
  0xa5   : > { %572 = vrot.lane.b32.xlu1 %v1884_v30, %s1782_s20 }
  0xa7   : > { %554 = vrot.lane.b32.xlu0 %v1887_v36, %s1782_s20 }
  0xa9   : > { %556 = vrot.lane.b32.xlu1 %v1891_v39, %s1782_s20 }
  0xab   : > { %566 = vrot.lane.b32.xlu0 %v1894_v41, %s1782_s20 }
  0xad   : > { %568 = vrot.lane.b32.xlu1 %v1897_v42, %s1782_s20 }
  0xaf   : > { %472 = vrot.lane.b32.xlu0 %v1872_v17, %s1783_s23 }
  0xb1   : > { %474 = vrot.lane.b32.xlu1 %v1876_v24, %s1783_s23 }
  0xb3   : > { %484 = vrot.lane.b32.xlu0 %v1878_v25, %s1783_s23 }
  0xb5   : > { %486 = vrot.lane.b32.xlu1 %v1884_v30, %s1783_s23 }
  0xb7   : > { %468 = vrot.lane.b32.xlu0 %v1887_v36, %s1783_s23 }
  0xb9   : > { %470 = vrot.lane.b32.xlu1 %v1891_v39, %s1783_s23 }
  0xbb   : > { %480 = vrot.lane.b32.xlu0 %v1894_v41, %s1783_s23 }
  0xbd   : > { %482 = vrot.lane.b32.xlu1 %v1897_v42, %s1783_s23 }
  0xbf   : > { %382 = vrot.lane.b32.xlu0 %v1872_v17, %s1784_s24 }
  0xc1   : > { %384 = vrot.lane.b32.xlu1 %v1876_v24, %s1784_s24 }
  0xc3   : > { %398 = vrot.lane.b32.xlu0 %v1878_v25, %s1784_s24 }
  0xc5   : > { %400 = vrot.lane.b32.xlu1 %v1884_v30, %s1784_s24 }
  0xc7   : > { %378 = vrot.lane.b32.xlu0 %v1887_v36, %s1784_s24 }
  0xc9   : > { %380 = vrot.lane.b32.xlu1 %v1891_v39, %s1784_s24 }
  0xcb   : > { %394 = vrot.lane.b32.xlu0 %v1894_v41, %s1784_s24 }
  0xcd   : > { %396 = vrot.lane.b32.xlu1 %v1897_v42, %s1784_s24 }
  0xcf   : > { %934 = vrot.lane.b32.xlu0 %v1878_v25, %s1785_s25 }
  0xd1   : > { %936 = vrot.lane.b32.xlu1 %v1872_v17, %s1785_s25 }
  0xd3   : > { %938 = vrot.lane.b32.xlu0 %v1884_v30, %s1785_s25 }
  0xd5   : > { %940 = vrot.lane.b32.xlu1 %v1876_v24, %s1785_s25 }
  0xd7   : > { %926 = vrot.lane.b32.xlu0 %v1894_v41, %s1785_s25 }
  0xd9   : > { %928 = vrot.lane.b32.xlu1 %v1887_v36, %s1785_s25 }
  0xdb   : > { %930 = vrot.lane.b32.xlu0 %v1897_v42, %s1785_s25 }
  0xdd   : > { %932 = vrot.lane.b32.xlu1 %v1891_v39, %s1785_s25 }
  0xdf   : > { %848 = vrot.lane.b32.xlu0 %v1878_v25, %s1786_s26 }
  0xe1   : > { %850 = vrot.lane.b32.xlu1 %v1872_v17, %s1786_s26 }
  0xe3   : > { %852 = vrot.lane.b32.xlu0 %v1884_v30, %s1786_s26 }
  0xe5   : > { %854 = vrot.lane.b32.xlu1 %v1876_v24, %s1786_s26 }
  0xe7   : > { %840 = vrot.lane.b32.xlu0 %v1894_v41, %s1786_s26 }
  0xe9   : > { %842 = vrot.lane.b32.xlu1 %v1887_v36, %s1786_s26 }
  0xeb   : > { %844 = vrot.lane.b32.xlu0 %v1897_v42, %s1786_s26 }
  0xed   : > { %846 = vrot.lane.b32.xlu1 %v1891_v39, %s1786_s26 }
  0xef   : > { %762 = vrot.lane.b32.xlu0 %v1878_v25, %s1787_s27 }
  0xf1   : > { %764 = vrot.lane.b32.xlu1 %v1872_v17, %s1787_s27 }
  0xf3   : > { %766 = vrot.lane.b32.xlu0 %v1884_v30, %s1787_s27 }
  0xf5   : > { %768 = vrot.lane.b32.xlu1 %v1876_v24, %s1787_s27 }
  0xf7   : > { %754 = vrot.lane.b32.xlu0 %v1894_v41, %s1787_s27 }
  0xf9   : > { %756 = vrot.lane.b32.xlu1 %v1887_v36, %s1787_s27 }
  0xfb   : > { %758 = vrot.lane.b32.xlu0 %v1897_v42, %s1787_s27 }
  0xfd   : > { %760 = vrot.lane.b32.xlu1 %v1891_v39, %s1787_s27  ;;  %s1670_s27 = sshll.u32 %s2110_s22, 3 }
  0xff   : > { %v645_v51 = vpop.permute.xlu0 %644  ;;  %1020 = vrot.lane.b32.xlu0 %v1878_v25, %s1789_s30 }
 0x101   : > { %1022 = vrot.lane.b32.xlu1 %v1872_v17, %s1789_s30 }
 0x103   : > { %v647_v57 = vpop.permute.xlu1 %646  ;;  %1024 = vrot.lane.b32.xlu0 %v1884_v30, %s1789_s30  ;;  %v657_v58 = vpop.permute.xlu0 %656 }
 0x104   : > { %v663_v61 = vsel %vm660_vm0, %v657_v58, %v645_v51  ;;  %v675_v62 = vsel %vm660_vm0, %v645_v51, %v657_v58 }
 0x105   : > { %1026 = vrot.lane.b32.xlu1 %v1876_v24, %s1789_s30  ;;  %v692_v3 = vmul.f32 %v681_v59, %v675_v62  ;;  %v693_v6 = vmul.f32 %v685_v60, %v663_v61 }
 0x107   : > { %v659_v0 = vpop.permute.xlu1 %658  ;;  %1012 = vrot.lane.b32.xlu0 %v1894_v41, %s1789_s30 }
 0x108   : > { %v664_v1 = vsel %vm660_vm0, %v659_v0, %v647_v57  ;;  %v676_v2 = vsel %vm660_vm0, %v647_v57, %v659_v0 }
 0x109   : > { %v694_v4 = vmul.f32 %v681_v59, %v676_v2  ;;  %1014 = vrot.lane.b32.xlu1 %v1887_v36, %s1789_s30  ;;  %v641_v5 = vpop.permute.xlu0 %640  ;;  %v695_v7 = vmul.f32 %v685_v60, %v664_v1  ;;  %v1578_v2 = vld [vmem:[%s2107_s5 + $0x1] ss:$8 sm:$0x3] }
 0x10b   : > { %v643_v8 = vpop.permute.xlu1 %642  ;;  %1016 = vrot.lane.b32.xlu0 %v1897_v42, %s1789_s30  ;;  %v1722_v9 = vpack.c.bf16 %v695_v7, %v693_v6  ;;  %v1721_v10 = vpack.c.bf16 %v694_v4, %v692_v3  ;;  %v509_v6 = vrot.slane %v1578_v2, %v1960_v53  ;;  %v513_v7 = vrot.slane %v1578_v2, %v1962_v54 }
 0x10d   : > { %1411 = vmatprep.subr.bf16.mxu0 %v1722_v9  ;;  %1018 = vrot.lane.b32.xlu1 %v1891_v39, %s1789_s30  ;;  %v653_v12 = vpop.permute.xlu0 %652  ;;  %s251_s30 = scalar_lea.vmem %s2108_s6, %s1670_s27 }
 0x10e   : > { %v661_v13 = vsel %vm660_vm0, %v653_v12, %v641_v5  ;;  %v673_v14 = vsel %vm660_vm0, %v641_v5, %v653_v12  ;;  %1412 = vmatpush1.bf16.msra.mxu0 %v1721_v10 }
 0x10f   : > { %v655_v15 = vpop.permute.xlu1 %654  ;;  %1148 = vperm.xlu0 %1761, %v1145_v11   ;;  %v688_v19 = vmul.f32 %v681_v59, %v673_v14  ;;  %v689_v20 = vmul.f32 %v685_v60, %v661_v13 }
 0x110   : > { %v662_v16 = vsel %vm660_vm0, %v655_v15, %v643_v8  ;;  %v674_v18 = vsel %vm660_vm0, %v643_v8, %v655_v15 }
 0x111   : > { %v690_v21 = vmul.f32 %v681_v59, %v674_v18  ;;  %v691_v22 = vmul.f32 %v685_v60, %v662_v16  ;;  %v559_v23 = vpop.permute.xlu0 %558 }
 0x113   : > { %v561_v27 = vpop.permute.xlu1 %560  ;;  %v1720_v28 = vpack.c.bf16 %v691_v22, %v689_v20  ;;  %v1719_v29 = vpack.c.bf16 %v690_v21, %v688_v19 }
 0x115   : > { %1413 = vmatprep.subr.bf16.mxu0 %v1720_v28  ;;  %v571_v33 = vpop.permute.xlu0 %570 }
 0x116   : > { %v577_v34 = vsel %vm574_vm1, %v571_v33, %v559_v23  ;;  %v589_v35 = vsel %vm574_vm1, %v559_v23, %v571_v33  ;;  %1414 = vmatpush1.bf16.msra.mxu0 %v1719_v29 }
 0x117   : > { %v573_v37 = vpop.permute.xlu1 %572  ;;  %v606_v43 = vmul.f32 %v595_v31, %v589_v35  ;;  %v607_v44 = vmul.f32 %v599_v32, %v577_v34 }
 0x118   : > { %v578_v38 = vsel %vm574_vm1, %v573_v37, %v561_v27  ;;  %v590_v40 = vsel %vm574_vm1, %v561_v27, %v573_v37 }
 0x119   : > { %v608_v45 = vmul.f32 %v595_v31, %v590_v40  ;;  %v609_v46 = vmul.f32 %v599_v32, %v578_v38  ;;  %v555_v47 = vpop.permute.xlu0 %554  ;;  %v373_v38 = vld [vmem:[%s2107_s5] ss:$8 sm:$0x3] }
 0x11b   : > { %v557_v48 = vpop.permute.xlu1 %556  ;;  %v1718_v49 = vpack.c.bf16 %v609_v46, %v607_v44  ;;  %v1717_v51 = vpack.c.bf16 %v608_v45, %v606_v43  ;;  %v423_v45 = vrot.slane %v373_v38, %v1960_v53  ;;  %v427_v46 = vrot.slane %v373_v38, %v1962_v54 }
 0x11d   : > { %1415 = vmatprep.subr.bf16.mxu0 %v1718_v49  ;;  %v567_v52 = vpop.permute.xlu0 %566 }
 0x11e   : > { %v575_v55 = vsel %vm574_vm1, %v567_v52, %v555_v47  ;;  %v587_v56 = vsel %vm574_vm1, %v555_v47, %v567_v52  ;;  %1416 = vmatpush1.bf16.msra.mxu0 %v1717_v51 }
 0x11f   : > { %v569_v57 = vpop.permute.xlu1 %568  ;;  %v602_v60 = vmul.f32 %v595_v31, %v587_v56  ;;  %v603_v61 = vmul.f32 %v599_v32, %v575_v55 }
 0x120   : > { %v576_v58 = vsel %vm574_vm1, %v569_v57, %v557_v48  ;;  %v588_v59 = vsel %vm574_vm1, %v557_v48, %v569_v57 }
 0x121   : > { %v604_v62 = vmul.f32 %v595_v31, %v588_v59  ;;  %v605_v0 = vmul.f32 %v599_v32, %v576_v58  ;;  %v473_v1 = vpop.permute.xlu0 %472 }
 0x123   : > { %v475_v3 = vpop.permute.xlu1 %474  ;;  %v1716_v4 = vpack.c.bf16 %v605_v0, %v603_v61  ;;  %v1715_v5 = vpack.c.bf16 %v604_v62, %v602_v60 }
 0x125   : > { %1417 = vmatprep.subr.bf16.mxu0 %v1716_v4  ;;  %v485_v8 = vpop.permute.xlu0 %484 }
 0x126   : > { %v491_v9 = vsel %vm488_vm2, %v485_v8, %v473_v1  ;;  %v503_v10 = vsel %vm488_vm2, %v473_v1, %v485_v8  ;;  %1418 = vmatpush1.bf16.msra.mxu0 %v1715_v5 }
 0x127   : > { %v487_v11 = vpop.permute.xlu1 %486  ;;  %v520_v14 = vmul.f32 %v509_v6, %v503_v10  ;;  %v521_v15 = vmul.f32 %v513_v7, %v491_v9 }
 0x128   : > { %v492_v12 = vsel %vm488_vm2, %v487_v11, %v475_v3  ;;  %v504_v13 = vsel %vm488_vm2, %v475_v3, %v487_v11 }
 0x129   : > { %v522_v16 = vmul.f32 %v509_v6, %v504_v13  ;;  %v523_v18 = vmul.f32 %v513_v7, %v492_v12  ;;  %v469_v19 = vpop.permute.xlu0 %468  ;;  %v1607_v12 = vld [vmem:[%s2107_s5 + $0x7] ss:$8 sm:$0x3] }
 0x12b   : > { %v471_v20 = vpop.permute.xlu1 %470  ;;  %v1714_v21 = vpack.c.bf16 %v523_v18, %v521_v15  ;;  %v1713_v22 = vpack.c.bf16 %v522_v16, %v520_v14  ;;  %v967_v16 = vrot.slane %v1607_v12, %v1960_v53  ;;  %v971_v18 = vrot.slane %v1607_v12, %v1962_v54 }
 0x12d   : > { %1419 = vmatprep.subr.bf16.mxu0 %v1714_v21  ;;  %v481_v23 = vpop.permute.xlu0 %480 }
 0x12e   : > { %v489_v26 = vsel %vm488_vm2, %v481_v23, %v469_v19  ;;  %v501_v27 = vsel %vm488_vm2, %v469_v19, %v481_v23  ;;  %1420 = vmatpush1.bf16.msra.mxu0 %v1713_v22 }
 0x12f   : > { %v483_v28 = vpop.permute.xlu1 %482  ;;  %v516_v32 = vmul.f32 %v509_v6, %v501_v27  ;;  %v517_v33 = vmul.f32 %v513_v7, %v489_v26 }
 0x130   : > { %v490_v29 = vsel %vm488_vm2, %v483_v28, %v471_v20  ;;  %v502_v31 = vsel %vm488_vm2, %v471_v20, %v483_v28 }
 0x131   : > { %v518_v34 = vmul.f32 %v509_v6, %v502_v31  ;;  %v519_v35 = vmul.f32 %v513_v7, %v490_v29  ;;  %v383_v37 = vpop.permute.xlu0 %382 }
 0x133   : > { %v385_v40 = vpop.permute.xlu1 %384  ;;  %v1712_v43 = vpack.c.bf16 %v519_v35, %v517_v33  ;;  %v1711_v44 = vpack.c.bf16 %v518_v34, %v516_v32 }
 0x135   : > { %1421 = vmatprep.subr.bf16.mxu0 %v1712_v43  ;;  %v399_v47 = vpop.permute.xlu0 %398 }
 0x136   : > { %v405_v48 = vsel %vm402_vm3, %v399_v47, %v383_v37  ;;  %v417_v49 = vsel %vm402_vm3, %v383_v37, %v399_v47  ;;  %1422 = vmatpush1.bf16.msra.mxu0 %v1711_v44 }
 0x137   : > { %v401_v51 = vpop.permute.xlu1 %400  ;;  %v434_v56 = vmul.f32 %v423_v45, %v417_v49  ;;  %v435_v57 = vmul.f32 %v427_v46, %v405_v48 }
 0x138   : > { %v406_v52 = vsel %vm402_vm3, %v401_v51, %v385_v40  ;;  %v418_v55 = vsel %vm402_vm3, %v385_v40, %v401_v51 }
 0x139   : > { %v436_v58 = vmul.f32 %v423_v45, %v418_v55  ;;  %v437_v59 = vmul.f32 %v427_v46, %v406_v52  ;;  %v379_v60 = vpop.permute.xlu0 %378  ;;  %v1602_v52 = vld [vmem:[%s2107_s5 + $0x6] ss:$8 sm:$0x3] }
 0x13b   : > { %v381_v61 = vpop.permute.xlu1 %380  ;;  %v1710_v62 = vpack.c.bf16 %v437_v59, %v435_v57  ;;  %v1709_v0 = vpack.c.bf16 %v436_v58, %v434_v56  ;;  %v881_v58 = vrot.slane %v1602_v52, %v1960_v53  ;;  %v885_v59 = vrot.slane %v1602_v52, %v1962_v54 }
 0x13d   : > { %1423 = vmatprep.subr.bf16.mxu0 %v1710_v62  ;;  %v395_v1 = vpop.permute.xlu0 %394 }
 0x13e   : > { %v403_v2 = vsel %vm402_vm3, %v395_v1, %v379_v60  ;;  %v415_v3 = vsel %vm402_vm3, %v379_v60, %v395_v1  ;;  %1424 = vmatpush1.bf16.msra.mxu0 %v1709_v0 }
 0x13f   : > { %v397_v4 = vpop.permute.xlu1 %396  ;;  %v430_v7 = vmul.f32 %v423_v45, %v415_v3  ;;  %v431_v8 = vmul.f32 %v427_v46, %v403_v2 }
 0x140   : > { %v404_v5 = vsel %vm402_vm3, %v397_v4, %v381_v61  ;;  %v416_v6 = vsel %vm402_vm3, %v381_v61, %v397_v4 }
 0x141   : > { %v432_v9 = vmul.f32 %v423_v45, %v416_v6  ;;  %v433_v10 = vmul.f32 %v427_v46, %v404_v5  ;;  %v935_v11 = vpop.permute.xlu0 %934 }
 0x143   : > { %v937_v13 = vpop.permute.xlu1 %936  ;;  %v1708_v14 = vpack.c.bf16 %v433_v10, %v431_v8  ;;  %v1707_v15 = vpack.c.bf16 %v432_v9, %v430_v7 }
 0x144   : > { %v945_v20 = vsel %vm942_vm4, %v935_v11, %v937_v13  ;;  %v961_v21 = vsel %vm942_vm4, %v937_v13, %v935_v11 }
 0x145   : > { %1425 = vmatprep.subr.bf16.mxu0 %v1708_v14  ;;  %v939_v19 = vpop.permute.xlu0 %938  ;;  %v978_v27 = vmul.f32 %v967_v16, %v945_v20  ;;  %v979_v28 = vmul.f32 %v971_v18, %v961_v21 }
 0x146   : > { %1426 = vmatpush1.bf16.msra.mxu0 %v1707_v15 }
 0x147   : > { %v941_v22 = vpop.permute.xlu1 %940 }
 0x148   : > { %v946_v23 = vsel %vm942_vm4, %v939_v19, %v941_v22  ;;  %v962_v26 = vsel %vm942_vm4, %v941_v22, %v939_v19 }
 0x149   : > { %v980_v29 = vmul.f32 %v967_v16, %v946_v23  ;;  %v981_v31 = vmul.f32 %v971_v18, %v962_v26  ;;  %v927_v32 = vpop.permute.xlu0 %926  ;;  %v1597_v23 = vld [vmem:[%s2107_s5 + $0x5] ss:$8 sm:$0x3] }
 0x14b   : > { %v929_v33 = vpop.permute.xlu1 %928  ;;  %v1738_v34 = vpack.c.bf16 %v981_v31, %v979_v28  ;;  %v1737_v35 = vpack.c.bf16 %v980_v29, %v978_v27  ;;  %v795_v29 = vrot.slane %v1597_v23, %v1960_v53  ;;  %v799_v31 = vrot.slane %v1597_v23, %v1962_v54 }
 0x14c   : > { %v943_v38 = vsel %vm942_vm4, %v927_v32, %v929_v33  ;;  %v959_v40 = vsel %vm942_vm4, %v929_v33, %v927_v32 }
 0x14d   : > { %1427 = vmatprep.subr.bf16.mxu0 %v1738_v34  ;;  %v931_v37 = vpop.permute.xlu0 %930  ;;  %v974_v46 = vmul.f32 %v967_v16, %v943_v38  ;;  %v975_v47 = vmul.f32 %v971_v18, %v959_v40 }
 0x14e   : > { %1428 = vmatpush2.bf16.msra.mxu0 %v1737_v35 }
 0x14f   : > { %v933_v43 = vpop.permute.xlu1 %932 }
 0x150   : > { %v944_v44 = vsel %vm942_vm4, %v931_v37, %v933_v43  ;;  %v960_v45 = vsel %vm942_vm4, %v933_v43, %v931_v37 }
 0x151   : > { %v976_v48 = vmul.f32 %v967_v16, %v944_v44  ;;  %v977_v49 = vmul.f32 %v971_v18, %v960_v45  ;;  %v849_v51 = vpop.permute.xlu0 %848 }
 0x153   : > { %v851_v55 = vpop.permute.xlu1 %850  ;;  %v1736_v56 = vpack.c.bf16 %v977_v49, %v975_v47  ;;  %v1735_v57 = vpack.c.bf16 %v976_v48, %v974_v46 }
 0x154   : > { %v859_v61 = vsel %vm856_vm5, %v849_v51, %v851_v55  ;;  %v875_v62 = vsel %vm856_vm5, %v851_v55, %v849_v51 }
 0x155   : > { %1429 = vmatprep.subr.bf16.mxu0 %v1736_v56  ;;  %v853_v60 = vpop.permute.xlu0 %852  ;;  %v892_v3 = vmul.f32 %v881_v58, %v859_v61  ;;  %v893_v4 = vmul.f32 %v885_v59, %v875_v62 }
 0x156   : > { %1430 = vmatpush2.bf16.msra.mxu0 %v1735_v57 }
 0x157   : > { %v855_v0 = vpop.permute.xlu1 %854 }
 0x158   : > { %v860_v1 = vsel %vm856_vm5, %v853_v60, %v855_v0  ;;  %v876_v2 = vsel %vm856_vm5, %v855_v0, %v853_v60 }
 0x159   : > { %v894_v5 = vmul.f32 %v881_v58, %v860_v1  ;;  %v895_v6 = vmul.f32 %v885_v59, %v876_v2  ;;  %v841_v7 = vpop.permute.xlu0 %840  ;;  %v1612_v1 = vld [vmem:[%s2107_s5 + $0x10] ss:$8 sm:$0x3] }
 0x15b   : > { %v843_v8 = vpop.permute.xlu1 %842  ;;  %v1734_v9 = vpack.c.bf16 %v895_v6, %v893_v4  ;;  %v1733_v10 = vpack.c.bf16 %v894_v5, %v892_v3  ;;  %v1053_v5 = vrot.slane %v1612_v1, %v1960_v53  ;;  %v1057_v6 = vrot.slane %v1612_v1, %v1962_v54 }
 0x15c   : > { %v857_v12 = vsel %vm856_vm5, %v841_v7, %v843_v8  ;;  %v873_v13 = vsel %vm856_vm5, %v843_v8, %v841_v7  ;;  %v1726_v8 = vpack.c.bf16 %v1876_v24, %v1872_v17  ;;  %v1725_v53 = vpack.c.bf16 %v1884_v30, %v1878_v25 }
 0x15d   : > { %1431 = vmatprep.subr.bf16.mxu0 %v1734_v9  ;;  %v845_v11 = vpop.permute.xlu0 %844  ;;  %v888_v18 = vmul.f32 %v881_v58, %v857_v12  ;;  %v889_v19 = vmul.f32 %v885_v59, %v873_v13  ;;  %v1724_v54 = vpack.c.bf16 %v1891_v39, %v1887_v36 }
 0x15e   : > { %1432 = vmatpush2.bf16.msra.mxu0 %v1733_v10 }
 0x15f   : > { %v847_v14 = vpop.permute.xlu1 %846 }
 0x160   : > { %v858_v15 = vsel %vm856_vm5, %v845_v11, %v847_v14  ;;  %v874_v16 = vsel %vm856_vm5, %v847_v14, %v845_v11 }
 0x161   : > { %v890_v20 = vmul.f32 %v881_v58, %v858_v15  ;;  %v891_v21 = vmul.f32 %v885_v59, %v874_v16  ;;  %v763_v22 = vpop.permute.xlu0 %762 }
 0x163   : > { %v765_v26 = vpop.permute.xlu1 %764  ;;  %v1732_v27 = vpack.c.bf16 %v891_v21, %v889_v19  ;;  %v1731_v28 = vpack.c.bf16 %v890_v20, %v888_v18  ;;  %v1723_v21 = vpack.c.bf16 %v1897_v42, %v1894_v41 }
 0x164   : > { %v773_v33 = vsel %vm770_vm6, %v763_v22, %v765_v26  ;;  %v789_v34 = vsel %vm770_vm6, %v765_v26, %v763_v22 }
 0x165   : > { %1433 = vmatprep.subr.bf16.mxu0 %v1732_v27  ;;  %v767_v32 = vpop.permute.xlu0 %766  ;;  %v806_v40 = vmul.f32 %v795_v29, %v773_v33  ;;  %v807_v43 = vmul.f32 %v799_v31, %v789_v34 }
 0x166   : > { %1434 = vmatpush2.bf16.msra.mxu0 %v1731_v28 }
 0x167   : > { %v769_v35 = vpop.permute.xlu1 %768 }
 0x168   : > { %v774_v37 = vsel %vm770_vm6, %v767_v32, %v769_v35  ;;  %v790_v38 = vsel %vm770_vm6, %v769_v35, %v767_v32 }
 0x169   : > { %v808_v44 = vmul.f32 %v795_v29, %v774_v37  ;;  %v809_v45 = vmul.f32 %v799_v31, %v790_v38  ;;  %v755_v46 = vpop.permute.xlu0 %754 }
 0x16b   : > { %v757_v47 = vpop.permute.xlu1 %756  ;;  %v1730_v48 = vpack.c.bf16 %v809_v45, %v807_v43  ;;  %v1729_v49 = vpack.c.bf16 %v808_v44, %v806_v40 }
 0x16c   : > { %v771_v52 = vsel %vm770_vm6, %v755_v46, %v757_v47  ;;  %v787_v55 = vsel %vm770_vm6, %v757_v47, %v755_v46 }
 0x16d   : > { %1435 = vmatprep.subr.bf16.mxu0 %v1730_v48  ;;  %v759_v51 = vpop.permute.xlu0 %758  ;;  %v802_v59 = vmul.f32 %v795_v29, %v771_v52  ;;  %v803_v60 = vmul.f32 %v799_v31, %v787_v55 }
 0x16e   : > { %1436 = vmatpush2.bf16.msra.mxu0 %v1729_v49 }
 0x16f   : > { %v761_v56 = vpop.permute.xlu1 %760 }
 0x170   : > { %v772_v57 = vsel %vm770_vm6, %v759_v51, %v761_v56  ;;  %v788_v58 = vsel %vm770_vm6, %v761_v56, %v759_v51 }
 0x171   : > { %v804_v61 = vmul.f32 %v795_v29, %v772_v57  ;;  %v805_v62 = vmul.f32 %v799_v31, %v788_v58  ;;  %v1021_v0 = vpop.permute.xlu0 %1020 }
 0x173   : > { %v1023_v2 = vpop.permute.xlu1 %1022  ;;  %v1728_v3 = vpack.c.bf16 %v805_v62, %v803_v60  ;;  %v1727_v4 = vpack.c.bf16 %v804_v61, %v802_v59 }
 0x174   : > { %v1031_v9 = vsel %vm1028_vm7, %v1021_v0, %v1023_v2  ;;  %v1047_v10 = vsel %vm1028_vm7, %v1023_v2, %v1021_v0 }
 0x175   : > { %1437 = vmatprep.subr.bf16.mxu0 %v1728_v3  ;;  %v1025_v7 = vpop.permute.xlu0 %1024  ;;  %v1064_v14 = vmul.f32 %v1053_v5, %v1031_v9  ;;  %v1065_v15 = vmul.f32 %v1057_v6, %v1047_v10 }
 0x176   : > { %1438 = vmatpush2.bf16.msra.mxu0 %v1727_v4 }
 0x177   : > { %v1027_v11 = vpop.permute.xlu1 %1026  ;;  %1439 = vmatprep.subr.bf16.mxu0 %v1726_v8 }
 0x178   : > { %v1032_v12 = vsel %vm1028_vm7, %v1025_v7, %v1027_v11  ;;  %v1048_v13 = vsel %vm1028_vm7, %v1027_v11, %v1025_v7 }
 0x179   : > { %v1066_v17 = vmul.f32 %v1053_v5, %v1032_v12  ;;  %v1067_v24 = vmul.f32 %v1057_v6, %v1048_v13  ;;  %v1013_v16 = vpop.permute.xlu0 %1012 }
 0x17a   : > { %1440 = vmatpush2.bf16.msra.mxu0 %v1725_v53 }
 0x17b   : > { %v1015_v18 = vpop.permute.xlu1 %1014  ;;  %1441 = vmatprep.subr.bf16.mxu0 %v1724_v54  ;;  %v1742_v19 = vpack.c.bf16 %v1067_v24, %v1065_v15  ;;  %v1741_v20 = vpack.c.bf16 %v1066_v17, %v1064_v14 }
 0x17c   : > { %v1029_v22 = vsel %vm1028_vm7, %v1013_v16, %v1015_v18  ;;  %v1045_v25 = vsel %vm1028_vm7, %v1015_v18, %v1013_v16 }
 0x17d   : > { %1464 = vmatprep.subr.bf16.mxu1 %v1742_v19  ;;  %v1017_v30 = vpop.permute.xlu0 %1016  ;;  %v1060_v26 = vmul.f32 %v1053_v5, %v1029_v22  ;;  %v1061_v27 = vmul.f32 %v1057_v6, %v1045_v25 }
 0x17e   : > { %1442 = vmatpush2.bf16.msra.mxu0 %v1723_v21  ;;  %1465 = vmatpush1.bf16.msra.mxu1 %v1741_v20 }
 0x17f   : > { %v1019_v36 = vpop.permute.xlu1 %1018 }
 0x180   : > { %v1030_v39 = vsel %vm1028_vm7, %v1017_v30, %v1019_v36  ;;  %v1046_v23 = vsel %vm1028_vm7, %v1019_v36, %v1017_v30 }
 0x181   : > { %v1062_v28 = vmul.f32 %v1053_v5, %v1030_v39  ;;  %v1063_v29 = vmul.f32 %v1057_v6, %v1046_v23  ;;  %1444 = vmatmul.mubr.bf16.vlgmr.msra.gmra.mxu0 %v1952_v50 }
 0x183   : > { %v1740_v41 = vpack.c.bf16 %v1063_v29, %v1061_v27  ;;  %v1739_v42 = vpack.c.bf16 %v1062_v28, %v1060_v26 }
 0x185   : > { %1466 = vmatprep.subr.bf16.mxu1 %v1740_v41 }
 0x186   : > { %1467 = vmatpush1.bf16.msra.mxu1 %v1739_v42 }
 0x189   : > { %1485 = vmatmul.mubr.bf16.vlgmr.msra.gmra.mxu1 %v1975_v63 }
 0x18a   : > { %v1149_v34 = vpop.permute.xlu0 %1148 }
 0x241   : > { %v1445_v31 = vpop.f32.mrf.mxu0 }
 0x242   : > { %v1446_v37 = vadd.f32 %v1445_v31, %v1149_v34 }
 0x243   : > { %v1447_v32 = vpop.f32.mrf.mxu0 }
 0x244   : > { %v1448_v40 = vadd.f32 %v1447_v32, %v1149_v34 }
 0x245   : > { %v1449_v33 = vpop.f32.mrf.mxu0 }
 0x247   : > { %v1450_v35 = vpop.f32.mrf.mxu0 }
 0x249   : > { %v1486_v38 = vpop.f32.mrf.mxu1 }
 0x24a   : > { %v1487_v43 = vadd.f32 %v1486_v38, %v1446_v37 }
 0x24b   : > { %v1488_v44 = vpop.f32.mrf.mxu1 }
 0x24c   : > { %v1665_v45 = vmul.f32 -1.442695, %v1487_v43  ;;  %v1489_v46 = vadd.f32 %v1488_v44, %v1448_v40 }
 0x24d   : > { %v1490_v50 = vpop.f32.mrf.mxu1 }
 0x24e   : > { %1764 = vpow2.f32 %v1665_v45  ;;  %v1666_v47 = vmul.f32 -1.442695, %v1489_v46 }
 0x24f   : > { %v1491_v48 = vpop.f32.mrf.mxu1 }
 0x250   : > { %1766 = vpow2.f32 %v1666_v47 }
 0x25b   : > { %v1765_v49 = vpop.eup %1764 }
 0x25c   : > { %v1499_v63 = vadd.f32 1.0, %v1765_v49 }
 0x25d   : > { %v1767_v51 = vpop.eup %1766 }
 0x25e   : > { %v1500_v52 = vadd.f32 1.0, %v1767_v51  ;;  %1768 = vrcp.f32 %v1499_v63 }
 0x260   : > { %1770 = vrcp.f32 %v1500_v52 }
 0x26b   : > { %v1769_v55 = vpop.eup %1768 }
 0x26d   : > { %v1771_v56 = vpop.eup %1770 }
 0x26e   : > { %v1507_v57 = vcombine.low %v1769_v55, %v1771_v56 }
 0x270   : > { %1509 = vst [vmem:[%s251_s30] sm:$0xff] %v1507_v57 }
 0x271 PF: > { %s16_s21 = sadd.s32 1, %s1778_s21  }
 0x272   : > { %p13_p4 = scmp.ge.s32.totalorder %s16_s21, 4  }
 0x274   :  { %15 = sbr.rel (!%p13_p4) target bundleno = 1 (0x1), region = 81 }

// kernel: seq2seq_forward.4
= control target key start
LH: loop header
LB: loop body
LE: loop exit
PB: predicated region body
PF: predicated region fallthrough
CT: control target
= control target key end

     0   :  { %s4955_s21 = smov 0   ;;  %s5949_s0 = inlined_call_operand.vmem [shape: f32[2,8,32,256], index: 0, kind: input, shape index: {}]   ;;  %s5950_s1 = inlined_call_operand.vmem [shape: bf16[128,384], index: 1, kind: input, shape index: {}]   ;;  %s5951_s2 = inlined_call_operand.vmem [shape: bf16[128,384], index: 2, kind: input, shape index: {}]   ;;  %s5952_s3 = inlined_call_operand.vmem [shape: f32[128,1], index: 3, kind: input, shape index: {}]   ;;  %s5953_s4 = inlined_call_operand.vmem [shape: f32[32,256], index: 4, kind: input, shape index: {}]   ;;  %s5954_s5 = inlined_call_operand.vmem [shape: f32[32,256], index: 5, kind: input, shape index: {}]   ;;  %s5955_s6 = inlined_call_operand.vmem [shape: f32[32,256], index: 6, kind: input, shape index: {}]   ;;  %s5956_s7 = inlined_call_operand.vmem [shape: f32[32,1], index: 7, kind: input, shape index: {}]   ;;  %s5957_s8 = inlined_call_operand.vmem [shape: f32[32,1], index: 8, kind: input, shape index: {}]   ;;  %s5958_s9 = inlined_call_operand.vmem [shape: f32[9,256], index: 9, kind: input, shape index: {}]   ;;  %s5959_s10 = inlined_call_operand.vmem [shape: f32[2,8,32,256], index: 10, kind: output, shape index: {0}]   ;;  %s5960_s11 = inlined_call_operand.vmem [shape: f32[2,32,256], index: 11, kind: output, shape index: {1}]   ;;  %s5961_s12 = inlined_call_operand.vmem [shape: f32[2,32,256], index: 12, kind: output, shape index: {2}]  }
   0x1 LB: > { %s4149_s22 = sadd.s32 4294967295, %s4860_s21   ;;  %p4153_p0 = scmp.ge.s32.totalorder %s4860_s21, 1  ;;  %s4860_s21 = sphi %s4955_s21, %s23_s21  }
   0x2   : > { %p367_p1 = scmp.lt.s32.totalorder %s4860_s21, 3 }
   0x4   : > { %p368_p2 = pnand %p4153_p0, %p367_p1 }
   0x5   : > { %p4965_p3 = scmp.lt.s32.totalorder (!%p368_p2), %s4149_s22, 1  ;;  %s5009_s20 = smov (!%p368_p2), 0  }
   0x6   : > { %371 = sbr.rel (%p368_p2) target bundleno = 1241 (0x4d9), region = 60 }
   0xb   : > { %v4870_v0 = vmov 0   ;;  %v4871_v1 = vmov 0.0   ;;  %s5964_s22 = smov (!%p4965_p3, %s4149_s22), 1 }
   0xc   : > { %476 = vst [vmem:[#allocation3 + $0xc0] sm:$0xff] %v4870_v0  ;;  %477 = vst [vmem:[#allocation3 + $0x18] sm:$0xff] %v4870_v0  ;;  %s4426_s24 = sshll.u32 %s5964_s22, 9  ;;  %s4428_s25 = sshll.u32 %s5964_s22, 6 }
   0xd   : > { %478 = vst [vmem:[#allocation3 + $0x98] sm:$0xff] %v4870_v0  ;;  %479 = vst [vmem:[#allocation3 + $0x8] sm:$0xff] %v4870_v0  ;;  %s4976_s28 = scalar_lea.vmem %s5949_s0, %s4426_s24  ;;  %s4981_s13 = scalar_lea.vmem %s5959_s10, %s4426_s24 }
   0xe   : > { %480 = vst [vmem:[#allocation3] sm:$0xff] %v4870_v0  ;;  %481 = vst [vmem:[#allocation3 + $0x78] sm:$0xff] %v4870_v0  ;;  %s4986_s16 = scalar_lea.vmem %s5960_s11, %s4428_s25  ;;  %s4991_s19 = scalar_lea.vmem %s5961_s12, %s4428_s25 }
   0xf   : > { %482 = vst [vmem:[#allocation3 + $0x50] sm:$0xff] %v4870_v0  ;;  %483 = vst [vmem:[#allocation3 + $0x68] sm:$0xff] %v4870_v0 }
  0x10   : > { %484 = vst [vmem:[#allocation3 + $0x70] sm:$0xff] %v4870_v0  ;;  %485 = vst [vmem:[#allocation3 + $0x30] sm:$0xff] %v4870_v0 }
  0x11   : > { %486 = vst [vmem:[#allocation3 + $0x158] sm:$0xff] %v4870_v0  ;;  %487 = vst [vmem:[#allocation3 + $0x150] sm:$0xff] %v4870_v0 }
  0x12   : > { %524 = vst [vmem:[#allocation4 + $0x110] sm:$0xff] %v4870_v0  ;;  %525 = vst [vmem:[#allocation4 + $0x38] sm:$0xff] %v4870_v0 }
  0x13   : > { %526 = vst [vmem:[#allocation4 + $0xe8] sm:$0xff] %v4870_v0  ;;  %527 = vst [vmem:[#allocation4 + $0xd8] sm:$0xff] %v4870_v0 }
  0x14   : > { %528 = vst [vmem:[#allocation4 + $0x68] sm:$0xff] %v4870_v0  ;;  %529 = vst [vmem:[#allocation4 + $0x50] sm:$0xff] %v4870_v0 }
  0x15   : > { %530 = vst [vmem:[#allocation4 + $0x10] sm:$0xff] %v4870_v0  ;;  %531 = vst [vmem:[#allocation4 + $0x18] sm:$0xff] %v4870_v0 }
  0x16   : > { %532 = vst [vmem:[#allocation4 + $0x148] sm:$0xff] %v4870_v0  ;;  %533 = vst [vmem:[#allocation4 + $0x30] sm:$0xff] %v4870_v0 }
  0x17   : > { %534 = vst [vmem:[#allocation4 + $0x58] sm:$0xff] %v4870_v0  ;;  %535 = vst [vmem:[#allocation4 + $0x138] sm:$0xff] %v4870_v0 }
  0x18   : > { %536 = vst [vmem:[#allocation5 + $0x18] sm:$0xff] %v4871_v1  ;;  %537 = vst [vmem:[#allocation5 + $0x8] sm:$0xff] %v4871_v1 }
  0x19   : > { %538 = vst [vmem:[#allocation5] sm:$0xff] %v4871_v1  ;;  %539 = vst [vmem:[#allocation5 + $0x30] sm:$0xff] %v4871_v1 }
  0x1a   : > { %540 = vst [vmem:[#allocation5 + $0x20] sm:$0xff] %v4871_v1  ;;  %541 = vst [vmem:[#allocation5 + $0x10] sm:$0xff] %v4871_v1 }
  0x1b   : > { %542 = vst [vmem:[#allocation5 + $0x38] sm:$0xff] %v4871_v1  ;;  %543 = vst [vmem:[#allocation5 + $0x28] sm:$0xff] %v4871_v1 }
  0x1c   : > { %544 = vst [vmem:[#allocation6 + $0x28] sm:$0xff] %v4871_v1  ;;  %545 = vst [vmem:[#allocation6 + $0x18] sm:$0xff] %v4871_v1 }
  0x1d   : > { %546 = vst [vmem:[#allocation6 + $0x30] sm:$0xff] %v4871_v1  ;;  %547 = vst [vmem:[#allocation6 + $0x8] sm:$0xff] %v4871_v1 }
  0x1e   : > { %548 = vst [vmem:[#allocation6 + $0x38] sm:$0xff] %v4871_v1  ;;  %549 = vst [vmem:[#allocation6 + $0x20] sm:$0xff] %v4871_v1 }
  0x1f   : > { %550 = vst [vmem:[#allocation6] sm:$0xff] %v4871_v1  ;;  %551 = vst [vmem:[#allocation6 + $0x10] sm:$0xff] %v4871_v1 }
  0x20   : > { %552 = vst [vmem:[%s4986_s16] sm:$0xff] %v4871_v1  ;;  %553 = vst [vmem:[%s4986_s16 + $0x8] sm:$0xff] %v4871_v1 }
  0x21   : > { %554 = vst [vmem:[%s4986_s16 + $0x10] sm:$0xff] %v4871_v1  ;;  %555 = vst [vmem:[%s4986_s16 + $0x18] sm:$0xff] %v4871_v1 }
  0x22   : > { %556 = vst [vmem:[%s4986_s16 + $0x20] sm:$0xff] %v4871_v1  ;;  %557 = vst [vmem:[%s4986_s16 + $0x28] sm:$0xff] %v4871_v1 }
  0x23   : > { %558 = vst [vmem:[%s4986_s16 + $0x30] sm:$0xff] %v4871_v1  ;;  %559 = vst [vmem:[%s4986_s16 + $0x38] sm:$0xff] %v4871_v1 }
  0x24   : > { %560 = vst [vmem:[%s4991_s19] sm:$0xff] %v4871_v1  ;;  %561 = vst [vmem:[%s4991_s19 + $0x8] sm:$0xff] %v4871_v1 }
  0x25   : > { %562 = vst [vmem:[%s4991_s19 + $0x10] sm:$0xff] %v4871_v1  ;;  %563 = vst [vmem:[%s4991_s19 + $0x18] sm:$0xff] %v4871_v1 }
  0x26   : > { %564 = vst [vmem:[%s4991_s19 + $0x20] sm:$0xff] %v4871_v1  ;;  %565 = vst [vmem:[%s4991_s19 + $0x28] sm:$0xff] %v4871_v1 }
  0x27   : > { %566 = vst [vmem:[%s4991_s19 + $0x30] sm:$0xff] %v4871_v1  ;;  %567 = vst [vmem:[%s4991_s19 + $0x38] sm:$0xff] %v4871_v1 }
  0x28 LB: >> { %v619_v2 = vld [vmem:[%s5957_s8 + $0x10] sm:$0xff]  ;;  %v4872_v4 = vmov 0   ;;  %v620_v5 = vld [vmem:[%s5957_s8 + $0x18] sm:$0xff]  ;;  %v586_v7 = vld [vmem:[%s5956_s7 + $0x8] sm:$0xff]  ;;  %s4430_s26 = sshll.u32 %s4864_s20, 6  ;;  %s4873_s29 = smov 1   ;;  %v696_v57 = vlaneseq  ;;  %s4864_s20 = sphi %s5009_s20, %s573_s20  }
  0x29   : >> { %v587_v3 = vld [vmem:[%s5956_s7 + $0x10] sm:$0xff]  ;;  %4551 = vset.pattern.permute.xlu1 %v4872_v4  ;;  %4550 = vset.pattern.permute.xlu0 %v4872_v4  ;;  %v588_v6 = vld [vmem:[%s5956_s7 + $0x18] sm:$0xff]  ;;  %v585_v8 = vld [vmem:[%s5956_s7] sm:$0xff]  ;;  %s576_s27 = scalar_lea.vmem %s4976_s28, %s4430_s26  ;;  %s4874_s30 = smov 15   ;;  %vm936_vm0 = vcmask 7168   ;;  %vm850_vm1 = vcmask 121856  }
  0x2a   : >> { %633 = vperm.xlu1 %4551, %v619_v2   ;;  %601 = vperm.xlu0 %4550, %v587_v3   ;;  %v618_v9 = vld [vmem:[%s5957_s8 + $0x8] sm:$0xff]  ;;  %v617_v10 = vld [vmem:[%s5957_s8] sm:$0xff]  ;;  %v583_v17 = vld [vmem:[%s576_s27 + $0x30] sm:$0xff]  ;;  %s4875_s14 = smov 16   ;;  %s4876_s15 = smov 17   ;;  %v697_v60 = vshrl.u32 %v696_v57, 7 }
  0x2b   : >> { %2061 = vmatprep.mubr.bf16.mxu1 %v4872_v4  ;;  %v581_v11 = vld [vmem:[%s576_s27 + $0x20] sm:$0xff]  ;;  %v582_v12 = vld [vmem:[%s576_s27 + $0x28] sm:$0xff]  ;;  %v584_v18 = vld [vmem:[%s576_s27 + $0x38] sm:$0xff]  ;;  %s4877_s17 = smov 112   ;;  %s4878_s18 = smov 113   ;;  %vm764_vm2 = vcmask 130048  }
  0x2c   : >> { %v579_v27 = vld [vmem:[%s576_s27 + $0x10] sm:$0xff]  ;;  %v580_v29 = vld [vmem:[%s576_s27 + $0x18] sm:$0xff]  ;;  %v577_v31 = vld [vmem:[%s576_s27] sm:$0xff]  ;;  %s4879_s22 = smov 127   ;;  %v5123_v63 = vsub.s32 0, %v697_v60  ;;  %v5125_v0 = vsub.s32 1, %v697_v60 }
  0x2d   : >> { %v578_v32 = vld [vmem:[%s576_s27 + $0x8] sm:$0xff]  ;;  %v4552_v47 = vld [vmem:[#allocation3 + $0x15c] ss:$-8 sps:$4 sm:$0xff]   ;;  %v4554_v48 = vld [vmem:[#allocation3 + $0x158] ss:$-8 sps:$4 sm:$0xff]   ;;  %s4880_s23 = smov 111  }
  0x2e   : >> { %638 = vperm.xlu1 %4551, %v620_v5   ;;  %606 = vperm.xlu0 %4550, %v588_v6   ;;  %v1448_v49 = vld [vmem:[#allocation3 + $0x70] sm:$0xff]  ;;  %v4558_v55 = vld [vmem:[#allocation3 + $0x4] ss:$120 sps:$4 sm:$0xff]   ;;  %v4560_v56 = vld [vmem:[#allocation3] ss:$120 sps:$4 sm:$0xff]   ;;  %vm678_vm3 = vcmask 138240  }
  0x2f   : >> { %2029 = vmatprep.subr.bf16.mxu1 %v4552_v47  ;;  %v1449_v50 = vld [vmem:[#allocation3 + $0x30] sm:$0xff]  ;;  %v4561_v58 = vld [vmem:[#allocation3 + $0x9c] ss:$-144 sps:$4 sm:$0xff]   ;;  %v4563_v59 = vld [vmem:[#allocation3 + $0x98] ss:$-144 sps:$4 sm:$0xff]   ;;  %vm1218_vm4 = vcmask 916480  }
  0x30   : >> { %2030 = vmatpush1.bf16.msra.mxu1 %v4554_v48  ;;  %v4276_v51 = vcombine.high %v1448_v49, %v1449_v50  ;;  %v4275_v52 = vcombine.low %v1448_v49, %v1449_v50  ;;  %v4555_v53 = vld [vmem:[#allocation3 + $0x54] ss:$24 sps:$4 sm:$0xff]   ;;  %v4557_v54 = vld [vmem:[#allocation3 + $0x50] ss:$24 sps:$4 sm:$0xff]   ;;  %v4564_v61 = vld [vmem:[#allocation3 + $0xc4] ss:$-168 sps:$4 sm:$0xff]  }
  0x31   : >> { %v4566_v62 = vld [vmem:[#allocation3 + $0xc0] ss:$-168 sps:$4 sm:$0xff]   ;;  %v4569_v3 = vld [vmem:[%s5950_s1 + $0x4] ss:$12 sps:$4 sm:$0xff]   ;;  %vm1132_vm5 = vcmask 924672   ;;  %vm1046_vm6 = vcmask 1039360  }
  0x32   : >> { %596 = vperm.xlu1 %4551, %v586_v7   ;;  %591 = vperm.xlu0 %4550, %v585_v8   ;;  %v4178_v2 = vld [vmem:[%s5958_s9 + $0x3] ss:$8 sm:$0x3]  ;;  %v1455_v49 = vld [vmem:[%s5952_s3 + $0x18] sm:$0xff]  ;;  %vm1304_vm7 = vcmask 908288   ;;  %s4467_s24 = sshll.u32 %s4864_s20, 8 }
  0x33   : >> { %2031 = vmatprep.subr.bf16.mxu1 %v4276_v51  ;;  %v957_v5 = vrot.slane %v4178_v2, %v5123_v63  ;;  %v961_v6 = vrot.slane %v4178_v2, %v5125_v0  ;;  %1948 = vmatprep.mubr.bf16.mxu0 %v4569_v3  ;;  %v1458_v3 = vld [vmem:[%s5952_s3 + $0x30] sm:$0xff]  ;;  %s5379_s25 = scalar_lea.vmem [#allocation2], %s4467_s24  ;;  %s573_s20 = sadd.s32 1, %s4864_s20  }
  0x34   : >> { %2032 = vmatpush1.bf16.msra.mxu1 %v4275_v52  ;;  %p570_p4 = scmp.ge.s32.totalorder %s573_s20, 8  }
  0x35   : >> { %2033 = vmatprep.subr.bf16.mxu1 %v4555_v53  ;;  %v1456_v53 = vld [vmem:[%s5952_s3 + $0x20] sm:$0xff]  ;;  %s5416_s26 = smov (%p570_p4), 0  }
  0x36   : >> { %628 = vperm.xlu1 %4551, %v618_v9   ;;  %623 = vperm.xlu0 %4550, %v617_v10  }
  0x38   : >> { %2034 = vmatpush1.bf16.msra.mxu1 %v4557_v54 }
  0x39   : >> { %2035 = vmatprep.subr.bf16.mxu1 %v4558_v55 }
  0x3c   : >> { %2036 = vmatpush1.bf16.msra.mxu1 %v4560_v56 }
  0x3d   : >> { %2037 = vmatprep.subr.bf16.mxu1 %v4561_v58 }
  0x40   : >> { %2038 = vmatpush1.bf16.msra.mxu1 %v4563_v59  ;;  %v1457_v59 = vld [vmem:[%s5952_s3 + $0x28] sm:$0xff] }
  0x41   : >> { %2039 = vmatprep.subr.bf16.mxu1 %v4564_v61 }
  0x44   : >> { %2040 = vmatpush1.bf16.msra.mxu1 %v4566_v62 }
  0xa5   : >> { %v634_v13 = vpop.permute.xlu1 %633  ;;  %v602_v14 = vpop.permute.xlu0 %601 }
  0xa6   : >> { %v613_v15 = vmul.f32 %v602_v14, %v581_v11  ;;  %v614_v16 = vmul.f32 %v602_v14, %v582_v12 }
  0xa8   : >> { %v5043_v19 = vadd.f32 %v634_v13, %v613_v15  ;;  %v5045_v20 = vadd.f32 %v634_v13, %v614_v16 }
  0xa9   : >> { %v639_v21 = vpop.permute.xlu1 %638  ;;  %v607_v22 = vpop.permute.xlu0 %606 }
  0xaa   : >> { %v615_v23 = vmul.f32 %v607_v22, %v583_v17  ;;  %v616_v24 = vmul.f32 %v607_v22, %v584_v18  ;;  %920 = vrot.lane.b32.xlu0 %v5045_v20, %s4873_s29  ;;  %v1452_v22 = vld [vmem:[%s5952_s3] sm:$0xff] }
  0xac   : >> { %v5048_v25 = vadd.f32 %v639_v21, %v615_v23  ;;  %v5050_v26 = vadd.f32 %v639_v21, %v616_v24 }
  0xad   : >> { %v597_v28 = vpop.permute.xlu1 %596  ;;  %v592_v30 = vpop.permute.xlu0 %591 }
  0xae   : >> { %922 = vrot.lane.b32.xlu1 %v5050_v26, %s4873_s29  ;;  %932 = vrot.lane.b32.xlu0 %v5043_v19, %s4873_s29  ;;  %v611_v33 = vmul.f32 %v597_v28, %v579_v27  ;;  %v612_v34 = vmul.f32 %v597_v28, %v580_v29  ;;  %v609_v35 = vmul.f32 %v592_v30, %v577_v31 }
  0xaf   : >> { %v610_v36 = vmul.f32 %v592_v30, %v578_v32  ;;  %v4774_v39 = vpack.c.bf16 %v5050_v26, %v5045_v20  ;;  %v4775_v40 = vpack.c.bf16 %v5048_v25, %v5043_v19  ;;  %v1453_v30 = vld [vmem:[%s5952_s3 + $0x8] sm:$0xff] }
  0xb1   : >> { %v629_v37 = vpop.permute.xlu1 %628  ;;  %v624_v38 = vpop.permute.xlu0 %623 }
  0xb2   : >> { %v5058_v41 = vadd.f32 %v629_v37, %v611_v33  ;;  %v5060_v42 = vadd.f32 %v629_v37, %v612_v34  ;;  %v5062_v43 = vadd.f32 %v624_v38, %v609_v35  ;;  %v5064_v44 = vadd.f32 %v624_v38, %v610_v36  ;;  %934 = vrot.lane.b32.xlu1 %v5048_v25, %s4873_s29  ;;  %v1454_v36 = vld [vmem:[%s5952_s3 + $0x10] sm:$0xff]  ;;  %v4173_v37 = vld [vmem:[%s5958_s9 + $0x2] ss:$8 sm:$0x3] }
  0xb3   : >> { %v871_v51 = vrot.slane %v4173_v37, %v5123_v63  ;;  %v875_v52 = vrot.slane %v4173_v37, %v5125_v0 }
  0xb4   : >> { %916 = vrot.lane.b32.xlu0 %v5064_v44, %s4873_s29  ;;  %v4776_v45 = vpack.c.bf16 %v5060_v42, %v5064_v44  ;;  %v4777_v46 = vpack.c.bf16 %v5058_v41, %v5062_v43 }
  0xb6   : >> { %918 = vrot.lane.b32.xlu1 %v5060_v42, %s4873_s29 }
  0xb8   : >> { %928 = vrot.lane.b32.xlu0 %v5062_v43, %s4873_s29 }
  0xba   : >> { %930 = vrot.lane.b32.xlu1 %v5058_v41, %s4873_s29 }
  0xbc   : >> { %834 = vrot.lane.b32.xlu0 %v5045_v20, %s4874_s30 }
  0xbe   : >> { %836 = vrot.lane.b32.xlu1 %v5050_v26, %s4874_s30 }
  0xc0   : >> { %846 = vrot.lane.b32.xlu0 %v5043_v19, %s4874_s30 }
  0xc2   : >> { %848 = vrot.lane.b32.xlu1 %v5048_v25, %s4874_s30 }
  0xc4   : >> { %830 = vrot.lane.b32.xlu0 %v5064_v44, %s4874_s30 }
  0xc6   : >> { %832 = vrot.lane.b32.xlu1 %v5060_v42, %s4874_s30 }
  0xc8   : >> { %842 = vrot.lane.b32.xlu0 %v5062_v43, %s4874_s30 }
  0xca   : >> { %844 = vrot.lane.b32.xlu1 %v5058_v41, %s4874_s30 }
  0xcc   : >> { %748 = vrot.lane.b32.xlu0 %v5045_v20, %s4875_s14 }
  0xce   : >> { %750 = vrot.lane.b32.xlu1 %v5050_v26, %s4875_s14 }
  0xd0   : >> { %760 = vrot.lane.b32.xlu0 %v5043_v19, %s4875_s14 }
  0xd2   : >> { %762 = vrot.lane.b32.xlu1 %v5048_v25, %s4875_s14 }
  0xd4   : >> { %744 = vrot.lane.b32.xlu0 %v5064_v44, %s4875_s14 }
  0xd6   : >> { %746 = vrot.lane.b32.xlu1 %v5060_v42, %s4875_s14 }
  0xd8   : >> { %756 = vrot.lane.b32.xlu0 %v5062_v43, %s4875_s14 }
  0xda   : >> { %758 = vrot.lane.b32.xlu1 %v5058_v41, %s4875_s14 }
  0xdc   : >> { %658 = vrot.lane.b32.xlu0 %v5045_v20, %s4876_s15 }
  0xde   : >> { %660 = vrot.lane.b32.xlu1 %v5050_v26, %s4876_s15 }
  0xe0   : >> { %674 = vrot.lane.b32.xlu0 %v5043_v19, %s4876_s15 }
  0xe2   : >> { %676 = vrot.lane.b32.xlu1 %v5048_v25, %s4876_s15 }
  0xe4   : >> { %654 = vrot.lane.b32.xlu0 %v5064_v44, %s4876_s15 }
  0xe6   : >> { %656 = vrot.lane.b32.xlu1 %v5060_v42, %s4876_s15 }
  0xe8   : >> { %670 = vrot.lane.b32.xlu0 %v5062_v43, %s4876_s15 }
  0xea   : >> { %672 = vrot.lane.b32.xlu1 %v5058_v41, %s4876_s15 }
  0xec   : >> { %1210 = vrot.lane.b32.xlu0 %v5043_v19, %s4877_s17 }
  0xee   : >> { %1212 = vrot.lane.b32.xlu1 %v5045_v20, %s4877_s17 }
  0xf0   : >> { %1214 = vrot.lane.b32.xlu0 %v5048_v25, %s4877_s17 }
  0xf2   : >> { %1216 = vrot.lane.b32.xlu1 %v5050_v26, %s4877_s17 }
  0xf4   : >> { %1202 = vrot.lane.b32.xlu0 %v5062_v43, %s4877_s17 }
  0xf6   : >> { %1204 = vrot.lane.b32.xlu1 %v5064_v44, %s4877_s17 }
  0xf8   : >> { %1206 = vrot.lane.b32.xlu0 %v5058_v41, %s4877_s17 }
  0xfa   : >> { %1208 = vrot.lane.b32.xlu1 %v5060_v42, %s4877_s17 }
  0xfc   : >> { %1124 = vrot.lane.b32.xlu0 %v5043_v19, %s4878_s18 }
  0xfe   : >> { %1126 = vrot.lane.b32.xlu1 %v5045_v20, %s4878_s18 }
 0x100   : >> { %1128 = vrot.lane.b32.xlu0 %v5048_v25, %s4878_s18 }
 0x102   : >> { %1130 = vrot.lane.b32.xlu1 %v5050_v26, %s4878_s18 }
 0x104   : >> { %1116 = vrot.lane.b32.xlu0 %v5062_v43, %s4878_s18 }
 0x106   : >> { %1118 = vrot.lane.b32.xlu1 %v5064_v44, %s4878_s18 }
 0x108   : >> { %1120 = vrot.lane.b32.xlu0 %v5058_v41, %s4878_s18 }
 0x10a   : >> { %1122 = vrot.lane.b32.xlu1 %v5060_v42, %s4878_s18 }
 0x10c   : >> { %1038 = vrot.lane.b32.xlu0 %v5043_v19, %s4879_s22 }
 0x10e   : >> { %1040 = vrot.lane.b32.xlu1 %v5045_v20, %s4879_s22 }
 0x110   : >> { %1042 = vrot.lane.b32.xlu0 %v5048_v25, %s4879_s22 }
 0x112   : >> { %1044 = vrot.lane.b32.xlu1 %v5050_v26, %s4879_s22 }
 0x114   : >> { %1030 = vrot.lane.b32.xlu0 %v5062_v43, %s4879_s22 }
 0x116   : >> { %1032 = vrot.lane.b32.xlu1 %v5064_v44, %s4879_s22 }
 0x118   : >> { %1034 = vrot.lane.b32.xlu0 %v5058_v41, %s4879_s22 }
 0x11a   : >> { %1036 = vrot.lane.b32.xlu1 %v5060_v42, %s4879_s22 }
 0x11c   : >> { %v921_v1 = vpop.permute.xlu0 %920  ;;  %1296 = vrot.lane.b32.xlu0 %v5043_v19, %s4880_s23 }
 0x11e   : >> { %1298 = vrot.lane.b32.xlu1 %v5045_v20, %s4880_s23 }
 0x120   : >> { %v923_v7 = vpop.permute.xlu1 %922  ;;  %1300 = vrot.lane.b32.xlu0 %v5048_v25, %s4880_s23  ;;  %v933_v8 = vpop.permute.xlu0 %932  ;;  %v4570_v25 = vld [vmem:[%s5950_s1 + $0x1c] ss:$12 sps:$4 sm:$0xff]  }
 0x121   : >> { %v939_v9 = vsel %vm936_vm0, %v933_v8, %v921_v1  ;;  %v951_v10 = vsel %vm936_vm0, %v921_v1, %v933_v8  ;;  %v1459_v8 = vld [vmem:[%s5952_s3 + $0x38] sm:$0xff] }
 0x122   : >> { %1302 = vrot.lane.b32.xlu1 %v5050_v26, %s4880_s23  ;;  %v968_v11 = vmul.f32 %v957_v5, %v951_v10  ;;  %v969_v12 = vmul.f32 %v961_v6, %v939_v9  ;;  %v1460_v10 = vld [vmem:[%s5952_s3 + $0x40] sm:$0xff] }
 0x123   : >> { %v4567_v26 = vld [vmem:[%s5950_s1] ss:$12 sps:$4 sm:$0xff]  }
 0x124   : >> { %v935_v13 = vpop.permute.xlu1 %934  ;;  %1288 = vrot.lane.b32.xlu0 %v5062_v43, %s4880_s23  ;;  %v4574_v43 = vld [vmem:[%s5950_s1 + $0x34] ss:$12 sps:$4 sm:$0xff]  }
 0x125   : >> { %v940_v14 = vsel %vm936_vm0, %v935_v13, %v923_v7  ;;  %v952_v15 = vsel %vm936_vm0, %v923_v7, %v935_v13 }
 0x126   : >> { %v970_v16 = vmul.f32 %v957_v5, %v952_v15  ;;  %v971_v17 = vmul.f32 %v961_v6, %v940_v14  ;;  %1290 = vrot.lane.b32.xlu1 %v5064_v44, %s4880_s23  ;;  %v917_v18 = vpop.permute.xlu0 %916 }
 0x128   : >> { %v919_v21 = vpop.permute.xlu1 %918  ;;  %1292 = vrot.lane.b32.xlu0 %v5058_v41, %s4880_s23  ;;  %v4778_v24 = vpack.c.bf16 %v971_v17, %v969_v12  ;;  %v4779_v27 = vpack.c.bf16 %v970_v16, %v968_v11  ;;  %v1461_v16 = vld [vmem:[%s5952_s3 + $0x48] sm:$0xff] }
 0x129   : >> { %v4573_v41 = vld [vmem:[%s5950_s1 + $0x8] ss:$12 sps:$4 sm:$0xff]  }
 0x12a   : >> { %1294 = vrot.lane.b32.xlu1 %v5060_v42, %s4880_s23  ;;  %v929_v23 = vpop.permute.xlu0 %928  ;;  %1916 = vmatprep.subr.bf16.mxu0 %v4778_v24  ;;  %v1462_v24 = vld [vmem:[%s5952_s3 + $0x50] sm:$0xff] }
 0x12b   : >> { %v937_v28 = vsel %vm936_vm0, %v929_v23, %v917_v18  ;;  %v949_v29 = vsel %vm936_vm0, %v917_v18, %v929_v23  ;;  %1917 = vmatpush1.bf16.msra.mxu0 %v4779_v27  ;;  %v4168_v27 = vld [vmem:[%s5958_s9 + $0x1] ss:$8 sm:$0x3] }
 0x12c   : >> { %v964_v31 = vmul.f32 %v957_v5, %v949_v29  ;;  %v965_v32 = vmul.f32 %v961_v6, %v937_v28  ;;  %v931_v33 = vpop.permute.xlu1 %930  ;;  %1470 = vperm.xlu0 %4550, %v1452_v22  }
 0x12d   : >> { %v938_v34 = vsel %vm936_vm0, %v931_v33, %v919_v21  ;;  %v950_v35 = vsel %vm936_vm0, %v919_v21, %v931_v33  ;;  %v785_v33 = vrot.slane %v4168_v27, %v5123_v63 }
 0x12e   : >> { %v966_v38 = vmul.f32 %v957_v5, %v950_v35  ;;  %v967_v47 = vmul.f32 %v961_v6, %v938_v34  ;;  %1475 = vperm.xlu1 %4551, %v1453_v30   ;;  %v835_v48 = vpop.permute.xlu0 %834  ;;  %v789_v34 = vrot.slane %v4168_v27, %v5125_v0  ;;  %v1464_v35 = vld [vmem:[%s5952_s3 + $0x60] sm:$0xff] }
 0x130   : >> { %v837_v50 = vpop.permute.xlu1 %836  ;;  %1480 = vperm.xlu0 %4550, %v1454_v36   ;;  %v4780_v55 = vpack.c.bf16 %v967_v47, %v965_v32  ;;  %v4781_v56 = vpack.c.bf16 %v966_v38, %v964_v31  ;;  %v1463_v31 = vld [vmem:[%s5952_s3 + $0x58] sm:$0xff] }
 0x132   : >> { %1485 = vperm.xlu1 %4551, %v1455_v49   ;;  %v847_v54 = vpop.permute.xlu0 %846  ;;  %1918 = vmatprep.subr.bf16.mxu0 %v4780_v55  ;;  %v1465_v49 = vld [vmem:[%s5952_s3 + $0x68] sm:$0xff]  ;;  %v1466_v55 = vld [vmem:[%s5952_s3 + $0x70] sm:$0xff] }
 0x133   : >> { %v853_v57 = vsel %vm850_vm1, %v847_v54, %v835_v48  ;;  %v865_v58 = vsel %vm850_vm1, %v835_v48, %v847_v54  ;;  %1919 = vmatpush1.bf16.msra.mxu0 %v4781_v56 }
 0x134   : >> { %v882_v60 = vmul.f32 %v871_v51, %v865_v58  ;;  %v883_v61 = vmul.f32 %v875_v52, %v853_v57  ;;  %v849_v62 = vpop.permute.xlu1 %848  ;;  %1490 = vperm.xlu0 %4550, %v1456_v53  }
 0x135   : >> { %v854_v1 = vsel %vm850_vm1, %v849_v62, %v837_v50  ;;  %v866_v2 = vsel %vm850_vm1, %v837_v50, %v849_v62 }
 0x136   : >> { %v884_v5 = vmul.f32 %v871_v51, %v866_v2  ;;  %v885_v6 = vmul.f32 %v875_v52, %v854_v1  ;;  %1495 = vperm.xlu1 %4551, %v1457_v59   ;;  %v831_v7 = vpop.permute.xlu0 %830  ;;  %v1467_v59 = vld [vmem:[%s5952_s3 + $0x78] sm:$0xff] }
 0x138   : >> { %v833_v9 = vpop.permute.xlu1 %832  ;;  %1500 = vperm.xlu0 %4550, %v1458_v3   ;;  %v4782_v12 = vpack.c.bf16 %v885_v6, %v883_v61  ;;  %v4783_v13 = vpack.c.bf16 %v884_v5, %v882_v60 }
 0x13a   : >> { %1505 = vperm.xlu1 %4551, %v1459_v8   ;;  %v843_v11 = vpop.permute.xlu0 %842  ;;  %1920 = vmatprep.subr.bf16.mxu0 %v4782_v12 }
 0x13b   : >> { %v851_v14 = vsel %vm850_vm1, %v843_v11, %v831_v7  ;;  %v863_v15 = vsel %vm850_vm1, %v831_v7, %v843_v11  ;;  %1921 = vmatpush1.bf16.msra.mxu0 %v4783_v13 }
 0x13c   : >> { %v878_v17 = vmul.f32 %v871_v51, %v863_v15  ;;  %v879_v18 = vmul.f32 %v875_v52, %v851_v14  ;;  %v845_v21 = vpop.permute.xlu1 %844  ;;  %1510 = vperm.xlu0 %4550, %v1460_v10   ;;  %v649_v10 = vld [vmem:[%s5958_s9] ss:$8 sm:$0x3] }
 0x13d   : >> { %v852_v22 = vsel %vm850_vm1, %v845_v21, %v833_v9  ;;  %v864_v23 = vsel %vm850_vm1, %v833_v9, %v845_v21  ;;  %v699_v15 = vrot.slane %v649_v10, %v5123_v63 }
 0x13e   : >> { %v880_v28 = vmul.f32 %v871_v51, %v864_v23  ;;  %v881_v29 = vmul.f32 %v875_v52, %v852_v22  ;;  %1515 = vperm.xlu1 %4551, %v1461_v16   ;;  %v749_v30 = vpop.permute.xlu0 %748  ;;  %v703_v16 = vrot.slane %v649_v10, %v5125_v0 }
 0x140   : >> { %v751_v32 = vpop.permute.xlu1 %750  ;;  %1520 = vperm.xlu0 %4550, %v1462_v24   ;;  %v4784_v37 = vpack.c.bf16 %v881_v29, %v879_v18  ;;  %v4785_v38 = vpack.c.bf16 %v880_v28, %v878_v17 }
 0x142   : >> { %1525 = vperm.xlu1 %4551, %v1463_v31   ;;  %v761_v36 = vpop.permute.xlu0 %760  ;;  %1922 = vmatprep.subr.bf16.mxu0 %v4784_v37 }
 0x143   : >> { %v767_v47 = vsel %vm764_vm2, %v761_v36, %v749_v30  ;;  %v779_v48 = vsel %vm764_vm2, %v749_v30, %v761_v36  ;;  %1923 = vmatpush1.bf16.msra.mxu0 %v4785_v38  ;;  %v4197_v36 = vld [vmem:[%s5958_s9 + $0x7] ss:$8 sm:$0x3] }
 0x144   : >> { %v796_v50 = vmul.f32 %v785_v33, %v779_v48  ;;  %v797_v51 = vmul.f32 %v789_v34, %v767_v47  ;;  %v763_v52 = vpop.permute.xlu1 %762  ;;  %1530 = vperm.xlu0 %4550, %v1464_v35  }
 0x145   : >> { %v768_v53 = vsel %vm764_vm2, %v763_v52, %v751_v32  ;;  %v780_v54 = vsel %vm764_vm2, %v751_v32, %v763_v52 }
 0x146   : >> { %v798_v56 = vmul.f32 %v785_v33, %v780_v54  ;;  %v799_v57 = vmul.f32 %v789_v34, %v768_v53  ;;  %1535 = vperm.xlu1 %4551, %v1465_v49   ;;  %v745_v58 = vpop.permute.xlu0 %744  ;;  %v1243_v54 = vrot.slane %v4197_v36, %v5123_v63 }
 0x148   : >> { %v747_v60 = vpop.permute.xlu1 %746  ;;  %1540 = vperm.xlu0 %4550, %v1466_v55   ;;  %v4786_v62 = vpack.c.bf16 %v799_v57, %v797_v51  ;;  %v4787_v1 = vpack.c.bf16 %v798_v56, %v796_v50 }
 0x14a   : >> { %1545 = vperm.xlu1 %4551, %v1467_v59   ;;  %v757_v61 = vpop.permute.xlu0 %756  ;;  %1924 = vmatprep.subr.bf16.mxu0 %v4786_v62 }
 0x14b   : >> { %v765_v2 = vsel %vm764_vm2, %v757_v61, %v745_v58  ;;  %v777_v3 = vsel %vm764_vm2, %v745_v58, %v757_v61  ;;  %1925 = vmatpush1.bf16.msra.mxu0 %v4787_v1  ;;  %v1247_v58 = vrot.slane %v4197_v36, %v5125_v0 }
 0x14c   : >> { %v792_v5 = vmul.f32 %v785_v33, %v777_v3  ;;  %v793_v6 = vmul.f32 %v789_v34, %v765_v2  ;;  %v759_v7 = vpop.permute.xlu1 %758 }
 0x14d   : >> { %v766_v8 = vsel %vm764_vm2, %v759_v7, %v747_v60  ;;  %v778_v9 = vsel %vm764_vm2, %v747_v60, %v759_v7 }
 0x14e   : >> { %v794_v11 = vmul.f32 %v785_v33, %v778_v9  ;;  %v795_v12 = vmul.f32 %v789_v34, %v766_v8  ;;  %v659_v13 = vpop.permute.xlu0 %658 }
 0x150   : >> { %v661_v14 = vpop.permute.xlu1 %660  ;;  %v4788_v18 = vpack.c.bf16 %v795_v12, %v793_v6  ;;  %v4789_v21 = vpack.c.bf16 %v794_v11, %v792_v5 }
 0x152   : >> { %v675_v17 = vpop.permute.xlu0 %674  ;;  %1926 = vmatprep.subr.bf16.mxu0 %v4788_v18 }
 0x153   : >> { %v681_v22 = vsel %vm678_vm3, %v675_v17, %v659_v13  ;;  %v693_v23 = vsel %vm678_vm3, %v659_v13, %v675_v17  ;;  %1927 = vmatpush1.bf16.msra.mxu0 %v4789_v21 }
 0x154   : >> { %v710_v24 = vmul.f32 %v699_v15, %v693_v23  ;;  %v711_v27 = vmul.f32 %v703_v16, %v681_v22  ;;  %v677_v28 = vpop.permute.xlu1 %676  ;;  %v4192_v22 = vld [vmem:[%s5958_s9 + $0x6] ss:$8 sm:$0x3] }
 0x155   : >> { %v682_v29 = vsel %vm678_vm3, %v677_v28, %v661_v14  ;;  %v694_v30 = vsel %vm678_vm3, %v661_v14, %v677_v28 }
 0x156   : >> { %v712_v31 = vmul.f32 %v699_v15, %v694_v30  ;;  %v713_v32 = vmul.f32 %v703_v16, %v682_v29  ;;  %v655_v33 = vpop.permute.xlu0 %654 }
 0x158   : >> { %v657_v34 = vpop.permute.xlu1 %656  ;;  %v4790_v37 = vpack.c.bf16 %v713_v32, %v711_v27  ;;  %v4791_v38 = vpack.c.bf16 %v712_v31, %v710_v24  ;;  %v1157_v31 = vrot.slane %v4192_v22, %v5123_v63  ;;  %v1161_v32 = vrot.slane %v4192_v22, %v5125_v0 }
 0x15a   : >> { %v671_v35 = vpop.permute.xlu0 %670  ;;  %1928 = vmatprep.subr.bf16.mxu0 %v4790_v37 }
 0x15b   : >> { %v679_v47 = vsel %vm678_vm3, %v671_v35, %v655_v33  ;;  %v691_v48 = vsel %vm678_vm3, %v655_v33, %v671_v35  ;;  %1929 = vmatpush1.bf16.msra.mxu0 %v4791_v38 }
 0x15c   : >> { %v706_v49 = vmul.f32 %v699_v15, %v691_v48  ;;  %v707_v50 = vmul.f32 %v703_v16, %v679_v47  ;;  %v673_v51 = vpop.permute.xlu1 %672 }
 0x15d   : >> { %v680_v52 = vsel %vm678_vm3, %v673_v51, %v657_v34  ;;  %v692_v53 = vsel %vm678_vm3, %v657_v34, %v673_v51 }
 0x15e   : >> { %v708_v55 = vmul.f32 %v699_v15, %v692_v53  ;;  %v709_v56 = vmul.f32 %v703_v16, %v680_v52  ;;  %v1211_v57 = vpop.permute.xlu0 %1210 }
 0x160   : >> { %v1213_v59 = vpop.permute.xlu1 %1212  ;;  %v4792_v3 = vpack.c.bf16 %v709_v56, %v707_v50  ;;  %v4793_v5 = vpack.c.bf16 %v708_v55, %v706_v49 }
 0x161   : >> { %v1221_v60 = vsel %vm1218_vm4, %v1211_v57, %v1213_v59  ;;  %v1237_v61 = vsel %vm1218_vm4, %v1213_v59, %v1211_v57 }
 0x162   : >> { %v1254_v62 = vmul.f32 %v1243_v54, %v1221_v60  ;;  %v1255_v1 = vmul.f32 %v1247_v58, %v1237_v61  ;;  %v1215_v2 = vpop.permute.xlu0 %1214  ;;  %1930 = vmatprep.subr.bf16.mxu0 %v4792_v3 }
 0x163   : >> { %1931 = vmatpush1.bf16.msra.mxu0 %v4793_v5 }
 0x164   : >> { %v1217_v6 = vpop.permute.xlu1 %1216 }
 0x165   : >> { %v1222_v7 = vsel %vm1218_vm4, %v1215_v2, %v1217_v6  ;;  %v1238_v8 = vsel %vm1218_vm4, %v1217_v6, %v1215_v2 }
 0x166   : >> { %v1256_v9 = vmul.f32 %v1243_v54, %v1222_v7  ;;  %v1257_v10 = vmul.f32 %v1247_v58, %v1238_v8  ;;  %v1203_v11 = vpop.permute.xlu0 %1202 }
 0x168   : >> { %v1205_v12 = vpop.permute.xlu1 %1204  ;;  %v4794_v18 = vpack.c.bf16 %v1257_v10, %v1255_v1  ;;  %v4795_v21 = vpack.c.bf16 %v1256_v9, %v1254_v62  ;;  %v4187_v1 = vld [vmem:[%s5958_s9 + $0x5] ss:$8 sm:$0x3] }
 0x169   : >> { %v1219_v13 = vsel %vm1218_vm4, %v1203_v11, %v1205_v12  ;;  %v1235_v14 = vsel %vm1218_vm4, %v1205_v12, %v1203_v11  ;;  %v1071_v9 = vrot.slane %v4187_v1, %v5123_v63  ;;  %v1075_v10 = vrot.slane %v4187_v1, %v5125_v0 }
 0x16a   : >> { %v1250_v15 = vmul.f32 %v1243_v54, %v1219_v13  ;;  %v1251_v16 = vmul.f32 %v1247_v58, %v1235_v14  ;;  %v1207_v17 = vpop.permute.xlu0 %1206  ;;  %1932 = vmatprep.subr.bf16.mxu0 %v4794_v18 }
 0x16b   : >> { %1933 = vmatpush2.bf16.msra.mxu0 %v4795_v21 }
 0x16c   : >> { %v1209_v23 = vpop.permute.xlu1 %1208 }
 0x16d   : >> { %v1220_v24 = vsel %vm1218_vm4, %v1207_v17, %v1209_v23  ;;  %v1236_v27 = vsel %vm1218_vm4, %v1209_v23, %v1207_v17 }
 0x16e   : >> { %v1252_v28 = vmul.f32 %v1243_v54, %v1220_v24  ;;  %v1253_v29 = vmul.f32 %v1247_v58, %v1236_v27  ;;  %v1125_v30 = vpop.permute.xlu0 %1124 }
 0x170   : >> { %v1127_v33 = vpop.permute.xlu1 %1126  ;;  %v4796_v47 = vpack.c.bf16 %v1253_v29, %v1251_v16  ;;  %v4797_v48 = vpack.c.bf16 %v1252_v28, %v1250_v15 }
 0x171   : >> { %v1135_v34 = vsel %vm1132_vm5, %v1125_v30, %v1127_v33  ;;  %v1151_v35 = vsel %vm1132_vm5, %v1127_v33, %v1125_v30 }
 0x172   : >> { %v1168_v36 = vmul.f32 %v1157_v31, %v1135_v34  ;;  %v1169_v37 = vmul.f32 %v1161_v32, %v1151_v35  ;;  %v1129_v38 = vpop.permute.xlu0 %1128  ;;  %1934 = vmatprep.subr.bf16.mxu0 %v4796_v47 }
 0x173   : >> { %1935 = vmatpush2.bf16.msra.mxu0 %v4797_v48 }
 0x174   : >> { %v1131_v49 = vpop.permute.xlu1 %1130 }
 0x175   : >> { %v1136_v50 = vsel %vm1132_vm5, %v1129_v38, %v1131_v49  ;;  %v1152_v51 = vsel %vm1132_vm5, %v1131_v49, %v1129_v38 }
 0x176   : >> { %v1170_v52 = vmul.f32 %v1157_v31, %v1136_v50  ;;  %v1171_v53 = vmul.f32 %v1161_v32, %v1152_v51  ;;  %v1117_v54 = vpop.permute.xlu0 %1116 }
 0x178   : >> { %v1119_v55 = vpop.permute.xlu1 %1118  ;;  %v4798_v61 = vpack.c.bf16 %v1171_v53, %v1169_v37  ;;  %v4799_v62 = vpack.c.bf16 %v1170_v52, %v1168_v36  ;;  %v4202_v37 = vld [vmem:[%s5958_s9 + $0x10] ss:$8 sm:$0x3] }
 0x179   : >> { %v1133_v56 = vsel %vm1132_vm5, %v1117_v54, %v1119_v55  ;;  %v1149_v57 = vsel %vm1132_vm5, %v1119_v55, %v1117_v54  ;;  %v1329_v52 = vrot.slane %v4202_v37, %v5123_v63  ;;  %v1333_v53 = vrot.slane %v4202_v37, %v5125_v0 }
 0x17a   : >> { %v1164_v58 = vmul.f32 %v1157_v31, %v1133_v56  ;;  %v1165_v59 = vmul.f32 %v1161_v32, %v1149_v57  ;;  %v1121_v60 = vpop.permute.xlu0 %1120  ;;  %1936 = vmatprep.subr.bf16.mxu0 %v4798_v61 }
 0x17b   : >> { %1937 = vmatpush2.bf16.msra.mxu0 %v4799_v62 }
 0x17c   : >> { %v1123_v2 = vpop.permute.xlu1 %1122 }
 0x17d   : >> { %v1134_v3 = vsel %vm1132_vm5, %v1121_v60, %v1123_v2  ;;  %v1150_v5 = vsel %vm1132_vm5, %v1123_v2, %v1121_v60 }
 0x17e   : >> { %v1166_v6 = vmul.f32 %v1157_v31, %v1134_v3  ;;  %v1167_v7 = vmul.f32 %v1161_v32, %v1150_v5  ;;  %v1039_v8 = vpop.permute.xlu0 %1038 }
 0x180   : >> { %v1041_v11 = vpop.permute.xlu1 %1040  ;;  %v4800_v17 = vpack.c.bf16 %v1167_v7, %v1165_v59  ;;  %v4801_v18 = vpack.c.bf16 %v1166_v6, %v1164_v58 }
 0x181   : >> { %v1049_v12 = vsel %vm1046_vm6, %v1039_v8, %v1041_v11  ;;  %v1065_v13 = vsel %vm1046_vm6, %v1041_v11, %v1039_v8 }
 0x182   : >> { %v1082_v14 = vmul.f32 %v1071_v9, %v1049_v12  ;;  %v1083_v15 = vmul.f32 %v1075_v10, %v1065_v13  ;;  %v1043_v16 = vpop.permute.xlu0 %1042  ;;  %1938 = vmatprep.subr.bf16.mxu0 %v4800_v17  ;;  %v4578_v17 = vld [vmem:[%s5950_s1 + $0x4c] ss:$12 sps:$4 sm:$0xff]  }
 0x183   : >> { %1939 = vmatpush2.bf16.msra.mxu0 %v4801_v18  ;;  %v4580_v18 = vld [vmem:[%s5950_s1 + $0x48] ss:$12 sps:$4 sm:$0xff]  }
 0x184   : >> { %v1045_v21 = vpop.permute.xlu1 %1044 }
 0x185   : >> { %v1050_v22 = vsel %vm1046_vm6, %v1043_v16, %v1045_v21  ;;  %v1066_v23 = vsel %vm1046_vm6, %v1045_v21, %v1043_v16  ;;  %v4577_v16 = vld [vmem:[%s5950_s1 + $0x20] ss:$12 sps:$4 sm:$0xff]   ;;  %v4581_v21 = vld [vmem:[%s5950_s1 + $0x38] ss:$12 sps:$4 sm:$0xff]  }
 0x186   : >> { %v1084_v24 = vmul.f32 %v1071_v9, %v1050_v22  ;;  %v1085_v27 = vmul.f32 %v1075_v10, %v1066_v23  ;;  %v1031_v28 = vpop.permute.xlu0 %1030  ;;  %v4582_v22 = vld [vmem:[%s5950_s1 + $0x64] ss:$12 sps:$4 sm:$0xff]   ;;  %v4584_v23 = vld [vmem:[%s5950_s1 + $0x60] ss:$12 sps:$4 sm:$0xff]  }
 0x188   : >> { %v1033_v29 = vpop.permute.xlu1 %1032  ;;  %v4802_v35 = vpack.c.bf16 %v1085_v27, %v1083_v15  ;;  %v4803_v36 = vpack.c.bf16 %v1084_v24, %v1082_v14  ;;  %v4572_v15 = vld [vmem:[%s5950_s1 + $0x18] ss:$12 sps:$4 sm:$0xff]   ;;  %v4585_v24 = vld [vmem:[%s5950_s1 + $0x50] ss:$12 sps:$4 sm:$0xff]  }
 0x189   : >> { %v1047_v30 = vsel %vm1046_vm6, %v1031_v28, %v1033_v29  ;;  %v1063_v31 = vsel %vm1046_vm6, %v1033_v29, %v1031_v28  ;;  %v4586_v27 = vld [vmem:[%s5950_s1 + $0x7c] ss:$12 sps:$4 sm:$0xff]   ;;  %v4588_v28 = vld [vmem:[%s5950_s1 + $0x78] ss:$12 sps:$4 sm:$0xff]  }
 0x18a   : >> { %v1078_v32 = vmul.f32 %v1071_v9, %v1047_v30  ;;  %v1079_v33 = vmul.f32 %v1075_v10, %v1063_v31  ;;  %v1035_v34 = vpop.permute.xlu0 %1034  ;;  %1940 = vmatprep.subr.bf16.mxu0 %v4802_v35  ;;  %v4589_v29 = vld [vmem:[%s5950_s1 + $0x68] ss:$12 sps:$4 sm:$0xff]   ;;  %v4592_v31 = vld [vmem:[%s5950_s1 + $0x90] ss:$12 sps:$4 sm:$0xff]   ;;  %v4597_v35 = vld [vmem:[%s5950_s1 + $0x98] ss:$12 sps:$4 sm:$0xff]  }
 0x18b   : >> { %1941 = vmatpush2.bf16.msra.mxu0 %v4803_v36  ;;  %v4590_v30 = vld [vmem:[%s5950_s1 + $0x94] ss:$12 sps:$4 sm:$0xff]   ;;  %v4598_v36 = vld [vmem:[%s5950_s1 + $0xb0] ss:$12 sps:$4 sm:$0xff]  }
 0x18c   : >> { %v1037_v38 = vpop.permute.xlu1 %1036 }
 0x18d   : >> { %v1048_v47 = vsel %vm1046_vm6, %v1035_v34, %v1037_v38  ;;  %v1064_v48 = vsel %vm1046_vm6, %v1037_v38, %v1035_v34  ;;  %v4596_v34 = vld [vmem:[%s5950_s1 + $0xa8] ss:$12 sps:$4 sm:$0xff]  }
 0x18e   : >> { %v1080_v49 = vmul.f32 %v1071_v9, %v1048_v47  ;;  %v1081_v50 = vmul.f32 %v1075_v10, %v1064_v48  ;;  %v1297_v51 = vpop.permute.xlu0 %1296 }
 0x190   : >> { %v1299_v54 = vpop.permute.xlu1 %1298  ;;  %v4804_v60 = vpack.c.bf16 %v1081_v50, %v1079_v33  ;;  %v4805_v61 = vpack.c.bf16 %v1080_v49, %v1078_v32  ;;  %v4593_v32 = vld [vmem:[%s5950_s1 + $0x80] ss:$12 sps:$4 sm:$0xff]  }
 0x191   : >> { %v1307_v55 = vsel %vm1304_vm7, %v1297_v51, %v1299_v54  ;;  %v1323_v56 = vsel %vm1304_vm7, %v1299_v54, %v1297_v51  ;;  %v4594_v33 = vld [vmem:[%s5950_s1 + $0xac] ss:$12 sps:$4 sm:$0xff]  }
 0x192   : >> { %v1340_v57 = vmul.f32 %v1329_v52, %v1307_v55  ;;  %v1341_v58 = vmul.f32 %v1333_v53, %v1323_v56  ;;  %v1301_v59 = vpop.permute.xlu0 %1300  ;;  %1942 = vmatprep.subr.bf16.mxu0 %v4804_v60 }
 0x193   : >> { %1943 = vmatpush2.bf16.msra.mxu0 %v4805_v61 }
 0x194   : >> { %v1303_v62 = vpop.permute.xlu1 %1302  ;;  %1944 = vmatprep.subr.bf16.mxu0 %v4774_v39 }
 0x195   : >> { %v1308_v1 = vsel %vm1304_vm7, %v1301_v59, %v1303_v62  ;;  %v1324_v2 = vsel %vm1304_vm7, %v1303_v62, %v1301_v59 }
 0x196   : >> { %v1342_v3 = vmul.f32 %v1329_v52, %v1308_v1  ;;  %v1343_v5 = vmul.f32 %v1333_v53, %v1324_v2  ;;  %v1289_v6 = vpop.permute.xlu0 %1288 }
 0x197   : >> { %1945 = vmatpush2.bf16.msra.mxu0 %v4775_v40 }
 0x198   : >> { %v1291_v7 = vpop.permute.xlu1 %1290  ;;  %1946 = vmatprep.subr.bf16.mxu0 %v4776_v45  ;;  %v4806_v12 = vpack.c.bf16 %v1343_v5, %v1341_v58  ;;  %v4807_v13 = vpack.c.bf16 %v1342_v3, %v1340_v57 }
 0x199   : >> { %v1305_v8 = vsel %vm1304_vm7, %v1289_v6, %v1291_v7  ;;  %v1321_v9 = vsel %vm1304_vm7, %v1291_v7, %v1289_v6 }
 0x19a   : >> { %v1336_v10 = vmul.f32 %v1329_v52, %v1305_v8  ;;  %v1337_v11 = vmul.f32 %v1333_v53, %v1321_v9  ;;  %v1293_v14 = vpop.permute.xlu0 %1292  ;;  %2041 = vmatprep.subr.bf16.mxu1 %v4806_v12 }
 0x19b   : >> { %1947 = vmatpush2.bf16.msra.mxu0 %v4777_v46  ;;  %2042 = vmatpush1.bf16.msra.mxu1 %v4807_v13  ;;  %v4576_v46 = vld [vmem:[%s5950_s1 + $0x30] ss:$12 sps:$4 sm:$0xff]  }
 0x19c   : >> { %v1295_v20 = vpop.permute.xlu1 %1294 }
 0x19d   : >> { %v1306_v39 = vsel %vm1304_vm7, %v1293_v14, %v1295_v20  ;;  %v1322_v19 = vsel %vm1304_vm7, %v1295_v20, %v1293_v14 }
 0x19e   : >> { %v1338_v40 = vmul.f32 %v1329_v52, %v1306_v39  ;;  %v1339_v42 = vmul.f32 %v1333_v53, %v1322_v19  ;;  %1949 = vmatmul.mubr.bf16.vlgmr.msra.gmra.mxu0 %v4567_v26 }
 0x19f   : >> { %1958 = vmatprep.mubr.bf16.mxu0 %v4570_v25 }
 0x1a0   : >> { %v4808_v44 = vpack.c.bf16 %v1339_v42, %v1337_v11  ;;  %v4809_v45 = vpack.c.bf16 %v1338_v40, %v1336_v10 }
 0x1a2   : >> { %2043 = vmatprep.subr.bf16.mxu1 %v4808_v44 }
 0x1a3   : >> { %2044 = vmatpush1.bf16.msra.mxu1 %v4809_v45 }
 0x1a6   : >> { %1959 = vmatmul.mubr.bf16.gmra.mxu0 %v4572_v15  ;;  %2062 = vmatmul.mubr.bf16.vlgmr.msra.gmra.mxu1 %v4573_v41 }
 0x1a7   : >> { %2071 = vmatprep.mubr.bf16.mxu1 %v4872_v4  ;;  %1968 = vmatprep.mubr.bf16.mxu0 %v4574_v43  ;;  %v1471_v48 = vpop.permute.xlu0 %1470 }
 0x1a9   : >> { %v1476_v53 = vpop.permute.xlu1 %1475 }
 0x1ab   : >> { %v1481_v61 = vpop.permute.xlu0 %1480 }
 0x1ad   : >> { %v1486_v9 = vpop.permute.xlu1 %1485 }
 0x1ae   : >> { %1969 = vmatmul.mubr.bf16.gmra.mxu0 %v4576_v46  ;;  %2072 = vmatmul.mubr.bf16.gmra.mxu1 %v4577_v16 }
 0x1af   : >> { %2081 = vmatprep.mubr.bf16.mxu1 %v4872_v4  ;;  %1978 = vmatprep.mubr.bf16.mxu0 %v4578_v17  ;;  %v1491_v19 = vpop.permute.xlu0 %1490 }
 0x1b1   : >> { %v1496_v46 = vpop.permute.xlu1 %1495 }
 0x1b6   : >> { %1979 = vmatmul.mubr.bf16.gmra.mxu0 %v4580_v18  ;;  %2082 = vmatmul.mubr.bf16.gmra.mxu1 %v4581_v21 }
 0x1b7   : >> { %1988 = vmatprep.mubr.bf16.mxu0 %v4582_v22  ;;  %2091 = vmatprep.mubr.bf16.mxu1 %v4872_v4 }
 0x1be   : >> { %1989 = vmatmul.mubr.bf16.gmra.mxu0 %v4584_v23  ;;  %2092 = vmatmul.mubr.bf16.gmra.mxu1 %v4585_v24 }
 0x1bf   : >> { %1998 = vmatprep.mubr.bf16.mxu0 %v4586_v27  ;;  %2101 = vmatprep.mubr.bf16.mxu1 %v4872_v4 }
 0x1c6   : >> { %1999 = vmatmul.mubr.bf16.gmra.mxu0 %v4588_v28  ;;  %2102 = vmatmul.mubr.bf16.gmra.mxu1 %v4589_v29  ;;  %v1501_v28 = vpop.permute.xlu0 %1500 }
 0x1c7   : >> { %2008 = vmatprep.mubr.bf16.mxu0 %v4590_v30  ;;  %2111 = vmatprep.mubr.bf16.mxu1 %v4872_v4 }
 0x1ce   : >> { %2009 = vmatmul.mubr.bf16.gmra.mxu0 %v4592_v31  ;;  %2112 = vmatmul.mubr.bf16.gmra.mxu1 %v4593_v32 }
 0x1cf   : >> { %2018 = vmatprep.mubr.bf16.mxu0 %v4594_v33  ;;  %2121 = vmatprep.mubr.bf16.mxu1 %v4872_v4 }
 0x1d6   : >> { %2019 = vmatmul.mubr.bf16.gmra.mxu0 %v4596_v34  ;;  %2122 = vmatmul.mubr.bf16.gmra.mxu1 %v4597_v35 }
 0x1d7   : >> { %2131 = vmatprep.mubr.bf16.mxu1 %v4872_v4 }
 0x1de   : >> { %2132 = vmatmul.mubr.bf16.gmra.mxu1 %v4598_v36 }
 0x25e   : >> { %v1950_v37 = vpop.f32.mrf.mxu0 }
 0x25f   : >> { %v1951_v50 = vadd.f32 %v1950_v37, %v1471_v48  ;;  %v1506_v37 = vpop.permute.xlu1 %1505 }
 0x260   : >> { %v1952_v38 = vpop.f32.mrf.mxu0 }
 0x261   : >> { %v1953_v54 = vadd.f32 %v1952_v38, %v1471_v48 }
 0x262   : >> { %v1954_v47 = vpop.f32.mrf.mxu0 }
 0x263   : >> { %v1955_v4 = vadd.f32 %v1954_v47, %v1476_v53 }
 0x264   : >> { %v1956_v49 = vpop.f32.mrf.mxu0 }
 0x265   : >> { %v1957_v62 = vadd.f32 %v1956_v49, %v1476_v53 }
 0x266   : >> { %v1960_v51 = vpop.f32.mrf.mxu0  ;;  %v2063_v52 = vpop.f32.mrf.mxu1 }
 0x267   : >> { %v2064_v55 = vadd.f32 %v2063_v52, %v1951_v50  ;;  %v1961_v5 = vadd.f32 %v1960_v51, %v1481_v61 }
 0x268   : >> { %v1962_v56 = vpop.f32.mrf.mxu0  ;;  %v2065_v57 = vpop.f32.mrf.mxu1 }
 0x269   : >> { %2145 = vst [vmem:[%s5379_s25] sm:$0xff] %v2064_v55  ;;  %v2066_v58 = vadd.f32 %v2065_v57, %v1953_v54  ;;  %v1963_v10 = vadd.f32 %v1962_v56, %v1481_v61  ;;  %v1511_v54 = vpop.permute.xlu0 %1510 }
 0x26a   : >> { %v1964_v59 = vpop.f32.mrf.mxu0  ;;  %v2067_v60 = vpop.f32.mrf.mxu1 }
 0x26b   : >> { %2146 = vst [vmem:[%s5379_s25 + $0x8] sm:$0xff] %v2066_v58  ;;  %v2068_v1 = vadd.f32 %v2067_v60, %v1955_v4  ;;  %v1965_v14 = vadd.f32 %v1964_v59, %v1486_v9 }
 0x26c   : >> { %v1966_v2 = vpop.f32.mrf.mxu0  ;;  %v2069_v3 = vpop.f32.mrf.mxu1 }
 0x26d   : >> { %2147 = vst [vmem:[%s5379_s25 + $0x10] sm:$0xff] %v2068_v1  ;;  %v2070_v6 = vadd.f32 %v2069_v3, %v1957_v62  ;;  %v1967_v25 = vadd.f32 %v1966_v2, %v1486_v9  ;;  %v1516_v62 = vpop.permute.xlu1 %1515 }
 0x26e   : >> { %v1970_v7 = vpop.f32.mrf.mxu0  ;;  %v2073_v8 = vpop.f32.mrf.mxu1 }
 0x26f   : >> { %2148 = vst [vmem:[%s5379_s25 + $0x18] sm:$0xff] %v2070_v6  ;;  %v2074_v11 = vadd.f32 %v2073_v8, %v1961_v5  ;;  %v1971_v45 = vadd.f32 %v1970_v7, %v1491_v19 }
 0x270   : >> { %v1972_v12 = vpop.f32.mrf.mxu0  ;;  %v2075_v13 = vpop.f32.mrf.mxu1 }
 0x271   : >> { %2149 = vst [vmem:[%s5379_s25 + $0x20] sm:$0xff] %v2074_v11  ;;  %v2076_v20 = vadd.f32 %v2075_v13, %v1963_v10  ;;  %v1973_v16 = vadd.f32 %v1972_v12, %v1491_v19  ;;  %v1521_v10 = vpop.permute.xlu0 %1520 }
 0x272   : >> { %v1974_v26 = vpop.f32.mrf.mxu0  ;;  %v2077_v39 = vpop.f32.mrf.mxu1 }
 0x273   : >> { %2150 = vst [vmem:[%s5379_s25 + $0x28] sm:$0xff] %v2076_v20  ;;  %v2078_v40 = vadd.f32 %v2077_v39, %v1965_v14  ;;  %v1975_v22 = vadd.f32 %v1974_v26, %v1496_v46 }
 0x274   : >> { %v1976_v42 = vpop.f32.mrf.mxu0  ;;  %v2079_v44 = vpop.f32.mrf.mxu1 }
 0x275   : >> { %2151 = vst [vmem:[%s5379_s25 + $0x30] sm:$0xff] %v2078_v40  ;;  %v2080_v15 = vadd.f32 %v2079_v44, %v1967_v25  ;;  %v1977_v29 = vadd.f32 %v1976_v42, %v1496_v46  ;;  %v1526_v25 = vpop.permute.xlu1 %1525 }
 0x276   : >> { %v1980_v41 = vpop.f32.mrf.mxu0  ;;  %v2083_v43 = vpop.f32.mrf.mxu1 }
 0x277   : >> { %2152 = vst [vmem:[%s5379_s25 + $0x38] sm:$0xff] %v2080_v15  ;;  %v2084_v17 = vadd.f32 %v2083_v43, %v1971_v45  ;;  %v1981_v33 = vadd.f32 %v1980_v41, %v1501_v28 }
 0x278   : >> { %v1982_v18 = vpop.f32.mrf.mxu0  ;;  %v2085_v21 = vpop.f32.mrf.mxu1 }
 0x279   : >> { %2153 = vst [vmem:[%s5379_s25 + $0x40] sm:$0xff] %v2084_v17  ;;  %v2086_v23 = vadd.f32 %v2085_v21, %v1973_v16  ;;  %v1983_v38 = vadd.f32 %v1982_v18, %v1501_v28  ;;  %v1531_v16 = vpop.permute.xlu0 %1530 }
 0x27a   : >> { %v1984_v24 = vpop.f32.mrf.mxu0  ;;  %v2087_v27 = vpop.f32.mrf.mxu1 }
 0x27b   : >> { %2154 = vst [vmem:[%s5379_s25 + $0x48] sm:$0xff] %v2086_v23  ;;  %v2088_v30 = vadd.f32 %v2087_v27, %v1975_v22  ;;  %v1985_v50 = vadd.f32 %v1984_v24, %v1506_v37 }
 0x27c   : >> { %v1986_v31 = vpop.f32.mrf.mxu0  ;;  %v2089_v32 = vpop.f32.mrf.mxu1 }
 0x27d   : >> { %2155 = vst [vmem:[%s5379_s25 + $0x50] sm:$0xff] %v2088_v30  ;;  %v2090_v34 = vadd.f32 %v2089_v32, %v1977_v29  ;;  %v1987_v55 = vadd.f32 %v1986_v31, %v1506_v37  ;;  %v1536_v29 = vpop.permute.xlu1 %1535  ;;  %v1541_v37 = vpop.permute.xlu0 %1540 }
 0x27e   : >> { %v1990_v35 = vpop.f32.mrf.mxu0  ;;  %v2093_v36 = vpop.f32.mrf.mxu1 }
 0x27f   : >> { %2156 = vst [vmem:[%s5379_s25 + $0x58] sm:$0xff] %v2090_v34  ;;  %v2094_v47 = vadd.f32 %v2093_v36, %v1981_v33  ;;  %v1991_v58 = vadd.f32 %v1990_v35, %v1511_v54 }
 0x280   : >> { %v1992_v48 = vpop.f32.mrf.mxu0  ;;  %v2095_v49 = vpop.f32.mrf.mxu1 }
 0x281   : >> { %2157 = vst [vmem:[%s5379_s25 + $0x60] sm:$0xff] %v2094_v47  ;;  %v2096_v51 = vadd.f32 %v2095_v49, %v1983_v38  ;;  %v1993_v1 = vadd.f32 %v1992_v48, %v1511_v54 }
 0x282   : >> { %v1994_v52 = vpop.f32.mrf.mxu0  ;;  %v2097_v53 = vpop.f32.mrf.mxu1 }
 0x283   : >> { %2158 = vst [vmem:[%s5379_s25 + $0x68] sm:$0xff] %v2096_v51  ;;  %v2098_v56 = vadd.f32 %v2097_v53, %v1985_v50  ;;  %v1995_v6 = vadd.f32 %v1994_v52, %v1516_v62  ;;  %v1546_v53 = vpop.permute.xlu1 %1545 }
 0x284   : >> { %v1996_v57 = vpop.f32.mrf.mxu0  ;;  %v2099_v4 = vpop.f32.mrf.mxu1 }
 0x285   : >> { %2159 = vst [vmem:[%s5379_s25 + $0x70] sm:$0xff] %v2098_v56  ;;  %v2100_v59 = vadd.f32 %v2099_v4, %v1987_v55  ;;  %v1997_v11 = vadd.f32 %v1996_v57, %v1516_v62 }
 0x286   : >> { %v2000_v60 = vpop.f32.mrf.mxu0  ;;  %v2103_v61 = vpop.f32.mrf.mxu1 }
 0x287   : >> { %2160 = vst [vmem:[%s5379_s25 + $0x78] sm:$0xff] %v2100_v59  ;;  %v2104_v2 = vadd.f32 %v2103_v61, %v1991_v58  ;;  %v2001_v20 = vadd.f32 %v2000_v60, %v1521_v10 }
 0x288   : >> { %v2002_v3 = vpop.f32.mrf.mxu0  ;;  %v2105_v5 = vpop.f32.mrf.mxu1 }
 0x289   : >> { %2161 = vst [vmem:[%s5379_s25 + $0x80] sm:$0xff] %v2104_v2  ;;  %v2106_v7 = vadd.f32 %v2105_v5, %v1993_v1  ;;  %v2003_v40 = vadd.f32 %v2002_v3, %v1521_v10 }
 0x28a   : >> { %v2004_v8 = vpop.f32.mrf.mxu0  ;;  %v2107_v9 = vpop.f32.mrf.mxu1 }
 0x28b   : >> { %2162 = vst [vmem:[%s5379_s25 + $0x88] sm:$0xff] %v2106_v7  ;;  %v2108_v12 = vadd.f32 %v2107_v9, %v1995_v6  ;;  %v2005_v15 = vadd.f32 %v2004_v8, %v1526_v25 }
 0x28c   : >> { %v2006_v13 = vpop.f32.mrf.mxu0  ;;  %v2109_v14 = vpop.f32.mrf.mxu1 }
 0x28d   : >> { %2163 = vst [vmem:[%s5379_s25 + $0x90] sm:$0xff] %v2108_v12  ;;  %v2110_v26 = vadd.f32 %v2109_v14, %v1997_v11  ;;  %v2007_v17 = vadd.f32 %v2006_v13, %v1526_v25 }
 0x28e   : >> { %v2010_v39 = vpop.f32.mrf.mxu0  ;;  %v2113_v19 = vpop.f32.mrf.mxu1 }
 0x28f   : >> { %2164 = vst [vmem:[%s5379_s25 + $0x98] sm:$0xff] %v2110_v26  ;;  %v2114_v42 = vadd.f32 %v2113_v19, %v2001_v20  ;;  %v2011_v23 = vadd.f32 %v2010_v39, %v1531_v16 }
 0x290   : >> { %v2012_v44 = vpop.f32.mrf.mxu0  ;;  %v2115_v45 = vpop.f32.mrf.mxu1 }
 0x291   : >> { %2165 = vst [vmem:[%s5379_s25 + $0xa0] sm:$0xff] %v2114_v42  ;;  %v2116_v41 = vadd.f32 %v2115_v45, %v2003_v40  ;;  %v2013_v30 = vadd.f32 %v2012_v44, %v1531_v16 }
 0x292   : >> { %v2014_v43 = vpop.f32.mrf.mxu0  ;;  %v2117_v46 = vpop.f32.mrf.mxu1 }
 0x293   : >> { %2166 = vst [vmem:[%s5379_s25 + $0xa8] sm:$0xff] %v2116_v41  ;;  %v2118_v18 = vadd.f32 %v2117_v46, %v2005_v15  ;;  %v2015_v34 = vadd.f32 %v2014_v43, %v1536_v29 }
 0x294   : >> { %v2016_v21 = vpop.f32.mrf.mxu0  ;;  %v2119_v22 = vpop.f32.mrf.mxu1 }
 0x295   : >> { %2167 = vst [vmem:[%s5379_s25 + $0xb0] sm:$0xff] %v2118_v18  ;;  %v2120_v24 = vadd.f32 %v2119_v22, %v2007_v17  ;;  %v2017_v38 = vadd.f32 %v2016_v21, %v1536_v29 }
 0x296   : >> { %v2020_v27 = vpop.f32.mrf.mxu0  ;;  %v2123_v28 = vpop.f32.mrf.mxu1 }
 0x297   : >> { %2168 = vst [vmem:[%s5379_s25 + $0xb8] sm:$0xff] %v2120_v24  ;;  %v2124_v31 = vadd.f32 %v2123_v28, %v2011_v23  ;;  %v2021_v50 = vadd.f32 %v2020_v27, %v1541_v37 }
 0x298   : >> { %v2022_v32 = vpop.f32.mrf.mxu0  ;;  %v2125_v33 = vpop.f32.mrf.mxu1 }
 0x299   : >> { %2169 = vst [vmem:[%s5379_s25 + $0xc0] sm:$0xff] %v2124_v31  ;;  %v2126_v35 = vadd.f32 %v2125_v33, %v2013_v30  ;;  %v2023_v54 = vadd.f32 %v2022_v32, %v1541_v37 }
 0x29a   : >> { %v2127_v36 = vpop.f32.mrf.mxu1  ;;  %v2024_v48 = vpop.f32.mrf.mxu0 }
 0x29b   : >> { %2170 = vst [vmem:[%s5379_s25 + $0xc8] sm:$0xff] %v2126_v35  ;;  %v2128_v47 = vadd.f32 %v2127_v36, %v2015_v34  ;;  %v2025_v4 = vadd.f32 %v2024_v48, %v1546_v53 }
 0x29c   : >> { %v2129_v49 = vpop.f32.mrf.mxu1  ;;  %v2026_v56 = vpop.f32.mrf.mxu0 }
 0x29d   : >> { %2171 = vst [vmem:[%s5379_s25 + $0xd0] sm:$0xff] %v2128_v47  ;;  %v2130_v51 = vadd.f32 %v2129_v49, %v2017_v38  ;;  %v2027_v60 = vadd.f32 %v2026_v56, %v1546_v53 }
 0x29e   : >> { %v2133_v52 = vpop.f32.mrf.mxu1 }
 0x29f   : >> { %2172 = vst [vmem:[%s5379_s25 + $0xd8] sm:$0xff] %v2130_v51  ;;  %v2134_v55 = vadd.f32 %v2133_v52, %v2021_v50 }
 0x2a0   : >> { %v2135_v57 = vpop.f32.mrf.mxu1 }
 0x2a1   : >> { %2173 = vst [vmem:[%s5379_s25 + $0xe0] sm:$0xff] %v2134_v55  ;;  %v2136_v58 = vadd.f32 %v2135_v57, %v2023_v54 }
 0x2a2   : >> { %v2137_v59 = vpop.f32.mrf.mxu1 }
 0x2a3   : >> { %2174 = vst [vmem:[%s5379_s25 + $0xe8] sm:$0xff] %v2136_v58  ;;  %v2138_v61 = vadd.f32 %v2137_v59, %v2025_v4  ;;  %572 = sbr.rel (!%p570_p4) target bundleno = 40 (0x28), region = 146 }
 0x2a4   : >> { %v2139_v62 = vpop.f32.mrf.mxu1 }
 0x2a5   : >> { %2175 = vst [vmem:[%s5379_s25 + $0xf0] sm:$0xff] %v2138_v61  ;;  %v2140_v1 = vadd.f32 %v2139_v62, %v2027_v60 }
 0x2a7   : >> { %2176 = vst [vmem:[%s5379_s25 + $0xf8] sm:$0xff] %v2140_v1 }
 0x2a8 LB: >> { %v5421_v2 = vld [vmem:[#allocation5 + $0x10] sm:$0xff]  ;;  %v5423_v3 = vld [vmem:[#allocation5 + $0x20] sm:$0xff]  ;;  %s4881_s27 = smov 1   ;;  %v5427_v5 = vld [vmem:[#allocation5 + $0x28] sm:$0xff]  ;;  %s4882_s28 = smov 15   ;;  %v4889_v37 = vmov 0   ;;  %s4868_s26 = sphi %s5416_s26, %s2182_s26  }
 0x2a9   : >> { %2462 = vrot.lane.b32.xlu0 %v5421_v2, %s4881_s27  ;;  %2474 = vrot.lane.b32.xlu1 %v5423_v3, %s4881_s27  ;;  %v5429_v6 = vld [vmem:[#allocation5 + $0x38] sm:$0xff]  ;;  %v5431_v7 = vld [vmem:[#allocation5 + $0x30] sm:$0xff]  ;;  %v5435_v8 = vld [vmem:[#allocation5 + $0x8] sm:$0xff]  ;;  %s4883_s20 = smov 16   ;;  %s4884_s29 = smov 17   ;;  %v4810_v41 = vpack.c.bf16 %v5427_v5, %v5421_v2 }
 0x2aa   : >> { %v5437_v9 = vld [vmem:[#allocation5] sm:$0xff]  ;;  %v5441_v10 = vld [vmem:[#allocation5 + $0x18] sm:$0xff]  ;;  %s4885_s30 = smov 112   ;;  %s4886_s14 = smov 113   ;;  %v4599_v20 = vld [vmem:[#allocation4 + $0x14c] ss:$-280 sps:$4 sm:$0xff]   ;;  %v4811_v43 = vpack.c.bf16 %v5429_v6, %v5423_v3  ;;  %v4812_v16 = vpack.c.bf16 %v5431_v7, %v5435_v8  ;;  %3542 = vmatprep.mubr.bf16.mxu1 %v4889_v37 }
 0x2ab   : >> { %v3027_v11 = vld [vmem:[#allocation4 + $0x58] sm:$0xff]  ;;  %v4601_v26 = vld [vmem:[#allocation4 + $0x148] ss:$-280 sps:$4 sm:$0xff]   ;;  %s4887_s15 = smov 127   ;;  %v4605_v25 = vld [vmem:[#allocation4 + $0x6c] ss:$-24 sps:$4 sm:$0xff]   ;;  %v4813_v17 = vpack.c.bf16 %v5437_v9, %v5441_v10 }
 0x2ac   : >> { %v3028_v12 = vld [vmem:[#allocation4 + $0x138] sm:$0xff]  ;;  %v4607_v40 = vld [vmem:[#allocation4 + $0x68] ss:$-24 sps:$4 sm:$0xff]   ;;  %s4888_s22 = smov 111   ;;  %s4504_s17 = sshll.u32 %s4868_s26, 8 }
 0x2ad   : >> { %2464 = vrot.lane.b32.xlu0 %v5427_v5, %s4881_s27  ;;  %2476 = vrot.lane.b32.xlu1 %v5429_v6, %s4881_s27  ;;  %v4397_v13 = vcombine.high %v3027_v11, %v3028_v12  ;;  %v4396_v14 = vcombine.low %v3027_v11, %v3028_v12  ;;  %v4602_v39 = vld [vmem:[#allocation4 + $0x14] ss:$8 sps:$4 sm:$0xff]   ;;  %v4604_v19 = vld [vmem:[#allocation4 + $0x10] ss:$8 sps:$4 sm:$0xff]   ;;  %s5711_s23 = scalar_lea.vmem [#allocation2], %s4504_s17 }
 0x2ae   : >> { %v4608_v42 = vld [vmem:[#allocation4 + $0xec] ss:$-16 sps:$4 sm:$0xff]   ;;  %v4610_v44 = vld [vmem:[#allocation4 + $0xe8] ss:$-16 sps:$4 sm:$0xff]   ;;  %v4616_v22 = vld [vmem:[%s5951_s2 + $0x4] ss:$12 sps:$4 sm:$0xff]  }
 0x2af   : >> { %3510 = vmatprep.subr.bf16.mxu1 %v4397_v13  ;;  %v4611_v45 = vld [vmem:[#allocation4 + $0x114] ss:$-216 sps:$4 sm:$0xff]   ;;  %v4613_v15 = vld [vmem:[#allocation4 + $0x110] ss:$-216 sps:$4 sm:$0xff]   ;;  %3429 = vmatprep.mubr.bf16.mxu0 %v4616_v22 }
 0x2b0   : >> { %3511 = vmatpush1.bf16.msra.mxu1 %v4396_v14  ;;  %v4295_v46 = vld [vmem:[%s5958_s9 + $0x3] ss:$8 sm:$0x3]  ;;  %v4290_v59 = vld [vmem:[%s5958_s9 + $0x2] ss:$8 sm:$0x3] }
 0x2b1   : >> { %2460 = vrot.lane.b32.xlu1 %v5431_v7, %s4881_s27  ;;  %2458 = vrot.lane.b32.xlu0 %v5435_v8, %s4881_s27  ;;  %v2499_v18 = vrot.slane %v4295_v46, %v5123_v63  ;;  %v2503_v21 = vrot.slane %v4295_v46, %v5125_v0  ;;  %v2413_v62 = vrot.slane %v4290_v59, %v5123_v63 }
 0x2b2   : >> { %3512 = vmatprep.subr.bf16.mxu1 %v4599_v20  ;;  %v2417_v1 = vrot.slane %v4290_v59, %v5125_v0 }
 0x2b4   : >> { %3513 = vmatpush1.bf16.msra.mxu1 %v4601_v26 }
 0x2b5   : >> { %2472 = vrot.lane.b32.xlu1 %v5437_v9, %s4881_s27  ;;  %2470 = vrot.lane.b32.xlu0 %v5441_v10, %s4881_s27 }
 0x2b6   : >> { %3514 = vmatprep.subr.bf16.mxu1 %v4602_v39 }
 0x2b8   : >> { %3515 = vmatpush1.bf16.msra.mxu1 %v4604_v19 }
 0x2b9   : >> { %2378 = vrot.lane.b32.xlu1 %v5427_v5, %s4882_s28  ;;  %2376 = vrot.lane.b32.xlu0 %v5421_v2, %s4882_s28 }
 0x2ba   : >> { %3516 = vmatprep.subr.bf16.mxu1 %v4605_v25 }
 0x2bc   : >> { %3517 = vmatpush1.bf16.msra.mxu1 %v4607_v40 }
 0x2bd   : >> { %2390 = vrot.lane.b32.xlu1 %v5429_v6, %s4882_s28  ;;  %2388 = vrot.lane.b32.xlu0 %v5423_v3, %s4882_s28 }
 0x2be   : >> { %3518 = vmatprep.subr.bf16.mxu1 %v4608_v42 }
 0x2c0   : >> { %3519 = vmatpush1.bf16.msra.mxu1 %v4610_v44 }
 0x2c1   : >> { %2374 = vrot.lane.b32.xlu1 %v5431_v7, %s4882_s28  ;;  %2372 = vrot.lane.b32.xlu0 %v5435_v8, %s4882_s28 }
 0x2c2   : >> { %3520 = vmatprep.subr.bf16.mxu1 %v4611_v45 }
 0x2c4   : >> { %3521 = vmatpush1.bf16.msra.mxu1 %v4613_v15 }
 0x2c5   : >> { %2386 = vrot.lane.b32.xlu1 %v5437_v9, %s4882_s28  ;;  %2384 = vrot.lane.b32.xlu0 %v5441_v10, %s4882_s28 }
 0x2c9   : >> { %2292 = vrot.lane.b32.xlu1 %v5427_v5, %s4883_s20  ;;  %2290 = vrot.lane.b32.xlu0 %v5421_v2, %s4883_s20 }
 0x2cd   : >> { %2304 = vrot.lane.b32.xlu1 %v5429_v6, %s4883_s20  ;;  %2302 = vrot.lane.b32.xlu0 %v5423_v3, %s4883_s20 }
 0x2d1   : >> { %2288 = vrot.lane.b32.xlu1 %v5431_v7, %s4883_s20  ;;  %2286 = vrot.lane.b32.xlu0 %v5435_v8, %s4883_s20 }
 0x2d5   : >> { %2300 = vrot.lane.b32.xlu1 %v5437_v9, %s4883_s20  ;;  %2298 = vrot.lane.b32.xlu0 %v5441_v10, %s4883_s20 }
 0x2d9   : >> { %2202 = vrot.lane.b32.xlu1 %v5427_v5, %s4884_s29  ;;  %2200 = vrot.lane.b32.xlu0 %v5421_v2, %s4884_s29 }
 0x2dd   : >> { %2218 = vrot.lane.b32.xlu1 %v5429_v6, %s4884_s29  ;;  %2216 = vrot.lane.b32.xlu0 %v5423_v3, %s4884_s29 }
 0x2e1   : >> { %2198 = vrot.lane.b32.xlu1 %v5431_v7, %s4884_s29  ;;  %2196 = vrot.lane.b32.xlu0 %v5435_v8, %s4884_s29 }
 0x2e5   : >> { %2214 = vrot.lane.b32.xlu1 %v5437_v9, %s4884_s29  ;;  %2212 = vrot.lane.b32.xlu0 %v5441_v10, %s4884_s29 }
 0x2e9   : >> { %2754 = vrot.lane.b32.xlu1 %v5421_v2, %s4885_s30  ;;  %2752 = vrot.lane.b32.xlu0 %v5423_v3, %s4885_s30 }
 0x2ed   : >> { %2758 = vrot.lane.b32.xlu1 %v5427_v5, %s4885_s30  ;;  %2756 = vrot.lane.b32.xlu0 %v5429_v6, %s4885_s30 }
 0x2f1   : >> { %2746 = vrot.lane.b32.xlu1 %v5435_v8, %s4885_s30  ;;  %2744 = vrot.lane.b32.xlu0 %v5441_v10, %s4885_s30 }
 0x2f5   : >> { %2750 = vrot.lane.b32.xlu1 %v5431_v7, %s4885_s30  ;;  %2748 = vrot.lane.b32.xlu0 %v5437_v9, %s4885_s30 }
 0x2f9   : >> { %2668 = vrot.lane.b32.xlu1 %v5421_v2, %s4886_s14  ;;  %2666 = vrot.lane.b32.xlu0 %v5423_v3, %s4886_s14 }
 0x2fd   : >> { %2672 = vrot.lane.b32.xlu1 %v5427_v5, %s4886_s14  ;;  %2670 = vrot.lane.b32.xlu0 %v5429_v6, %s4886_s14 }
 0x301   : >> { %2660 = vrot.lane.b32.xlu1 %v5435_v8, %s4886_s14  ;;  %2658 = vrot.lane.b32.xlu0 %v5441_v10, %s4886_s14 }
 0x305   : >> { %2664 = vrot.lane.b32.xlu1 %v5431_v7, %s4886_s14  ;;  %2662 = vrot.lane.b32.xlu0 %v5437_v9, %s4886_s14 }
 0x309   : >> { %2582 = vrot.lane.b32.xlu1 %v5421_v2, %s4887_s15  ;;  %2580 = vrot.lane.b32.xlu0 %v5423_v3, %s4887_s15 }
 0x30d   : >> { %2586 = vrot.lane.b32.xlu1 %v5427_v5, %s4887_s15  ;;  %2584 = vrot.lane.b32.xlu0 %v5429_v6, %s4887_s15 }
 0x311   : >> { %2574 = vrot.lane.b32.xlu1 %v5435_v8, %s4887_s15  ;;  %2572 = vrot.lane.b32.xlu0 %v5441_v10, %s4887_s15 }
 0x315   : >> { %2578 = vrot.lane.b32.xlu1 %v5431_v7, %s4887_s15  ;;  %2576 = vrot.lane.b32.xlu0 %v5437_v9, %s4887_s15 }
 0x319   : >> { %2840 = vrot.lane.b32.xlu1 %v5421_v2, %s4888_s22  ;;  %2838 = vrot.lane.b32.xlu0 %v5423_v3, %s4888_s22 }
 0x31b   : >> { %v2463_v23 = vpop.permute.xlu0 %2462  ;;  %v2475_v24 = vpop.permute.xlu1 %2474 }
 0x31c   : >> { %v2481_v27 = vsel %vm936_vm0, %v2475_v24, %v2463_v23  ;;  %v2493_v28 = vsel %vm936_vm0, %v2463_v23, %v2475_v24 }
 0x31d   : >> { %v2510_v29 = vmul.f32 %v2499_v18, %v2493_v28  ;;  %v2511_v30 = vmul.f32 %v2503_v21, %v2481_v27  ;;  %2844 = vrot.lane.b32.xlu1 %v5427_v5, %s4888_s22  ;;  %2842 = vrot.lane.b32.xlu0 %v5429_v6, %s4888_s22  ;;  %v4618_v6 = vld [vmem:[%s5951_s2 + $0x1c] ss:$12 sps:$4 sm:$0xff]  }
 0x31f   : >> { %v2465_v31 = vpop.permute.xlu0 %2464  ;;  %v2477_v32 = vpop.permute.xlu1 %2476 }
 0x320   : >> { %v2482_v33 = vsel %vm936_vm0, %v2477_v32, %v2465_v31  ;;  %v2494_v34 = vsel %vm936_vm0, %v2465_v31, %v2477_v32 }
 0x321   : >> { %v2512_v35 = vmul.f32 %v2499_v18, %v2494_v34  ;;  %v2513_v36 = vmul.f32 %v2503_v21, %v2482_v33  ;;  %2832 = vrot.lane.b32.xlu1 %v5435_v8, %s4888_s22  ;;  %2830 = vrot.lane.b32.xlu0 %v5441_v10, %s4888_s22  ;;  %v4285_v33 = vld [vmem:[%s5958_s9 + $0x1] ss:$8 sm:$0x3] }
 0x322   : >> { %v4622_v10 = vld [vmem:[%s5951_s2 + $0x34] ss:$12 sps:$4 sm:$0xff]  }
 0x323   : >> { %v2461_v38 = vpop.permute.xlu1 %2460  ;;  %v2459_v47 = vpop.permute.xlu0 %2458  ;;  %v4814_v48 = vpack.c.bf16 %v2513_v36, %v2511_v30  ;;  %v4815_v49 = vpack.c.bf16 %v2512_v35, %v2510_v29  ;;  %v2327_v36 = vrot.slane %v4285_v33, %v5123_v63 }
 0x325   : >> { %2836 = vrot.lane.b32.xlu1 %v5431_v7, %s4888_s22  ;;  %2834 = vrot.lane.b32.xlu0 %v5437_v9, %s4888_s22  ;;  %v4620_v9 = vld [vmem:[%s5951_s2 + $0x18] ss:$12 sps:$4 sm:$0xff]  }
 0x326   : >> { %3397 = vmatprep.subr.bf16.mxu0 %v4814_v48 }
 0x327   : >> { %v2473_v50 = vpop.permute.xlu1 %2472  ;;  %v2471_v51 = vpop.permute.xlu0 %2470  ;;  %3398 = vmatpush1.bf16.msra.mxu0 %v4815_v49 }
 0x328   : >> { %v2480_v52 = vsel %vm936_vm0, %v2473_v50, %v2461_v38  ;;  %v2492_v53 = vsel %vm936_vm0, %v2461_v38, %v2473_v50  ;;  %v2479_v54 = vsel %vm936_vm0, %v2471_v51, %v2459_v47  ;;  %v2491_v55 = vsel %vm936_vm0, %v2459_v47, %v2471_v51 }
 0x329   : >> { %v2508_v56 = vmul.f32 %v2499_v18, %v2492_v53  ;;  %v2509_v57 = vmul.f32 %v2503_v21, %v2480_v52  ;;  %v2506_v4 = vmul.f32 %v2499_v18, %v2491_v55  ;;  %v2507_v58 = vmul.f32 %v2503_v21, %v2479_v54 }
 0x32a   : >> { %v2331_v38 = vrot.slane %v4285_v33, %v5125_v0 }
 0x32b   : >> { %v2379_v60 = vpop.permute.xlu1 %2378  ;;  %v2377_v61 = vpop.permute.xlu0 %2376  ;;  %v4816_v11 = vpack.c.bf16 %v2509_v57, %v2507_v58  ;;  %v4817_v12 = vpack.c.bf16 %v2508_v56, %v2506_v4 }
 0x32d   : >> { %3399 = vmatprep.subr.bf16.mxu0 %v4816_v11 }
 0x32e   : >> { %3400 = vmatpush1.bf16.msra.mxu0 %v4817_v12 }
 0x32f   : >> { %v2391_v13 = vpop.permute.xlu1 %2390  ;;  %v2389_v14 = vpop.permute.xlu0 %2388 }
 0x330   : >> { %v2396_v20 = vsel %vm850_vm1, %v2391_v13, %v2379_v60  ;;  %v2408_v26 = vsel %vm850_vm1, %v2379_v60, %v2391_v13  ;;  %v2395_v39 = vsel %vm850_vm1, %v2389_v14, %v2377_v61  ;;  %v2407_v19 = vsel %vm850_vm1, %v2377_v61, %v2389_v14 }
 0x331   : >> { %v2426_v25 = vmul.f32 %v2413_v62, %v2408_v26  ;;  %v2427_v40 = vmul.f32 %v2417_v1, %v2396_v20  ;;  %v2424_v42 = vmul.f32 %v2413_v62, %v2407_v19  ;;  %v2425_v44 = vmul.f32 %v2417_v1, %v2395_v39 }
 0x333   : >> { %v2375_v45 = vpop.permute.xlu1 %2374  ;;  %v2373_v15 = vpop.permute.xlu0 %2372  ;;  %v4818_v46 = vpack.c.bf16 %v2427_v40, %v2425_v44  ;;  %v4819_v18 = vpack.c.bf16 %v2426_v25, %v2424_v42  ;;  %v2191_v25 = vld [vmem:[%s5958_s9] ss:$8 sm:$0x3] }
 0x334   : >> { %v2241_v44 = vrot.slane %v2191_v25, %v5123_v63 }
 0x335   : >> { %3401 = vmatprep.subr.bf16.mxu0 %v4818_v46 }
 0x336   : >> { %3402 = vmatpush1.bf16.msra.mxu0 %v4819_v18 }
 0x337   : >> { %v2387_v21 = vpop.permute.xlu1 %2386  ;;  %v2385_v22 = vpop.permute.xlu0 %2384 }
 0x338   : >> { %v2394_v23 = vsel %vm850_vm1, %v2387_v21, %v2375_v45  ;;  %v2406_v24 = vsel %vm850_vm1, %v2375_v45, %v2387_v21  ;;  %v2393_v27 = vsel %vm850_vm1, %v2385_v22, %v2373_v15  ;;  %v2405_v28 = vsel %vm850_vm1, %v2373_v15, %v2385_v22 }
 0x339   : >> { %v2422_v29 = vmul.f32 %v2413_v62, %v2406_v24  ;;  %v2423_v30 = vmul.f32 %v2417_v1, %v2394_v23  ;;  %v2420_v31 = vmul.f32 %v2413_v62, %v2405_v28  ;;  %v2421_v32 = vmul.f32 %v2417_v1, %v2393_v27 }
 0x33a   : >> { %v2245_v45 = vrot.slane %v2191_v25, %v5125_v0 }
 0x33b   : >> { %v2293_v34 = vpop.permute.xlu1 %2292  ;;  %v2291_v35 = vpop.permute.xlu0 %2290  ;;  %v4820_v47 = vpack.c.bf16 %v2423_v30, %v2421_v32  ;;  %v4821_v48 = vpack.c.bf16 %v2422_v29, %v2420_v31 }
 0x33d   : >> { %3403 = vmatprep.subr.bf16.mxu0 %v4820_v47 }
 0x33e   : >> { %3404 = vmatpush1.bf16.msra.mxu0 %v4821_v48 }
 0x33f   : >> { %v2305_v49 = vpop.permute.xlu1 %2304  ;;  %v2303_v50 = vpop.permute.xlu0 %2302 }
 0x340   : >> { %v2310_v51 = vsel %vm764_vm2, %v2305_v49, %v2293_v34  ;;  %v2322_v52 = vsel %vm764_vm2, %v2293_v34, %v2305_v49  ;;  %v2309_v53 = vsel %vm764_vm2, %v2303_v50, %v2291_v35  ;;  %v2321_v54 = vsel %vm764_vm2, %v2291_v35, %v2303_v50  ;;  %v4314_v34 = vld [vmem:[%s5958_s9 + $0x7] ss:$8 sm:$0x3] }
 0x341   : >> { %v2340_v55 = vmul.f32 %v2327_v36, %v2322_v52  ;;  %v2341_v56 = vmul.f32 %v2331_v38, %v2310_v51  ;;  %v2338_v57 = vmul.f32 %v2327_v36, %v2321_v54  ;;  %v2339_v4 = vmul.f32 %v2331_v38, %v2309_v53 }
 0x342   : >> { %v2785_v48 = vrot.slane %v4314_v34, %v5123_v63  ;;  %v2789_v49 = vrot.slane %v4314_v34, %v5125_v0 }
 0x343   : >> { %v2289_v58 = vpop.permute.xlu1 %2288  ;;  %v2287_v59 = vpop.permute.xlu0 %2286  ;;  %v4822_v60 = vpack.c.bf16 %v2341_v56, %v2339_v4  ;;  %v4823_v61 = vpack.c.bf16 %v2340_v55, %v2338_v57 }
 0x345   : >> { %3405 = vmatprep.subr.bf16.mxu0 %v4822_v60 }
 0x346   : >> { %3406 = vmatpush1.bf16.msra.mxu0 %v4823_v61 }
 0x347   : >> { %v2301_v62 = vpop.permute.xlu1 %2300  ;;  %v2299_v1 = vpop.permute.xlu0 %2298 }
 0x348   : >> { %v2308_v11 = vsel %vm764_vm2, %v2301_v62, %v2289_v58  ;;  %v2320_v12 = vsel %vm764_vm2, %v2289_v58, %v2301_v62  ;;  %v2307_v13 = vsel %vm764_vm2, %v2299_v1, %v2287_v59  ;;  %v2319_v14 = vsel %vm764_vm2, %v2287_v59, %v2299_v1 }
 0x349   : >> { %v2336_v20 = vmul.f32 %v2327_v36, %v2320_v12  ;;  %v2337_v26 = vmul.f32 %v2331_v38, %v2308_v11  ;;  %v2334_v39 = vmul.f32 %v2327_v36, %v2319_v14  ;;  %v2335_v19 = vmul.f32 %v2331_v38, %v2307_v13 }
 0x34b   : >> { %v2203_v40 = vpop.permute.xlu1 %2202  ;;  %v2201_v42 = vpop.permute.xlu0 %2200  ;;  %v4824_v15 = vpack.c.bf16 %v2337_v26, %v2335_v19  ;;  %v4825_v46 = vpack.c.bf16 %v2336_v20, %v2334_v39 }
 0x34d   : >> { %3407 = vmatprep.subr.bf16.mxu0 %v4824_v15 }
 0x34e   : >> { %3408 = vmatpush1.bf16.msra.mxu0 %v4825_v46 }
 0x34f   : >> { %v2219_v18 = vpop.permute.xlu1 %2218  ;;  %v2217_v21 = vpop.permute.xlu0 %2216 }
 0x350   : >> { %v2224_v22 = vsel %vm678_vm3, %v2219_v18, %v2203_v40  ;;  %v2236_v23 = vsel %vm678_vm3, %v2203_v40, %v2219_v18  ;;  %v2223_v24 = vsel %vm678_vm3, %v2217_v21, %v2201_v42  ;;  %v2235_v27 = vsel %vm678_vm3, %v2201_v42, %v2217_v21  ;;  %v4309_v18 = vld [vmem:[%s5958_s9 + $0x6] ss:$8 sm:$0x3] }
 0x351   : >> { %v2254_v28 = vmul.f32 %v2241_v44, %v2236_v23  ;;  %v2255_v29 = vmul.f32 %v2245_v45, %v2224_v22  ;;  %v2252_v30 = vmul.f32 %v2241_v44, %v2235_v27  ;;  %v2253_v31 = vmul.f32 %v2245_v45, %v2223_v24 }
 0x353   : >> { %v2199_v32 = vpop.permute.xlu1 %2198  ;;  %v2197_v33 = vpop.permute.xlu0 %2196  ;;  %v4826_v35 = vpack.c.bf16 %v2255_v29, %v2253_v31  ;;  %v4827_v36 = vpack.c.bf16 %v2254_v28, %v2252_v30  ;;  %v2699_v29 = vrot.slane %v4309_v18, %v5123_v63  ;;  %v2703_v30 = vrot.slane %v4309_v18, %v5125_v0 }
 0x355   : >> { %3409 = vmatprep.subr.bf16.mxu0 %v4826_v35 }
 0x356   : >> { %3410 = vmatpush1.bf16.msra.mxu0 %v4827_v36 }
 0x357   : >> { %v2215_v38 = vpop.permute.xlu1 %2214  ;;  %v2213_v47 = vpop.permute.xlu0 %2212 }
 0x358   : >> { %v2222_v50 = vsel %vm678_vm3, %v2215_v38, %v2199_v32  ;;  %v2234_v51 = vsel %vm678_vm3, %v2199_v32, %v2215_v38  ;;  %v2221_v52 = vsel %vm678_vm3, %v2213_v47, %v2197_v33  ;;  %v2233_v53 = vsel %vm678_vm3, %v2197_v33, %v2213_v47 }
 0x359   : >> { %v2250_v54 = vmul.f32 %v2241_v44, %v2234_v51  ;;  %v2251_v55 = vmul.f32 %v2245_v45, %v2222_v50  ;;  %v2248_v56 = vmul.f32 %v2241_v44, %v2233_v53  ;;  %v2249_v57 = vmul.f32 %v2245_v45, %v2221_v52 }
 0x35b   : >> { %v2755_v4 = vpop.permute.xlu1 %2754  ;;  %v2753_v58 = vpop.permute.xlu0 %2752  ;;  %v4828_v1 = vpack.c.bf16 %v2251_v55, %v2249_v57  ;;  %v4829_v11 = vpack.c.bf16 %v2250_v54, %v2248_v56 }
 0x35c   : >> { %v2763_v59 = vsel %vm1218_vm4, %v2753_v58, %v2755_v4  ;;  %v2779_v60 = vsel %vm1218_vm4, %v2755_v4, %v2753_v58 }
 0x35d   : >> { %v2796_v61 = vmul.f32 %v2785_v48, %v2763_v59  ;;  %v2797_v62 = vmul.f32 %v2789_v49, %v2779_v60  ;;  %3411 = vmatprep.subr.bf16.mxu0 %v4828_v1 }
 0x35e   : >> { %3412 = vmatpush1.bf16.msra.mxu0 %v4829_v11 }
 0x35f   : >> { %v2759_v12 = vpop.permute.xlu1 %2758  ;;  %v2757_v13 = vpop.permute.xlu0 %2756 }
 0x360   : >> { %v2764_v14 = vsel %vm1218_vm4, %v2757_v13, %v2759_v12  ;;  %v2780_v20 = vsel %vm1218_vm4, %v2759_v12, %v2757_v13 }
 0x361   : >> { %v2798_v26 = vmul.f32 %v2785_v48, %v2764_v14  ;;  %v2799_v39 = vmul.f32 %v2789_v49, %v2780_v20 }
 0x363   : >> { %v2747_v19 = vpop.permute.xlu1 %2746  ;;  %v2745_v25 = vpop.permute.xlu0 %2744  ;;  %v4830_v15 = vpack.c.bf16 %v2799_v39, %v2797_v62  ;;  %v4831_v46 = vpack.c.bf16 %v2798_v26, %v2796_v61  ;;  %v4304_v61 = vld [vmem:[%s5958_s9 + $0x5] ss:$8 sm:$0x3] }
 0x364   : >> { %v2761_v40 = vsel %vm1218_vm4, %v2745_v25, %v2747_v19  ;;  %v2777_v42 = vsel %vm1218_vm4, %v2747_v19, %v2745_v25  ;;  %v2613_v20 = vrot.slane %v4304_v61, %v5123_v63  ;;  %v2617_v26 = vrot.slane %v4304_v61, %v5125_v0 }
 0x365   : >> { %v2792_v44 = vmul.f32 %v2785_v48, %v2761_v40  ;;  %v2793_v45 = vmul.f32 %v2789_v49, %v2777_v42  ;;  %3413 = vmatprep.subr.bf16.mxu0 %v4830_v15 }
 0x366   : >> { %3414 = vmatpush2.bf16.msra.mxu0 %v4831_v46 }
 0x367   : >> { %v2751_v21 = vpop.permute.xlu1 %2750  ;;  %v2749_v22 = vpop.permute.xlu0 %2748 }
 0x368   : >> { %v2762_v23 = vsel %vm1218_vm4, %v2749_v22, %v2751_v21  ;;  %v2778_v24 = vsel %vm1218_vm4, %v2751_v21, %v2749_v22 }
 0x369   : >> { %v2794_v27 = vmul.f32 %v2785_v48, %v2762_v23  ;;  %v2795_v28 = vmul.f32 %v2789_v49, %v2778_v24 }
 0x36b   : >> { %v2669_v31 = vpop.permute.xlu1 %2668  ;;  %v2667_v32 = vpop.permute.xlu0 %2666  ;;  %v4832_v38 = vpack.c.bf16 %v2795_v28, %v2793_v45  ;;  %v4833_v47 = vpack.c.bf16 %v2794_v27, %v2792_v44 }
 0x36c   : >> { %v2677_v33 = vsel %vm1132_vm5, %v2667_v32, %v2669_v31  ;;  %v2693_v34 = vsel %vm1132_vm5, %v2669_v31, %v2667_v32 }
 0x36d   : >> { %v2710_v35 = vmul.f32 %v2699_v29, %v2677_v33  ;;  %v2711_v36 = vmul.f32 %v2703_v30, %v2693_v34  ;;  %3415 = vmatprep.subr.bf16.mxu0 %v4832_v38 }
 0x36e   : >> { %3416 = vmatpush2.bf16.msra.mxu0 %v4833_v47 }
 0x36f   : >> { %v2673_v50 = vpop.permute.xlu1 %2672  ;;  %v2671_v51 = vpop.permute.xlu0 %2670 }
 0x370   : >> { %v2678_v48 = vsel %vm1132_vm5, %v2671_v51, %v2673_v50  ;;  %v2694_v49 = vsel %vm1132_vm5, %v2673_v50, %v2671_v51 }
 0x371   : >> { %v2712_v52 = vmul.f32 %v2699_v29, %v2678_v48  ;;  %v2713_v53 = vmul.f32 %v2703_v30, %v2694_v49 }
 0x373   : >> { %v2661_v54 = vpop.permute.xlu1 %2660  ;;  %v2659_v55 = vpop.permute.xlu0 %2658  ;;  %v4834_v59 = vpack.c.bf16 %v2713_v53, %v2711_v36  ;;  %v4835_v60 = vpack.c.bf16 %v2712_v52, %v2710_v35  ;;  %v4319_v35 = vld [vmem:[%s5958_s9 + $0x10] ss:$8 sm:$0x3] }
 0x374   : >> { %v2675_v56 = vsel %vm1132_vm5, %v2659_v55, %v2661_v54  ;;  %v2691_v57 = vsel %vm1132_vm5, %v2661_v54, %v2659_v55  ;;  %v2871_v49 = vrot.slane %v4319_v35, %v5123_v63  ;;  %v2875_v52 = vrot.slane %v4319_v35, %v5125_v0  ;;  %v4645_v35 = vld [vmem:[%s5951_s2 + $0xb0] ss:$12 sps:$4 sm:$0xff]  }
 0x375   : >> { %v2706_v4 = vmul.f32 %v2699_v29, %v2675_v56  ;;  %v2707_v58 = vmul.f32 %v2703_v30, %v2691_v57  ;;  %3417 = vmatprep.subr.bf16.mxu0 %v4834_v59 }
 0x376   : >> { %3418 = vmatpush2.bf16.msra.mxu0 %v4835_v60 }
 0x377   : >> { %v2665_v62 = vpop.permute.xlu1 %2664  ;;  %v2663_v1 = vpop.permute.xlu0 %2662 }
 0x378   : >> { %v2676_v11 = vsel %vm1132_vm5, %v2663_v1, %v2665_v62  ;;  %v2692_v12 = vsel %vm1132_vm5, %v2665_v62, %v2663_v1 }
 0x379   : >> { %v2708_v13 = vmul.f32 %v2699_v29, %v2676_v11  ;;  %v2709_v14 = vmul.f32 %v2703_v30, %v2692_v12 }
 0x37b   : >> { %v2583_v39 = vpop.permute.xlu1 %2582  ;;  %v2581_v19 = vpop.permute.xlu0 %2580  ;;  %v4836_v45 = vpack.c.bf16 %v2709_v14, %v2707_v58  ;;  %v4837_v15 = vpack.c.bf16 %v2708_v13, %v2706_v4 }
 0x37c   : >> { %v2591_v25 = vsel %vm1046_vm6, %v2581_v19, %v2583_v39  ;;  %v2607_v40 = vsel %vm1046_vm6, %v2583_v39, %v2581_v19 }
 0x37d   : >> { %v2624_v42 = vmul.f32 %v2613_v20, %v2591_v25  ;;  %v2625_v44 = vmul.f32 %v2617_v26, %v2607_v40  ;;  %3419 = vmatprep.subr.bf16.mxu0 %v4836_v45  ;;  %v4624_v45 = vld [vmem:[%s5951_s2 + $0x30] ss:$12 sps:$4 sm:$0xff]  }
 0x37e   : >> { %3420 = vmatpush2.bf16.msra.mxu0 %v4837_v15  ;;  %v4626_v15 = vld [vmem:[%s5951_s2 + $0x4c] ss:$12 sps:$4 sm:$0xff]  }
 0x37f   : >> { %v2587_v46 = vpop.permute.xlu1 %2586  ;;  %v2585_v18 = vpop.permute.xlu0 %2584 }
 0x380   : >> { %v2592_v21 = vsel %vm1046_vm6, %v2585_v18, %v2587_v46  ;;  %v2608_v22 = vsel %vm1046_vm6, %v2587_v46, %v2585_v18  ;;  %v4625_v46 = vld [vmem:[%s5951_s2 + $0x38] ss:$12 sps:$4 sm:$0xff]   ;;  %v4628_v18 = vld [vmem:[%s5951_s2 + $0x48] ss:$12 sps:$4 sm:$0xff]  }
 0x381   : >> { %v2626_v23 = vmul.f32 %v2613_v20, %v2592_v21  ;;  %v2627_v24 = vmul.f32 %v2617_v26, %v2608_v22  ;;  %v4630_v21 = vld [vmem:[%s5951_s2 + $0x64] ss:$12 sps:$4 sm:$0xff]  }
 0x382   : >> { %v4629_v22 = vld [vmem:[%s5951_s2 + $0x50] ss:$12 sps:$4 sm:$0xff]  }
 0x383   : >> { %v2575_v27 = vpop.permute.xlu1 %2574  ;;  %v2573_v28 = vpop.permute.xlu0 %2572  ;;  %v4838_v33 = vpack.c.bf16 %v2627_v24, %v2625_v44  ;;  %v4839_v34 = vpack.c.bf16 %v2626_v23, %v2624_v42  ;;  %v4617_v44 = vld [vmem:[%s5951_s2 + $0x8] ss:$12 sps:$4 sm:$0xff]   ;;  %v4632_v23 = vld [vmem:[%s5951_s2 + $0x60] ss:$12 sps:$4 sm:$0xff]  }
 0x384   : >> { %v2589_v29 = vsel %vm1046_vm6, %v2573_v28, %v2575_v27  ;;  %v2605_v30 = vsel %vm1046_vm6, %v2575_v27, %v2573_v28  ;;  %v4634_v24 = vld [vmem:[%s5951_s2 + $0x7c] ss:$12 sps:$4 sm:$0xff]   ;;  %v4636_v28 = vld [vmem:[%s5951_s2 + $0x78] ss:$12 sps:$4 sm:$0xff]  }
 0x385   : >> { %v2620_v31 = vmul.f32 %v2613_v20, %v2589_v29  ;;  %v2621_v32 = vmul.f32 %v2617_v26, %v2605_v30  ;;  %3421 = vmatprep.subr.bf16.mxu0 %v4838_v33  ;;  %v4633_v27 = vld [vmem:[%s5951_s2 + $0x68] ss:$12 sps:$4 sm:$0xff]   ;;  %v4637_v30 = vld [vmem:[%s5951_s2 + $0x80] ss:$12 sps:$4 sm:$0xff]   ;;  %v4641_v33 = vld [vmem:[%s5951_s2 + $0x98] ss:$12 sps:$4 sm:$0xff]  }
 0x386   : >> { %3422 = vmatpush2.bf16.msra.mxu0 %v4839_v34  ;;  %v4638_v29 = vld [vmem:[%s5951_s2 + $0x94] ss:$12 sps:$4 sm:$0xff]  }
 0x387   : >> { %v2579_v36 = vpop.permute.xlu1 %2578  ;;  %v2577_v38 = vpop.permute.xlu0 %2576  ;;  %v4644_v34 = vld [vmem:[%s5951_s2 + $0xa8] ss:$12 sps:$4 sm:$0xff]  }
 0x388   : >> { %v2590_v47 = vsel %vm1046_vm6, %v2577_v38, %v2579_v36  ;;  %v2606_v50 = vsel %vm1046_vm6, %v2579_v36, %v2577_v38 }
 0x389   : >> { %v2622_v51 = vmul.f32 %v2613_v20, %v2590_v47  ;;  %v2623_v48 = vmul.f32 %v2617_v26, %v2606_v50 }
 0x38b   : >> { %v2841_v53 = vpop.permute.xlu1 %2840  ;;  %v2839_v54 = vpop.permute.xlu0 %2838  ;;  %v4840_v58 = vpack.c.bf16 %v2623_v48, %v2621_v32  ;;  %v4841_v59 = vpack.c.bf16 %v2622_v51, %v2620_v31  ;;  %v4640_v31 = vld [vmem:[%s5951_s2 + $0x90] ss:$12 sps:$4 sm:$0xff]   ;;  %v4642_v32 = vld [vmem:[%s5951_s2 + $0xac] ss:$12 sps:$4 sm:$0xff]   ;;  %v3663_v48 = vld [vmem:[%s5953_s4] sm:$0xff] }
 0x38c   : >> { %v2849_v55 = vsel %vm1304_vm7, %v2839_v54, %v2841_v53  ;;  %v2865_v56 = vsel %vm1304_vm7, %v2841_v53, %v2839_v54  ;;  %v5706_v51 = vld [vmem:[#allocation6 + $0x28] sm:$0xff]  ;;  %v5714_v53 = vld [vmem:[#allocation6 + $0x18] sm:$0xff] }
 0x38d   : >> { %v2882_v57 = vmul.f32 %v2871_v49, %v2849_v55  ;;  %v2883_v4 = vmul.f32 %v2875_v52, %v2865_v56  ;;  %3423 = vmatprep.subr.bf16.mxu0 %v4840_v58  ;;  %v3664_v54 = vld [vmem:[%s5953_s4 + $0x8] sm:$0xff]  ;;  %v3671_v56 = vmul.f32 %v3663_v48, %v5706_v51 }
 0x38e   : >> { %3424 = vmatpush2.bf16.msra.mxu0 %v4841_v59  ;;  %v5721_v59 = vld [vmem:[#allocation6 + $0x30] sm:$0xff] }
 0x38f   : >> { %v2845_v60 = vpop.permute.xlu1 %2844  ;;  %v2843_v61 = vpop.permute.xlu0 %2842  ;;  %3425 = vmatprep.subr.bf16.mxu0 %v4810_v41  ;;  %v4614_v41 = vld [vmem:[%s5951_s2] ss:$12 sps:$4 sm:$0xff]  }
 0x390   : >> { %v2850_v62 = vsel %vm1304_vm7, %v2843_v61, %v2845_v60  ;;  %v2866_v1 = vsel %vm1304_vm7, %v2845_v60, %v2843_v61  ;;  %v3665_v60 = vld [vmem:[%s5953_s4 + $0x10] sm:$0xff] }
 0x391   : >> { %v2884_v11 = vmul.f32 %v2871_v49, %v2850_v62  ;;  %v2885_v12 = vmul.f32 %v2875_v52, %v2866_v1  ;;  %v3672_v1 = vmul.f32 %v3664_v54, %v5714_v53 }
 0x392   : >> { %3426 = vmatpush2.bf16.msra.mxu0 %v4811_v43 }
 0x393   : >> { %v2833_v13 = vpop.permute.xlu1 %2832  ;;  %v2831_v14 = vpop.permute.xlu0 %2830  ;;  %v4842_v25 = vpack.c.bf16 %v2885_v12, %v2883_v4  ;;  %v4843_v40 = vpack.c.bf16 %v2884_v11, %v2882_v57  ;;  %3427 = vmatprep.subr.bf16.mxu0 %v4812_v16  ;;  %v2918_v57 = vld [vmem:[%s5711_s23 + $0x8] sm:$0xff]  ;;  %v3666_v12 = vld [vmem:[%s5953_s4 + $0x18] sm:$0xff] }
 0x394   : >> { %v2847_v20 = vsel %vm1304_vm7, %v2831_v14, %v2833_v13  ;;  %v2863_v26 = vsel %vm1304_vm7, %v2833_v13, %v2831_v14  ;;  %v5727_v11 = vld [vmem:[#allocation6 + $0x8] sm:$0xff]  ;;  %v2919_v13 = vld [vmem:[%s5711_s23 + $0x10] sm:$0xff] }
 0x395   : >> { %v2878_v39 = vmul.f32 %v2871_v49, %v2847_v20  ;;  %v2879_v19 = vmul.f32 %v2875_v52, %v2863_v26  ;;  %3522 = vmatprep.subr.bf16.mxu1 %v4842_v25  ;;  %v3673_v25 = vmul.f32 %v3665_v60, %v5721_v59 }
 0x396   : >> { %3523 = vmatpush1.bf16.msra.mxu1 %v4843_v40  ;;  %3428 = vmatpush2.bf16.msra.mxu0 %v4813_v17  ;;  %v4621_v17 = vld [vmem:[%s5951_s2 + $0x20] ss:$12 sps:$4 sm:$0xff]   ;;  %v2920_v40 = vld [vmem:[%s5711_s23 + $0x18] sm:$0xff] }
 0x397   : >> { %v2837_v2 = vpop.permute.xlu1 %2836  ;;  %v2835_v5 = vpop.permute.xlu0 %2834 }
 0x398   : >> { %v2848_v42 = vsel %vm1304_vm7, %v2835_v5, %v2837_v2  ;;  %v2864_v3 = vsel %vm1304_vm7, %v2837_v2, %v2835_v5  ;;  %v3674_v5 = vmul.f32 %v3666_v12, %v5727_v11 }
 0x399   : >> { %v2880_v7 = vmul.f32 %v2871_v49, %v2848_v42  ;;  %v2881_v8 = vmul.f32 %v2875_v52, %v2864_v3  ;;  %3430 = vmatmul.mubr.bf16.vlgmr.msra.gmra.mxu0 %v4614_v41  ;;  %v5736_v42 = vld [vmem:[#allocation6 + $0x38] sm:$0xff] }
 0x39a   : >> { %3439 = vmatprep.mubr.bf16.mxu0 %v4618_v6 }
 0x39b   : >> { %v4844_v43 = vpack.c.bf16 %v2881_v8, %v2879_v19  ;;  %v4845_v16 = vpack.c.bf16 %v2880_v7, %v2878_v39 }
 0x39d   : >> { %3524 = vmatprep.subr.bf16.mxu1 %v4844_v43  ;;  %v3667_v43 = vld [vmem:[%s5953_s4 + $0x20] sm:$0xff] }
 0x39e   : >> { %3525 = vmatpush1.bf16.msra.mxu1 %v4845_v16  ;;  %v5741_v16 = vld [vmem:[#allocation6 + $0x20] sm:$0xff] }
 0x3a1   : >> { %3543 = vmatmul.mubr.bf16.vlgmr.msra.gmra.mxu1 %v4617_v44  ;;  %3440 = vmatmul.mubr.bf16.gmra.mxu0 %v4620_v9  ;;  %v3668_v44 = vld [vmem:[%s5953_s4 + $0x28] sm:$0xff] }
 0x3a2   : >> { %3552 = vmatprep.mubr.bf16.mxu1 %v4889_v37  ;;  %3449 = vmatprep.mubr.bf16.mxu0 %v4622_v10 }
 0x3a9   : >> { %3553 = vmatmul.mubr.bf16.gmra.mxu1 %v4621_v17  ;;  %3450 = vmatmul.mubr.bf16.gmra.mxu0 %v4624_v45 }
 0x3aa   : >> { %3562 = vmatprep.mubr.bf16.mxu1 %v4889_v37  ;;  %3459 = vmatprep.mubr.bf16.mxu0 %v4626_v15 }
 0x3b1   : >> { %3563 = vmatmul.mubr.bf16.gmra.mxu1 %v4625_v46  ;;  %3460 = vmatmul.mubr.bf16.gmra.mxu0 %v4628_v18  ;;  %v2921_v46 = vld [vmem:[%s5711_s23 + $0x20] sm:$0xff] }
 0x3b2   : >> { %3572 = vmatprep.mubr.bf16.mxu1 %v4889_v37  ;;  %3469 = vmatprep.mubr.bf16.mxu0 %v4630_v21  ;;  %v5747_v18 = vld [vmem:[#allocation6] sm:$0xff]  ;;  %v3669_v21 = vld [vmem:[%s5953_s4 + $0x30] sm:$0xff] }
 0x3b9   : >> { %3573 = vmatmul.mubr.bf16.gmra.mxu1 %v4629_v22  ;;  %3470 = vmatmul.mubr.bf16.gmra.mxu0 %v4632_v23  ;;  %v3675_v23 = vmul.f32 %v3667_v43, %v5736_v42 }
 0x3ba   : >> { %3582 = vmatprep.mubr.bf16.mxu1 %v4889_v37  ;;  %3479 = vmatprep.mubr.bf16.mxu0 %v4634_v24  ;;  %v2922_v24 = vld [vmem:[%s5711_s23 + $0x28] sm:$0xff] }
 0x3c1   : >> { %3583 = vmatmul.mubr.bf16.gmra.mxu1 %v4633_v27  ;;  %3480 = vmatmul.mubr.bf16.gmra.mxu0 %v4636_v28  ;;  %v3676_v28 = vmul.f32 %v3668_v44, %v5741_v16  ;;  %v2927_v44 = vld [vmem:[%s5711_s23 + $0x50] sm:$0xff] }
 0x3c2   : >> { %3592 = vmatprep.mubr.bf16.mxu1 %v4889_v37  ;;  %3489 = vmatprep.mubr.bf16.mxu0 %v4638_v29 }
 0x3c9   : >> { %3593 = vmatmul.mubr.bf16.gmra.mxu1 %v4637_v30  ;;  %3490 = vmatmul.mubr.bf16.gmra.mxu0 %v4640_v31 }
 0x3ca   : >> { %3602 = vmatprep.mubr.bf16.mxu1 %v4889_v37  ;;  %3499 = vmatprep.mubr.bf16.mxu0 %v4642_v32 }
 0x3d1   : >> { %3603 = vmatmul.mubr.bf16.gmra.mxu1 %v4641_v33  ;;  %3500 = vmatmul.mubr.bf16.gmra.mxu0 %v4644_v34  ;;  %v5755_v33 = vld [vmem:[#allocation6 + $0x10] sm:$0xff]  ;;  %v3670_v34 = vld [vmem:[%s5953_s4 + $0x38] sm:$0xff] }
 0x3d2   : >> { %3612 = vmatprep.mubr.bf16.mxu1 %v4889_v37  ;;  %v2917_v37 = vld [vmem:[%s5711_s23] sm:$0xff] }
 0x3d9   : >> { %3613 = vmatmul.mubr.bf16.gmra.mxu1 %v4645_v35 }
 0x459   : >> { %v3431_v36 = vpop.f32.mrf.mxu0 }
 0x45b   : >> { %v3433_v38 = vpop.f32.mrf.mxu0 }
 0x45d   : >> { %v3435_v47 = vpop.f32.mrf.mxu0 }
 0x45f   : >> { %v3437_v50 = vpop.f32.mrf.mxu0 }
 0x461   : >> { %v3544_v49 = vpop.f32.mrf.mxu1  ;;  %v3441_v52 = vpop.f32.mrf.mxu0 }
 0x462   : >> { %v3545_v55 = vadd.f32 %v3544_v49, %v3431_v36  ;;  %v2923_v36 = vld [vmem:[%s5711_s23 + $0x30] sm:$0xff] }
 0x463   : >> { %v3546_v4 = vpop.f32.mrf.mxu1  ;;  %v3443_v58 = vpop.f32.mrf.mxu0 }
 0x464   : >> { %v3623_v61 = vadd.f32 %v3545_v55, %v2917_v37  ;;  %v3547_v62 = vadd.f32 %v3546_v4, %v3433_v38  ;;  %v2924_v55 = vld [vmem:[%s5711_s23 + $0x38] sm:$0xff] }
 0x465   : >> { %v3548_v14 = vpop.f32.mrf.mxu1  ;;  %v3445_v20 = vpop.f32.mrf.mxu0 }
 0x466   : >> { %v3679_v26 = vadd.f32 %v3671_v56, %v3623_v61  ;;  %v3624_v39 = vadd.f32 %v3547_v62, %v2918_v57  ;;  %v3549_v19 = vadd.f32 %v3548_v14, %v3435_v47  ;;  %v3677_v47 = vmul.f32 %v3669_v21, %v5747_v18  ;;  %v3738_v21 = vld [vmem:[%s5954_s5 + $0x18] sm:$0xff] }
 0x467   : >> { %v3550_v2 = vpop.f32.mrf.mxu1  ;;  %v3447_v41 = vpop.f32.mrf.mxu0  ;;  %v3678_v57 = vmul.f32 %v3670_v34, %v5755_v33  ;;  %v3740_v34 = vld [vmem:[%s5954_s5 + $0x28] sm:$0xff] }
 0x468   : >> { %v4398_v3 = vmul.f32 -1.442695, %v3679_v26  ;;  %v3680_v6 = vadd.f32 %v3672_v1, %v3624_v39  ;;  %v3625_v7 = vadd.f32 %v3549_v19, %v2919_v13  ;;  %v3551_v8 = vadd.f32 %v3550_v2, %v3437_v50  ;;  %v2925_v1 = vld [vmem:[%s5711_s23 + $0x40] sm:$0xff] }
 0x469   : >> { %v3554_v9 = vpop.f32.mrf.mxu1  ;;  %v3451_v10 = vpop.f32.mrf.mxu0 }
 0x46a   : >> { %4646 = vpow2.f32 %v4398_v3  ;;  %v4399_v17 = vmul.f32 -1.442695, %v3680_v6  ;;  %v3681_v45 = vadd.f32 %v3673_v25, %v3625_v7  ;;  %v3626_v15 = vadd.f32 %v3551_v8, %v2920_v40  ;;  %v3736_v25 = vld [vmem:[%s5954_s5 + $0x8] sm:$0xff]  ;;  %v3737_v40 = vld [vmem:[%s5954_s5 + $0x10] sm:$0xff] }
 0x46b   : >> { %v3555_v22 = vadd.f32 %v3554_v9, %v3441_v52  ;;  %v3556_v27 = vpop.f32.mrf.mxu1  ;;  %v3453_v29 = vpop.f32.mrf.mxu0  ;;  %v3735_v52 = vld [vmem:[%s5954_s5] sm:$0xff]  ;;  %v2926_v7 = vld [vmem:[%s5711_s23 + $0x48] sm:$0xff]  ;;  %v3744_v43 = vmul.f32 %v3736_v25, %v5714_v53  ;;  %v2931_v25 = vld [vmem:[%s5711_s23 + $0x70] sm:$0xff] }
 0x46c   : >> { %4648 = vpow2.f32 %v4399_v17  ;;  %v4400_v30 = vmul.f32 -1.442695, %v3681_v45  ;;  %v3682_v31 = vadd.f32 %v3674_v5, %v3626_v15  ;;  %v3557_v32 = vadd.f32 %v3556_v27, %v3443_v58 }
 0x46d   : >> { %v3627_v35 = vadd.f32 %v3555_v22, %v2921_v46  ;;  %v3558_v38 = vpop.f32.mrf.mxu1  ;;  %v3455_v50 = vpop.f32.mrf.mxu0  ;;  %v3743_v13 = vmul.f32 %v3735_v52, %v5706_v51  ;;  %v3739_v22 = vld [vmem:[%s5954_s5 + $0x20] sm:$0xff] }
 0x46e   : >> { %4650 = vpow2.f32 %v4400_v30  ;;  %v4401_v48 = vmul.f32 -1.442695, %v3682_v31  ;;  %v3628_v37 = vadd.f32 %v3557_v32, %v2922_v24  ;;  %v3559_v49 = vadd.f32 %v3558_v38, %v3445_v20  ;;  %v2928_v32 = vld [vmem:[%s5711_s23 + $0x58] sm:$0xff] }
 0x46f   : >> { %v3683_v54 = vadd.f32 %v3675_v23, %v3627_v35  ;;  %v3560_v56 = vpop.f32.mrf.mxu1  ;;  %v3457_v4 = vpop.f32.mrf.mxu0 }
 0x470   : >> { %4652 = vpow2.f32 %v4401_v48  ;;  %v3684_v58 = vadd.f32 %v3676_v28, %v3628_v37  ;;  %v3629_v60 = vadd.f32 %v3559_v49, %v2923_v36  ;;  %v3561_v61 = vadd.f32 %v3560_v56, %v3447_v41  ;;  %v3741_v56 = vld [vmem:[%s5954_s5 + $0x30] sm:$0xff] }
 0x471   : >> { %v4402_v62 = vmul.f32 -1.442695, %v3683_v54  ;;  %v3564_v12 = vpop.f32.mrf.mxu1  ;;  %v3461_v14 = vpop.f32.mrf.mxu0  ;;  %v3747_v37 = vmul.f32 %v3739_v22, %v5736_v42 }
 0x472   : >> { %v4403_v20 = vmul.f32 -1.442695, %v3684_v58  ;;  %v3685_v26 = vadd.f32 %v3677_v47, %v3629_v60  ;;  %v3630_v39 = vadd.f32 %v3561_v61, %v2924_v55  ;;  %v3565_v19 = vadd.f32 %v3564_v12, %v3451_v10 }
 0x473   : >> { %4654 = vpow2.f32 %v4402_v62  ;;  %v3566_v2 = vpop.f32.mrf.mxu1  ;;  %v3463_v5 = vpop.f32.mrf.mxu0  ;;  %v3745_v10 = vmul.f32 %v3737_v40, %v5721_v59  ;;  %v3746_v47 = vmul.f32 %v3738_v21, %v5727_v11  ;;  %v3748_v61 = vmul.f32 %v3740_v34, %v5741_v16 }
 0x474   : >> { %4656 = vpow2.f32 %v4403_v20  ;;  %v4404_v41 = vmul.f32 -1.442695, %v3685_v26  ;;  %v3686_v3 = vadd.f32 %v3678_v57, %v3630_v39  ;;  %v3631_v6 = vadd.f32 %v3565_v19, %v2925_v1  ;;  %v2930_v20 = vld [vmem:[%s5711_s23 + $0x68] sm:$0xff] }
 0x475   : >> { %v3567_v8 = vadd.f32 %v3566_v2, %v3453_v29  ;;  %v3568_v9 = vpop.f32.mrf.mxu1  ;;  %v3465_v17 = vpop.f32.mrf.mxu0  ;;  %v3749_v2 = vmul.f32 %v3741_v56, %v5747_v18 }
 0x476   : >> { %4658 = vpow2.f32 %v4404_v41  ;;  %v4405_v45 = vmul.f32 -1.442695, %v3686_v3  ;;  %v3751_v15 = vadd.f32 %v3743_v13, %v3631_v6  ;;  %v3569_v46 = vadd.f32 %v3568_v9, %v3455_v50  ;;  %v2929_v50 = vld [vmem:[%s5711_s23 + $0x60] sm:$0xff] }
 0x477   : >> { %v4647_v23 = vpop.eup %4646  ;;  %v3632_v24 = vadd.f32 %v3567_v8, %v2926_v7  ;;  %v3570_v27 = vpop.f32.mrf.mxu1 }
 0x478   : >> { %v3467_v28 = vpop.f32.mrf.mxu0  ;;  %v3711_v29 = vadd.f32 1.0, %v4647_v23  ;;  %4660 = vpow2.f32 %v4405_v45  ;;  %v4406_v30 = vmul.f32 -1.442695, %v3751_v15  ;;  %v3633_v31 = vadd.f32 %v3569_v46, %v2927_v44  ;;  %v2932_v44 = vld [vmem:[%s5711_s23 + $0x78] sm:$0xff] }
 0x479   : >> { %v4649_v35 = vpop.eup %4648  ;;  %v3752_v36 = vadd.f32 %v3744_v43, %v3632_v24  ;;  %v3571_v38 = vadd.f32 %v3570_v27, %v3457_v4  ;;  %v3574_v48 = vpop.f32.mrf.mxu1 }
 0x47a   : >> { %v3471_v49 = vpop.f32.mrf.mxu0  ;;  %4662 = vrcp.f32 %v3711_v29  ;;  %v3712_v52 = vadd.f32 1.0, %v4649_v35  ;;  %v3753_v54 = vadd.f32 %v3745_v10, %v3633_v31  ;;  %v3575_v55 = vadd.f32 %v3574_v48, %v3461_v14  ;;  %v3742_v14 = vld [vmem:[%s5954_s5 + $0x38] sm:$0xff] }
 0x47b   : >> { %v4651_v57 = vpop.eup %4650  ;;  %4664 = vpow2.f32 %v4406_v30  ;;  %v4407_v4 = vmul.f32 -1.442695, %v3752_v36  ;;  %v3634_v58 = vadd.f32 %v3571_v38, %v2928_v32  ;;  %v3576_v60 = vpop.f32.mrf.mxu1  ;;  %v3750_v10 = vmul.f32 %v3742_v14, %v5755_v33  ;;  %v2933_v32 = vld [vmem:[%s5711_s23 + $0x80] sm:$0xff] }
 0x47c   : >> { %v3473_v62 = vpop.f32.mrf.mxu0  ;;  %4666 = vrcp.f32 %v3712_v52  ;;  %v3713_v1 = vadd.f32 1.0, %v4651_v57  ;;  %v4408_v12 = vmul.f32 -1.442695, %v3753_v54  ;;  %v3635_v13 = vadd.f32 %v3575_v55, %v2929_v50  ;;  %v2934_v54 = vld [vmem:[%s5711_s23 + $0x88] sm:$0xff] }
 0x47d   : >> { %v4653_v26 = vpop.eup %4652  ;;  %4668 = vpow2.f32 %v4407_v4  ;;  %v3754_v39 = vadd.f32 %v3746_v47, %v3634_v58  ;;  %v3577_v19 = vadd.f32 %v3576_v60, %v3463_v5  ;;  %v3578_v40 = vpop.f32.mrf.mxu1 }
 0x47e   : >> { %v3475_v41 = vpop.f32.mrf.mxu0  ;;  %4670 = vrcp.f32 %v3713_v1  ;;  %v3714_v3 = vadd.f32 1.0, %v4653_v26  ;;  %v3755_v6 = vadd.f32 %v3747_v37, %v3635_v13  ;;  %v3579_v7 = vadd.f32 %v3578_v40, %v3465_v17 }
 0x47f   : >> { %4672 = vpow2.f32 %v4408_v12  ;;  %v4409_v8 = vmul.f32 -1.442695, %v3754_v39  ;;  %v3636_v43 = vadd.f32 %v3577_v19, %v2930_v20  ;;  %v3580_v9 = vpop.f32.mrf.mxu1  ;;  %v2936_v39 = vld [vmem:[%s5711_s23 + $0x98] sm:$0xff] }
 0x480   : >> { %v3477_v45 = vpop.f32.mrf.mxu0  ;;  %v4655_v15 = vpop.eup %4654  ;;  %4674 = vrcp.f32 %v3714_v3  ;;  %v4410_v5 = vmul.f32 -1.442695, %v3755_v6  ;;  %v3637_v46 = vadd.f32 %v3579_v7, %v2931_v25  ;;  %v3581_v21 = vadd.f32 %v3580_v9, %v3467_v28  ;;  %v2937_v9 = vld [vmem:[%s5711_s23 + $0xa0] sm:$0xff] }
 0x481   : >> { %v4657_v22 = vpop.eup %4656  ;;  %v3715_v23 = vadd.f32 1.0, %v4655_v15  ;;  %4676 = vpow2.f32 %v4409_v8  ;;  %v3756_v24 = vadd.f32 %v3748_v61, %v3636_v43  ;;  %v3584_v27 = vpop.f32.mrf.mxu1  ;;  %v2935_v61 = vld [vmem:[%s5711_s23 + $0x90] sm:$0xff] }
 0x482   : >> { %v3481_v17 = vpop.f32.mrf.mxu0  ;;  %v3716_v29 = vadd.f32 1.0, %v4657_v22  ;;  %4678 = vpow2.f32 %v4410_v5  ;;  %v3757_v30 = vadd.f32 %v3749_v2, %v3637_v46  ;;  %v3638_v31 = vadd.f32 %v3581_v21, %v2932_v44  ;;  %v2938_v5 = vld [vmem:[%s5711_s23 + $0xa8] sm:$0xff] }
 0x483   : >> { %v4659_v34 = vpop.eup %4658  ;;  %4680 = vrcp.f32 %v3715_v23  ;;  %v4411_v35 = vmul.f32 -1.442695, %v3756_v24  ;;  %v3585_v36 = vadd.f32 %v3584_v27, %v3471_v49  ;;  %v3586_v38 = vpop.f32.mrf.mxu1 }
 0x484   : >> { %v3483_v47 = vpop.f32.mrf.mxu0  ;;  %4682 = vrcp.f32 %v3716_v29  ;;  %v3717_v28 = vadd.f32 1.0, %v4659_v34  ;;  %v4412_v50 = vmul.f32 -1.442695, %v3757_v30  ;;  %v3758_v48 = vadd.f32 %v3750_v10, %v3638_v31 }
 0x485   : >> { %v4661_v37 = vpop.eup %4660  ;;  %4684 = vpow2.f32 %v4411_v35  ;;  %v3639_v52 = vadd.f32 %v3585_v36, %v2933_v32  ;;  %v3587_v55 = vadd.f32 %v3586_v38, %v3473_v62  ;;  %v3588_v56 = vpop.f32.mrf.mxu1  ;;  %v2940_v38 = vld [vmem:[%s5711_s23 + $0xb8] sm:$0xff] }
 0x486   : >> { %v3485_v57 = vpop.f32.mrf.mxu0  ;;  %4686 = vrcp.f32 %v3717_v28  ;;  %v3718_v4 = vadd.f32 1.0, %v4661_v37  ;;  %v4413_v58 = vmul.f32 -1.442695, %v3758_v48  ;;  %v3589_v60 = vadd.f32 %v3588_v56, %v3475_v41 }
 0x487   : >> { %v5806_v49 = vpop.eup %4662  ;;  %4688 = vpow2.f32 %v4412_v50  ;;  %v3590_v1 = vpop.f32.mrf.mxu1  ;;  %v3640_v20 = vadd.f32 %v3587_v55, %v2934_v54 }
 0x488   : >> { %v3487_v12 = vpop.f32.mrf.mxu0  ;;  %v4665_v13 = vpop.eup %4664  ;;  %4690 = vrcp.f32 %v3718_v4  ;;  %v3591_v14 = vadd.f32 %v3590_v1, %v3477_v45  ;;  %v3641_v2 = vadd.f32 %v3589_v60, %v2935_v61 }
 0x489   : >> { %v5809_v26 = vpop.eup %4666  ;;  %v3783_v62 = vadd.f32 1.0, %v4665_v13  ;;  %4692 = vpow2.f32 %v4413_v58  ;;  %v3594_v19 = vpop.f32.mrf.mxu1  ;;  %v2941_v13 = vld [vmem:[%s5711_s23 + $0xc0] sm:$0xff] }
 0x48a   : >> { %v3491_v25 = vpop.f32.mrf.mxu0  ;;  %v4669_v40 = vpop.eup %4668  ;;  %4694 = vtanh.f32 %v3639_v52  ;;  %v3595_v6 = vadd.f32 %v3594_v19, %v3481_v17  ;;  %v3642_v44 = vadd.f32 %v3591_v14, %v2936_v39  ;;  %v2939_v17 = vld [vmem:[%s5711_s23 + $0xb0] sm:$0xff] }
 0x48b   : >> { %v5812_v41 = vpop.eup %4670  ;;  %4696 = vrcp.f32 %v3783_v62  ;;  %v3784_v3 = vadd.f32 1.0, %v4669_v40  ;;  %v3596_v7 = vpop.f32.mrf.mxu1 }
 0x48c   : >> { %v5814_v8 = vpop.f32.mrf.mxu0  ;;  %v4673_v43 = vpop.eup %4672  ;;  %4698 = vtanh.f32 %v3640_v20  ;;  %v3597_v10 = vadd.f32 %v3596_v7, %v3483_v47  ;;  %v3643_v27 = vadd.f32 %v3595_v6, %v2937_v9  ;;  %v2942_v9 = vld [vmem:[%s5711_s23 + $0xc8] sm:$0xff] }
 0x48d   : >> { %v5817_v45 = vpop.eup %4674  ;;  %4700 = vrcp.f32 %v3784_v3  ;;  %v3785_v15 = vadd.f32 1.0, %v4673_v43  ;;  %v3598_v46 = vpop.f32.mrf.mxu1 }
 0x48e   : >> { %v4677_v21 = vpop.eup %4676  ;;  %4702 = vtanh.f32 %v3641_v2  ;;  %v3599_v22 = vadd.f32 %v3598_v46, %v3485_v57  ;;  %v3495_v30 = vpop.f32.mrf.mxu0  ;;  %v3644_v34 = vadd.f32 %v3597_v10, %v2938_v5 }
 0x48f   : >> { %v4679_v23 = vpop.eup %4678  ;;  %4704 = vrcp.f32 %v3785_v15  ;;  %v3786_v24 = vadd.f32 1.0, %v4677_v21  ;;  %v3600_v29 = vpop.f32.mrf.mxu1  ;;  %v3840_v21 = vld [vmem:[%s5955_s6 + $0x8] sm:$0xff] }
 0x490   : >> { %v5821_v31 = vpop.eup %4680  ;;  %v3787_v32 = vadd.f32 1.0, %v4679_v23  ;;  %4706 = vtanh.f32 %v3642_v44  ;;  %v3601_v35 = vadd.f32 %v3600_v29, %v3487_v12  ;;  %v3645_v50 = vadd.f32 %v3599_v22, %v2939_v17  ;;  %v3497_v54 = vpop.f32.mrf.mxu0  ;;  %v2943_v22 = vld [vmem:[%s5711_s23 + $0xd0] sm:$0xff]  ;;  %v2944_v29 = vld [vmem:[%s5711_s23 + $0xd8] sm:$0xff] }
 0x491   : >> { %v5823_v36 = vpop.eup %4682  ;;  %4708 = vrcp.f32 %v3786_v24  ;;  %v3604_v47 = vpop.f32.mrf.mxu1 }
 0x492   : >> { %v4685_v28 = vpop.eup %4684  ;;  %4710 = vrcp.f32 %v3787_v32  ;;  %v3646_v56 = vadd.f32 %v3601_v35, %v2940_v38  ;;  %v3605_v61 = vadd.f32 %v3604_v47, %v3491_v25  ;;  %v3501_v14 = vpop.f32.mrf.mxu0  ;;  %v3839_v25 = vld [vmem:[%s5955_s6] sm:$0xff] }
 0x493   : >> { %v5826_v48 = vpop.eup %4686  ;;  %v3788_v37 = vadd.f32 1.0, %v4685_v28  ;;  %4712 = vtanh.f32 %v3643_v27  ;;  %v3606_v52 = vpop.f32.mrf.mxu1  ;;  %v2945_v35 = vld [vmem:[%s5711_s23 + $0xe0] sm:$0xff] }
 0x494   : >> { %v4689_v55 = vpop.eup %4688  ;;  %4714 = vtanh.f32 %v3644_v34  ;;  %v3647_v6 = vadd.f32 %v3605_v61, %v2941_v13  ;;  %v3607_v7 = vadd.f32 %v3606_v52, %v5814_v8  ;;  %v3503_v15 = vpop.f32.mrf.mxu0  ;;  %v3841_v34 = vld [vmem:[%s5955_s6 + $0x10] sm:$0xff] }
 0x495   : >> { %v5828_v57 = vpop.eup %4690  ;;  %4716 = vrcp.f32 %v3788_v37  ;;  %v3789_v4 = vadd.f32 1.0, %v4689_v55  ;;  %v3608_v58 = vpop.f32.mrf.mxu1 }
 0x496   : >> { %v4693_v60 = vpop.eup %4692  ;;  %4718 = vtanh.f32 %v3645_v50  ;;  %v3648_v32 = vadd.f32 %v3607_v7, %v2942_v9 }
 0x497   : >> { %v4695_v1 = vpop.eup %4694  ;;  %4720 = vrcp.f32 %v3789_v4  ;;  %v3790_v12 = vadd.f32 1.0, %v4693_v60  ;;  %v3610_v20 = vpop.f32.mrf.mxu1 }
 0x498   : >> { %v4697_v62 = vpop.eup %4696  ;;  %4722 = vtanh.f32 %v3646_v56  ;;  %v3823_v40 = vmul.f32 %v4695_v1, %v5806_v49  ;;  %v3609_v49 = vadd.f32 %v3608_v58, %v3495_v30  ;;  %v3611_v8 = vadd.f32 %v3610_v20, %v3497_v54  ;;  %v3842_v20 = vld [vmem:[%s5955_s6 + $0x18] sm:$0xff] }
 0x499   : >> { %v4699_v39 = vpop.eup %4698  ;;  %4724 = vrcp.f32 %v3790_v12  ;;  %v3807_v19 = vmul.f32 %v4697_v62, %v5706_v51  ;;  %v3614_v2 = vpop.f32.mrf.mxu1 }
 0x49a   : >> { %v4701_v3 = vpop.eup %4700  ;;  %v3824_v51 = vmul.f32 %v4699_v39, %v5809_v26  ;;  %v3615_v23 = vadd.f32 %v3614_v2, %v3501_v14  ;;  %v3649_v37 = vadd.f32 %v3609_v49, %v2943_v22  ;;  %v3650_v56 = vadd.f32 %v3611_v8, %v2944_v29  ;;  %v2947_v8 = vld [vmem:[%s5711_s23 + $0xf0] sm:$0xff] }
 0x49b   : >> { %v4703_v43 = vpop.eup %4702  ;;  %v5837_v44 = vadd.f32 %v3823_v40, %v3807_v19  ;;  %v3808_v10 = vmul.f32 %v4701_v3, %v5714_v53  ;;  %v3616_v5 = vpop.f32.mrf.mxu1  ;;  %v3843_v3 = vld [vmem:[%s5955_s6 + $0x20] sm:$0xff] }
 0x49c   : >> { %v4705_v46 = vpop.eup %4704  ;;  %v3825_v17 = vmul.f32 %v4703_v43, %v5812_v41  ;;  %v3617_v38 = vadd.f32 %v3616_v5, %v3503_v15  ;;  %v3505_v41 = vpop.f32.mrf.mxu0  ;;  %v3651_v14 = vadd.f32 %v3615_v23, %v2945_v35  ;;  %v3845_v23 = vld [vmem:[%s5955_s6 + $0x30] sm:$0xff] }
 0x49d   : >> { %v4707_v24 = vpop.eup %4706  ;;  %v3847_v27 = vmul.f32 %v3839_v25, %v5837_v44  ;;  %3927 = vst [vmem:[#allocation6 + $0x28] sm:$0xff] %v5837_v44  ;;  %v5848_v53 = vadd.f32 %v3824_v51, %v3808_v10  ;;  %v3809_v26 = vmul.f32 %v4705_v46, %v5721_v59  ;;  %v2946_v59 = vld [vmem:[%s5711_s23 + $0xe8] sm:$0xff]  ;;  %v3618_v54 = vpop.f32.mrf.mxu1 }
 0x49e   : >> { %v4709_v30 = vpop.eup %4708  ;;  %v3826_v58 = vmul.f32 %v4707_v24, %v5817_v45  ;;  %v3652_v45 = vadd.f32 %v3617_v38, %v2946_v59  ;;  %v3507_v25 = vpop.f32.mrf.mxu0  ;;  %v3619_v10 = vadd.f32 %v3618_v54, %v3505_v41 }
 0x49f   : >> { %v4711_v47 = vpop.eup %4710  ;;  %v3855_v28 = vadd.f32 %v3847_v27, %v3647_v6  ;;  %v3848_v50 = vmul.f32 %v3840_v21, %v5848_v53  ;;  %3928 = vst [vmem:[#allocation6 + $0x18] sm:$0xff] %v5848_v53  ;;  %v5859_v52 = vadd.f32 %v3825_v17, %v3809_v26  ;;  %v3810_v4 = vmul.f32 %v4709_v30, %v5727_v11  ;;  %v3620_v7 = vpop.f32.mrf.mxu1  ;;  %v2948_v30 = vld [vmem:[%s5711_s23 + $0xf8] sm:$0xff]  ;;  %s4505_s23 = sshll.u32 %s4868_s26, 6  ;;  %s2182_s26 = sadd.s32 1, %s4868_s26  }
 0x4a0   : >> { %v4713_v55 = vpop.eup %4712  ;;  %v3811_v60 = vmul.f32 %v4711_v47, %v5736_v42  ;;  %v3621_v24 = vadd.f32 %v3620_v7, %v3507_v25  ;;  %v3653_v35 = vadd.f32 %v3619_v10, %v2947_v8  ;;  %s5901_s18 = scalar_lea.vmem %s4981_s13, %s4505_s23  ;;  %v3956_v10 = vld [vmem:[%s4986_s16 + $0x10] sm:$0xff]  ;;  %p2179_p5 = scmp.ge.s32.totalorder %s2182_s26, 8  }
 0x4a1   : >> { %v4715_v61 = vpop.eup %4714  ;;  %v4414_v1 = vmul.f32 -1.442695, %v3855_v28  ;;  %v3856_v12 = vadd.f32 %v3848_v50, %v3648_v32  ;;  %v3849_v13 = vmul.f32 %v3841_v34, %v5859_v52  ;;  %3929 = vst [vmem:[#allocation6 + $0x30] sm:$0xff] %v5859_v52  ;;  %v5870_v39 = vadd.f32 %v3826_v58, %v3810_v4  ;;  %v3846_v32 = vld [vmem:[%s5955_s6 + $0x38] sm:$0xff] }
 0x4a2   : >> { %v4717_v62 = vpop.eup %4716  ;;  %v3827_v11 = vmul.f32 %v4713_v55, %v5821_v31  ;;  %v3828_v42 = vmul.f32 %v4715_v61, %v5823_v36  ;;  %v3844_v36 = vld [vmem:[%s5955_s6 + $0x28] sm:$0xff] }
 0x4a3   : >> { %v4719_v19 = vpop.eup %4718  ;;  %4726 = vpow2.f32 %v4414_v1  ;;  %v4415_v40 = vmul.f32 -1.442695, %v3856_v12  ;;  %v3857_v2 = vadd.f32 %v3849_v13, %v3649_v37  ;;  %v3812_v6 = vmul.f32 %v4717_v62, %v5741_v16  ;;  %3930 = vst [vmem:[#allocation6 + $0x8] sm:$0xff] %v5870_v39 }
 0x4a4   : >> { %v4721_v43 = vpop.eup %4720  ;;  %v3850_v9 = vmul.f32 %v3842_v20, %v5870_v39  ;;  %v3835_v31 = vadd.f32 %v3827_v11, %v3811_v60  ;;  %v3829_v51 = vmul.f32 %v4719_v19, %v5826_v48  ;;  %v3654_v37 = vadd.f32 %v3621_v24, %v2948_v30  ;;  %v3958_v30 = vld [vmem:[%s4986_s16 + $0x20] sm:$0xff] }
 0x4a5   : >> { %v4723_v49 = vpop.eup %4722  ;;  %4728 = vpow2.f32 %v4415_v40  ;;  %v4416_v15 = vmul.f32 -1.442695, %v3857_v2  ;;  %v3836_v16 = vadd.f32 %v3828_v42, %v3812_v6  ;;  %v3813_v5 = vmul.f32 %v4721_v43, %v5747_v18  ;;  %v3954_v42 = vld [vmem:[%s4986_s16] sm:$0xff]  ;;  %v3955_v6 = vld [vmem:[%s4986_s16 + $0x8] sm:$0xff] }
 0x4a6   : >> { %v4725_v46 = vpop.eup %4724  ;;  %v3858_v21 = vadd.f32 %v3850_v9, %v3650_v56  ;;  %v3851_v22 = vmul.f32 %v3843_v3, %v3835_v31  ;;  %3931 = vst [vmem:[#allocation6 + $0x38] sm:$0xff] %v3835_v31  ;;  %v3830_v27 = vmul.f32 %v4723_v49, %v5828_v57  ;;  %v3978_v3 = vld [vmem:[%s4991_s19] sm:$0xff] }
 0x4a7   : >> { %4730 = vpow2.f32 %v4416_v15  ;;  %v3852_v48 = vmul.f32 %v3844_v36, %v3836_v16  ;;  %3932 = vst [vmem:[#allocation6 + $0x20] sm:$0xff] %v3836_v16  ;;  %v3837_v26 = vadd.f32 %v3829_v51, %v3813_v5  ;;  %v3814_v17 = vmul.f32 %v4725_v46, %v5755_v33  ;;  %v3979_v36 = vld [vmem:[%s4991_s19 + $0x8] sm:$0xff] }
 0x4a8   : >> { %v4417_v18 = vmul.f32 -1.442695, %v3858_v21  ;;  %v3859_v29 = vadd.f32 %v3851_v22, %v3651_v14  ;;  %v3980_v21 = vld [vmem:[%s4991_s19 + $0x10] sm:$0xff] }
 0x4a9   : >> { %v3860_v34 = vadd.f32 %v3852_v48, %v3652_v45  ;;  %v3853_v38 = vmul.f32 %v3845_v23, %v3837_v26  ;;  %3933 = vst [vmem:[#allocation6] sm:$0xff] %v3837_v26  ;;  %v3838_v47 = vadd.f32 %v3830_v27, %v3814_v17  ;;  %v3957_v27 = vld [vmem:[%s4986_s16 + $0x18] sm:$0xff] }
 0x4aa   : >> { %4732 = vpow2.f32 %v4417_v18  ;;  %v4418_v57 = vmul.f32 -1.442695, %v3859_v29  ;;  %v3981_v29 = vld [vmem:[%s4991_s19 + $0x18] sm:$0xff] }
 0x4ab   : >> { %v4419_v28 = vmul.f32 -1.442695, %v3860_v34  ;;  %v3861_v50 = vadd.f32 %v3853_v38, %v3653_v35  ;;  %v3854_v59 = vmul.f32 %v3846_v32, %v3838_v47  ;;  %3934 = vst [vmem:[#allocation6 + $0x10] sm:$0xff] %v3838_v47 }
 0x4ac   : >> { %4734 = vpow2.f32 %v4418_v57 }
 0x4ad   : >> { %4736 = vpow2.f32 %v4419_v28  ;;  %v4420_v33 = vmul.f32 -1.442695, %v3861_v50  ;;  %v3862_v41 = vadd.f32 %v3854_v59, %v3654_v37  ;;  %v3982_v28 = vld [vmem:[%s4991_s19 + $0x20] sm:$0xff] }
 0x4af   : >> { %4738 = vpow2.f32 %v4420_v33  ;;  %v4421_v54 = vmul.f32 -1.442695, %v3862_v41 }
 0x4b0   : >> { %v4727_v55 = vpop.eup %4726 }
 0x4b1   : >> { %v3887_v56 = vadd.f32 1.0, %v4727_v55  ;;  %4740 = vpow2.f32 %v4421_v54  ;;  %v3983_v54 = vld [vmem:[%s4991_s19 + $0x28] sm:$0xff]  ;;  %v3960_v55 = vld [vmem:[%s4986_s16 + $0x30] sm:$0xff] }
 0x4b2   : >> { %v4729_v4 = vpop.eup %4728  ;;  %4742 = vtanh.f32 %v5837_v44 }
 0x4b3   : >> { %4744 = vrcp.f32 %v3887_v56  ;;  %v3888_v58 = vadd.f32 1.0, %v4729_v4 }
 0x4b4   : >> { %v4731_v60 = vpop.eup %4730  ;;  %4746 = vtanh.f32 %v5848_v53 }
 0x4b5   : >> { %4748 = vrcp.f32 %v3888_v58  ;;  %v3889_v61 = vadd.f32 1.0, %v4731_v60 }
 0x4b6   : >> { %4750 = vtanh.f32 %v5859_v52 }
 0x4b7   : >> { %v4733_v1 = vpop.eup %4732  ;;  %4752 = vrcp.f32 %v3889_v61 }
 0x4b8   : >> { %v3890_v12 = vadd.f32 1.0, %v4733_v1  ;;  %4754 = vtanh.f32 %v5870_v39 }
 0x4b9   : >> { %v4735_v13 = vpop.eup %4734  ;;  %4756 = vtanh.f32 %v3835_v31 }
 0x4ba   : >> { %v4737_v20 = vpop.eup %4736  ;;  %4758 = vrcp.f32 %v3890_v12  ;;  %v3891_v44 = vadd.f32 1.0, %v4735_v13  ;;  %v3984_v12 = vld [vmem:[%s4991_s19 + $0x30] sm:$0xff]  ;;  %v3961_v13 = vld [vmem:[%s4986_s16 + $0x38] sm:$0xff] }
 0x4bb   : >> { %v3892_v14 = vadd.f32 1.0, %v4737_v20  ;;  %4760 = vtanh.f32 %v3836_v16 }
 0x4bc   : >> { %v4739_v53 = vpop.eup %4738  ;;  %4762 = vrcp.f32 %v3891_v44 }
 0x4bd   : >> { %4764 = vrcp.f32 %v3892_v14  ;;  %v3893_v52 = vadd.f32 1.0, %v4739_v53 }
 0x4be   : >> { %v4741_v62 = vpop.eup %4740  ;;  %4766 = vtanh.f32 %v3837_v26 }
 0x4bf   : >> { %v4743_v11 = vpop.eup %4742  ;;  %4768 = vrcp.f32 %v3893_v52  ;;  %v3894_v39 = vadd.f32 1.0, %v4741_v62  ;;  %v3985_v52 = vld [vmem:[%s4991_s19 + $0x38] sm:$0xff] }
 0x4c0   : >> { %v4745_v45 = vpop.eup %4744  ;;  %4770 = vtanh.f32 %v3838_v47  ;;  %v3959_v47 = vld [vmem:[%s4986_s16 + $0x28] sm:$0xff] }
 0x4c1   : >> { %v4747_v19 = vpop.eup %4746  ;;  %v3919_v40 = vmul.f32 %v4745_v45, %v4743_v11  ;;  %4772 = vrcp.f32 %v3894_v39 }
 0x4c2   : >> { %v4749_v2 = vpop.eup %4748 }
 0x4c3   : >> { %v4751_v25 = vpop.eup %4750  ;;  %3935 = vst [vmem:[#allocation5 + $0x18] sm:$0xff] %v3919_v40  ;;  %3946 = vst [vmem:[%s5901_s18] sm:$0xff] %v3919_v40  ;;  %v3962_v7 = vadd.f32 %v3954_v42, %v3919_v40  ;;  %v3986_v43 = vmul.f32 %v3919_v40, %v3919_v40  ;;  %v3920_v9 = vmul.f32 %v4749_v2, %v4747_v19 }
 0x4c4   : >> { %v4753_v31 = vpop.eup %4752 }
 0x4c5   : >> { %v4755_v51 = vpop.eup %4754  ;;  %3970 = vst [vmem:[%s4986_s16] sm:$0xff] %v3962_v7  ;;  %v3994_v49 = vadd.f32 %v3986_v43, %v3978_v3  ;;  %3936 = vst [vmem:[#allocation5 + $0x8] sm:$0xff] %v3920_v9  ;;  %v3963_v15 = vadd.f32 %v3955_v6, %v3920_v9  ;;  %v3987_v16 = vmul.f32 %v3920_v9, %v3920_v9 }
 0x4c6   : >> { %3947 = vst [vmem:[%s5901_s18 + $0x8] sm:$0xff] %v3920_v9  ;;  %v3921_v5 = vmul.f32 %v4753_v31, %v4751_v25  ;;  %v4757_v46 = vpop.eup %4756 }
 0x4c7   : >> { %v4759_v22 = vpop.eup %4758  ;;  %4002 = vst [vmem:[%s4991_s19] sm:$0xff] %v3994_v49  ;;  %3971 = vst [vmem:[%s4986_s16 + $0x8] sm:$0xff] %v3963_v15  ;;  %v3995_v8 = vadd.f32 %v3987_v16, %v3979_v36 }
 0x4c8   : >> { %3937 = vst [vmem:[#allocation5] sm:$0xff] %v3921_v5  ;;  %3948 = vst [vmem:[%s5901_s18 + $0x10] sm:$0xff] %v3921_v5  ;;  %v3964_v23 = vadd.f32 %v3956_v10, %v3921_v5  ;;  %v3988_v24 = vmul.f32 %v3921_v5, %v3921_v5  ;;  %v4761_v48 = vpop.eup %4760  ;;  %v3922_v26 = vmul.f32 %v4759_v22, %v4755_v51 }
 0x4c9   : >> { %v4763_v17 = vpop.eup %4762  ;;  %4003 = vst [vmem:[%s4991_s19 + $0x8] sm:$0xff] %v3995_v8 }
 0x4ca   : >> { %3972 = vst [vmem:[%s4986_s16 + $0x10] sm:$0xff] %v3964_v23  ;;  %v3996_v18 = vadd.f32 %v3988_v24, %v3980_v21  ;;  %v4765_v32 = vpop.eup %4764  ;;  %3938 = vst [vmem:[#allocation5 + $0x30] sm:$0xff] %v3922_v26  ;;  %v3965_v34 = vadd.f32 %v3957_v27, %v3922_v26  ;;  %v3989_v35 = vmul.f32 %v3922_v26, %v3922_v26 }
 0x4cb   : >> { %3949 = vst [vmem:[%s5901_s18 + $0x18] sm:$0xff] %v3922_v26  ;;  %v3923_v38 = vmul.f32 %v4763_v17, %v4757_v46  ;;  %v4767_v57 = vpop.eup %4766  ;;  %v3924_v50 = vmul.f32 %v4765_v32, %v4761_v48 }
 0x4cc   : >> { %4004 = vst [vmem:[%s4991_s19 + $0x10] sm:$0xff] %v3996_v18  ;;  %v4769_v37 = vpop.eup %4768  ;;  %3973 = vst [vmem:[%s4986_s16 + $0x18] sm:$0xff] %v3965_v34  ;;  %v3997_v59 = vadd.f32 %v3989_v35, %v3981_v29 }
 0x4cd   : >> { %3939 = vst [vmem:[#allocation5 + $0x20] sm:$0xff] %v3923_v38  ;;  %3950 = vst [vmem:[%s5901_s18 + $0x20] sm:$0xff] %v3923_v38  ;;  %v3966_v33 = vadd.f32 %v3958_v30, %v3923_v38  ;;  %v3990_v41 = vmul.f32 %v3923_v38, %v3923_v38  ;;  %v4771_v56 = vpop.eup %4770  ;;  %v3967_v4 = vadd.f32 %v3959_v47, %v3924_v50 }
 0x4ce   : >> { %3940 = vst [vmem:[#allocation5 + $0x10] sm:$0xff] %v3924_v50  ;;  %3951 = vst [vmem:[%s5901_s18 + $0x28] sm:$0xff] %v3924_v50  ;;  %v3991_v58 = vmul.f32 %v3924_v50, %v3924_v50  ;;  %v3925_v60 = vmul.f32 %v4769_v37, %v4767_v57  ;;  %v4773_v61 = vpop.eup %4772 }
 0x4cf   : >> { %4005 = vst [vmem:[%s4991_s19 + $0x18] sm:$0xff] %v3997_v59  ;;  %3974 = vst [vmem:[%s4986_s16 + $0x20] sm:$0xff] %v3966_v33  ;;  %v3998_v1 = vadd.f32 %v3990_v41, %v3982_v28  ;;  %v3926_v53 = vmul.f32 %v4773_v61, %v4771_v56 }
 0x4d0   : >> { %3975 = vst [vmem:[%s4986_s16 + $0x28] sm:$0xff] %v3967_v4  ;;  %v3999_v20 = vadd.f32 %v3991_v58, %v3983_v54  ;;  %3941 = vst [vmem:[#allocation5 + $0x38] sm:$0xff] %v3925_v60  ;;  %v3968_v44 = vadd.f32 %v3960_v55, %v3925_v60  ;;  %v3992_v14 = vmul.f32 %v3925_v60, %v3925_v60 }
 0x4d1   : >> { %3952 = vst [vmem:[%s5901_s18 + $0x30] sm:$0xff] %v3925_v60  ;;  %4006 = vst [vmem:[%s4991_s19 + $0x20] sm:$0xff] %v3998_v1  ;;  %v3969_v11 = vadd.f32 %v3961_v13, %v3926_v53  ;;  %v3993_v39 = vmul.f32 %v3926_v53, %v3926_v53 }
 0x4d2   : >> { %4007 = vst [vmem:[%s4991_s19 + $0x28] sm:$0xff] %v3999_v20  ;;  %3976 = vst [vmem:[%s4986_s16 + $0x30] sm:$0xff] %v3968_v44  ;;  %v4000_v62 = vadd.f32 %v3992_v14, %v3984_v12 }
 0x4d3   : >> { %3942 = vst [vmem:[#allocation5 + $0x28] sm:$0xff] %v3926_v53  ;;  %3953 = vst [vmem:[%s5901_s18 + $0x38] sm:$0xff] %v3926_v53  ;;  %v4001_v45 = vadd.f32 %v3993_v39, %v3985_v52 }
 0x4d4   : >> { %4008 = vst [vmem:[%s4991_s19 + $0x30] sm:$0xff] %v4000_v62  ;;  %3977 = vst [vmem:[%s4986_s16 + $0x38] sm:$0xff] %v3969_v11  ;;  %2181 = sbr.rel (!%p2179_p5) target bundleno = 680 (0x2a8), region = 157 }
 0x4d5   : >> { %4009 = vst [vmem:[%s4991_s19 + $0x38] sm:$0xff] %v4001_v45 }
 0x4d9 PF: > { %s23_s21 = sadd.s32 1, %s4860_s21  }
 0x4da   : > { %p20_p6 = scmp.ge.s32.totalorder %s23_s21, 4  }
 0x4dc   :  { %22 = sbr.rel (!%p20_p6) target bundleno = 1 (0x1), region = 168 }

// kernel: seq2seq_forward.3
= control target key start
LH: loop header
LB: loop body
LE: loop exit
PB: predicated region body
PF: predicated region fallthrough
CT: control target
= control target key end

     0   :  { %s3902_s21 = smov 0   ;;  %s4726_s0 = inlined_call_operand.vmem [shape: f32[2,8,4,256], index: 0, kind: input, shape index: {}]   ;;  %s4727_s1 = inlined_call_operand.vmem [shape: bf16[128,128], index: 1, kind: input, shape index: {}]   ;;  %s4728_s2 = inlined_call_operand.vmem [shape: bf16[128,384], index: 2, kind: input, shape index: {}]   ;;  %s4729_s3 = inlined_call_operand.vmem [shape: f32[128,1], index: 3, kind: input, shape index: {}]   ;;  %s4730_s4 = inlined_call_operand.vmem [shape: f32[32,256], index: 4, kind: input, shape index: {}]   ;;  %s4731_s5 = inlined_call_operand.vmem [shape: f32[32,256], index: 5, kind: input, shape index: {}]   ;;  %s4732_s6 = inlined_call_operand.vmem [shape: f32[32,256], index: 6, kind: input, shape index: {}]   ;;  %s4733_s7 = inlined_call_operand.vmem [shape: f32[4,1], index: 7, kind: input, shape index: {}]   ;;  %s4734_s8 = inlined_call_operand.vmem [shape: f32[4,1], index: 8, kind: input, shape index: {}]   ;;  %s4735_s9 = inlined_call_operand.vmem [shape: f32[9,256], index: 9, kind: input, shape index: {}]   ;;  %s4736_s10 = inlined_call_operand.vmem [shape: f32[2,8,32,256], index: 10, kind: output, shape index: {0}]   ;;  %s4737_s11 = inlined_call_operand.vmem [shape: f32[2,32,256], index: 11, kind: output, shape index: {1}]   ;;  %s4738_s12 = inlined_call_operand.vmem [shape: f32[2,32,256], index: 12, kind: output, shape index: {2}]  }
   0x1 LB: > { %s3237_s22 = sadd.s32 4294967295, %s3806_s21   ;;  %p3241_p0 = scmp.ge.s32.totalorder %s3806_s21, 1  ;;  %s3806_s21 = sphi %s3902_s21, %s23_s21  }
   0x2   : > { %p367_p1 = scmp.lt.s32.totalorder %s3806_s21, 3 }
   0x4   : > { %p368_p2 = pnand %p3241_p0, %p367_p1 }
   0x5   : > { %p3912_p3 = scmp.lt.s32.totalorder (!%p368_p2), %s3237_s22, 1  ;;  %s3959_s20 = smov (!%p368_p2), 0  }
   0x6   : > { %371 = sbr.rel (%p368_p2) target bundleno = 1129 (0x469), region = 60 }
   0xb   : > { %v3816_v0 = vmov 0   ;;  %v3817_v1 = vmov 0.0   ;;  %s4741_s22 = smov (!%p3912_p3, %s3237_s22), 1 }
   0xc   : > { %440 = vst [vmem:[#allocation3 + $0x30] sm:$0xff] %v3816_v0  ;;  %441 = vst [vmem:[#allocation3] sm:$0xff] %v3816_v0  ;;  %s3920_s24 = sshll.u32 %s4741_s22, 6  ;;  %s3440_s25 = sshll.u32 %s4741_s22, 9 }
   0xd   : > { %442 = vst [vmem:[#allocation3 + $0x58] sm:$0xff] %v3816_v0  ;;  %443 = vst [vmem:[#allocation3 + $0x18] sm:$0xff] %v3816_v0  ;;  %s423_s28 = scalar_lea.vmem %s4726_s0, %s3920_s24  ;;  %s3929_s13 = scalar_lea.vmem %s4736_s10, %s3440_s25 }
   0xe   : > { %444 = vst [vmem:[#allocation3 + $0x50] sm:$0xff] %v3816_v0  ;;  %445 = vst [vmem:[#allocation3 + $0x68] sm:$0xff] %v3816_v0  ;;  %s3935_s16 = scalar_lea.vmem %s4737_s11, %s3920_s24  ;;  %s3941_s19 = scalar_lea.vmem %s4738_s12, %s3920_s24 }
   0xf   : > { %446 = vst [vmem:[#allocation3 + $0x8] sm:$0xff] %v3816_v0  ;;  %447 = vst [vmem:[#allocation3 + $0x48] sm:$0xff] %v3816_v0 }
  0x10   : > { %448 = vst [vmem:[#allocation3 + $0x40] sm:$0xff] %v3816_v0  ;;  %449 = vst [vmem:[#allocation3 + $0x20] sm:$0xff] %v3816_v0 }
  0x11   : > { %450 = vst [vmem:[#allocation3 + $0x10] sm:$0xff] %v3816_v0  ;;  %451 = vst [vmem:[#allocation3 + $0x38] sm:$0xff] %v3816_v0 }
  0x12   : > { %452 = vst [vmem:[#allocation3 + $0x60] sm:$0xff] %v3816_v0  ;;  %453 = vst [vmem:[#allocation3 + $0x70] sm:$0xff] %v3816_v0 }
  0x13   : > { %454 = vst [vmem:[#allocation3 + $0x78] sm:$0xff] %v3816_v0  ;;  %455 = vst [vmem:[#allocation3 + $0x28] sm:$0xff] %v3816_v0 }
  0x14   : > { %492 = vst [vmem:[#allocation4 + $0x40] sm:$0xff] %v3816_v0  ;;  %493 = vst [vmem:[#allocation4 + $0xf8] sm:$0xff] %v3816_v0 }
  0x15   : > { %494 = vst [vmem:[#allocation4 + $0x98] sm:$0xff] %v3816_v0  ;;  %495 = vst [vmem:[#allocation4 + $0x10] sm:$0xff] %v3816_v0 }
  0x16   : > { %496 = vst [vmem:[#allocation4 + $0x118] sm:$0xff] %v3816_v0  ;;  %497 = vst [vmem:[#allocation4 + $0x20] sm:$0xff] %v3816_v0 }
  0x17   : > { %498 = vst [vmem:[#allocation4 + $0x28] sm:$0xff] %v3816_v0  ;;  %499 = vst [vmem:[#allocation4 + $0x70] sm:$0xff] %v3816_v0 }
  0x18   : > { %500 = vst [vmem:[#allocation4 + $0xd8] sm:$0xff] %v3816_v0  ;;  %501 = vst [vmem:[#allocation4 + $0xb0] sm:$0xff] %v3816_v0 }
  0x19   : > { %502 = vst [vmem:[#allocation4 + $0x18] sm:$0xff] %v3816_v0  ;;  %503 = vst [vmem:[#allocation4 + $0x160] sm:$0xff] %v3816_v0 }
  0x1a   : > { %504 = vst [vmem:[#allocation5 + $0x28] sm:$0xff] %v3817_v1  ;;  %505 = vst [vmem:[#allocation5 + $0x10] sm:$0xff] %v3817_v1 }
  0x1b   : > { %506 = vst [vmem:[#allocation5 + $0x30] sm:$0xff] %v3817_v1  ;;  %507 = vst [vmem:[#allocation5 + $0x20] sm:$0xff] %v3817_v1 }
  0x1c   : > { %508 = vst [vmem:[#allocation5 + $0x8] sm:$0xff] %v3817_v1  ;;  %509 = vst [vmem:[#allocation5 + $0x38] sm:$0xff] %v3817_v1 }
  0x1d   : > { %510 = vst [vmem:[#allocation5 + $0x18] sm:$0xff] %v3817_v1  ;;  %511 = vst [vmem:[#allocation5] sm:$0xff] %v3817_v1 }
  0x1e   : > { %512 = vst [vmem:[#allocation6 + $0x28] sm:$0xff] %v3817_v1  ;;  %513 = vst [vmem:[#allocation6 + $0x10] sm:$0xff] %v3817_v1 }
  0x1f   : > { %514 = vst [vmem:[#allocation6 + $0x18] sm:$0xff] %v3817_v1  ;;  %515 = vst [vmem:[#allocation6 + $0x38] sm:$0xff] %v3817_v1 }
  0x20   : > { %516 = vst [vmem:[#allocation6 + $0x8] sm:$0xff] %v3817_v1  ;;  %517 = vst [vmem:[#allocation6 + $0x30] sm:$0xff] %v3817_v1 }
  0x21   : > { %518 = vst [vmem:[#allocation6] sm:$0xff] %v3817_v1  ;;  %519 = vst [vmem:[#allocation6 + $0x20] sm:$0xff] %v3817_v1 }
  0x22   : > { %520 = vst [vmem:[%s3935_s16] sm:$0xff] %v3817_v1  ;;  %521 = vst [vmem:[%s3935_s16 + $0x8] sm:$0xff] %v3817_v1 }
  0x23   : > { %522 = vst [vmem:[%s3935_s16 + $0x10] sm:$0xff] %v3817_v1  ;;  %523 = vst [vmem:[%s3935_s16 + $0x18] sm:$0xff] %v3817_v1 }
  0x24   : > { %524 = vst [vmem:[%s3935_s16 + $0x20] sm:$0xff] %v3817_v1  ;;  %525 = vst [vmem:[%s3935_s16 + $0x28] sm:$0xff] %v3817_v1 }
  0x25   : > { %526 = vst [vmem:[%s3935_s16 + $0x30] sm:$0xff] %v3817_v1  ;;  %527 = vst [vmem:[%s3935_s16 + $0x38] sm:$0xff] %v3817_v1 }
  0x26   : > { %528 = vst [vmem:[%s3941_s19] sm:$0xff] %v3817_v1  ;;  %529 = vst [vmem:[%s3941_s19 + $0x8] sm:$0xff] %v3817_v1 }
  0x27   : > { %530 = vst [vmem:[%s3941_s19 + $0x10] sm:$0xff] %v3817_v1  ;;  %531 = vst [vmem:[%s3941_s19 + $0x18] sm:$0xff] %v3817_v1 }
  0x28   : > { %532 = vst [vmem:[%s3941_s19 + $0x20] sm:$0xff] %v3817_v1  ;;  %533 = vst [vmem:[%s3941_s19 + $0x28] sm:$0xff] %v3817_v1 }
  0x29   : > { %534 = vst [vmem:[%s3941_s19 + $0x30] sm:$0xff] %v3817_v1  ;;  %535 = vst [vmem:[%s3941_s19 + $0x38] sm:$0xff] %v3817_v1 }
  0x2a LB: >> { %v546_v2 = vld [vmem:[%s4733_s7] sm:$0xf]  ;;  %v3818_v3 = vmov 0   ;;  %v3819_v5 = vmov 839922192   ;;  %v554_v7 = vlaneseq  ;;  %s3443_s27 = sshll.u32 %s3810_s20, 3  ;;  %s3810_s20 = sphi %s3959_s20, %s541_s20  }
  0x2b   : >> { %3553 = vset.pattern.permute.xlu0 %v3818_v3  ;;  %1149 = vmatprep.mubr.bf16.mxu0 %v3818_v3  ;;  %v560_v4 = vld [vmem:[%s4734_s8] sm:$0xf]  ;;  %v552_v6 = vunpack.c.l.s4 %v3819_v5  ;;  %s544_s14 = scalar_lea.vmem %s423_s28, %s3443_s27  ;;  %v3555_v14 = vld [vmem:[#allocation3 + $0x7c] ss:$-80 sps:$4 sm:$0xff]   ;;  %v3557_v18 = vld [vmem:[#allocation3 + $0x78] ss:$-80 sps:$4 sm:$0xff]  }
  0x2c   : >> { %549 = vperm.xlu0 %3553, %v546_v2   ;;  %1189 = vmatprep.mubr.bf16.mxu1 %v3818_v3  ;;  %v3974_v9 = vshrl.u32 %v554_v7, 7  ;;  %v545_v13 = vld [vmem:[%s544_s14] sm:$0xff]  ;;  %s3820_s15 = smov 127   ;;  %s3821_s17 = smov 111   ;;  %v3561_v24 = vld [vmem:[#allocation3 + $0x14] ss:$40 sps:$4 sm:$0xff]  }
  0x2d   : >> { %3554 = vset.pattern.permute.xlu1 %v3818_v3  ;;  %v553_v8 = vunpack.c.0.s8 %v552_v6  ;;  %1117 = vmatprep.subr.bf16.mxu0 %v3555_v14  ;;  %v3558_v20 = vld [vmem:[#allocation3 + $0x64] ss:$16 sps:$4 sm:$0xff]   ;;  %v3560_v22 = vld [vmem:[#allocation3 + $0x60] ss:$16 sps:$4 sm:$0xff]   ;;  %s3822_s18 = smov 112   ;;  %s3823_s22 = smov 16  }
  0x2e   : >> { %3492 = vmatprep.subr.bf16.mxu1 %v3555_v14  ;;  %1118 = vmatpush1.bf16.msra.mxu0 %v3557_v18  ;;  %v3563_v25 = vld [vmem:[#allocation3 + $0x10] ss:$40 sps:$4 sm:$0xff]   ;;  %v885_v26 = vld [vmem:[#allocation3 + $0x40] sm:$0xff]  ;;  %s3824_s23 = smov 113   ;;  %s3825_s25 = smov 1   ;;  %v883_v30 = vld [vmem:[#allocation3 + $0x8] sm:$0xff] }
  0x2f   : >> { %v556_v10 = vsub.s32 %v553_v8, %v3974_v9  ;;  %3500 = vmatpush1.bf16.msra.mxu1 %v3557_v18  ;;  %1119 = vmatprep.subr.bf16.mxu0 %v3558_v20  ;;  %v886_v27 = vld [vmem:[#allocation3 + $0x20] sm:$0xff]  ;;  %v884_v31 = vld [vmem:[#allocation3 + $0x48] sm:$0xff]  ;;  %s3826_s26 = smov 17   ;;  %s3827_s27 = smov 15   ;;  %v895_v35 = vld [vmem:[%s4729_s3 + $0x10] sm:$0xff]  ;;  %v4042_v54 = vsub.s32 0, %v3974_v9 }
  0x30   : >> { %563 = vperm.xlu0 %3553, %v560_v4   ;;  %3493 = vmatprep.subr.bf16.mxu1 %v3558_v20  ;;  %v3285_v28 = vcombine.high %v885_v26, %v886_v27  ;;  %v3284_v29 = vcombine.low %v885_v26, %v886_v27  ;;  %v3283_v32 = vcombine.high %v883_v30, %v884_v31  ;;  %v893_v34 = vld [vmem:[%s4729_s3] sm:$0xff]  ;;  %v899_v37 = vld [vmem:[%s4729_s3 + $0x30] sm:$0xff]  ;;  %v894_v42 = vld [vmem:[%s4729_s3 + $0x8] sm:$0xff]  ;;  %v4045_v55 = vsub.s32 1, %v3974_v9  ;;  %s3453_s29 = sshll.u32 %s3810_s20, 8  ;;  %s541_s20 = sadd.s32 1, %s3810_s20  }
  0x31   : >> { %v3282_v33 = vcombine.low %v883_v30, %v884_v31  ;;  %v897_v36 = vld [vmem:[%s4729_s3 + $0x20] sm:$0xff]  ;;  %v903_v39 = vld [vmem:[%s4729_s3 + $0x50] sm:$0xff]  ;;  %v896_v43 = vld [vmem:[%s4729_s3 + $0x18] sm:$0xff]  ;;  %vm616_vm0 = vcmask 130048   ;;  %vm685_vm1 = vcmask 7168   ;;  %vm833_vm2 = vcmask 908288  }
  0x32   : >> { %1120 = vmatpush1.bf16.msra.mxu0 %v3560_v22  ;;  %v901_v38 = vld [vmem:[%s4729_s3 + $0x40] sm:$0xff]  ;;  %v907_v41 = vld [vmem:[%s4729_s3 + $0x70] sm:$0xff]  ;;  %v898_v44 = vld [vmem:[%s4729_s3 + $0x28] sm:$0xff]  ;;  %vm582_vm3 = vcmask 138240   ;;  %vm729_vm4 = vcmask 1039360   ;;  %vm798_vm5 = vcmask 916480  }
  0x33   : >> { %3501 = vmatpush1.bf16.msra.mxu1 %v3560_v22  ;;  %1121 = vmatprep.subr.bf16.mxu0 %v3561_v24  ;;  %v905_v40 = vld [vmem:[%s4729_s3 + $0x60] sm:$0xff]  ;;  %v900_v45 = vld [vmem:[%s4729_s3 + $0x38] sm:$0xff]  ;;  %v902_v46 = vld [vmem:[%s4729_s3 + $0x48] sm:$0xff]  ;;  %vm764_vm6 = vcmask 924672   ;;  %vm651_vm7 = vcmask 121856   ;;  %p538_p4 = scmp.ge.s32.totalorder %s541_s20, 8  }
  0x34   : >> { %3494 = vmatprep.subr.bf16.mxu1 %v3561_v24  ;;  %v904_v47 = vld [vmem:[%s4729_s3 + $0x58] sm:$0xff]  ;;  %v906_v48 = vld [vmem:[%s4729_s3 + $0x68] sm:$0xff]  ;;  %s4193_s30 = smov (%p538_p4), 0  }
  0x35   : >> { %v908_v49 = vld [vmem:[%s4729_s3 + $0x78] sm:$0xff]  ;;  %v3253_v56 = vld [vmem:[%s4735_s9 + $0x1] ss:$8 sm:$0x3] }
  0x36   : >> { %1122 = vmatpush1.bf16.msra.mxu0 %v3563_v25  ;;  %v625_v59 = vrot.slane %v3253_v56, %v4042_v54  ;;  %v629_v60 = vrot.slane %v3253_v56, %v4045_v55  ;;  %v3257_v61 = vld [vmem:[%s4735_s9 + $0x3] ss:$8 sm:$0x3]  ;;  %v3266_v62 = vld [vmem:[%s4735_s9 + $0x10] ss:$8 sm:$0x3] }
  0x37   : >> { %3502 = vmatpush1.bf16.msra.mxu1 %v3563_v25  ;;  %1123 = vmatprep.subr.bf16.mxu0 %v3285_v28  ;;  %v694_v4 = vrot.slane %v3257_v61, %v4042_v54  ;;  %v698_v5 = vrot.slane %v3257_v61, %v4045_v55  ;;  %v574_v6 = vld [vmem:[%s4735_s9] ss:$8 sm:$0x3]  ;;  %v843_v9 = vrot.slane %v3266_v62, %v4042_v54 }
  0x38   : >> { %3495 = vmatprep.subr.bf16.mxu1 %v3285_v28  ;;  %v591_v14 = vrot.slane %v574_v6, %v4042_v54 }
  0x3a   : >> { %1124 = vmatpush1.bf16.msra.mxu0 %v3284_v29 }
  0x3b   : >> { %3503 = vmatpush1.bf16.msra.mxu1 %v3284_v29  ;;  %1125 = vmatprep.subr.bf16.mxu0 %v3283_v32 }
  0x3c   : >> { %3496 = vmatprep.subr.bf16.mxu1 %v3283_v32 }
  0x3e   : >> { %1126 = vmatpush1.bf16.msra.mxu0 %v3282_v33 }
  0x3f   : >> { %3504 = vmatpush1.bf16.msra.mxu1 %v3282_v33 }
  0xa7   : >> { %v550_v11 = vpop.permute.xlu0 %549 }
  0xa8   : >> { %v557_v12 = vrot.slane %v550_v11, %v556_v10 }
  0xaa   : >> { %v559_v16 = vmul.f32 %v557_v12, %v545_v13 }
  0xab   : >> { %v564_v15 = vpop.permute.xlu0 %563 }
  0xac   : >> { %v571_v17 = vrot.slane %v564_v15, %v556_v10  ;;  %v847_v10 = vrot.slane %v3266_v62, %v4045_v55  ;;  %v595_v15 = vrot.slane %v574_v6, %v4045_v55 }
  0xae   : >> { %v573_v19 = vadd.f32 %v571_v17, %v559_v16  ;;  %v3260_v16 = vld [vmem:[%s4735_s9 + $0x5] ss:$8 sm:$0x3] }
  0xaf   : >> { %v739_v27 = vrot.slane %v3260_v16, %v4042_v54  ;;  %v743_v28 = vrot.slane %v3260_v16, %v4045_v55 }
  0xb0   : >> { %725 = vrot.lane.b32.xlu0 %v573_v19, %s3820_s15  ;;  %829 = vrot.lane.b32.xlu1 %v573_v19, %s3821_s17  ;;  %v576_v21 = vcombine.high %v573_v19, %v573_v19 }
  0xb2   : >> { %v3448_v23 = vpack.c.bf16 %v576_v21, %v573_v19 }
  0xb4   : >> { %794 = vrot.lane.b32.xlu0 %v573_v19, %s3822_s18  ;;  %614 = vrot.lane.b32.xlu1 %v573_v19, %s3823_s22  ;;  %722 = vst [vmem:[#allocation3 + $0x58] sm:$0x33] %v3448_v23 }
  0xb8   : >> { %760 = vrot.lane.b32.xlu0 %v573_v19, %s3824_s23  ;;  %683 = vrot.lane.b32.xlu1 %v573_v19, %s3825_s25 }
  0xbc   : >> { %580 = vrot.lane.b32.xlu1 %v573_v19, %s3826_s26  ;;  %611 = vrot.lane.b32.xlu0 %v576_v21, %s3823_s22 }
  0xc0   : >> { %680 = vrot.lane.b32.xlu0 %v576_v21, %s3825_s25  ;;  %831 = vrot.lane.b32.xlu1 %v576_v21, %s3821_s17 }
  0xc4   : >> { %577 = vrot.lane.b32.xlu0 %v576_v21, %s3826_s26  ;;  %727 = vrot.lane.b32.xlu1 %v576_v21, %s3820_s15 }
  0xc8   : >> { %646 = vrot.lane.b32.xlu0 %v576_v21, %s3827_s27  ;;  %796 = vrot.lane.b32.xlu1 %v576_v21, %s3822_s18 }
  0xcc   : >> { %911 = vperm.xlu0 %3553, %v893_v34   ;;  %762 = vrot.lane.b32.xlu1 %v576_v21, %s3824_s23  ;;  %v3264_v21 = vld [vmem:[%s4735_s9 + $0x7] ss:$8 sm:$0x3]  ;;  %s4148_s23 = scalar_lea.vmem [#allocation2], %s3453_s29 }
  0xcd   : >> { %v808_v32 = vrot.slane %v3264_v21, %v4042_v54  ;;  %v812_v33 = vrot.slane %v3264_v21, %v4045_v55  ;;  %v3571_v21 = vld [vmem:[%s4727_s1 + $0x20] sm:$0xff]  }
  0xd0   : >> { %921 = vperm.xlu0 %3553, %v895_v35   ;;  %649 = vrot.lane.b32.xlu1 %v573_v19, %s3827_s27 }
  0xd4   : >> { %931 = vperm.xlu0 %3553, %v897_v36   ;;  %916 = vperm.xlu1 %3554, %v894_v42  }
  0xd8   : >> { %941 = vperm.xlu0 %3553, %v899_v37   ;;  %926 = vperm.xlu1 %3554, %v896_v43  }
  0xdc   : >> { %951 = vperm.xlu0 %3553, %v901_v38   ;;  %936 = vperm.xlu1 %3554, %v898_v44   ;;  %v3262_v44 = vld [vmem:[%s4735_s9 + $0x6] ss:$8 sm:$0x3] }
  0xdd   : >> { %v778_v56 = vrot.slane %v3262_v44, %v4045_v55 }
  0xe0   : >> { %961 = vperm.xlu0 %3553, %v903_v39   ;;  %946 = vperm.xlu1 %3554, %v900_v45  }
  0xe4   : >> { %971 = vperm.xlu0 %3553, %v905_v40   ;;  %956 = vperm.xlu1 %3554, %v902_v46  }
  0xe8   : >> { %981 = vperm.xlu0 %3553, %v907_v41   ;;  %966 = vperm.xlu1 %3554, %v904_v47  }
  0xec   : >> { %976 = vperm.xlu1 %3554, %v906_v48  }
  0xf0   : >> { %986 = vperm.xlu1 %3554, %v908_v49  }
 0x122   : >> { %v726_v50 = vpop.permute.xlu0 %725  ;;  %v830_v51 = vpop.permute.xlu1 %829 }
 0x126   : >> { %v4039_v52 = vpop.permute.xlu0 %794  ;;  %v615_v53 = vpop.permute.xlu1 %614 }
 0x12a   : >> { %v4050_v57 = vpop.permute.xlu0 %760  ;;  %v684_v58 = vpop.permute.xlu1 %683 }
 0x12e   : >> { %v581_v63 = vpop.permute.xlu1 %580  ;;  %v612_v0 = vpop.permute.xlu0 %611 }
 0x12f   : >> { %v617_v1 = vsel %vm616_vm0, %v615_v53, %v612_v0  ;;  %v620_v2 = vsel %vm616_vm0, %v612_v0, %v615_v53  ;;  %v774_v53 = vrot.slane %v3262_v44, %v4042_v54 }
 0x130   : >> { %v632_v7 = vmul.f32 %v625_v59, %v620_v2  ;;  %v633_v8 = vmul.f32 %v629_v60, %v617_v1 }
 0x132   : >> { %v3445_v11 = vpack.c.bf16 %v633_v8, %v632_v7  ;;  %v681_v12 = vpop.permute.xlu0 %680  ;;  %v832_v13 = vpop.permute.xlu1 %831 }
 0x133   : >> { %v686_v17 = vsel %vm685_vm1, %v684_v58, %v681_v12  ;;  %v689_v18 = vsel %vm685_vm1, %v681_v12, %v684_v58  ;;  %v834_v19 = vsel %vm833_vm2, %v830_v51, %v832_v13  ;;  %v838_v20 = vsel %vm833_vm2, %v832_v13, %v830_v51  ;;  %v3255_v58 = vld [vmem:[%s4735_s9 + $0x2] ss:$8 sm:$0x3] }
 0x134   : >> { %v641_v22 = vrot.slane %v3445_v11, 6  ;;  %v701_v23 = vmul.f32 %v694_v4, %v689_v18  ;;  %v702_v24 = vmul.f32 %v698_v5, %v686_v17  ;;  %v850_v25 = vmul.f32 %v843_v9, %v834_v19 }
 0x135   : >> { %v851_v26 = vmul.f32 %v847_v10, %v838_v20  ;;  %v664_v5 = vrot.slane %v3255_v58, %v4045_v55  ;;  %v3570_v20 = vld [vmem:[%s4727_s1] sm:$0xff]  }
 0x136   : >> { %643 = vst [vmem:[#allocation3 + $0x30] sm:$0xcc] %v641_v22  ;;  %v3447_v29 = vpack.c.bf16 %v702_v24, %v701_v23  ;;  %v578_v30 = vpop.permute.xlu0 %577  ;;  %v728_v31 = vpop.permute.xlu1 %727  ;;  %v3572_v22 = vld [vmem:[%s4727_s1 + $0x8] sm:$0xff]   ;;  %v3574_v24 = vld [vmem:[%s4727_s1 + $0x10] sm:$0xff]  }
 0x137   : >> { %v3452_v34 = vpack.c.bf16 %v851_v26, %v850_v25  ;;  %v583_v35 = vsel %vm582_vm3, %v581_v63, %v578_v30  ;;  %v586_v36 = vsel %vm582_vm3, %v578_v30, %v581_v63  ;;  %v730_v37 = vsel %vm729_vm4, %v726_v50, %v728_v31  ;;  %v3573_v23 = vld [vmem:[%s4727_s1 + $0x28] sm:$0xff]   ;;  %v3575_v25 = vld [vmem:[%s4727_s1 + $0x30] sm:$0xff]   ;;  %v3576_v26 = vld [vmem:[%s4727_s1 + $0x18] sm:$0xff]  }
 0x138   : >> { %v710_v38 = vrot.slane %v3447_v29, 6  ;;  %v598_v39 = vmul.f32 %v591_v14, %v586_v36  ;;  %v599_v40 = vmul.f32 %v595_v15, %v583_v35  ;;  %v734_v41 = vsel %vm729_vm4, %v728_v31, %v726_v50 }
 0x139   : >> { %860 = vst [vmem:[#allocation3 + $0x50] sm:$0x33] %v3452_v34  ;;  %v746_v42 = vmul.f32 %v739_v27, %v730_v37  ;;  %v747_v43 = vmul.f32 %v743_v28, %v734_v41  ;;  %v660_v63 = vrot.slane %v3255_v58, %v4042_v54  ;;  %v3577_v27 = vld [vmem:[%s4727_s1 + $0x38] sm:$0xff]  }
 0x13a   : >> { %712 = vst [vmem:[#allocation3] sm:$0xcc] %v710_v38  ;;  %v3444_v45 = vpack.c.bf16 %v599_v40, %v598_v39  ;;  %v797_v46 = vpop.permute.xlu1 %796  ;;  %v647_v7 = vpop.permute.xlu0 %646 }
 0x13b   : >> { %v3449_v47 = vpack.c.bf16 %v747_v43, %v746_v42  ;;  %v799_v48 = vsel %vm798_vm5, %v4039_v52, %v797_v46  ;;  %v803_v49 = vsel %vm798_vm5, %v797_v46, %v4039_v52 }
 0x13c   : >> { %608 = vst [vmem:[#allocation3 + $0x30] sm:$0x33] %v3444_v45  ;;  %v815_v50 = vmul.f32 %v808_v32, %v799_v48  ;;  %v816_v51 = vmul.f32 %v812_v33, %v803_v49 }
 0x13d   : >> { %v755_v59 = vrot.slane %v3449_v47, 6 }
 0x13e   : >> { %v3451_v60 = vpack.c.bf16 %v816_v51, %v815_v50  ;;  %v763_v61 = vpop.permute.xlu1 %762 }
 0x13f   : >> { %757 = vst [vmem:[#allocation3 + $0x58] sm:$0xcc] %v755_v59  ;;  %v765_v62 = vsel %vm764_vm6, %v4050_v57, %v763_v61  ;;  %v769_v52 = vsel %vm764_vm6, %v763_v61, %v4050_v57 }
 0x140   : >> { %v824_v0 = vrot.slane %v3451_v60, 6  ;;  %v781_v1 = vmul.f32 %v774_v53, %v765_v62  ;;  %v782_v2 = vmul.f32 %v778_v56, %v769_v52  ;;  %v3564_v4 = vld [vmem:[#allocation3 + $0x54] ss:$24 sps:$4 sm:$0xff]   ;;  %v3566_v6 = vld [vmem:[#allocation3 + $0x50] ss:$24 sps:$4 sm:$0xff]  }
 0x141   : >> { %1127 = vmatprep.subr.bf16.mxu0 %v3564_v4  ;;  %3497 = vmatprep.subr.bf16.mxu1 %v3564_v4 }
 0x142   : >> { %826 = vst [vmem:[#allocation3 + $0x18] sm:$0xcc] %v824_v0  ;;  %v3450_v8 = vpack.c.bf16 %v782_v2, %v781_v1  ;;  %v650_v9 = vpop.permute.xlu1 %649  ;;  %1128 = vmatpush1.bf16.msra.mxu0 %v3566_v6  ;;  %3505 = vmatpush1.bf16.msra.mxu1 %v3566_v6 }
 0x143   : >> { %v652_v10 = vsel %vm651_vm7, %v650_v9, %v647_v7  ;;  %v655_v57 = vsel %vm651_vm7, %v647_v7, %v650_v9 }
 0x144   : >> { %791 = vst [vmem:[#allocation3 + $0x18] sm:$0x33] %v3450_v8  ;;  %v667_v11 = vmul.f32 %v660_v63, %v655_v57  ;;  %v668_v12 = vmul.f32 %v664_v5, %v652_v10 }
 0x146   : >> { %v3446_v13 = vpack.c.bf16 %v668_v12, %v667_v11  ;;  %v879_v14 = vld [vmem:[#allocation3 + $0x58] sm:$0xff] }
 0x147   : >> { %v912_v28 = vpop.permute.xlu0 %911 }
 0x148   : >> { %677 = vst [vmem:[#allocation3] sm:$0x33] %v3446_v13 }
 0x14b   : >> { %v880_v15 = vld [vmem:[#allocation3 + $0x18] sm:$0xff]  ;;  %v922_v30 = vpop.permute.xlu0 %921 }
 0x14c   : >> { %v3279_v16 = vcombine.high %v879_v14, %v880_v15  ;;  %v3278_v17 = vcombine.low %v879_v14, %v880_v15 }
 0x14e   : >> { %1129 = vmatprep.subr.bf16.mxu0 %v3279_v16  ;;  %3498 = vmatprep.subr.bf16.mxu1 %v3279_v16 }
 0x14f   : >> { %1130 = vmatpush1.bf16.msra.mxu0 %v3278_v17  ;;  %3506 = vmatpush1.bf16.msra.mxu1 %v3278_v17  ;;  %v3567_v18 = vld [vmem:[#allocation3 + $0x34] ss:$-48 sps:$4 sm:$0xff]   ;;  %v3569_v19 = vld [vmem:[#allocation3 + $0x30] ss:$-48 sps:$4 sm:$0xff]   ;;  %v917_v29 = vpop.permute.xlu1 %916  ;;  %v4139_v32 = vpop.permute.xlu0 %931 }
 0x150   : >> { %1131 = vmatprep.subr.bf16.mxu0 %v3567_v18  ;;  %3499 = vmatprep.subr.bf16.mxu1 %v3567_v18 }
 0x153   : >> { %1132 = vmatpush1.bf16.msra.mxu0 %v3569_v19  ;;  %3507 = vmatpush1.bf16.msra.mxu1 %v3569_v19  ;;  %v927_v31 = vpop.permute.xlu1 %926  ;;  %v4143_v34 = vpop.permute.xlu0 %941 }
 0x156   : >> { %1150 = vmatmul.mubr.bf16.vlgmr.msra.gmra.mxu0 %v3570_v20  ;;  %1190 = vmatmul.mubr.bf16.vlgmr.msra.gmra.mxu1 %v3571_v21 }
 0x157   : >> { %1159 = vmatprep.mubr.bf16.mxu0 %v3818_v3  ;;  %1199 = vmatprep.mubr.bf16.mxu1 %v3818_v3  ;;  %v4141_v33 = vpop.permute.xlu1 %936  ;;  %v952_v35 = vpop.permute.xlu0 %951 }
 0x15b   : >> { %v962_v51 = vpop.permute.xlu0 %961 }
 0x15e   : >> { %1160 = vmatmul.mubr.bf16.gmra.mxu0 %v3572_v22  ;;  %1200 = vmatmul.mubr.bf16.gmra.mxu1 %v3573_v23 }
 0x15f   : >> { %1169 = vmatprep.mubr.bf16.mxu0 %v3818_v3  ;;  %1209 = vmatprep.mubr.bf16.mxu1 %v3818_v3  ;;  %v972_v9 = vpop.permute.xlu0 %971 }
 0x166   : >> { %1170 = vmatmul.mubr.bf16.gmra.mxu0 %v3574_v24  ;;  %1210 = vmatmul.mubr.bf16.gmra.mxu1 %v3575_v25 }
 0x167   : >> { %1179 = vmatprep.mubr.bf16.mxu0 %v3818_v3  ;;  %1219 = vmatprep.mubr.bf16.mxu1 %v3818_v3  ;;  %v4146_v3 = vpop.permute.xlu1 %946 }
 0x16b   : >> { %v957_v42 = vpop.permute.xlu1 %956 }
 0x16e   : >> { %1180 = vmatmul.mubr.bf16.gmra.mxu0 %v3576_v26  ;;  %1220 = vmatmul.mubr.bf16.gmra.mxu1 %v3577_v27  ;;  %v982_v26 = vpop.permute.xlu0 %981 }
 0x16f   : >> { %v967_v63 = vpop.permute.xlu1 %966 }
 0x173   : >> { %v977_v17 = vpop.permute.xlu1 %976 }
 0x216   : >> { %v1151_v36 = vpop.f32.mrf.mxu0  ;;  %v1191_v37 = vpop.f32.mrf.mxu1 }
 0x217   : >> { %v1152_v38 = vadd.f32 %v1151_v36, %v912_v28  ;;  %v1192_v39 = vadd.f32 %v1191_v37, %v952_v35  ;;  %v987_v37 = vpop.permute.xlu1 %986 }
 0x218   : >> { %v1153_v40 = vpop.f32.mrf.mxu0  ;;  %v1193_v41 = vpop.f32.mrf.mxu1 }
 0x219   : >> { %1233 = vst [vmem:[%s4148_s23] sm:$0xff] %v1152_v38  ;;  %1249 = vst [vmem:[%s4148_s23 + $0x80] sm:$0xff] %v1192_v39  ;;  %v1154_v43 = vadd.f32 %v1153_v40, %v912_v28  ;;  %v1194_v44 = vadd.f32 %v1193_v41, %v952_v35 }
 0x21a   : >> { %v1155_v45 = vpop.f32.mrf.mxu0  ;;  %v1195_v46 = vpop.f32.mrf.mxu1 }
 0x21b   : >> { %1234 = vst [vmem:[%s4148_s23 + $0x8] sm:$0xff] %v1154_v43  ;;  %1250 = vst [vmem:[%s4148_s23 + $0x88] sm:$0xff] %v1194_v44  ;;  %v1156_v47 = vadd.f32 %v1155_v45, %v917_v29  ;;  %v1196_v48 = vadd.f32 %v1195_v46, %v957_v42 }
 0x21c   : >> { %v1157_v49 = vpop.f32.mrf.mxu0  ;;  %v1197_v50 = vpop.f32.mrf.mxu1 }
 0x21d   : >> { %1235 = vst [vmem:[%s4148_s23 + $0x10] sm:$0xff] %v1156_v47  ;;  %1251 = vst [vmem:[%s4148_s23 + $0x90] sm:$0xff] %v1196_v48  ;;  %v1158_v53 = vadd.f32 %v1157_v49, %v917_v29  ;;  %v1198_v56 = vadd.f32 %v1197_v50, %v957_v42 }
 0x21e   : >> { %v1161_v58 = vpop.f32.mrf.mxu0  ;;  %v1201_v59 = vpop.f32.mrf.mxu1 }
 0x21f   : >> { %1236 = vst [vmem:[%s4148_s23 + $0x18] sm:$0xff] %v1158_v53  ;;  %1252 = vst [vmem:[%s4148_s23 + $0x98] sm:$0xff] %v1198_v56  ;;  %v1162_v60 = vadd.f32 %v1161_v58, %v922_v30  ;;  %v1202_v61 = vadd.f32 %v1201_v59, %v962_v51 }
 0x220   : >> { %v1163_v62 = vpop.f32.mrf.mxu0  ;;  %v1203_v52 = vpop.f32.mrf.mxu1 }
 0x221   : >> { %1237 = vst [vmem:[%s4148_s23 + $0x20] sm:$0xff] %v1162_v60  ;;  %1253 = vst [vmem:[%s4148_s23 + $0xa0] sm:$0xff] %v1202_v61  ;;  %v1164_v0 = vadd.f32 %v1163_v62, %v922_v30  ;;  %v1204_v1 = vadd.f32 %v1203_v52, %v962_v51 }
 0x222   : >> { %v1165_v2 = vpop.f32.mrf.mxu0  ;;  %v1205_v4 = vpop.f32.mrf.mxu1 }
 0x223   : >> { %1238 = vst [vmem:[%s4148_s23 + $0x28] sm:$0xff] %v1164_v0  ;;  %1254 = vst [vmem:[%s4148_s23 + $0xa8] sm:$0xff] %v1204_v1  ;;  %v1166_v5 = vadd.f32 %v1165_v2, %v927_v31  ;;  %v1206_v6 = vadd.f32 %v1205_v4, %v967_v63 }
 0x224   : >> { %v1167_v7 = vpop.f32.mrf.mxu0  ;;  %v1207_v8 = vpop.f32.mrf.mxu1 }
 0x225   : >> { %1239 = vst [vmem:[%s4148_s23 + $0x30] sm:$0xff] %v1166_v5  ;;  %1255 = vst [vmem:[%s4148_s23 + $0xb0] sm:$0xff] %v1206_v6  ;;  %v1168_v10 = vadd.f32 %v1167_v7, %v927_v31  ;;  %v1208_v57 = vadd.f32 %v1207_v8, %v967_v63 }
 0x226   : >> { %v1171_v11 = vpop.f32.mrf.mxu0  ;;  %v1211_v12 = vpop.f32.mrf.mxu1 }
 0x227   : >> { %1240 = vst [vmem:[%s4148_s23 + $0x38] sm:$0xff] %v1168_v10  ;;  %1256 = vst [vmem:[%s4148_s23 + $0xb8] sm:$0xff] %v1208_v57  ;;  %v1172_v13 = vadd.f32 %v1171_v11, %v4139_v32  ;;  %v1212_v14 = vadd.f32 %v1211_v12, %v972_v9 }
 0x228   : >> { %v1173_v15 = vpop.f32.mrf.mxu0  ;;  %v1213_v16 = vpop.f32.mrf.mxu1 }
 0x229   : >> { %1241 = vst [vmem:[%s4148_s23 + $0x40] sm:$0xff] %v1172_v13  ;;  %1257 = vst [vmem:[%s4148_s23 + $0xc0] sm:$0xff] %v1212_v14  ;;  %v1174_v18 = vadd.f32 %v1173_v15, %v4139_v32  ;;  %v1214_v19 = vadd.f32 %v1213_v16, %v972_v9 }
 0x22a   : >> { %v1175_v20 = vpop.f32.mrf.mxu0  ;;  %v1215_v21 = vpop.f32.mrf.mxu1 }
 0x22b   : >> { %1242 = vst [vmem:[%s4148_s23 + $0x48] sm:$0xff] %v1174_v18  ;;  %1258 = vst [vmem:[%s4148_s23 + $0xc8] sm:$0xff] %v1214_v19  ;;  %v1176_v22 = vadd.f32 %v1175_v20, %v4141_v33  ;;  %v1216_v23 = vadd.f32 %v1215_v21, %v977_v17 }
 0x22c   : >> { %v1177_v24 = vpop.f32.mrf.mxu0  ;;  %v1217_v25 = vpop.f32.mrf.mxu1 }
 0x22d   : >> { %1243 = vst [vmem:[%s4148_s23 + $0x50] sm:$0xff] %v1176_v22  ;;  %1259 = vst [vmem:[%s4148_s23 + $0xd0] sm:$0xff] %v1216_v23  ;;  %v1178_v27 = vadd.f32 %v1177_v24, %v4141_v33  ;;  %v1218_v28 = vadd.f32 %v1217_v25, %v977_v17 }
 0x22e   : >> { %v1181_v29 = vpop.f32.mrf.mxu0  ;;  %v1221_v30 = vpop.f32.mrf.mxu1 }
 0x22f   : >> { %1244 = vst [vmem:[%s4148_s23 + $0x58] sm:$0xff] %v1178_v27  ;;  %1260 = vst [vmem:[%s4148_s23 + $0xd8] sm:$0xff] %v1218_v28  ;;  %v1182_v31 = vadd.f32 %v1181_v29, %v4143_v34  ;;  %v1222_v32 = vadd.f32 %v1221_v30, %v982_v26 }
 0x230   : >> { %v1183_v35 = vpop.f32.mrf.mxu0  ;;  %v1223_v36 = vpop.f32.mrf.mxu1 }
 0x231   : >> { %1245 = vst [vmem:[%s4148_s23 + $0x60] sm:$0xff] %v1182_v31  ;;  %1261 = vst [vmem:[%s4148_s23 + $0xe0] sm:$0xff] %v1222_v32  ;;  %v1184_v33 = vadd.f32 %v1183_v35, %v4143_v34  ;;  %v1224_v38 = vadd.f32 %v1223_v36, %v982_v26 }
 0x232   : >> { %v1185_v39 = vpop.f32.mrf.mxu0  ;;  %v1225_v40 = vpop.f32.mrf.mxu1 }
 0x233   : >> { %1246 = vst [vmem:[%s4148_s23 + $0x68] sm:$0xff] %v1184_v33  ;;  %1262 = vst [vmem:[%s4148_s23 + $0xe8] sm:$0xff] %v1224_v38  ;;  %v1186_v41 = vadd.f32 %v1185_v39, %v4146_v3  ;;  %v1226_v42 = vadd.f32 %v1225_v40, %v987_v37  ;;  %540 = sbr.rel (!%p538_p4) target bundleno = 42 (0x2a), region = 146 }
 0x234   : >> { %v1187_v43 = vpop.f32.mrf.mxu0  ;;  %v1227_v44 = vpop.f32.mrf.mxu1 }
 0x235   : >> { %1247 = vst [vmem:[%s4148_s23 + $0x70] sm:$0xff] %v1186_v41  ;;  %1263 = vst [vmem:[%s4148_s23 + $0xf0] sm:$0xff] %v1226_v42  ;;  %v1188_v45 = vadd.f32 %v1187_v43, %v4146_v3  ;;  %v1228_v46 = vadd.f32 %v1227_v44, %v987_v37 }
 0x237   : >> { %1248 = vst [vmem:[%s4148_s23 + $0x78] sm:$0xff] %v1188_v45  ;;  %1264 = vst [vmem:[%s4148_s23 + $0xf8] sm:$0xff] %v1228_v46 }
 0x238 LB: >> { %v4198_v34 = vld [vmem:[#allocation5 + $0x38] sm:$0xff]  ;;  %v4200_v47 = vld [vmem:[#allocation5 + $0x8] sm:$0xff]  ;;  %s3828_s27 = smov 1   ;;  %v4204_v3 = vld [vmem:[#allocation5] sm:$0xff]  ;;  %s3829_s24 = smov 15   ;;  %v3836_v24 = vmov 0   ;;  %s3814_s30 = sphi %s4193_s30, %s1270_s30  }
 0x239   : >> { %1550 = vrot.lane.b32.xlu0 %v4198_v34, %s3828_s27  ;;  %1562 = vrot.lane.b32.xlu1 %v4200_v47, %s3828_s27  ;;  %v4206_v48 = vld [vmem:[#allocation5 + $0x18] sm:$0xff]  ;;  %v4208_v49 = vld [vmem:[#allocation5 + $0x20] sm:$0xff]  ;;  %v4212_v50 = vld [vmem:[#allocation5 + $0x10] sm:$0xff]  ;;  %s3830_s28 = smov 16   ;;  %s3831_s20 = smov 17   ;;  %v3756_v5 = vpack.c.bf16 %v4204_v3, %v4198_v34 }
 0x23a   : >> { %v4214_v51 = vld [vmem:[#allocation5 + $0x30] sm:$0xff]  ;;  %v4218_v53 = vld [vmem:[#allocation5 + $0x28] sm:$0xff]  ;;  %s3832_s14 = smov 112   ;;  %s3833_s22 = smov 113   ;;  %v3578_v56 = vld [vmem:[#allocation4 + $0x1c] ss:$328 sps:$4 sm:$0xff]   ;;  %v3757_v6 = vpack.c.bf16 %v4206_v48, %v4200_v47  ;;  %v3758_v8 = vpack.c.bf16 %v4208_v49, %v4212_v50  ;;  %2630 = vmatprep.mubr.bf16.mxu1 %v3836_v24 }
 0x23b   : >> { %v3580_v58 = vld [vmem:[#allocation4 + $0x18] ss:$328 sps:$4 sm:$0xff]   ;;  %2598 = vmatprep.subr.bf16.mxu1 %v3578_v56  ;;  %v3581_v59 = vld [vmem:[#allocation4 + $0xdc] ss:$-40 sps:$4 sm:$0xff]   ;;  %v3586_v62 = vld [vmem:[#allocation4 + $0x28] ss:$72 sps:$4 sm:$0xff]   ;;  %v3759_v9 = vpack.c.bf16 %v4214_v51, %v4218_v53 }
 0x23c   : >> { %2599 = vmatpush1.bf16.msra.mxu1 %v3580_v58  ;;  %v3583_v60 = vld [vmem:[#allocation4 + $0xd8] ss:$-40 sps:$4 sm:$0xff]   ;;  %v3584_v61 = vld [vmem:[#allocation4 + $0x2c] ss:$72 sps:$4 sm:$0xff]   ;;  %s3834_s17 = smov 127   ;;  %s3835_s18 = smov 111  }
 0x23d   : >> { %1552 = vrot.lane.b32.xlu0 %v4204_v3, %s3828_s27  ;;  %1564 = vrot.lane.b32.xlu1 %v4206_v48, %s3828_s27  ;;  %v3587_v52 = vld [vmem:[#allocation4 + $0x11c] ss:$-248 sps:$4 sm:$0xff]   ;;  %v3589_v63 = vld [vmem:[#allocation4 + $0x118] ss:$-248 sps:$4 sm:$0xff]   ;;  %s3490_s25 = sshll.u32 %s3814_s30, 8 }
 0x23e   : >> { %2600 = vmatprep.subr.bf16.mxu1 %v3581_v59  ;;  %v3590_v0 = vld [vmem:[#allocation4 + $0x9c] ss:$-136 sps:$4 sm:$0xff]   ;;  %v3592_v1 = vld [vmem:[#allocation4 + $0x98] ss:$-136 sps:$4 sm:$0xff]   ;;  %s4488_s26 = scalar_lea.vmem [#allocation2], %s3490_s25 }
 0x23f   : >> { %v3593_v2 = vld [vmem:[#allocation4 + $0x44] ss:$184 sps:$4 sm:$0xff]   ;;  %v3595_v4 = vld [vmem:[#allocation4 + $0x40] ss:$184 sps:$4 sm:$0xff]  }
 0x240   : >> { %2601 = vmatpush1.bf16.msra.mxu1 %v3583_v60  ;;  %v3308_v7 = vld [vmem:[%s4735_s9 + $0x3] ss:$8 sm:$0x3]  ;;  %v3598_v11 = vld [vmem:[%s4728_s2 + $0x4] ss:$12 sps:$4 sm:$0xff]  }
 0x241   : >> { %1548 = vrot.lane.b32.xlu1 %v4208_v49, %s3828_s27  ;;  %1546 = vrot.lane.b32.xlu0 %v4212_v50, %s3828_s27  ;;  %v1587_v10 = vrot.slane %v3308_v7, %v4042_v54  ;;  %v1591_v57 = vrot.slane %v3308_v7, %v4045_v55  ;;  %v3303_v40 = vld [vmem:[%s4735_s9 + $0x2] ss:$8 sm:$0x3] }
 0x242   : >> { %2602 = vmatprep.subr.bf16.mxu1 %v3584_v61  ;;  %2517 = vmatprep.mubr.bf16.mxu0 %v3598_v11  ;;  %v1501_v43 = vrot.slane %v3303_v40, %v4042_v54  ;;  %v1505_v44 = vrot.slane %v3303_v40, %v4045_v55 }
 0x244   : >> { %2603 = vmatpush1.bf16.msra.mxu1 %v3586_v62 }
 0x245   : >> { %1560 = vrot.lane.b32.xlu1 %v4214_v51, %s3828_s27  ;;  %1558 = vrot.lane.b32.xlu0 %v4218_v53, %s3828_s27 }
 0x246   : >> { %2604 = vmatprep.subr.bf16.mxu1 %v3587_v52 }
 0x248   : >> { %2605 = vmatpush1.bf16.msra.mxu1 %v3589_v63 }
 0x249   : >> { %1466 = vrot.lane.b32.xlu1 %v4204_v3, %s3829_s24  ;;  %1464 = vrot.lane.b32.xlu0 %v4198_v34, %s3829_s24 }
 0x24a   : >> { %2606 = vmatprep.subr.bf16.mxu1 %v3590_v0 }
 0x24c   : >> { %2607 = vmatpush1.bf16.msra.mxu1 %v3592_v1 }
 0x24d   : >> { %1478 = vrot.lane.b32.xlu1 %v4206_v48, %s3829_s24  ;;  %1476 = vrot.lane.b32.xlu0 %v4200_v47, %s3829_s24 }
 0x24e   : >> { %2608 = vmatprep.subr.bf16.mxu1 %v3593_v2 }
 0x250   : >> { %2609 = vmatpush1.bf16.msra.mxu1 %v3595_v4 }
 0x251   : >> { %1462 = vrot.lane.b32.xlu1 %v4208_v49, %s3829_s24  ;;  %1460 = vrot.lane.b32.xlu0 %v4212_v50, %s3829_s24 }
 0x255   : >> { %1474 = vrot.lane.b32.xlu1 %v4214_v51, %s3829_s24  ;;  %1472 = vrot.lane.b32.xlu0 %v4218_v53, %s3829_s24 }
 0x259   : >> { %1380 = vrot.lane.b32.xlu1 %v4204_v3, %s3830_s28  ;;  %1378 = vrot.lane.b32.xlu0 %v4198_v34, %s3830_s28 }
 0x25d   : >> { %1392 = vrot.lane.b32.xlu1 %v4206_v48, %s3830_s28  ;;  %1390 = vrot.lane.b32.xlu0 %v4200_v47, %s3830_s28 }
 0x261   : >> { %1376 = vrot.lane.b32.xlu1 %v4208_v49, %s3830_s28  ;;  %1374 = vrot.lane.b32.xlu0 %v4212_v50, %s3830_s28 }
 0x265   : >> { %1388 = vrot.lane.b32.xlu1 %v4214_v51, %s3830_s28  ;;  %1386 = vrot.lane.b32.xlu0 %v4218_v53, %s3830_s28 }
 0x269   : >> { %1290 = vrot.lane.b32.xlu1 %v4204_v3, %s3831_s20  ;;  %1288 = vrot.lane.b32.xlu0 %v4198_v34, %s3831_s20 }
 0x26d   : >> { %1306 = vrot.lane.b32.xlu1 %v4206_v48, %s3831_s20  ;;  %1304 = vrot.lane.b32.xlu0 %v4200_v47, %s3831_s20 }
 0x271   : >> { %1286 = vrot.lane.b32.xlu1 %v4208_v49, %s3831_s20  ;;  %1284 = vrot.lane.b32.xlu0 %v4212_v50, %s3831_s20 }
 0x275   : >> { %1302 = vrot.lane.b32.xlu1 %v4214_v51, %s3831_s20  ;;  %1300 = vrot.lane.b32.xlu0 %v4218_v53, %s3831_s20 }
 0x279   : >> { %1842 = vrot.lane.b32.xlu1 %v4198_v34, %s3832_s14  ;;  %1840 = vrot.lane.b32.xlu0 %v4200_v47, %s3832_s14 }
 0x27d   : >> { %1846 = vrot.lane.b32.xlu1 %v4204_v3, %s3832_s14  ;;  %1844 = vrot.lane.b32.xlu0 %v4206_v48, %s3832_s14 }
 0x281   : >> { %1834 = vrot.lane.b32.xlu1 %v4212_v50, %s3832_s14  ;;  %1832 = vrot.lane.b32.xlu0 %v4218_v53, %s3832_s14 }
 0x285   : >> { %1838 = vrot.lane.b32.xlu1 %v4208_v49, %s3832_s14  ;;  %1836 = vrot.lane.b32.xlu0 %v4214_v51, %s3832_s14 }
 0x289   : >> { %1756 = vrot.lane.b32.xlu1 %v4198_v34, %s3833_s22  ;;  %1754 = vrot.lane.b32.xlu0 %v4200_v47, %s3833_s22 }
 0x28d   : >> { %1760 = vrot.lane.b32.xlu1 %v4204_v3, %s3833_s22  ;;  %1758 = vrot.lane.b32.xlu0 %v4206_v48, %s3833_s22 }
 0x291   : >> { %1748 = vrot.lane.b32.xlu1 %v4212_v50, %s3833_s22  ;;  %1746 = vrot.lane.b32.xlu0 %v4218_v53, %s3833_s22 }
 0x295   : >> { %1752 = vrot.lane.b32.xlu1 %v4208_v49, %s3833_s22  ;;  %1750 = vrot.lane.b32.xlu0 %v4214_v51, %s3833_s22 }
 0x299   : >> { %1670 = vrot.lane.b32.xlu1 %v4198_v34, %s3834_s17  ;;  %1668 = vrot.lane.b32.xlu0 %v4200_v47, %s3834_s17 }
 0x29d   : >> { %1674 = vrot.lane.b32.xlu1 %v4204_v3, %s3834_s17  ;;  %1672 = vrot.lane.b32.xlu0 %v4206_v48, %s3834_s17 }
 0x2a1   : >> { %1662 = vrot.lane.b32.xlu1 %v4212_v50, %s3834_s17  ;;  %1660 = vrot.lane.b32.xlu0 %v4218_v53, %s3834_s17 }
 0x2a5   : >> { %1666 = vrot.lane.b32.xlu1 %v4208_v49, %s3834_s17  ;;  %1664 = vrot.lane.b32.xlu0 %v4214_v51, %s3834_s17 }
 0x2a9   : >> { %1928 = vrot.lane.b32.xlu1 %v4198_v34, %s3835_s18  ;;  %1926 = vrot.lane.b32.xlu0 %v4200_v47, %s3835_s18 }
 0x2ab   : >> { %v1551_v12 = vpop.permute.xlu0 %1550  ;;  %v1563_v13 = vpop.permute.xlu1 %1562 }
 0x2ac   : >> { %v1569_v14 = vsel %vm685_vm1, %v1563_v13, %v1551_v12  ;;  %v1581_v15 = vsel %vm685_vm1, %v1551_v12, %v1563_v13 }
 0x2ad   : >> { %v1598_v16 = vmul.f32 %v1587_v10, %v1581_v15  ;;  %v1599_v17 = vmul.f32 %v1591_v57, %v1569_v14  ;;  %1932 = vrot.lane.b32.xlu1 %v4204_v3, %s3835_s18  ;;  %1930 = vrot.lane.b32.xlu0 %v4206_v48, %s3835_s18  ;;  %v3600_v48 = vld [vmem:[%s4728_s2 + $0x1c] ss:$12 sps:$4 sm:$0xff]  }
 0x2af   : >> { %v1553_v18 = vpop.permute.xlu0 %1552  ;;  %v1565_v19 = vpop.permute.xlu1 %1564 }
 0x2b0   : >> { %v1570_v20 = vsel %vm685_vm1, %v1565_v19, %v1553_v18  ;;  %v1582_v21 = vsel %vm685_vm1, %v1553_v18, %v1565_v19 }
 0x2b1   : >> { %v1600_v22 = vmul.f32 %v1587_v10, %v1582_v21  ;;  %v1601_v23 = vmul.f32 %v1591_v57, %v1570_v20  ;;  %1920 = vrot.lane.b32.xlu1 %v4212_v50, %s3835_s18  ;;  %1918 = vrot.lane.b32.xlu0 %v4218_v53, %s3835_s18  ;;  %v3298_v20 = vld [vmem:[%s4735_s9 + $0x1] ss:$8 sm:$0x3] }
 0x2b2   : >> { %v3604_v53 = vld [vmem:[%s4728_s2 + $0x34] ss:$12 sps:$4 sm:$0xff]  }
 0x2b3   : >> { %v1549_v25 = vpop.permute.xlu1 %1548  ;;  %v1547_v26 = vpop.permute.xlu0 %1546  ;;  %v3760_v27 = vpack.c.bf16 %v1601_v23, %v1599_v17  ;;  %v3761_v28 = vpack.c.bf16 %v1600_v22, %v1598_v16  ;;  %v1415_v23 = vrot.slane %v3298_v20, %v4042_v54 }
 0x2b5   : >> { %1924 = vrot.lane.b32.xlu1 %v4208_v49, %s3835_s18  ;;  %1922 = vrot.lane.b32.xlu0 %v4214_v51, %s3835_s18  ;;  %v3602_v51 = vld [vmem:[%s4728_s2 + $0x18] ss:$12 sps:$4 sm:$0xff]  }
 0x2b6   : >> { %2485 = vmatprep.subr.bf16.mxu0 %v3760_v27 }
 0x2b7   : >> { %v1561_v29 = vpop.permute.xlu1 %1560  ;;  %v1559_v30 = vpop.permute.xlu0 %1558  ;;  %2486 = vmatpush1.bf16.msra.mxu0 %v3761_v28 }
 0x2b8   : >> { %v1568_v31 = vsel %vm685_vm1, %v1561_v29, %v1549_v25  ;;  %v1580_v32 = vsel %vm685_vm1, %v1549_v25, %v1561_v29  ;;  %v1567_v35 = vsel %vm685_vm1, %v1559_v30, %v1547_v26  ;;  %v1579_v36 = vsel %vm685_vm1, %v1547_v26, %v1559_v30 }
 0x2b9   : >> { %v1596_v37 = vmul.f32 %v1587_v10, %v1580_v32  ;;  %v1597_v33 = vmul.f32 %v1591_v57, %v1568_v31  ;;  %v1594_v38 = vmul.f32 %v1587_v10, %v1579_v36  ;;  %v1595_v39 = vmul.f32 %v1591_v57, %v1567_v35 }
 0x2ba   : >> { %v1419_v25 = vrot.slane %v3298_v20, %v4045_v55 }
 0x2bb   : >> { %v1467_v41 = vpop.permute.xlu1 %1466  ;;  %v1465_v42 = vpop.permute.xlu0 %1464  ;;  %v3762_v45 = vpack.c.bf16 %v1597_v33, %v1595_v39  ;;  %v3763_v46 = vpack.c.bf16 %v1596_v37, %v1594_v38 }
 0x2bd   : >> { %2487 = vmatprep.subr.bf16.mxu0 %v3762_v45 }
 0x2be   : >> { %2488 = vmatpush1.bf16.msra.mxu0 %v3763_v46 }
 0x2bf   : >> { %v1479_v56 = vpop.permute.xlu1 %1478  ;;  %v1477_v58 = vpop.permute.xlu0 %1476 }
 0x2c0   : >> { %v1484_v59 = vsel %vm651_vm7, %v1479_v56, %v1467_v41  ;;  %v1496_v60 = vsel %vm651_vm7, %v1467_v41, %v1479_v56  ;;  %v1483_v61 = vsel %vm651_vm7, %v1477_v58, %v1465_v42  ;;  %v1495_v62 = vsel %vm651_vm7, %v1465_v42, %v1477_v58 }
 0x2c1   : >> { %v1514_v52 = vmul.f32 %v1501_v43, %v1496_v60  ;;  %v1515_v63 = vmul.f32 %v1505_v44, %v1484_v59  ;;  %v1512_v0 = vmul.f32 %v1501_v43, %v1495_v62  ;;  %v1513_v1 = vmul.f32 %v1505_v44, %v1483_v61 }
 0x2c3   : >> { %v1463_v2 = vpop.permute.xlu1 %1462  ;;  %v1461_v4 = vpop.permute.xlu0 %1460  ;;  %v3764_v7 = vpack.c.bf16 %v1515_v63, %v1513_v1  ;;  %v3765_v10 = vpack.c.bf16 %v1514_v52, %v1512_v0  ;;  %v1279_v52 = vld [vmem:[%s4735_s9] ss:$8 sm:$0x3] }
 0x2c4   : >> { %v1329_v1 = vrot.slane %v1279_v52, %v4042_v54 }
 0x2c5   : >> { %2489 = vmatprep.subr.bf16.mxu0 %v3764_v7 }
 0x2c6   : >> { %2490 = vmatpush1.bf16.msra.mxu0 %v3765_v10 }
 0x2c7   : >> { %v1475_v57 = vpop.permute.xlu1 %1474  ;;  %v1473_v11 = vpop.permute.xlu0 %1472 }
 0x2c8   : >> { %v1482_v12 = vsel %vm651_vm7, %v1475_v57, %v1463_v2  ;;  %v1494_v13 = vsel %vm651_vm7, %v1463_v2, %v1475_v57  ;;  %v1481_v14 = vsel %vm651_vm7, %v1473_v11, %v1461_v4  ;;  %v1493_v15 = vsel %vm651_vm7, %v1461_v4, %v1473_v11 }
 0x2c9   : >> { %v1510_v16 = vmul.f32 %v1501_v43, %v1494_v13  ;;  %v1511_v17 = vmul.f32 %v1505_v44, %v1482_v12  ;;  %v1508_v18 = vmul.f32 %v1501_v43, %v1493_v15  ;;  %v1509_v19 = vmul.f32 %v1505_v44, %v1481_v14 }
 0x2ca   : >> { %v1333_v2 = vrot.slane %v1279_v52, %v4045_v55 }
 0x2cb   : >> { %v1381_v21 = vpop.permute.xlu1 %1380  ;;  %v1379_v22 = vpop.permute.xlu0 %1378  ;;  %v3766_v26 = vpack.c.bf16 %v1511_v17, %v1509_v19  ;;  %v3767_v27 = vpack.c.bf16 %v1510_v16, %v1508_v18 }
 0x2cd   : >> { %2491 = vmatprep.subr.bf16.mxu0 %v3766_v26 }
 0x2ce   : >> { %2492 = vmatpush1.bf16.msra.mxu0 %v3767_v27 }
 0x2cf   : >> { %v1393_v28 = vpop.permute.xlu1 %1392  ;;  %v1391_v29 = vpop.permute.xlu0 %1390 }
 0x2d0   : >> { %v1398_v30 = vsel %vm616_vm0, %v1393_v28, %v1381_v21  ;;  %v1410_v31 = vsel %vm616_vm0, %v1381_v21, %v1393_v28  ;;  %v1397_v32 = vsel %vm616_vm0, %v1391_v29, %v1379_v22  ;;  %v1409_v35 = vsel %vm616_vm0, %v1379_v22, %v1391_v29  ;;  %v3327_v21 = vld [vmem:[%s4735_s9 + $0x7] ss:$8 sm:$0x3] }
 0x2d1   : >> { %v1428_v36 = vmul.f32 %v1415_v23, %v1410_v31  ;;  %v1429_v37 = vmul.f32 %v1419_v25, %v1398_v30  ;;  %v1426_v33 = vmul.f32 %v1415_v23, %v1409_v35  ;;  %v1427_v38 = vmul.f32 %v1419_v25, %v1397_v32 }
 0x2d2   : >> { %v1873_v27 = vrot.slane %v3327_v21, %v4042_v54  ;;  %v1877_v28 = vrot.slane %v3327_v21, %v4045_v55 }
 0x2d3   : >> { %v1377_v39 = vpop.permute.xlu1 %1376  ;;  %v1375_v40 = vpop.permute.xlu0 %1374  ;;  %v3768_v41 = vpack.c.bf16 %v1429_v37, %v1427_v38  ;;  %v3769_v42 = vpack.c.bf16 %v1428_v36, %v1426_v33 }
 0x2d5   : >> { %2493 = vmatprep.subr.bf16.mxu0 %v3768_v41 }
 0x2d6   : >> { %2494 = vmatpush1.bf16.msra.mxu0 %v3769_v42 }
 0x2d7   : >> { %v1389_v43 = vpop.permute.xlu1 %1388  ;;  %v1387_v44 = vpop.permute.xlu0 %1386 }
 0x2d8   : >> { %v1396_v45 = vsel %vm616_vm0, %v1389_v43, %v1377_v39  ;;  %v1408_v46 = vsel %vm616_vm0, %v1377_v39, %v1389_v43  ;;  %v1395_v56 = vsel %vm616_vm0, %v1387_v44, %v1375_v40  ;;  %v1407_v58 = vsel %vm616_vm0, %v1375_v40, %v1387_v44 }
 0x2d9   : >> { %v1424_v59 = vmul.f32 %v1415_v23, %v1408_v46  ;;  %v1425_v60 = vmul.f32 %v1419_v25, %v1396_v45  ;;  %v1422_v61 = vmul.f32 %v1415_v23, %v1407_v58  ;;  %v1423_v62 = vmul.f32 %v1419_v25, %v1395_v56 }
 0x2db   : >> { %v1291_v63 = vpop.permute.xlu1 %1290  ;;  %v1289_v0 = vpop.permute.xlu0 %1288  ;;  %v3770_v4 = vpack.c.bf16 %v1425_v60, %v1423_v62  ;;  %v3771_v7 = vpack.c.bf16 %v1424_v59, %v1422_v61 }
 0x2dd   : >> { %2495 = vmatprep.subr.bf16.mxu0 %v3770_v4 }
 0x2de   : >> { %2496 = vmatpush1.bf16.msra.mxu0 %v3771_v7 }
 0x2df   : >> { %v1307_v10 = vpop.permute.xlu1 %1306  ;;  %v1305_v57 = vpop.permute.xlu0 %1304 }
 0x2e0   : >> { %v1312_v11 = vsel %vm582_vm3, %v1307_v10, %v1291_v63  ;;  %v1324_v12 = vsel %vm582_vm3, %v1291_v63, %v1307_v10  ;;  %v1311_v13 = vsel %vm582_vm3, %v1305_v57, %v1289_v0  ;;  %v1323_v14 = vsel %vm582_vm3, %v1289_v0, %v1305_v57  ;;  %v3322_v10 = vld [vmem:[%s4735_s9 + $0x6] ss:$8 sm:$0x3] }
 0x2e1   : >> { %v1342_v15 = vmul.f32 %v1329_v1, %v1324_v12  ;;  %v1343_v16 = vmul.f32 %v1333_v2, %v1312_v11  ;;  %v1340_v17 = vmul.f32 %v1329_v1, %v1323_v14  ;;  %v1341_v18 = vmul.f32 %v1333_v2, %v1311_v13 }
 0x2e3   : >> { %v1287_v19 = vpop.permute.xlu1 %1286  ;;  %v1285_v20 = vpop.permute.xlu0 %1284  ;;  %v3772_v22 = vpack.c.bf16 %v1343_v16, %v1341_v18  ;;  %v3773_v23 = vpack.c.bf16 %v1342_v15, %v1340_v17  ;;  %v1787_v16 = vrot.slane %v3322_v10, %v4042_v54  ;;  %v1791_v17 = vrot.slane %v3322_v10, %v4045_v55 }
 0x2e5   : >> { %2497 = vmatprep.subr.bf16.mxu0 %v3772_v22 }
 0x2e6   : >> { %2498 = vmatpush1.bf16.msra.mxu0 %v3773_v23 }
 0x2e7   : >> { %v1303_v25 = vpop.permute.xlu1 %1302  ;;  %v1301_v26 = vpop.permute.xlu0 %1300 }
 0x2e8   : >> { %v1310_v29 = vsel %vm582_vm3, %v1303_v25, %v1287_v19  ;;  %v1322_v30 = vsel %vm582_vm3, %v1287_v19, %v1303_v25  ;;  %v1309_v31 = vsel %vm582_vm3, %v1301_v26, %v1285_v20  ;;  %v1321_v32 = vsel %vm582_vm3, %v1285_v20, %v1301_v26 }
 0x2e9   : >> { %v1338_v35 = vmul.f32 %v1329_v1, %v1322_v30  ;;  %v1339_v36 = vmul.f32 %v1333_v2, %v1310_v29  ;;  %v1336_v37 = vmul.f32 %v1329_v1, %v1321_v32  ;;  %v1337_v33 = vmul.f32 %v1333_v2, %v1309_v31 }
 0x2eb   : >> { %v1843_v38 = vpop.permute.xlu1 %1842  ;;  %v1841_v39 = vpop.permute.xlu0 %1840  ;;  %v3774_v44 = vpack.c.bf16 %v1339_v36, %v1337_v33  ;;  %v3775_v45 = vpack.c.bf16 %v1338_v35, %v1336_v37 }
 0x2ec   : >> { %v1851_v40 = vsel %vm798_vm5, %v1841_v39, %v1843_v38  ;;  %v1867_v41 = vsel %vm798_vm5, %v1843_v38, %v1841_v39 }
 0x2ed   : >> { %v1884_v42 = vmul.f32 %v1873_v27, %v1851_v40  ;;  %v1885_v43 = vmul.f32 %v1877_v28, %v1867_v41  ;;  %2499 = vmatprep.subr.bf16.mxu0 %v3774_v44 }
 0x2ee   : >> { %2500 = vmatpush1.bf16.msra.mxu0 %v3775_v45 }
 0x2ef   : >> { %v1847_v46 = vpop.permute.xlu1 %1846  ;;  %v1845_v56 = vpop.permute.xlu0 %1844 }
 0x2f0   : >> { %v1852_v58 = vsel %vm798_vm5, %v1845_v56, %v1847_v46  ;;  %v1868_v59 = vsel %vm798_vm5, %v1847_v46, %v1845_v56 }
 0x2f1   : >> { %v1886_v60 = vmul.f32 %v1873_v27, %v1852_v58  ;;  %v1887_v61 = vmul.f32 %v1877_v28, %v1868_v59 }
 0x2f3   : >> { %v1835_v62 = vpop.permute.xlu1 %1834  ;;  %v1833_v52 = vpop.permute.xlu0 %1832  ;;  %v3776_v4 = vpack.c.bf16 %v1887_v61, %v1885_v43  ;;  %v3777_v7 = vpack.c.bf16 %v1886_v60, %v1884_v42  ;;  %v3317_v42 = vld [vmem:[%s4735_s9 + $0x5] ss:$8 sm:$0x3] }
 0x2f4   : >> { %v1849_v63 = vsel %vm798_vm5, %v1833_v52, %v1835_v62  ;;  %v1865_v0 = vsel %vm798_vm5, %v1835_v62, %v1833_v52  ;;  %v1701_v59 = vrot.slane %v3317_v42, %v4042_v54  ;;  %v1705_v60 = vrot.slane %v3317_v42, %v4045_v55 }
 0x2f5   : >> { %v1880_v1 = vmul.f32 %v1873_v27, %v1849_v63  ;;  %v1881_v2 = vmul.f32 %v1877_v28, %v1865_v0  ;;  %2501 = vmatprep.subr.bf16.mxu0 %v3776_v4 }
 0x2f6   : >> { %2502 = vmatpush2.bf16.msra.mxu0 %v3777_v7 }
 0x2f7   : >> { %v1839_v57 = vpop.permute.xlu1 %1838  ;;  %v1837_v11 = vpop.permute.xlu0 %1836 }
 0x2f8   : >> { %v1850_v12 = vsel %vm798_vm5, %v1837_v11, %v1839_v57  ;;  %v1866_v13 = vsel %vm798_vm5, %v1839_v57, %v1837_v11 }
 0x2f9   : >> { %v1882_v14 = vmul.f32 %v1873_v27, %v1850_v12  ;;  %v1883_v15 = vmul.f32 %v1877_v28, %v1866_v13 }
 0x2fb   : >> { %v1757_v18 = vpop.permute.xlu1 %1756  ;;  %v1755_v19 = vpop.permute.xlu0 %1754  ;;  %v3778_v25 = vpack.c.bf16 %v1883_v15, %v1881_v2  ;;  %v3779_v26 = vpack.c.bf16 %v1882_v14, %v1880_v1 }
 0x2fc   : >> { %v1765_v20 = vsel %vm764_vm6, %v1755_v19, %v1757_v18  ;;  %v1781_v21 = vsel %vm764_vm6, %v1757_v18, %v1755_v19 }
 0x2fd   : >> { %v1798_v22 = vmul.f32 %v1787_v16, %v1765_v20  ;;  %v1799_v23 = vmul.f32 %v1791_v17, %v1781_v21  ;;  %2503 = vmatprep.subr.bf16.mxu0 %v3778_v25 }
 0x2fe   : >> { %2504 = vmatpush2.bf16.msra.mxu0 %v3779_v26 }
 0x2ff   : >> { %v1761_v29 = vpop.permute.xlu1 %1760  ;;  %v1759_v30 = vpop.permute.xlu0 %1758 }
 0x300   : >> { %v1766_v27 = vsel %vm764_vm6, %v1759_v30, %v1761_v29  ;;  %v1782_v28 = vsel %vm764_vm6, %v1761_v29, %v1759_v30 }
 0x301   : >> { %v1800_v31 = vmul.f32 %v1787_v16, %v1766_v27  ;;  %v1801_v32 = vmul.f32 %v1791_v17, %v1782_v28 }
 0x303   : >> { %v1749_v35 = vpop.permute.xlu1 %1748  ;;  %v1747_v36 = vpop.permute.xlu0 %1746  ;;  %v3780_v40 = vpack.c.bf16 %v1801_v32, %v1799_v23  ;;  %v3781_v41 = vpack.c.bf16 %v1800_v31, %v1798_v22  ;;  %v3332_v22 = vld [vmem:[%s4735_s9 + $0x10] ss:$8 sm:$0x3] }
 0x304   : >> { %v1763_v37 = vsel %vm764_vm6, %v1747_v36, %v1749_v35  ;;  %v1779_v33 = vsel %vm764_vm6, %v1749_v35, %v1747_v36  ;;  %v1959_v28 = vrot.slane %v3332_v22, %v4042_v54  ;;  %v1963_v31 = vrot.slane %v3332_v22, %v4045_v55  ;;  %v3627_v22 = vld [vmem:[%s4728_s2 + $0xb0] ss:$12 sps:$4 sm:$0xff]  }
 0x305   : >> { %v1794_v38 = vmul.f32 %v1787_v16, %v1763_v37  ;;  %v1795_v39 = vmul.f32 %v1791_v17, %v1779_v33  ;;  %2505 = vmatprep.subr.bf16.mxu0 %v3780_v40 }
 0x306   : >> { %2506 = vmatpush2.bf16.msra.mxu0 %v3781_v41 }
 0x307   : >> { %v1753_v43 = vpop.permute.xlu1 %1752  ;;  %v1751_v44 = vpop.permute.xlu0 %1750 }
 0x308   : >> { %v1764_v45 = vsel %vm764_vm6, %v1751_v44, %v1753_v43  ;;  %v1780_v46 = vsel %vm764_vm6, %v1753_v43, %v1751_v44 }
 0x309   : >> { %v1796_v56 = vmul.f32 %v1787_v16, %v1764_v45  ;;  %v1797_v58 = vmul.f32 %v1791_v17, %v1780_v46 }
 0x30b   : >> { %v1671_v61 = vpop.permute.xlu1 %1670  ;;  %v1669_v62 = vpop.permute.xlu0 %1668  ;;  %v3782_v2 = vpack.c.bf16 %v1797_v58, %v1795_v39  ;;  %v3783_v4 = vpack.c.bf16 %v1796_v56, %v1794_v38 }
 0x30c   : >> { %v1679_v52 = vsel %vm729_vm4, %v1669_v62, %v1671_v61  ;;  %v1695_v63 = vsel %vm729_vm4, %v1671_v61, %v1669_v62 }
 0x30d   : >> { %v1712_v0 = vmul.f32 %v1701_v59, %v1679_v52  ;;  %v1713_v1 = vmul.f32 %v1705_v60, %v1695_v63  ;;  %2507 = vmatprep.subr.bf16.mxu0 %v3782_v2  ;;  %v3606_v2 = vld [vmem:[%s4728_s2 + $0x30] ss:$12 sps:$4 sm:$0xff]  }
 0x30e   : >> { %2508 = vmatpush2.bf16.msra.mxu0 %v3783_v4  ;;  %v3608_v4 = vld [vmem:[%s4728_s2 + $0x4c] ss:$12 sps:$4 sm:$0xff]  }
 0x30f   : >> { %v1675_v7 = vpop.permute.xlu1 %1674  ;;  %v1673_v10 = vpop.permute.xlu0 %1672 }
 0x310   : >> { %v1680_v57 = vsel %vm729_vm4, %v1673_v10, %v1675_v7  ;;  %v1696_v11 = vsel %vm729_vm4, %v1675_v7, %v1673_v10  ;;  %v3607_v7 = vld [vmem:[%s4728_s2 + $0x38] ss:$12 sps:$4 sm:$0xff]   ;;  %v3610_v10 = vld [vmem:[%s4728_s2 + $0x48] ss:$12 sps:$4 sm:$0xff]  }
 0x311   : >> { %v1714_v12 = vmul.f32 %v1701_v59, %v1680_v57  ;;  %v1715_v13 = vmul.f32 %v1705_v60, %v1696_v11  ;;  %v3612_v57 = vld [vmem:[%s4728_s2 + $0x64] ss:$12 sps:$4 sm:$0xff]  }
 0x312   : >> { %v3611_v11 = vld [vmem:[%s4728_s2 + $0x50] ss:$12 sps:$4 sm:$0xff]  }
 0x313   : >> { %v1663_v14 = vpop.permute.xlu1 %1662  ;;  %v1661_v15 = vpop.permute.xlu0 %1660  ;;  %v3784_v20 = vpack.c.bf16 %v1715_v13, %v1713_v1  ;;  %v3785_v21 = vpack.c.bf16 %v1714_v12, %v1712_v0  ;;  %v3599_v1 = vld [vmem:[%s4728_s2 + $0x8] ss:$12 sps:$4 sm:$0xff]   ;;  %v3614_v12 = vld [vmem:[%s4728_s2 + $0x60] ss:$12 sps:$4 sm:$0xff]  }
 0x314   : >> { %v1677_v16 = vsel %vm729_vm4, %v1661_v15, %v1663_v14  ;;  %v1693_v17 = vsel %vm729_vm4, %v1663_v14, %v1661_v15  ;;  %v3616_v13 = vld [vmem:[%s4728_s2 + $0x7c] ss:$12 sps:$4 sm:$0xff]   ;;  %v3618_v15 = vld [vmem:[%s4728_s2 + $0x78] ss:$12 sps:$4 sm:$0xff]  }
 0x315   : >> { %v1708_v18 = vmul.f32 %v1701_v59, %v1677_v16  ;;  %v1709_v19 = vmul.f32 %v1705_v60, %v1693_v17  ;;  %2509 = vmatprep.subr.bf16.mxu0 %v3784_v20  ;;  %v3615_v14 = vld [vmem:[%s4728_s2 + $0x68] ss:$12 sps:$4 sm:$0xff]   ;;  %v3619_v17 = vld [vmem:[%s4728_s2 + $0x80] ss:$12 sps:$4 sm:$0xff]   ;;  %v3623_v20 = vld [vmem:[%s4728_s2 + $0x98] ss:$12 sps:$4 sm:$0xff]  }
 0x316   : >> { %2510 = vmatpush2.bf16.msra.mxu0 %v3785_v21  ;;  %v3620_v16 = vld [vmem:[%s4728_s2 + $0x94] ss:$12 sps:$4 sm:$0xff]  }
 0x317   : >> { %v1667_v23 = vpop.permute.xlu1 %1666  ;;  %v1665_v25 = vpop.permute.xlu0 %1664  ;;  %v3626_v21 = vld [vmem:[%s4728_s2 + $0xa8] ss:$12 sps:$4 sm:$0xff]  }
 0x318   : >> { %v1678_v26 = vsel %vm729_vm4, %v1665_v25, %v1667_v23  ;;  %v1694_v29 = vsel %vm729_vm4, %v1667_v23, %v1665_v25 }
 0x319   : >> { %v1710_v30 = vmul.f32 %v1701_v59, %v1678_v26  ;;  %v1711_v27 = vmul.f32 %v1705_v60, %v1694_v29 }
 0x31b   : >> { %v1929_v32 = vpop.permute.xlu1 %1928  ;;  %v1927_v35 = vpop.permute.xlu0 %1926  ;;  %v3786_v39 = vpack.c.bf16 %v1711_v27, %v1709_v19  ;;  %v3787_v40 = vpack.c.bf16 %v1710_v30, %v1708_v18  ;;  %v3622_v18 = vld [vmem:[%s4728_s2 + $0x90] ss:$12 sps:$4 sm:$0xff]   ;;  %v3624_v19 = vld [vmem:[%s4728_s2 + $0xac] ss:$12 sps:$4 sm:$0xff]   ;;  %v2751_v27 = vld [vmem:[%s4730_s4] sm:$0xff] }
 0x31c   : >> { %v1937_v36 = vsel %vm833_vm2, %v1927_v35, %v1929_v32  ;;  %v1953_v37 = vsel %vm833_vm2, %v1929_v32, %v1927_v35  ;;  %v4483_v30 = vld [vmem:[#allocation6 + $0x28] sm:$0xff]  ;;  %v4491_v32 = vld [vmem:[#allocation6 + $0x10] sm:$0xff] }
 0x31d   : >> { %v1970_v33 = vmul.f32 %v1959_v28, %v1937_v36  ;;  %v1971_v38 = vmul.f32 %v1963_v31, %v1953_v37  ;;  %2511 = vmatprep.subr.bf16.mxu0 %v3786_v39  ;;  %v2752_v35 = vld [vmem:[%s4730_s4 + $0x8] sm:$0xff]  ;;  %v2759_v37 = vmul.f32 %v2751_v27, %v4483_v30 }
 0x31e   : >> { %2512 = vmatpush2.bf16.msra.mxu0 %v3787_v40  ;;  %v4498_v40 = vld [vmem:[#allocation6 + $0x18] sm:$0xff] }
 0x31f   : >> { %v1933_v41 = vpop.permute.xlu1 %1932  ;;  %v1931_v42 = vpop.permute.xlu0 %1930  ;;  %2513 = vmatprep.subr.bf16.mxu0 %v3756_v5  ;;  %v3596_v5 = vld [vmem:[%s4728_s2] ss:$12 sps:$4 sm:$0xff]  }
 0x320   : >> { %v1938_v43 = vsel %vm833_vm2, %v1931_v42, %v1933_v41  ;;  %v1954_v44 = vsel %vm833_vm2, %v1933_v41, %v1931_v42  ;;  %v2753_v41 = vld [vmem:[%s4730_s4 + $0x10] sm:$0xff] }
 0x321   : >> { %v1972_v45 = vmul.f32 %v1959_v28, %v1938_v43  ;;  %v1973_v46 = vmul.f32 %v1963_v31, %v1954_v44  ;;  %v2760_v44 = vmul.f32 %v2752_v35, %v4491_v32 }
 0x322   : >> { %2514 = vmatpush2.bf16.msra.mxu0 %v3757_v6 }
 0x323   : >> { %v1921_v56 = vpop.permute.xlu1 %1920  ;;  %v1919_v58 = vpop.permute.xlu0 %1918  ;;  %v3788_v52 = vpack.c.bf16 %v1973_v46, %v1971_v38  ;;  %v3789_v63 = vpack.c.bf16 %v1972_v45, %v1970_v33  ;;  %2515 = vmatprep.subr.bf16.mxu0 %v3758_v8  ;;  %v2006_v33 = vld [vmem:[%s4488_s26 + $0x8] sm:$0xff]  ;;  %v4504_v45 = vld [vmem:[#allocation6 + $0x38] sm:$0xff] }
 0x324   : >> { %v1935_v59 = vsel %vm833_vm2, %v1919_v58, %v1921_v56  ;;  %v1951_v60 = vsel %vm833_vm2, %v1921_v56, %v1919_v58  ;;  %v2754_v46 = vld [vmem:[%s4730_s4 + $0x18] sm:$0xff]  ;;  %v2007_v56 = vld [vmem:[%s4488_s26 + $0x10] sm:$0xff] }
 0x325   : >> { %v1966_v61 = vmul.f32 %v1959_v28, %v1935_v59  ;;  %v1967_v62 = vmul.f32 %v1963_v31, %v1951_v60  ;;  %2610 = vmatprep.subr.bf16.mxu1 %v3788_v52  ;;  %v2761_v52 = vmul.f32 %v2753_v41, %v4498_v40 }
 0x326   : >> { %2611 = vmatpush1.bf16.msra.mxu1 %v3789_v63  ;;  %2516 = vmatpush2.bf16.msra.mxu0 %v3759_v9  ;;  %v3603_v9 = vld [vmem:[%s4728_s2 + $0x20] ss:$12 sps:$4 sm:$0xff]   ;;  %v2008_v63 = vld [vmem:[%s4488_s26 + $0x18] sm:$0xff] }
 0x327   : >> { %v1925_v34 = vpop.permute.xlu1 %1924  ;;  %v1923_v3 = vpop.permute.xlu0 %1922 }
 0x328   : >> { %v1936_v0 = vsel %vm833_vm2, %v1923_v3, %v1925_v34  ;;  %v1952_v47 = vsel %vm833_vm2, %v1925_v34, %v1923_v3  ;;  %v2762_v3 = vmul.f32 %v2754_v46, %v4504_v45 }
 0x329   : >> { %v1968_v49 = vmul.f32 %v1959_v28, %v1936_v0  ;;  %v1969_v50 = vmul.f32 %v1963_v31, %v1952_v47  ;;  %2518 = vmatmul.mubr.bf16.vlgmr.msra.gmra.mxu0 %v3596_v5  ;;  %v4513_v0 = vld [vmem:[#allocation6 + $0x8] sm:$0xff] }
 0x32a   : >> { %2527 = vmatprep.mubr.bf16.mxu0 %v3600_v48 }
 0x32b   : >> { %v3790_v6 = vpack.c.bf16 %v1969_v50, %v1967_v62  ;;  %v3791_v8 = vpack.c.bf16 %v1968_v49, %v1966_v61 }
 0x32d   : >> { %2612 = vmatprep.subr.bf16.mxu1 %v3790_v6  ;;  %v2755_v6 = vld [vmem:[%s4730_s4 + $0x20] sm:$0xff] }
 0x32e   : >> { %2613 = vmatpush1.bf16.msra.mxu1 %v3791_v8  ;;  %v4518_v8 = vld [vmem:[#allocation6 + $0x30] sm:$0xff] }
 0x331   : >> { %2631 = vmatmul.mubr.bf16.vlgmr.msra.gmra.mxu1 %v3599_v1  ;;  %2528 = vmatmul.mubr.bf16.gmra.mxu0 %v3602_v51  ;;  %v2756_v1 = vld [vmem:[%s4730_s4 + $0x28] sm:$0xff] }
 0x332   : >> { %2640 = vmatprep.mubr.bf16.mxu1 %v3836_v24  ;;  %2537 = vmatprep.mubr.bf16.mxu0 %v3604_v53 }
 0x339   : >> { %2641 = vmatmul.mubr.bf16.gmra.mxu1 %v3603_v9  ;;  %2538 = vmatmul.mubr.bf16.gmra.mxu0 %v3606_v2 }
 0x33a   : >> { %2650 = vmatprep.mubr.bf16.mxu1 %v3836_v24  ;;  %2547 = vmatprep.mubr.bf16.mxu0 %v3608_v4 }
 0x341   : >> { %2651 = vmatmul.mubr.bf16.gmra.mxu1 %v3607_v7  ;;  %2548 = vmatmul.mubr.bf16.gmra.mxu0 %v3610_v10  ;;  %v2009_v7 = vld [vmem:[%s4488_s26 + $0x20] sm:$0xff] }
 0x342   : >> { %2660 = vmatprep.mubr.bf16.mxu1 %v3836_v24  ;;  %2557 = vmatprep.mubr.bf16.mxu0 %v3612_v57  ;;  %v4524_v10 = vld [vmem:[#allocation6] sm:$0xff]  ;;  %v2757_v57 = vld [vmem:[%s4730_s4 + $0x30] sm:$0xff] }
 0x349   : >> { %2661 = vmatmul.mubr.bf16.gmra.mxu1 %v3611_v11  ;;  %2558 = vmatmul.mubr.bf16.gmra.mxu0 %v3614_v12  ;;  %v2763_v12 = vmul.f32 %v2755_v6, %v4513_v0 }
 0x34a   : >> { %2670 = vmatprep.mubr.bf16.mxu1 %v3836_v24  ;;  %2567 = vmatprep.mubr.bf16.mxu0 %v3616_v13  ;;  %v2010_v13 = vld [vmem:[%s4488_s26 + $0x28] sm:$0xff] }
 0x351   : >> { %2671 = vmatmul.mubr.bf16.gmra.mxu1 %v3615_v14  ;;  %2568 = vmatmul.mubr.bf16.gmra.mxu0 %v3618_v15  ;;  %v2764_v15 = vmul.f32 %v2756_v1, %v4518_v8  ;;  %v2015_v1 = vld [vmem:[%s4488_s26 + $0x50] sm:$0xff] }
 0x352   : >> { %2680 = vmatprep.mubr.bf16.mxu1 %v3836_v24  ;;  %2577 = vmatprep.mubr.bf16.mxu0 %v3620_v16 }
 0x359   : >> { %2681 = vmatmul.mubr.bf16.gmra.mxu1 %v3619_v17  ;;  %2578 = vmatmul.mubr.bf16.gmra.mxu0 %v3622_v18 }
 0x35a   : >> { %2690 = vmatprep.mubr.bf16.mxu1 %v3836_v24  ;;  %2587 = vmatprep.mubr.bf16.mxu0 %v3624_v19 }
 0x361   : >> { %2691 = vmatmul.mubr.bf16.gmra.mxu1 %v3623_v20  ;;  %2588 = vmatmul.mubr.bf16.gmra.mxu0 %v3626_v21  ;;  %v4532_v20 = vld [vmem:[#allocation6 + $0x20] sm:$0xff]  ;;  %v2758_v21 = vld [vmem:[%s4730_s4 + $0x38] sm:$0xff] }
 0x362   : >> { %2700 = vmatprep.mubr.bf16.mxu1 %v3836_v24  ;;  %v2005_v24 = vld [vmem:[%s4488_s26] sm:$0xff] }
 0x369   : >> { %2701 = vmatmul.mubr.bf16.gmra.mxu1 %v3627_v22 }
 0x3e9   : >> { %v2519_v23 = vpop.f32.mrf.mxu0 }
 0x3eb   : >> { %v2521_v25 = vpop.f32.mrf.mxu0 }
 0x3ed   : >> { %v2523_v26 = vpop.f32.mrf.mxu0 }
 0x3ef   : >> { %v2525_v29 = vpop.f32.mrf.mxu0 }
 0x3f1   : >> { %v2632_v28 = vpop.f32.mrf.mxu1  ;;  %v2529_v31 = vpop.f32.mrf.mxu0 }
 0x3f2   : >> { %v2633_v36 = vadd.f32 %v2632_v28, %v2519_v23  ;;  %v2011_v23 = vld [vmem:[%s4488_s26 + $0x30] sm:$0xff] }
 0x3f3   : >> { %v2634_v38 = vpop.f32.mrf.mxu1  ;;  %v2531_v39 = vpop.f32.mrf.mxu0 }
 0x3f4   : >> { %v2711_v42 = vadd.f32 %v2633_v36, %v2005_v24  ;;  %v2635_v43 = vadd.f32 %v2634_v38, %v2521_v25  ;;  %v2012_v36 = vld [vmem:[%s4488_s26 + $0x38] sm:$0xff] }
 0x3f5   : >> { %v2636_v58 = vpop.f32.mrf.mxu1  ;;  %v2533_v59 = vpop.f32.mrf.mxu0 }
 0x3f6   : >> { %v2767_v60 = vadd.f32 %v2759_v37, %v2711_v42  ;;  %v2712_v61 = vadd.f32 %v2635_v43, %v2006_v33  ;;  %v2637_v62 = vadd.f32 %v2636_v58, %v2523_v26  ;;  %v2765_v26 = vmul.f32 %v2757_v57, %v4524_v10  ;;  %v2826_v57 = vld [vmem:[%s4731_s5 + $0x18] sm:$0xff] }
 0x3f7   : >> { %v2638_v34 = vpop.f32.mrf.mxu1  ;;  %v2535_v5 = vpop.f32.mrf.mxu0  ;;  %v2766_v33 = vmul.f32 %v2758_v21, %v4532_v20  ;;  %v2828_v21 = vld [vmem:[%s4731_s5 + $0x28] sm:$0xff] }
 0x3f8   : >> { %v3411_v47 = vmul.f32 -1.442695, %v2767_v60  ;;  %v2768_v48 = vadd.f32 %v2760_v44, %v2712_v61  ;;  %v2713_v49 = vadd.f32 %v2637_v62, %v2007_v56  ;;  %v2639_v50 = vadd.f32 %v2638_v34, %v2525_v29  ;;  %v2013_v44 = vld [vmem:[%s4488_s26 + $0x40] sm:$0xff] }
 0x3f9   : >> { %v2642_v51 = vpop.f32.mrf.mxu1  ;;  %v2539_v53 = vpop.f32.mrf.mxu0 }
 0x3fa   : >> { %3628 = vpow2.f32 %v3411_v47  ;;  %v3412_v9 = vmul.f32 -1.442695, %v2768_v48  ;;  %v2769_v2 = vadd.f32 %v2761_v52, %v2713_v49  ;;  %v2714_v4 = vadd.f32 %v2639_v50, %v2008_v63  ;;  %v2824_v52 = vld [vmem:[%s4731_s5 + $0x8] sm:$0xff]  ;;  %v2825_v63 = vld [vmem:[%s4731_s5 + $0x10] sm:$0xff] }
 0x3fb   : >> { %v2643_v11 = vadd.f32 %v2642_v51, %v2529_v31  ;;  %v2644_v14 = vpop.f32.mrf.mxu1  ;;  %v2541_v16 = vpop.f32.mrf.mxu0  ;;  %v2823_v31 = vld [vmem:[%s4731_s5] sm:$0xff]  ;;  %v2014_v49 = vld [vmem:[%s4488_s26 + $0x48] sm:$0xff]  ;;  %v2832_v6 = vmul.f32 %v2824_v52, %v4491_v32  ;;  %v2019_v52 = vld [vmem:[%s4488_s26 + $0x70] sm:$0xff] }
 0x3fc   : >> { %3630 = vpow2.f32 %v3412_v9  ;;  %v3413_v17 = vmul.f32 -1.442695, %v2769_v2  ;;  %v2770_v18 = vadd.f32 %v2762_v3, %v2714_v4  ;;  %v2645_v19 = vadd.f32 %v2644_v14, %v2531_v39 }
 0x3fd   : >> { %v2715_v22 = vadd.f32 %v2643_v11, %v2009_v7  ;;  %v2646_v25 = vpop.f32.mrf.mxu1  ;;  %v2543_v29 = vpop.f32.mrf.mxu0  ;;  %v2831_v56 = vmul.f32 %v2823_v31, %v4483_v30  ;;  %v2827_v11 = vld [vmem:[%s4731_s5 + $0x20] sm:$0xff] }
 0x3fe   : >> { %3632 = vpow2.f32 %v3413_v17  ;;  %v3414_v27 = vmul.f32 -1.442695, %v2770_v18  ;;  %v2716_v24 = vadd.f32 %v2645_v19, %v2010_v13  ;;  %v2647_v28 = vadd.f32 %v2646_v25, %v2533_v59  ;;  %v2016_v19 = vld [vmem:[%s4488_s26 + $0x58] sm:$0xff] }
 0x3ff   : >> { %v2771_v35 = vadd.f32 %v2763_v12, %v2715_v22  ;;  %v2648_v37 = vpop.f32.mrf.mxu1  ;;  %v2545_v38 = vpop.f32.mrf.mxu0 }
 0x400   : >> { %3634 = vpow2.f32 %v3414_v27  ;;  %v2772_v39 = vadd.f32 %v2764_v15, %v2716_v24  ;;  %v2717_v41 = vadd.f32 %v2647_v28, %v2011_v23  ;;  %v2649_v42 = vadd.f32 %v2648_v37, %v2535_v5  ;;  %v2829_v37 = vld [vmem:[%s4731_s5 + $0x30] sm:$0xff] }
 0x401   : >> { %v3415_v43 = vmul.f32 -1.442695, %v2771_v35  ;;  %v2652_v46 = vpop.f32.mrf.mxu1  ;;  %v2549_v58 = vpop.f32.mrf.mxu0  ;;  %v2835_v24 = vmul.f32 %v2827_v11, %v4513_v0 }
 0x402   : >> { %v3416_v59 = vmul.f32 -1.442695, %v2772_v39  ;;  %v2773_v60 = vadd.f32 %v2765_v26, %v2717_v41  ;;  %v2718_v61 = vadd.f32 %v2649_v42, %v2012_v36  ;;  %v2653_v62 = vadd.f32 %v2652_v46, %v2539_v53 }
 0x403   : >> { %3636 = vpow2.f32 %v3415_v43  ;;  %v2654_v34 = vpop.f32.mrf.mxu1  ;;  %v2551_v3 = vpop.f32.mrf.mxu0  ;;  %v2833_v53 = vmul.f32 %v2825_v63, %v4498_v40  ;;  %v2834_v26 = vmul.f32 %v2826_v57, %v4504_v45  ;;  %v2836_v42 = vmul.f32 %v2828_v21, %v4518_v8 }
 0x404   : >> { %3638 = vpow2.f32 %v3416_v59  ;;  %v3417_v5 = vmul.f32 -1.442695, %v2773_v60  ;;  %v2774_v47 = vadd.f32 %v2766_v33, %v2718_v61  ;;  %v2719_v48 = vadd.f32 %v2653_v62, %v2013_v44  ;;  %v2018_v59 = vld [vmem:[%s4488_s26 + $0x68] sm:$0xff] }
 0x405   : >> { %v2655_v50 = vadd.f32 %v2654_v34, %v2541_v16  ;;  %v2656_v51 = vpop.f32.mrf.mxu1  ;;  %v2553_v9 = vpop.f32.mrf.mxu0  ;;  %v2837_v34 = vmul.f32 %v2829_v37, %v4524_v10 }
 0x406   : >> { %3640 = vpow2.f32 %v3417_v5  ;;  %v3418_v2 = vmul.f32 -1.442695, %v2774_v47  ;;  %v2839_v4 = vadd.f32 %v2831_v56, %v2719_v48  ;;  %v2657_v7 = vadd.f32 %v2656_v51, %v2543_v29  ;;  %v2017_v29 = vld [vmem:[%s4488_s26 + $0x60] sm:$0xff] }
 0x407   : >> { %v3629_v12 = vpop.eup %3628  ;;  %v2720_v13 = vadd.f32 %v2655_v50, %v2014_v49  ;;  %v2658_v14 = vpop.f32.mrf.mxu1 }
 0x408   : >> { %v2555_v15 = vpop.f32.mrf.mxu0  ;;  %v2799_v16 = vadd.f32 1.0, %v3629_v12  ;;  %3642 = vpow2.f32 %v3418_v2  ;;  %v3419_v17 = vmul.f32 -1.442695, %v2839_v4  ;;  %v2721_v18 = vadd.f32 %v2657_v7, %v2015_v1  ;;  %v2020_v1 = vld [vmem:[%s4488_s26 + $0x78] sm:$0xff] }
 0x409   : >> { %v3631_v22 = vpop.eup %3630  ;;  %v2840_v23 = vadd.f32 %v2832_v6, %v2720_v13  ;;  %v2659_v25 = vadd.f32 %v2658_v14, %v2545_v38  ;;  %v2662_v27 = vpop.f32.mrf.mxu1 }
 0x40a   : >> { %v2559_v28 = vpop.f32.mrf.mxu0  ;;  %3644 = vrcp.f32 %v2799_v16  ;;  %v2800_v31 = vadd.f32 1.0, %v3631_v22  ;;  %v2841_v35 = vadd.f32 %v2833_v53, %v2721_v18  ;;  %v2663_v36 = vadd.f32 %v2662_v27, %v2549_v58  ;;  %v2830_v58 = vld [vmem:[%s4731_s5 + $0x38] sm:$0xff] }
 0x40b   : >> { %v3633_v33 = vpop.eup %3632  ;;  %3646 = vpow2.f32 %v3419_v17  ;;  %v3420_v38 = vmul.f32 -1.442695, %v2840_v23  ;;  %v2722_v39 = vadd.f32 %v2659_v25, %v2016_v19  ;;  %v2664_v41 = vpop.f32.mrf.mxu1  ;;  %v2838_v53 = vmul.f32 %v2830_v58, %v4532_v20  ;;  %v2021_v19 = vld [vmem:[%s4488_s26 + $0x80] sm:$0xff] }
 0x40c   : >> { %v2561_v43 = vpop.f32.mrf.mxu0  ;;  %3648 = vrcp.f32 %v2800_v31  ;;  %v2801_v44 = vadd.f32 1.0, %v3633_v33  ;;  %v3421_v46 = vmul.f32 -1.442695, %v2841_v35  ;;  %v2723_v56 = vadd.f32 %v2663_v36, %v2017_v29  ;;  %v2022_v35 = vld [vmem:[%s4488_s26 + $0x88] sm:$0xff] }
 0x40d   : >> { %v3635_v60 = vpop.eup %3634  ;;  %3650 = vpow2.f32 %v3420_v38  ;;  %v2842_v61 = vadd.f32 %v2834_v26, %v2722_v39  ;;  %v2665_v62 = vadd.f32 %v2664_v41, %v2551_v3  ;;  %v2666_v63 = vpop.f32.mrf.mxu1 }
 0x40e   : >> { %v2563_v5 = vpop.f32.mrf.mxu0  ;;  %3652 = vrcp.f32 %v2801_v44  ;;  %v2802_v47 = vadd.f32 1.0, %v3635_v60  ;;  %v2843_v48 = vadd.f32 %v2835_v24, %v2723_v56  ;;  %v2667_v49 = vadd.f32 %v2666_v63, %v2553_v9 }
 0x40f   : >> { %3654 = vpow2.f32 %v3421_v46  ;;  %v3422_v50 = vmul.f32 -1.442695, %v2842_v61  ;;  %v2724_v6 = vadd.f32 %v2665_v62, %v2018_v59  ;;  %v2668_v51 = vpop.f32.mrf.mxu1  ;;  %v2024_v61 = vld [vmem:[%s4488_s26 + $0x98] sm:$0xff] }
 0x410   : >> { %v2565_v2 = vpop.f32.mrf.mxu0  ;;  %v3637_v4 = vpop.eup %3636  ;;  %3656 = vrcp.f32 %v2802_v47  ;;  %v3423_v3 = vmul.f32 -1.442695, %v2843_v48  ;;  %v2725_v7 = vadd.f32 %v2667_v49, %v2019_v52  ;;  %v2669_v57 = vadd.f32 %v2668_v51, %v2555_v15  ;;  %v2025_v51 = vld [vmem:[%s4488_s26 + $0xa0] sm:$0xff] }
 0x411   : >> { %v3639_v11 = vpop.eup %3638  ;;  %v2803_v12 = vadd.f32 1.0, %v3637_v4  ;;  %3658 = vpow2.f32 %v3422_v50  ;;  %v2844_v13 = vadd.f32 %v2836_v42, %v2724_v6  ;;  %v2672_v14 = vpop.f32.mrf.mxu1  ;;  %v2023_v42 = vld [vmem:[%s4488_s26 + $0x90] sm:$0xff] }
 0x412   : >> { %v2569_v9 = vpop.f32.mrf.mxu0  ;;  %v2804_v16 = vadd.f32 1.0, %v3639_v11  ;;  %3660 = vpow2.f32 %v3423_v3  ;;  %v2845_v17 = vadd.f32 %v2837_v34, %v2725_v7  ;;  %v2726_v18 = vadd.f32 %v2669_v57, %v2020_v1  ;;  %v2026_v3 = vld [vmem:[%s4488_s26 + $0xa8] sm:$0xff] }
 0x413   : >> { %v3641_v21 = vpop.eup %3640  ;;  %3662 = vrcp.f32 %v2803_v12  ;;  %v3424_v22 = vmul.f32 -1.442695, %v2844_v13  ;;  %v2673_v23 = vadd.f32 %v2672_v14, %v2559_v28  ;;  %v2674_v25 = vpop.f32.mrf.mxu1 }
 0x414   : >> { %v2571_v26 = vpop.f32.mrf.mxu0  ;;  %3664 = vrcp.f32 %v2804_v16  ;;  %v2805_v15 = vadd.f32 1.0, %v3641_v21  ;;  %v3425_v29 = vmul.f32 -1.442695, %v2845_v17  ;;  %v2846_v27 = vadd.f32 %v2838_v53, %v2726_v18 }
 0x415   : >> { %v3643_v24 = vpop.eup %3642  ;;  %3666 = vpow2.f32 %v3424_v22  ;;  %v2727_v31 = vadd.f32 %v2673_v23, %v2021_v19  ;;  %v2675_v36 = vadd.f32 %v2674_v25, %v2561_v43  ;;  %v2676_v37 = vpop.f32.mrf.mxu1  ;;  %v2028_v25 = vld [vmem:[%s4488_s26 + $0xb8] sm:$0xff] }
 0x416   : >> { %v2573_v33 = vpop.f32.mrf.mxu0  ;;  %3668 = vrcp.f32 %v2805_v15  ;;  %v2806_v38 = vadd.f32 1.0, %v3643_v24  ;;  %v3426_v39 = vmul.f32 -1.442695, %v2846_v27  ;;  %v2677_v41 = vadd.f32 %v2676_v37, %v2563_v5 }
 0x417   : >> { %v4583_v28 = vpop.eup %3644  ;;  %3670 = vpow2.f32 %v3425_v29  ;;  %v2678_v44 = vpop.f32.mrf.mxu1  ;;  %v2728_v59 = vadd.f32 %v2675_v36, %v2022_v35 }
 0x418   : >> { %v2575_v46 = vpop.f32.mrf.mxu0  ;;  %v3647_v56 = vpop.eup %3646  ;;  %3672 = vrcp.f32 %v2806_v38  ;;  %v2679_v58 = vadd.f32 %v2678_v44, %v2565_v2  ;;  %v2729_v34 = vadd.f32 %v2677_v41, %v2023_v42 }
 0x419   : >> { %v4586_v60 = vpop.eup %3648  ;;  %v2871_v43 = vadd.f32 1.0, %v3647_v56  ;;  %3674 = vpow2.f32 %v3426_v39  ;;  %v2682_v62 = vpop.f32.mrf.mxu1  ;;  %v2029_v56 = vld [vmem:[%s4488_s26 + $0xc0] sm:$0xff] }
 0x41a   : >> { %v2579_v52 = vpop.f32.mrf.mxu0  ;;  %v3651_v63 = vpop.eup %3650  ;;  %3676 = vtanh.f32 %v2727_v31  ;;  %v2683_v48 = vadd.f32 %v2682_v62, %v2569_v9  ;;  %v2730_v1 = vadd.f32 %v2679_v58, %v2024_v61  ;;  %v2027_v9 = vld [vmem:[%s4488_s26 + $0xb0] sm:$0xff] }
 0x41b   : >> { %v4589_v5 = vpop.eup %3652  ;;  %3678 = vrcp.f32 %v2871_v43  ;;  %v2872_v47 = vadd.f32 1.0, %v3651_v63  ;;  %v2684_v49 = vpop.f32.mrf.mxu1 }
 0x41c   : >> { %v4591_v50 = vpop.f32.mrf.mxu0  ;;  %v3655_v6 = vpop.eup %3654  ;;  %3680 = vtanh.f32 %v2728_v59  ;;  %v2685_v53 = vadd.f32 %v2684_v49, %v2571_v26  ;;  %v2731_v14 = vadd.f32 %v2683_v48, %v2025_v51  ;;  %v2030_v51 = vld [vmem:[%s4488_s26 + $0xc8] sm:$0xff] }
 0x41d   : >> { %v4594_v2 = vpop.eup %3656  ;;  %3682 = vrcp.f32 %v2872_v47  ;;  %v2873_v4 = vadd.f32 1.0, %v3655_v6  ;;  %v2686_v7 = vpop.f32.mrf.mxu1 }
 0x41e   : >> { %v3659_v57 = vpop.eup %3658  ;;  %3684 = vtanh.f32 %v2729_v34  ;;  %v2687_v11 = vadd.f32 %v2686_v7, %v2573_v33  ;;  %v2583_v17 = vpop.f32.mrf.mxu0  ;;  %v2732_v21 = vadd.f32 %v2685_v53, %v2026_v3 }
 0x41f   : >> { %v3661_v12 = vpop.eup %3660  ;;  %3686 = vrcp.f32 %v2873_v4  ;;  %v2874_v13 = vadd.f32 1.0, %v3659_v57  ;;  %v2688_v16 = vpop.f32.mrf.mxu1  ;;  %v2928_v57 = vld [vmem:[%s4732_s6 + $0x8] sm:$0xff] }
 0x420   : >> { %v4598_v18 = vpop.eup %3662  ;;  %v2875_v19 = vadd.f32 1.0, %v3661_v12  ;;  %3688 = vtanh.f32 %v2730_v1  ;;  %v2689_v22 = vadd.f32 %v2688_v16, %v2575_v46  ;;  %v2733_v29 = vadd.f32 %v2687_v11, %v2027_v9  ;;  %v2585_v35 = vpop.f32.mrf.mxu0  ;;  %v2031_v11 = vld [vmem:[%s4488_s26 + $0xd0] sm:$0xff]  ;;  %v2032_v16 = vld [vmem:[%s4488_s26 + $0xd8] sm:$0xff] }
 0x421   : >> { %v4600_v23 = vpop.eup %3664  ;;  %3690 = vrcp.f32 %v2874_v13  ;;  %v2692_v26 = vpop.f32.mrf.mxu1 }
 0x422   : >> { %v3667_v15 = vpop.eup %3666  ;;  %3692 = vrcp.f32 %v2875_v19  ;;  %v2734_v37 = vadd.f32 %v2689_v22, %v2028_v25  ;;  %v2693_v42 = vadd.f32 %v2692_v26, %v2579_v52  ;;  %v2589_v58 = vpop.f32.mrf.mxu0  ;;  %v2927_v52 = vld [vmem:[%s4732_s6] sm:$0xff] }
 0x423   : >> { %v4603_v27 = vpop.eup %3668  ;;  %v2876_v24 = vadd.f32 1.0, %v3667_v15  ;;  %3694 = vtanh.f32 %v2731_v14  ;;  %v2694_v31 = vpop.f32.mrf.mxu1  ;;  %v2033_v22 = vld [vmem:[%s4488_s26 + $0xe0] sm:$0xff] }
 0x424   : >> { %v3671_v36 = vpop.eup %3670  ;;  %3696 = vtanh.f32 %v2732_v21  ;;  %v2735_v48 = vadd.f32 %v2693_v42, %v2029_v56  ;;  %v2695_v49 = vadd.f32 %v2694_v31, %v4591_v50  ;;  %v2591_v4 = vpop.f32.mrf.mxu0  ;;  %v2929_v21 = vld [vmem:[%s4732_s6 + $0x10] sm:$0xff] }
 0x425   : >> { %v4605_v33 = vpop.eup %3672  ;;  %3698 = vrcp.f32 %v2876_v24  ;;  %v2877_v38 = vadd.f32 1.0, %v3671_v36  ;;  %v2696_v39 = vpop.f32.mrf.mxu1 }
 0x426   : >> { %v3675_v41 = vpop.eup %3674  ;;  %3700 = vtanh.f32 %v2733_v29  ;;  %v2736_v19 = vadd.f32 %v2695_v49, %v2030_v51 }
 0x427   : >> { %v3677_v44 = vpop.eup %3676  ;;  %3702 = vrcp.f32 %v2877_v38  ;;  %v2878_v46 = vadd.f32 1.0, %v3675_v41  ;;  %v2698_v59 = vpop.f32.mrf.mxu1 }
 0x428   : >> { %v3679_v43 = vpop.eup %3678  ;;  %3704 = vtanh.f32 %v2734_v37  ;;  %v2911_v63 = vmul.f32 %v3677_v44, %v4583_v28  ;;  %v2697_v28 = vadd.f32 %v2696_v39, %v2583_v17  ;;  %v2699_v50 = vadd.f32 %v2698_v59, %v2585_v35  ;;  %v2930_v59 = vld [vmem:[%s4732_s6 + $0x18] sm:$0xff] }
 0x429   : >> { %v3681_v61 = vpop.eup %3680  ;;  %3706 = vrcp.f32 %v2878_v46  ;;  %v2895_v62 = vmul.f32 %v3679_v43, %v4483_v30  ;;  %v2702_v34 = vpop.f32.mrf.mxu1 }
 0x42a   : >> { %v3683_v47 = vpop.eup %3682  ;;  %v2912_v30 = vmul.f32 %v3681_v61, %v4586_v60  ;;  %v2703_v12 = vadd.f32 %v2702_v34, %v2589_v58  ;;  %v2737_v24 = vadd.f32 %v2697_v28, %v2031_v11  ;;  %v2738_v37 = vadd.f32 %v2699_v50, %v2032_v16  ;;  %v2035_v50 = vld [vmem:[%s4488_s26 + $0xf0] sm:$0xff] }
 0x42b   : >> { %v3685_v6 = vpop.eup %3684  ;;  %v4614_v1 = vadd.f32 %v2911_v63, %v2895_v62  ;;  %v2896_v53 = vmul.f32 %v3683_v47, %v4491_v32  ;;  %v2704_v3 = vpop.f32.mrf.mxu1  ;;  %v2931_v47 = vld [vmem:[%s4732_s6 + $0x20] sm:$0xff] }
 0x42c   : >> { %v3687_v7 = vpop.eup %3686  ;;  %v2913_v9 = vmul.f32 %v3685_v6, %v4589_v5  ;;  %v2705_v25 = vadd.f32 %v2704_v3, %v2591_v4  ;;  %v2593_v5 = vpop.f32.mrf.mxu0  ;;  %v2739_v58 = vadd.f32 %v2703_v12, %v2033_v22  ;;  %v2933_v12 = vld [vmem:[%s4732_s6 + $0x30] sm:$0xff] }
 0x42d   : >> { %v3689_v13 = vpop.eup %3688  ;;  %v2935_v14 = vmul.f32 %v2927_v52, %v4614_v1  ;;  %3015 = vst [vmem:[#allocation6 + $0x28] sm:$0xff] %v4614_v1  ;;  %v4625_v32 = vadd.f32 %v2912_v30, %v2896_v53  ;;  %v2897_v60 = vmul.f32 %v3687_v7, %v4498_v40  ;;  %v2034_v40 = vld [vmem:[%s4488_s26 + $0xe8] sm:$0xff]  ;;  %v2706_v35 = vpop.f32.mrf.mxu1 }
 0x42e   : >> { %v3691_v17 = vpop.eup %3690  ;;  %v2914_v39 = vmul.f32 %v3689_v13, %v4594_v2  ;;  %v2740_v2 = vadd.f32 %v2705_v25, %v2034_v40  ;;  %v2595_v52 = vpop.f32.mrf.mxu0  ;;  %v2707_v53 = vadd.f32 %v2706_v35, %v2593_v5 }
 0x42f   : >> { %v3693_v26 = vpop.eup %3692  ;;  %v2943_v15 = vadd.f32 %v2935_v14, %v2735_v48  ;;  %v2936_v29 = vmul.f32 %v2928_v57, %v4625_v32  ;;  %3016 = vst [vmem:[#allocation6 + $0x10] sm:$0xff] %v4625_v32  ;;  %v4636_v31 = vadd.f32 %v2913_v9, %v2897_v60  ;;  %v2898_v38 = vmul.f32 %v3691_v17, %v4504_v45  ;;  %v2708_v49 = vpop.f32.mrf.mxu1  ;;  %v2036_v17 = vld [vmem:[%s4488_s26 + $0xf8] sm:$0xff]  ;;  %s3491_s26 = sshll.u32 %s3814_s30, 6  ;;  %s1270_s30 = sadd.s32 1, %s3814_s30  }
 0x430   : >> { %v3695_v36 = vpop.eup %3694  ;;  %v2899_v41 = vmul.f32 %v3693_v26, %v4513_v0  ;;  %v2709_v13 = vadd.f32 %v2708_v49, %v2595_v52  ;;  %v2741_v22 = vadd.f32 %v2707_v53, %v2035_v50  ;;  %s4678_s15 = scalar_lea.vmem %s3929_s13, %s3491_s26  ;;  %v3044_v53 = vld [vmem:[%s3935_s16 + $0x10] sm:$0xff]  ;;  %p1267_p5 = scmp.ge.s32.totalorder %s1270_s30, 8  }
 0x431   : >> { %v3697_v42 = vpop.eup %3696  ;;  %v3427_v44 = vmul.f32 -1.442695, %v2943_v15  ;;  %v2944_v46 = vadd.f32 %v2936_v29, %v2736_v19  ;;  %v2937_v56 = vmul.f32 %v2929_v21, %v4636_v31  ;;  %3017 = vst [vmem:[#allocation6 + $0x18] sm:$0xff] %v4636_v31  ;;  %v4647_v61 = vadd.f32 %v2914_v39, %v2898_v38  ;;  %v2934_v19 = vld [vmem:[%s4732_s6 + $0x38] sm:$0xff] }
 0x432   : >> { %v3699_v43 = vpop.eup %3698  ;;  %v2915_v45 = vmul.f32 %v3695_v36, %v4598_v18  ;;  %v2916_v0 = vmul.f32 %v3697_v42, %v4600_v23  ;;  %v2932_v23 = vld [vmem:[%s4732_s6 + $0x28] sm:$0xff] }
 0x433   : >> { %v3701_v62 = vpop.eup %3700  ;;  %3708 = vpow2.f32 %v3427_v44  ;;  %v3428_v63 = vmul.f32 -1.442695, %v2944_v46  ;;  %v2945_v34 = vadd.f32 %v2937_v56, %v2737_v24  ;;  %v2900_v48 = vmul.f32 %v3699_v43, %v4518_v8  ;;  %3018 = vst [vmem:[#allocation6 + $0x38] sm:$0xff] %v4647_v61 }
 0x434   : >> { %v3703_v6 = vpop.eup %3702  ;;  %v2938_v51 = vmul.f32 %v2930_v59, %v4647_v61  ;;  %v2923_v18 = vadd.f32 %v2915_v45, %v2899_v41  ;;  %v2917_v30 = vmul.f32 %v3701_v62, %v4603_v27  ;;  %v2742_v24 = vadd.f32 %v2709_v13, %v2036_v17  ;;  %v3046_v17 = vld [vmem:[%s3935_s16 + $0x20] sm:$0xff] }
 0x435   : >> { %v3705_v28 = vpop.eup %3704  ;;  %3710 = vpow2.f32 %v3428_v63  ;;  %v3429_v4 = vmul.f32 -1.442695, %v2945_v34  ;;  %v2924_v8 = vadd.f32 %v2916_v0, %v2900_v48  ;;  %v2901_v3 = vmul.f32 %v3703_v6, %v4524_v10  ;;  %v3042_v0 = vld [vmem:[%s3935_s16] sm:$0xff]  ;;  %v3043_v48 = vld [vmem:[%s3935_s16 + $0x8] sm:$0xff] }
 0x436   : >> { %v3707_v7 = vpop.eup %3706  ;;  %v2946_v57 = vadd.f32 %v2938_v51, %v2738_v37  ;;  %v2939_v11 = vmul.f32 %v2931_v47, %v2923_v18  ;;  %3019 = vst [vmem:[#allocation6 + $0x8] sm:$0xff] %v2923_v18  ;;  %v2918_v14 = vmul.f32 %v3705_v28, %v4605_v33  ;;  %v3066_v47 = vld [vmem:[%s3941_s19] sm:$0xff] }
 0x437   : >> { %3712 = vpow2.f32 %v3429_v4  ;;  %v2940_v27 = vmul.f32 %v2932_v23, %v2924_v8  ;;  %3020 = vst [vmem:[#allocation6 + $0x30] sm:$0xff] %v2924_v8  ;;  %v2925_v60 = vadd.f32 %v2917_v30, %v2901_v3  ;;  %v2902_v9 = vmul.f32 %v3707_v7, %v4532_v20  ;;  %v3067_v23 = vld [vmem:[%s3941_s19 + $0x8] sm:$0xff] }
 0x438   : >> { %v3430_v10 = vmul.f32 -1.442695, %v2946_v57  ;;  %v2947_v16 = vadd.f32 %v2939_v11, %v2739_v58  ;;  %v3068_v57 = vld [vmem:[%s3941_s19 + $0x10] sm:$0xff] }
 0x439   : >> { %v2948_v21 = vadd.f32 %v2940_v27, %v2740_v2  ;;  %v2941_v25 = vmul.f32 %v2933_v12, %v2925_v60  ;;  %3021 = vst [vmem:[#allocation6] sm:$0xff] %v2925_v60  ;;  %v2926_v26 = vadd.f32 %v2918_v14, %v2902_v9  ;;  %v3045_v14 = vld [vmem:[%s3935_s16 + $0x18] sm:$0xff] }
 0x43a   : >> { %3714 = vpow2.f32 %v3430_v10  ;;  %v3431_v33 = vmul.f32 -1.442695, %v2947_v16  ;;  %v3069_v16 = vld [vmem:[%s3941_s19 + $0x18] sm:$0xff] }
 0x43b   : >> { %v3432_v15 = vmul.f32 -1.442695, %v2948_v21  ;;  %v2949_v29 = vadd.f32 %v2941_v25, %v2741_v22  ;;  %v2942_v40 = vmul.f32 %v2934_v19, %v2926_v26  ;;  %3022 = vst [vmem:[#allocation6 + $0x20] sm:$0xff] %v2926_v26 }
 0x43c   : >> { %3716 = vpow2.f32 %v3431_v33 }
 0x43d   : >> { %3718 = vpow2.f32 %v3432_v15  ;;  %v3433_v20 = vmul.f32 -1.442695, %v2949_v29  ;;  %v2950_v5 = vadd.f32 %v2942_v40, %v2742_v24  ;;  %v3070_v15 = vld [vmem:[%s3941_s19 + $0x20] sm:$0xff] }
 0x43f   : >> { %3720 = vpow2.f32 %v3433_v20  ;;  %v3434_v35 = vmul.f32 -1.442695, %v2950_v5 }
 0x440   : >> { %v3709_v36 = vpop.eup %3708 }
 0x441   : >> { %v2975_v37 = vadd.f32 1.0, %v3709_v36  ;;  %3722 = vpow2.f32 %v3434_v35  ;;  %v3071_v35 = vld [vmem:[%s3941_s19 + $0x28] sm:$0xff]  ;;  %v3048_v36 = vld [vmem:[%s3935_s16 + $0x30] sm:$0xff] }
 0x442   : >> { %v3711_v38 = vpop.eup %3710  ;;  %3724 = vtanh.f32 %v4614_v1 }
 0x443   : >> { %3726 = vrcp.f32 %v2975_v37  ;;  %v2976_v39 = vadd.f32 1.0, %v3711_v38 }
 0x444   : >> { %v3713_v41 = vpop.eup %3712  ;;  %3728 = vtanh.f32 %v4625_v32 }
 0x445   : >> { %3730 = vrcp.f32 %v2976_v39  ;;  %v2977_v42 = vadd.f32 1.0, %v3713_v41 }
 0x446   : >> { %3732 = vtanh.f32 %v4636_v31 }
 0x447   : >> { %v3715_v44 = vpop.eup %3714  ;;  %3734 = vrcp.f32 %v2977_v42 }
 0x448   : >> { %v2978_v46 = vadd.f32 1.0, %v3715_v44  ;;  %3736 = vtanh.f32 %v4647_v61 }
 0x449   : >> { %v3717_v56 = vpop.eup %3716  ;;  %3738 = vtanh.f32 %v2923_v18 }
 0x44a   : >> { %v3719_v59 = vpop.eup %3718  ;;  %3740 = vrcp.f32 %v2978_v46  ;;  %v2979_v1 = vadd.f32 1.0, %v3717_v56  ;;  %v3072_v46 = vld [vmem:[%s3941_s19 + $0x30] sm:$0xff]  ;;  %v3049_v56 = vld [vmem:[%s3935_s16 + $0x38] sm:$0xff] }
 0x44b   : >> { %v2980_v58 = vadd.f32 1.0, %v3719_v59  ;;  %3742 = vtanh.f32 %v2924_v8 }
 0x44c   : >> { %v3721_v32 = vpop.eup %3720  ;;  %3744 = vrcp.f32 %v2979_v1 }
 0x44d   : >> { %3746 = vrcp.f32 %v2980_v58  ;;  %v2981_v31 = vadd.f32 1.0, %v3721_v32 }
 0x44e   : >> { %v3723_v43 = vpop.eup %3722  ;;  %3748 = vtanh.f32 %v2925_v60 }
 0x44f   : >> { %v3725_v45 = vpop.eup %3724  ;;  %3750 = vrcp.f32 %v2981_v31  ;;  %v2982_v61 = vadd.f32 1.0, %v3723_v43  ;;  %v3073_v31 = vld [vmem:[%s3941_s19 + $0x38] sm:$0xff] }
 0x450   : >> { %v3727_v2 = vpop.eup %3726  ;;  %3752 = vtanh.f32 %v2926_v26  ;;  %v3047_v26 = vld [vmem:[%s3935_s16 + $0x28] sm:$0xff] }
 0x451   : >> { %v3729_v62 = vpop.eup %3728  ;;  %v3007_v63 = vmul.f32 %v3727_v2, %v3725_v45  ;;  %3754 = vrcp.f32 %v2982_v61 }
 0x452   : >> { %v3731_v34 = vpop.eup %3730 }
 0x453   : >> { %v3733_v52 = vpop.eup %3732  ;;  %3023 = vst [vmem:[#allocation5 + $0x28] sm:$0xff] %v3007_v63  ;;  %3034 = vst [vmem:[%s4678_s15] sm:$0xff] %v3007_v63  ;;  %v3050_v49 = vadd.f32 %v3042_v0, %v3007_v63  ;;  %v3074_v6 = vmul.f32 %v3007_v63, %v3007_v63  ;;  %v3008_v51 = vmul.f32 %v3731_v34, %v3729_v62 }
 0x454   : >> { %v3735_v18 = vpop.eup %3734 }
 0x455   : >> { %v3737_v30 = vpop.eup %3736  ;;  %3058 = vst [vmem:[%s3935_s16] sm:$0xff] %v3050_v49  ;;  %v3082_v28 = vadd.f32 %v3074_v6, %v3066_v47  ;;  %3024 = vst [vmem:[#allocation5 + $0x10] sm:$0xff] %v3008_v51  ;;  %v3051_v4 = vadd.f32 %v3043_v48, %v3008_v51  ;;  %v3075_v8 = vmul.f32 %v3008_v51, %v3008_v51 }
 0x456   : >> { %3035 = vst [vmem:[%s4678_s15 + $0x8] sm:$0xff] %v3008_v51  ;;  %v3009_v3 = vmul.f32 %v3735_v18, %v3733_v52  ;;  %v3739_v7 = vpop.eup %3738 }
 0x457   : >> { %v3741_v11 = vpop.eup %3740  ;;  %3090 = vst [vmem:[%s3941_s19] sm:$0xff] %v3082_v28  ;;  %3059 = vst [vmem:[%s3935_s16 + $0x8] sm:$0xff] %v3051_v4  ;;  %v3083_v50 = vadd.f32 %v3075_v8, %v3067_v23 }
 0x458   : >> { %3025 = vst [vmem:[#allocation5 + $0x30] sm:$0xff] %v3009_v3  ;;  %3036 = vst [vmem:[%s4678_s15 + $0x10] sm:$0xff] %v3009_v3  ;;  %v3052_v12 = vadd.f32 %v3044_v53, %v3009_v3  ;;  %v3076_v13 = vmul.f32 %v3009_v3, %v3009_v3  ;;  %v3743_v27 = vpop.eup %3742  ;;  %v3010_v60 = vmul.f32 %v3741_v11, %v3737_v30 }
 0x459   : >> { %v3745_v9 = vpop.eup %3744  ;;  %3091 = vst [vmem:[%s3941_s19 + $0x8] sm:$0xff] %v3083_v50 }
 0x45a   : >> { %3060 = vst [vmem:[%s3935_s16 + $0x10] sm:$0xff] %v3052_v12  ;;  %v3084_v10 = vadd.f32 %v3076_v13, %v3068_v57  ;;  %v3747_v19 = vpop.eup %3746  ;;  %3026 = vst [vmem:[#allocation5 + $0x20] sm:$0xff] %v3010_v60  ;;  %v3053_v21 = vadd.f32 %v3045_v14, %v3010_v60  ;;  %v3077_v22 = vmul.f32 %v3010_v60, %v3010_v60 }
 0x45b   : >> { %3037 = vst [vmem:[%s4678_s15 + $0x18] sm:$0xff] %v3010_v60  ;;  %v3011_v25 = vmul.f32 %v3745_v9, %v3739_v7  ;;  %v3749_v33 = vpop.eup %3748  ;;  %v3012_v29 = vmul.f32 %v3747_v19, %v3743_v27 }
 0x45c   : >> { %3092 = vst [vmem:[%s3941_s19 + $0x10] sm:$0xff] %v3084_v10  ;;  %v3751_v24 = vpop.eup %3750  ;;  %3061 = vst [vmem:[%s3935_s16 + $0x18] sm:$0xff] %v3053_v21  ;;  %v3085_v40 = vadd.f32 %v3077_v22, %v3069_v16 }
 0x45d   : >> { %3027 = vst [vmem:[#allocation5 + $0x8] sm:$0xff] %v3011_v25  ;;  %3038 = vst [vmem:[%s4678_s15 + $0x20] sm:$0xff] %v3011_v25  ;;  %v3054_v20 = vadd.f32 %v3046_v17, %v3011_v25  ;;  %v3078_v5 = vmul.f32 %v3011_v25, %v3011_v25  ;;  %v3753_v37 = vpop.eup %3752  ;;  %v3055_v38 = vadd.f32 %v3047_v26, %v3012_v29 }
 0x45e   : >> { %3028 = vst [vmem:[#allocation5 + $0x38] sm:$0xff] %v3012_v29  ;;  %3039 = vst [vmem:[%s4678_s15 + $0x28] sm:$0xff] %v3012_v29  ;;  %v3079_v39 = vmul.f32 %v3012_v29, %v3012_v29  ;;  %v3013_v41 = vmul.f32 %v3751_v24, %v3749_v33  ;;  %v3755_v42 = vpop.eup %3754 }
 0x45f   : >> { %3093 = vst [vmem:[%s3941_s19 + $0x18] sm:$0xff] %v3085_v40  ;;  %3062 = vst [vmem:[%s3935_s16 + $0x20] sm:$0xff] %v3054_v20  ;;  %v3086_v44 = vadd.f32 %v3078_v5, %v3070_v15  ;;  %v3014_v32 = vmul.f32 %v3755_v42, %v3753_v37 }
 0x460   : >> { %3063 = vst [vmem:[%s3935_s16 + $0x28] sm:$0xff] %v3055_v38  ;;  %v3087_v59 = vadd.f32 %v3079_v39, %v3071_v35  ;;  %3029 = vst [vmem:[#allocation5 + $0x18] sm:$0xff] %v3013_v41  ;;  %v3056_v1 = vadd.f32 %v3048_v36, %v3013_v41  ;;  %v3080_v58 = vmul.f32 %v3013_v41, %v3013_v41 }
 0x461   : >> { %3040 = vst [vmem:[%s4678_s15 + $0x30] sm:$0xff] %v3013_v41  ;;  %3094 = vst [vmem:[%s3941_s19 + $0x20] sm:$0xff] %v3086_v44  ;;  %v3057_v45 = vadd.f32 %v3049_v56, %v3014_v32  ;;  %v3081_v61 = vmul.f32 %v3014_v32, %v3014_v32 }
 0x462   : >> { %3095 = vst [vmem:[%s3941_s19 + $0x28] sm:$0xff] %v3087_v59  ;;  %3064 = vst [vmem:[%s3935_s16 + $0x30] sm:$0xff] %v3056_v1  ;;  %v3088_v43 = vadd.f32 %v3080_v58, %v3072_v46 }
 0x463   : >> { %3030 = vst [vmem:[#allocation5] sm:$0xff] %v3014_v32  ;;  %3041 = vst [vmem:[%s4678_s15 + $0x38] sm:$0xff] %v3014_v32  ;;  %v3089_v2 = vadd.f32 %v3081_v61, %v3073_v31 }
 0x464   : >> { %3096 = vst [vmem:[%s3941_s19 + $0x30] sm:$0xff] %v3088_v43  ;;  %3065 = vst [vmem:[%s3935_s16 + $0x38] sm:$0xff] %v3057_v45  ;;  %1269 = sbr.rel (!%p1267_p5) target bundleno = 568 (0x238), region = 157 }
 0x465   : >> { %3097 = vst [vmem:[%s3941_s19 + $0x38] sm:$0xff] %v3089_v2 }
 0x469 PF: > { %s23_s21 = sadd.s32 1, %s3806_s21  }
 0x46a   : > { %p20_p6 = scmp.ge.s32.totalorder %s23_s21, 4  }
 0x46c   :  { %22 = sbr.rel (!%p20_p6) target bundleno = 1 (0x1), region = 168 }

</bundles_post_ra>
